<compile_context>
chip_gen: v5e
topology: v5e:2x2
jax: 0.10.0
libtpu: 0.0.40
codegen_flags: <defaults>
</compile_context>

<pallas_src>
import functools

import jax
import jax.numpy as jnp
from jax import lax
from jax.experimental import pallas as pl
from jax.experimental.pallas import tpu as pltpu


def _round_up(v, m):
    return (v + m - 1) // m * m


def convlstm_cell_kernel(xcol_ref, w_ref, b_ref, peep_ref, wco_ref, cprev_ref,
                         out_ref, *, cout, activation):
    """One grid step processes R = bb*H*W rows (bb batch elements flattened).

    xcol_ref : (R, Kp)      bf16  im2col'd concat([X, H_prev]); Kp = kh*kw*Ctot padded to 128
    w_ref    : (Kp, 4*Cout) bf16  fused [i|f|c|o] conv weights (zero-padded rows)
    b_ref    : (1, 4*Cout)  f32   fused conv bias
    peep_ref : (R, 4*Cout)  f32   [W_ci | W_cf | 0 | 0] (tiled over bb)
    wco_ref  : (R, Cout)    f32   W_co (tiled over bb)
    cprev_ref: (R, Cout)    f32
    out_ref  : (R, 4*Cout)  f32   lane-dense slab, lanes = [H | C | 0 | 0]
    """
    gc = 4 * cout
    rows = out_ref.shape[0]

    # Single fused MXU matmul, f32 accumulation, bf16 operands.
    acc = jnp.dot(xcol_ref[...], w_ref[...], preferred_element_type=jnp.float32)
    acc = acc + b_ref[...]                       # one lane-dense bias add

    c_prev = cprev_ref[...]
    # Broadcast C_prev across the four gate lane groups once.
    cpt = jnp.concatenate([c_prev, c_prev, c_prev, c_prev], axis=-1)

    # pre lanes (torch.chunk order): [i + Wci*C | f + Wcf*C | c_conv | o_conv]
    pre = acc + peep_ref[...] * cpt

    # Per-lane selector: 1.0 on the i/f (sigmoid) lane groups, 0.0 elsewhere.
    lane = lax.broadcasted_iota(jnp.int32, (1, gc), 1)
    sel_if = (lane < 2 * cout).astype(jnp.float32)          # (1, 4*Cout)

    # ONE lane-dense EUP pass covers input gate, forget gate and the cell
    # activation (the o lane group rides along for free and is discarded).
    if activation == "tanh":
        scale = 1.0 - 0.5 * sel_if                          # 0.5 on i/f, 1.0 on c
        t = jnp.tanh(pre * scale)
        g = t * scale + 0.5 * sel_if                        # sigmoid on i/f, tanh on c
    else:  # relu
        sig = 0.5 * jnp.tanh(0.5 * pre) + 0.5
        g = sel_if * sig + (1.0 - sel_if) * jnp.maximum(pre, 0.0)

    i_gate = g[:, 0 * cout:1 * cout]
    f_gate = g[:, 1 * cout:2 * cout]
    c_act = g[:, 2 * cout:3 * cout]
    o_conv = acc[:, 3 * cout:4 * cout]

    c_new = f_gate * c_prev + i_gate * c_act
    # Output gate needs C_new -> narrow second EUP pass.
    o_gate = 0.5 * jnp.tanh(0.5 * (o_conv + wco_ref[...] * c_new)) + 0.5
    if activation == "tanh":
        h_new = o_gate * jnp.tanh(c_new)
    else:
        h_new = o_gate * jnp.maximum(c_new, 0.0)

    # 128-lane output slab [H | C | 0 | 0]: direct lane-slice stores, no concat.
    out_ref[:, 0 * cout:1 * cout] = h_new.astype(out_ref.dtype)
    out_ref[:, 1 * cout:2 * cout] = c_new.astype(out_ref.dtype)
    out_ref[:, 2 * cout:4 * cout] = jnp.zeros((rows, 2 * cout), out_ref.dtype)


def convlstm_cell(x, h_prev, c_prev, conv_w, conv_b, w_ci, w_cf, w_co,
                  *, padding, activation="tanh"):
    """Pallas ConvLSTMCell forward.  NHWC / HWIO layouts (see header comment)."""
    n, hh, ww, cin = x.shape
    cout = h_prev.shape[-1]
    khh, kww, ctot, four_cout = conv_w.shape
    assert four_cout == 4 * cout and ctot == cin + cout
    p = padding
    hw = hh * ww
    k = khh * kww * ctot
    kp = _round_up(k, 128)          # lane/sublane-aligned contraction dim

    # Rows per grid step: 2 batch elements per step when possible (taller LHS
    # for the 256-wide MXU on v6e/v7x, fewer grid steps).
    bb = 2 if (n % 2 == 0) else 1
    rows = bb * hw
    grid = (n // bb,)

    # ---- wrapper-side layout plumbing (im2col + gate/bias/peephole fusion) ----
    xh = jnp.concatenate([x, h_prev], axis=-1)                 # (N, H, W, Ctot)
    xh_pad = jnp.pad(xh, ((0, 0), (p, p), (p, p), (0, 0)))
    patches = [xh_pad[:, dy:dy + hh, dx:dx + ww, :]
               for dy in range(khh) for dx in range(kww)]
    x_col = jnp.concatenate(patches, axis=-1).reshape(n, hw, k)
    x_col = jnp.pad(x_col, ((0, 0), (0, 0), (0, kp - k)))
    x_col = x_col.reshape(n * hw, kp).astype(jnp.bfloat16)     # bf16 MXU operand

    # Fused [i|f|c|o] weight, flattened to match the patch order (dy, dx, c).
    w_flat = jnp.pad(conv_w.reshape(k, 4 * cout),
                     ((0, kp - k), (0, 0))).astype(jnp.bfloat16)
    b_flat = conv_b.reshape(1, 4 * cout).astype(jnp.float32)

    # Peephole operand laid out on the gate lanes: [W_ci | W_cf | 0 | 0].
    zeros_cf = jnp.zeros((hw, 2 * cout), jnp.float32)
    peep_if = jnp.concatenate([w_ci.reshape(hw, cout).astype(jnp.float32),
                               w_cf.reshape(hw, cout).astype(jnp.float32),
                               zeros_cf], axis=-1)             # (hw, 4*Cout)
    peep_if = jnp.tile(peep_if, (bb, 1))                       # (rows, 4*Cout)
    wco_flat = jnp.tile(w_co.reshape(hw, cout).astype(jnp.float32), (bb, 1))
    c_prev2 = c_prev.reshape(n * hw, cout).astype(jnp.float32)

    kernel = functools.partial(convlstm_cell_kernel, cout=cout,
                               activation=activation)

    # VMEM budget: 2x double-buffering of every pipelined block + in-kernel
    # f32 temporaries (acc/pre/g/cpt/out-val) + slack; clamp to v7x's 64 MiB.
    block_bytes = (rows * kp * 2            # x_col (bf16)
                   + kp * 4 * cout * 2      # weights (bf16)
                   + 4 * cout * 4           # bias
                   + rows * 4 * cout * 4    # peepholes
                   + rows * cout * 4        # W_co
                   + rows * cout * 4        # C_prev
                   + rows * 4 * cout * 4)   # output slab
    temp_bytes = 5 * rows * 4 * cout * 4
    vmem_limit = int(min(64 * 1024 * 1024,
                         max(16 * 1024 * 1024,
                             2 * block_bytes + temp_bytes + 4 * 1024 * 1024)))

    grid_spec = pltpu.PrefetchScalarGridSpec(
        num_scalar_prefetch=0,
        grid=grid,
        in_specs=[
            pl.BlockSpec((rows, kp), lambda b: (b, 0)),          # x_col (bf16)
            pl.BlockSpec((kp, 4 * cout), lambda b: (0, 0)),      # fused weights
            pl.BlockSpec((1, 4 * cout), lambda b: (0, 0)),       # fused bias
            pl.BlockSpec((rows, 4 * cout), lambda b: (0, 0)),    # [Wci|Wcf|0|0]
            pl.BlockSpec((rows, cout), lambda b: (0, 0)),        # W_co
            pl.BlockSpec((rows, cout), lambda b: (b, 0)),        # C_prev
        ],
        out_specs=pl.BlockSpec((rows, 4 * cout), lambda b: (b, 0)),
    )

    out = pl.pallas_call(
        kernel,
        out_shape=jax.ShapeDtypeStruct((n * hw, 4 * cout), jnp.float32),
        grid_spec=grid_spec,
        compiler_params=pltpu.CompilerParams(
            dimension_semantics=("parallel",),
            vmem_limit_bytes=vmem_limit),
    )(x_col, w_flat, b_flat, peep_if, wco_flat, c_prev2)

    h = out[:, 0 * cout:1 * cout].reshape(n, hh, ww, cout).astype(x.dtype)
    c = out[:, 1 * cout:2 * cout].reshape(n, hh, ww, cout).astype(x.dtype)
    return h, c


def convlstm_cell_reference(x, h_prev, c_prev, conv_w, conv_b, w_ci, w_cf, w_co,
                            *, padding, activation="tanh", mxu_dtype=None):
    """Pure-JAX reference mirroring the PyTorch forward (NHWC layout).

    mxu_dtype=jnp.bfloat16 models the kernel's declared bf16 conv operands
    (f32 accumulation); mxu_dtype=None is the full-f32 module math.
    """
    act = jnp.tanh if activation == "tanh" else jax.nn.relu
    cout = h_prev.shape[-1]
    xh = jnp.concatenate([x, h_prev], axis=-1)
    cw = conv_w
    if mxu_dtype is not None:
        xh = xh.astype(mxu_dtype)
        cw = cw.astype(mxu_dtype)
    conv = lax.conv_general_dilated(
        xh, cw, window_strides=(1, 1),
        padding=[(padding, padding), (padding, padding)],
        dimension_numbers=("NHWC", "HWIO", "NHWC"),
        preferred_element_type=jnp.float32) + conv_b
    i_conv, f_conv, c_conv, o_conv = [conv[..., g * cout:(g + 1) * cout]
                                      for g in range(4)]
    input_gate = jax.nn.sigmoid(i_conv + w_ci * c_prev)
    forget_gate = jax.nn.sigmoid(f_conv + w_cf * c_prev)
    c_new = forget_gate * c_prev + input_gate * act(c_conv)
    output_gate = jax.nn.sigmoid(o_conv + w_co * c_new)
    h_new = output_gate * act(c_new)
    return h_new, c_new


if __name__ == "__main__":
    # Module config: in_channels=4, out_channels=32, kernel_size=3, padding=1,
    # activation='tanh', frame_size=(16, 16); batch=2.
    N, Cin, Cout = 2, 4, 32
    H = W = 16
    KH = KW = 3
    P = 1
    ACT = "tanh"
    Ctot = Cin + Cout

    key = jax.random.PRNGKey(0)
    ks = jax.random.split(key, 8)
    x = jax.random.normal(ks[0], (N, H, W, Cin), jnp.float32)
    h_prev = 0.1 * jax.random.normal(ks[1], (N, H, W, Cout), jnp.float32)
    c_prev = 0.1 * jax.random.normal(ks[2], (N, H, W, Cout), jnp.float32)
    # Deterministic synthetic parameters (nn.Conv2d weight/bias + peepholes).
    conv_w = jax.random.normal(ks[3], (KH, KW, Ctot, 4 * Cout), jnp.float32) \
        * (1.0 / (KH * KW * Ctot) ** 0.5)
    conv_b = 0.1 * jax.random.normal(ks[4], (4 * Cout,), jnp.float32)
    w_ci = 0.1 * jax.random.normal(ks[5], (H, W, Cout), jnp.float32)
    w_cf = 0.1 * jax.random.normal(ks[6], (H, W, Cout), jnp.float32)
    w_co = 0.1 * jax.random.normal(ks[7], (H, W, Cout), jnp.float32)

    h_out, c_out = convlstm_cell(x, h_prev, c_prev, conv_w, conv_b,
                                 w_ci, w_cf, w_co, padding=P, activation=ACT)
    jax.block_until_ready((h_out, c_out))

    # Tight check vs a reference that models the declared bf16 MXU operands.
    h_q, c_q = convlstm_cell_reference(x, h_prev, c_prev, conv_w, conv_b,
                                       w_ci, w_cf, w_co, padding=P,
                                       activation=ACT, mxu_dtype=jnp.bfloat16)
    assert jnp.allclose(h_out, h_q, atol=2e-3, rtol=2e-3), "H mismatch (bf16 ref)"
    assert jnp.allclose(c_out, c_q, atol=2e-3, rtol=2e-3), "C mismatch (bf16 ref)"

    # Loose check vs the full-f32 PyTorch-equivalent math (bf16 operand noise).
    h_ref, c_ref = convlstm_cell_reference(x, h_prev, c_prev, conv_w, conv_b,
                                           w_ci, w_cf, w_co, padding=P,
                                           activation=ACT, mxu_dtype=None)
    assert jnp.allclose(h_out, h_ref, atol=5e-2, rtol=5e-2), "H mismatch (f32 ref)"
    assert jnp.allclose(c_out, c_ref, atol=5e-2, rtol=5e-2), "C mismatch (f32 ref)"

    print("KERNEL_OK")
</pallas_src>

<mosaic_0001>
module attributes {stable_mosaic.version = 11 : i64} {
  func.func @convlstm_cell_kernel(%arg0: i32, %arg1: memref<512x384xbf16, #tpu.memory_space<vmem>>, %arg2: memref<384x128xbf16, #tpu.memory_space<vmem>>, %arg3: memref<1x128xf32, #tpu.memory_space<vmem>>, %arg4: memref<512x128xf32, #tpu.memory_space<vmem>>, %arg5: memref<512x32xf32, #tpu.memory_space<vmem>>, %arg6: memref<512x32xf32, #tpu.memory_space<vmem>>, %arg7: memref<512x128xf32, #tpu.memory_space<vmem>>) attributes {dimension_semantics = [#tpu.dimension_semantics<parallel>], iteration_bounds = array<i64: 1>, scalar_prefetch = 0 : i64, scratch_operands = 0 : i64, tpu.core_type = #tpu.core_type<tc>, window_params = [{transform_indices = @transform_0, window_bounds = array<i64: 512, 384>}, {pipeline_mode = #tpu.pipeline_mode<synchronous>, transform_indices = @transform_1, window_bounds = array<i64: 384, 128>}, {pipeline_mode = #tpu.pipeline_mode<synchronous>, transform_indices = @transform_2, window_bounds = array<i64: 1, 128>}, {pipeline_mode = #tpu.pipeline_mode<synchronous>, transform_indices = @transform_3, window_bounds = array<i64: 512, 128>}, {pipeline_mode = #tpu.pipeline_mode<synchronous>, transform_indices = @transform_4, window_bounds = array<i64: 512, 32>}, {transform_indices = @transform_5, window_bounds = array<i64: 512, 32>}, {transform_indices = @transform_6, window_bounds = array<i64: 512, 128>}]} {
    %c0 = arith.constant 0 : index
    %c0_0 = arith.constant 0 : index
    %0 = vector.load %arg1[%c0, %c0_0] : memref<512x384xbf16, #tpu.memory_space<vmem>>, vector<512x384xbf16>
    %c0_1 = arith.constant 0 : index
    %c0_2 = arith.constant 0 : index
    %1 = vector.load %arg2[%c0_1, %c0_2] : memref<384x128xbf16, #tpu.memory_space<vmem>>, vector<384x128xbf16>
    %cst = arith.constant dense<0.000000e+00> : vector<512x128xf32>
    %2 = tpu.matmul %0, %1, %cst {dimension_numbers = #tpu.dot_dimension_numbers<[1], [0], [0], [1], [0, 0, 1, 1], [], []>} : vector<512x384xbf16>, vector<384x128xbf16>, vector<512x128xf32> -> vector<512x128xf32>
    %c0_3 = arith.constant 0 : index
    %c0_4 = arith.constant 0 : index
    %3 = vector.load %arg3[%c0_3, %c0_4] : memref<1x128xf32, #tpu.memory_space<vmem>>, vector<1x128xf32>
    %4 = vector.broadcast %3 : vector<1x128xf32> to vector<512x128xf32>
    %5 = arith.addf %2, %4 : vector<512x128xf32>
    %c0_5 = arith.constant 0 : index
    %c0_6 = arith.constant 0 : index
    %6 = vector.load %arg6[%c0_5, %c0_6] : memref<512x32xf32, #tpu.memory_space<vmem>>, vector<512x32xf32>
    %7 = tpu.concatenate %6, %6, %6, %6 in 1 : vector<512x32xf32>, vector<512x32xf32>, vector<512x32xf32>, vector<512x32xf32> -> vector<512x128xf32>
    %c0_7 = arith.constant 0 : index
    %c0_8 = arith.constant 0 : index
    %8 = vector.load %arg4[%c0_7, %c0_8] : memref<512x128xf32, #tpu.memory_space<vmem>>, vector<512x128xf32>
    %9 = arith.mulf %8, %7 : vector<512x128xf32>
    %10 = arith.addf %5, %9 : vector<512x128xf32>
    %11 = tpu.iota {dimensions = array<i32: 1>} : vector<1x128xi32>
    %c64_i32 = arith.constant 64 : i32
    %12 = vector.broadcast %c64_i32 : i32 to vector<1x128xi32>
    %13 = arith.cmpi slt, %11, %12 : vector<1x128xi32>
    %14 = arith.extui %13 : vector<1x128xi1> to vector<1x128xi32>
    %15 = arith.sitofp %14 : vector<1x128xi32> to vector<1x128xf32>
    %cst_9 = arith.constant 5.000000e-01 : f32
    %16 = vector.broadcast %cst_9 : f32 to vector<1x128xf32>
    %17 = arith.mulf %16, %15 : vector<1x128xf32>
    %cst_10 = arith.constant 1.000000e+00 : f32
    %18 = vector.broadcast %cst_10 : f32 to vector<1x128xf32>
    %19 = arith.subf %18, %17 : vector<1x128xf32>
    %20 = vector.broadcast %19 : vector<1x128xf32> to vector<512x128xf32>
    %21 = arith.mulf %10, %20 : vector<512x128xf32>
    %22 = math.tanh %21 : vector<512x128xf32>
    %23 = vector.broadcast %19 : vector<1x128xf32> to vector<512x128xf32>
    %24 = arith.mulf %22, %23 : vector<512x128xf32>
    %cst_11 = arith.constant 5.000000e-01 : f32
    %25 = vector.broadcast %cst_11 : f32 to vector<1x128xf32>
    %26 = arith.mulf %25, %15 : vector<1x128xf32>
    %27 = vector.broadcast %26 : vector<1x128xf32> to vector<512x128xf32>
    %28 = arith.addf %24, %27 : vector<512x128xf32>
    %29 = vector.extract_strided_slice %28 {offsets = [0, 0], sizes = [512, 32], strides = [1, 1]} : vector<512x128xf32> to vector<512x32xf32>
    %30 = vector.extract_strided_slice %28 {offsets = [0, 32], sizes = [512, 32], strides = [1, 1]} : vector<512x128xf32> to vector<512x32xf32>
    %31 = vector.extract_strided_slice %28 {offsets = [0, 64], sizes = [512, 32], strides = [1, 1]} : vector<512x128xf32> to vector<512x32xf32>
    %32 = vector.extract_strided_slice %5 {offsets = [0, 96], sizes = [512, 32], strides = [1, 1]} : vector<512x128xf32> to vector<512x32xf32>
    %33 = arith.mulf %30, %6 : vector<512x32xf32>
    %34 = arith.mulf %29, %31 : vector<512x32xf32>
    %35 = arith.addf %33, %34 : vector<512x32xf32>
    %c0_12 = arith.constant 0 : index
    %c0_13 = arith.constant 0 : index
    %36 = vector.load %arg5[%c0_12, %c0_13] : memref<512x32xf32, #tpu.memory_space<vmem>>, vector<512x32xf32>
    %37 = arith.mulf %36, %35 : vector<512x32xf32>
    %38 = arith.addf %32, %37 : vector<512x32xf32>
    %cst_14 = arith.constant 5.000000e-01 : f32
    %39 = vector.broadcast %cst_14 : f32 to vector<512x32xf32>
    %40 = arith.mulf %39, %38 : vector<512x32xf32>
    %41 = math.tanh %40 : vector<512x32xf32>
    %cst_15 = arith.constant 5.000000e-01 : f32
    %42 = vector.broadcast %cst_15 : f32 to vector<512x32xf32>
    %43 = arith.mulf %42, %41 : vector<512x32xf32>
    %cst_16 = arith.constant 5.000000e-01 : f32
    %44 = vector.broadcast %cst_16 : f32 to vector<512x32xf32>
    %45 = arith.addf %43, %44 : vector<512x32xf32>
    %46 = math.tanh %35 : vector<512x32xf32>
    %47 = arith.mulf %45, %46 : vector<512x32xf32>
    %c0_17 = arith.constant 0 : index
    %c0_18 = arith.constant 0 : index
    %48 = vector.load %arg7[%c0_17, %c0_18] : memref<512x128xf32, #tpu.memory_space<vmem>>, vector<512x32xf32>
    tpu.vector_store %arg7[%c0_17, %c0_18], %47 {strides = array<i32>} : memref<512x128xf32, #tpu.memory_space<vmem>>, vector<512x32xf32>,
    %c0_19 = arith.constant 0 : index
    %c32 = arith.constant 32 : index
    %49 = vector.load %arg7[%c0_19, %c32] : memref<512x128xf32, #tpu.memory_space<vmem>>, vector<512x32xf32>
    tpu.vector_store %arg7[%c0_19, %c32], %35 {strides = array<i32>} : memref<512x128xf32, #tpu.memory_space<vmem>>, vector<512x32xf32>,
    %cst_20 = arith.constant 0.000000e+00 : f32
    %50 = vector.broadcast %cst_20 : f32 to vector<512x64xf32>
    %c0_21 = arith.constant 0 : index
    %c64 = arith.constant 64 : index
    %51 = vector.load %arg7[%c0_21, %c64] : memref<512x128xf32, #tpu.memory_space<vmem>>, vector<512x64xf32>
    tpu.vector_store %arg7[%c0_21, %c64], %50 {strides = array<i32>} : memref<512x128xf32, #tpu.memory_space<vmem>>, vector<512x64xf32>,
    return
  }
  func.func @transform_0(%arg0: i32) -> (i32, i32) {
    %c0_i32 = arith.constant 0 : i32
    %c0_i32_0 = arith.constant 0 : i32
    return %arg0, %c0_i32 : i32, i32
  }
  func.func @transform_1(%arg0: i32) -> (i32, i32) {
    %c0_i32 = arith.constant 0 : i32
    %c0_i32_0 = arith.constant 0 : i32
    %c0_i32_1 = arith.constant 0 : i32
    return %c0_i32, %c0_i32_0 : i32, i32
  }
  func.func @transform_2(%arg0: i32) -> (i32, i32) {
    %c0_i32 = arith.constant 0 : i32
    %c0_i32_0 = arith.constant 0 : i32
    %c0_i32_1 = arith.constant 0 : i32
    return %c0_i32, %c0_i32_0 : i32, i32
  }
  func.func @transform_3(%arg0: i32) -> (i32, i32) {
    %c0_i32 = arith.constant 0 : i32
    %c0_i32_0 = arith.constant 0 : i32
    %c0_i32_1 = arith.constant 0 : i32
    return %c0_i32, %c0_i32_0 : i32, i32
  }
  func.func @transform_4(%arg0: i32) -> (i32, i32) {
    %c0_i32 = arith.constant 0 : i32
    %c0_i32_0 = arith.constant 0 : i32
    %c0_i32_1 = arith.constant 0 : i32
    return %c0_i32, %c0_i32_0 : i32, i32
  }
  func.func @transform_5(%arg0: i32) -> (i32, i32) {
    %c0_i32 = arith.constant 0 : i32
    %c0_i32_0 = arith.constant 0 : i32
    return %arg0, %c0_i32 : i32, i32
  }
  func.func @transform_6(%arg0: i32) -> (i32, i32) {
    %c0_i32 = arith.constant 0 : i32
    %c0_i32_0 = arith.constant 0 : i32
    return %arg0, %c0_i32 : i32, i32
  }
}

</mosaic_0001>

<bundles_post_ra>
// kernel: tpu_custom_call.1
= control target key start
LH: loop header
LB: loop body
LE: loop exit
PB: predicated region body
PF: predicated region fallthrough
CT: control target
= control target key end

     0   :  { %11 = vsyncpa [#allocation3], 0  ;;  %s12170_s0 = inlined_call_operand.vmem [shape: bf16[512,384], index: 0, kind: input, shape index: {}]   ;;  %s12171_s1 = inlined_call_operand.vmem [shape: bf16[384,128], index: 1, kind: input, shape index: {}]   ;;  %s12172_s2 = inlined_call_operand.vmem [shape: f32[1,128], index: 2, kind: input, shape index: {}]   ;;  %s12173_s3 = inlined_call_operand.hbm [shape: f32[512,128], index: 3, kind: input, shape index: {}]   ;;  %s12174_s4 = inlined_call_operand.vmem [shape: f32[512,32], index: 4, kind: input, shape index: {}]   ;;  %s12175_s5 = inlined_call_operand.vmem [shape: f32[512,32], index: 5, kind: input, shape index: {}]   ;;  %s12176_s6 = inlined_call_operand.hbm [shape: f32[512,128], index: 6, kind: output, shape index: {}]  }
   0x1   :  { %12 = vsyncpa [#allocation4], 0  ;;  %s23_s23 = sshll.u32 %s12173_s3, 4  ;;  %s6406_s24 = smov [#allocation2]   ;;  %s24_s23 = int_to_ptr.hbm [resolvable:$true] %s23_s23 }
   0x2   :  { %s25_s25 = sshll.u32 %s6406_s24, 4  ;;  %s6407_s26 = smov 128   ;;  %s26_s25 = int_to_ptr.vmem [resolvable:$true] %s25_s25 }
   0x3   :  { %s6408_s27 = smov 8  }
   0x4   :  { %31 = dma.hbm_to_vmem [thread:$0]  %s24_s23, 8192, %s26_s25, [#allocation3], %s6407_s26, %s6407_s26, %s6408_s27  }
   0x5   :  { %6402 = dma.done.wait [#allocation3], 8192  }
   0x6   :  { %6403 = vsyncadd [#allocation3], 4294959104  ;;  %v6458_v0 = vld [vmem:[%s12175_s5 + $0x20] sm:$0xff]  ;;  %v6463_v1 = vld [vmem:[%s12175_s5 + $0x10] sm:$0xff]  ;;  %s6409_s9 = smov 32   ;;  %s6410_s3 = smov 64  }
   0x7   :  { %v6468_v2 = vld [vmem:[%s12175_s5] sm:$0xff]  ;;  %1519 = vrot.lane.b32.xlu2 %v6458_v0, %s6409_s9  ;;  %1515 = vrot.lane.b32.xlu1 %v6463_v1, %s6409_s9  ;;  %v5838_v3 = vld [vmem:[%s12171_s1 + $0x38] sm:$0xff]  ;;  %s6411_s30 = smov 96   ;;  %vm2087_vm0 = vcmask 261120   ;;  %vm2152_vm1 = vcmask 523264   ;;  %vm2217_vm2 = vcmask 785408  }
   0x8   :  { %1511 = vrot.lane.b32.xlu0 %v6468_v2, %s6409_s9  ;;  %5855 = vmatpush.bf16.msra.mxu3 %v5838_v3  ;;  %v5837_v4 = vld [vmem:[%s12171_s1 + $0x30] sm:$0xff]  ;;  %v6485_v5 = vld [vmem:[%s12175_s5 + $0x28] sm:$0xff]  ;;  %v6490_v6 = vld [vmem:[%s12175_s5 + $0x18] sm:$0xff]  ;;  %vm5105_vm4 = vcmask 523520   ;;  %vm5170_vm5 = vcmask 1048064   ;;  %s5241_s29 = sshll.u32 %s12176_s6, 4  ;;  %s5242_s29 = int_to_ptr.hbm [resolvable:$true] %s5241_s29 }
   0x9   :  { %876 = vmatpush.bf16.msra.mxu0 %v5838_v3  ;;  %v6495_v7 = vld [vmem:[%s12171_s1 + $0xb8] sm:$0xff]  ;;  %v6500_v8 = vld [vmem:[%s12175_s5 + $0x8] sm:$0xff]  ;;  %v6514_v11 = vld [vmem:[%s12171_s1 + $0xb0] sm:$0xff] }
   0xa   :  { %v5836_v9 = vld [vmem:[%s12171_s1 + $0x28] sm:$0xff]  ;;  %v6508_v10 = vld [vmem:[%s12171_s1 + $0x78] sm:$0xff]  ;;  %1214 = vmatpush.bf16.msra.mxu2 %v6495_v7  ;;  %v6526_v12 = vld [vmem:[%s12171_s1 + $0x70] sm:$0xff] }
   0xb   :  { %1045 = vmatpush.bf16.msra.mxu1 %v6508_v10  ;;  %v5835_v13 = vld [vmem:[%s12171_s1 + $0x20] sm:$0xff]  ;;  %v6535_v14 = vld [vmem:[%s12171_s1 + $0xa8] sm:$0xff]  ;;  %v6545_v16 = vld [vmem:[%s12175_s5 + $0x38] sm:$0xff] }
   0xc   :  { %5856 = vmatpush.bf16.msra.mxu3 %v5837_v4  ;;  %v6540_v15 = vld [vmem:[%s12175_s5 + $0x40] sm:$0xff]  ;;  %v6551_v17 = vld [vmem:[%s12171_s1 + $0x68] sm:$0xff]  ;;  %v6556_v18 = vld [vmem:[%s12175_s5 + $0x30] sm:$0xff] }
   0xd   :  { %877 = vmatpush.bf16.msra.mxu0 %v5837_v4  ;;  %v5834_v19 = vld [vmem:[%s12171_s1 + $0x18] sm:$0xff]  ;;  %v6565_v20 = vld [vmem:[%s12171_s1 + $0xa0] sm:$0xff]  ;;  %v5833_v22 = vld [vmem:[%s12171_s1 + $0x10] sm:$0xff] }
   0xe   :  { %1215 = vmatpush.bf16.msra.mxu2 %v6514_v11  ;;  %v6577_v21 = vld [vmem:[%s12171_s1 + $0x60] sm:$0xff]  ;;  %v6586_v23 = vld [vmem:[%s12171_s1 + $0x98] sm:$0xff]  ;;  %v6596_v25 = vld [vmem:[%s12175_s5 + $0x50] sm:$0xff] }
   0xf   :  { %1521 = vrot.lane.b32.xlu2 %v6485_v5, %s6409_s9  ;;  %1517 = vrot.lane.b32.xlu1 %v6490_v6, %s6409_s9  ;;  %v6591_v24 = vld [vmem:[%s12175_s5 + $0x58] sm:$0xff]  ;;  %v6607_v27 = vld [vmem:[%s12175_s5 + $0x48] sm:$0xff] }
  0x10   :  { %1513 = vrot.lane.b32.xlu0 %v6500_v8, %s6409_s9  ;;  %5857 = vmatpush.bf16.msra.mxu3 %v5836_v9  ;;  %v6602_v26 = vld [vmem:[%s12171_s1 + $0x58] sm:$0xff]  ;;  %v5832_v28 = vld [vmem:[%s12171_s1 + $0x8] sm:$0xff]  ;;  %v6616_v29 = vld [vmem:[%s12171_s1 + $0x90] sm:$0xff] }
  0x11   :  { %878 = vmatpush.bf16.msra.mxu0 %v5836_v9  ;;  %1046 = vmatpush.bf16.msra.mxu1 %v6526_v12  ;;  %v6628_v30 = vld [vmem:[%s12171_s1 + $0x50] sm:$0xff]  ;;  %v5831_v31 = vld [vmem:[%s12171_s1] sm:$0xff]  ;;  %v5808_v33 = vld [vmem:[%s12170_s0 + $0x248] sm:$0xf0] }
  0x12   :  { %1216 = vmatpush.bf16.msra.mxu2 %v6535_v14  ;;  %v5544_v32 = vld [vmem:[%s12170_s0 + $0x240] sm:$0xf]  ;;  %v6643_v34 = vld [vmem:[%s12171_s1 + $0x88] sm:$0xff]  ;;  %v6654_v37 = vld [vmem:[%s12175_s5 + $0x70] sm:$0xff] }
  0x13   :  { %v5256_v35 = vld [vmem:[%s12170_s0] sm:$0xf]  ;;  %v5736_v36 = vld [vmem:[%s12170_s0 + $0x8] sm:$0xf0]  ;;  %v5545_v39 = vor.u32 %v5808_v33, %v5544_v32  ;;  %v5264_v44 = vld [vmem:[%s12170_s0 + $0x8] sm:$0xf] }
  0x14   :  { %5858 = vmatpush.bf16.msra.mxu3 %v5835_v13  ;;  %v6659_v38 = vld [vmem:[%s12175_s5 + $0x68] sm:$0xff]  ;;  %v6665_v40 = vld [vmem:[%s12175_s5 + $0x60] sm:$0xff]  ;;  %v5257_v42 = vor.u32 %v5736_v36, %v5256_v35  ;;  %v5737_v45 = vld [vmem:[%s12170_s0 + $0x10] sm:$0xf0] }
  0x15   :  { %879 = vmatpush.bf16.msra.mxu0 %v5835_v13  ;;  %1047 = vmatpush.bf16.msra.mxu1 %v6551_v17  ;;  %v5840_v41 = vld [vmem:[%s12171_s1 + $0x48] sm:$0xff]  ;;  %v6674_v43 = vld [vmem:[%s12171_s1 + $0x80] sm:$0xff]  ;;  %v5265_v46 = vor.u32 %v5737_v45, %v5264_v44  ;;  %v5258_v49 = vld [vmem:[%s12170_s0 + $0xc] sm:$0xf0] }
  0x16   :  { %1217 = vmatpush.bf16.msra.mxu2 %v6565_v20  ;;  %v5839_v47 = vld [vmem:[%s12171_s1 + $0x40] sm:$0xff]  ;;  %v6703_v50 = vld [vmem:[%s12175_s5 + $0x88] sm:$0xff]  ;;  %v6713_v53 = vld [vmem:[%s12175_s5 + $0x78] sm:$0xff] }
  0x17   :  { %1527 = vrot.lane.b32.xlu2 %v6540_v15, %s6409_s9  ;;  %1525 = vrot.lane.b32.xlu1 %v6545_v16, %s6409_s9  ;;  %v5735_v48 = vld [vmem:[%s12170_s0 + $0x4] sm:$0xf]  ;;  %v5556_v54 = vld [vmem:[%s12170_s0 + $0x258] sm:$0xf] }
  0x18   :  { %1523 = vrot.lane.b32.xlu0 %v6556_v18, %s6409_s9  ;;  %5859 = vmatpush.bf16.msra.mxu3 %v5834_v19  ;;  %v6708_v51 = vld [vmem:[%s12175_s5 + $0x80] sm:$0xff]  ;;  %v5261_v52 = vor.u32 %v5735_v48, %v5258_v49  ;;  %v5268_v56 = vld [vmem:[%s12170_s0 + $0x18] sm:$0xf]  ;;  %v6748_v61 = vld [vmem:[%s12175_s5 + $0x90] sm:$0xff] }
  0x19   :  { %880 = vmatpush.bf16.msra.mxu0 %v5834_v19  ;;  %1048 = vmatpush.bf16.msra.mxu1 %v6577_v21  ;;  %v5811_v55 = vld [vmem:[%s12170_s0 + $0x260] sm:$0xf0]  ;;  %v6743_v59 = vld [vmem:[%s12175_s5 + $0x98] sm:$0xff]  ;;  %v5276_v63 = vld [vmem:[%s12170_s0 + $0x20] sm:$0xf] }
  0x1a   :  { %1218 = vmatpush.bf16.msra.mxu2 %v6586_v23  ;;  %v5739_v57 = vld [vmem:[%s12170_s0 + $0x20] sm:$0xf0]  ;;  %v5557_v60 = vor.u32 %v5811_v55, %v5556_v54  ;;  %v5740_v3 = vld [vmem:[%s12170_s0 + $0x28] sm:$0xf0]  ;;  %v5738_v9 = vld [vmem:[%s12170_s0 + $0x1c] sm:$0xf] }
  0x1b   :  { %v6738_v58 = vld [vmem:[%s12175_s5 + $0xa0] sm:$0xff]  ;;  %v5269_v62 = vor.u32 %v5739_v57, %v5268_v56  ;;  %v5277_v4 = vor.u32 %v5740_v3, %v5276_v63  ;;  %v6778_v13 = vld [vmem:[%s12175_s5 + $0xb0] sm:$0xff]  ;;  %v6783_v19 = vld [vmem:[%s12175_s5 + $0xa8] sm:$0xff] }
  0x1c   :  { %5860 = vmatpush.bf16.msra.mxu3 %v5833_v22  ;;  %v6817_v33 = vld [vmem:[%s12175_s5 + $0xc0] sm:$0xff]  ;;  %v6841_v44 = vld [vmem:[%s12175_s5 + $0xe8] sm:$0xff]  ;;  %v5817_v48 = vld [vmem:[%s12170_s0 + $0x290] sm:$0xf0] }
  0x1d   :  { %881 = vmatpush.bf16.msra.mxu0 %v5833_v22  ;;  %1049 = vmatpush.bf16.msra.mxu1 %v6602_v26  ;;  %v5814_v22 = vld [vmem:[%s12170_s0 + $0x278] sm:$0xf0]  ;;  %v5743_v36 = vld [vmem:[%s12170_s0 + $0x40] sm:$0xf0]  ;;  %v5745_v49 = vld [vmem:[%s12170_s0 + $0x50] sm:$0xf0] }
  0x1e   :  { %1219 = vmatpush.bf16.msra.mxu2 %v6616_v29  ;;  %v6846_v45 = vld [vmem:[%s12175_s5 + $0xe0] sm:$0xff]  ;;  %v6881_v54 = vld [vmem:[%s12175_s5 + $0xf8] sm:$0xff]  ;;  %v5300_v57 = vld [vmem:[%s12170_s0 + $0x50] sm:$0xf] }
  0x1f   :  { %1533 = vrot.lane.b32.xlu2 %v6591_v24, %s6409_s9  ;;  %1531 = vrot.lane.b32.xlu1 %v6596_v25, %s6409_s9  ;;  %v5294_v63 = vld [vmem:[%s12170_s0 + $0x54] sm:$0xf0] }
  0x20   :  { %1529 = vrot.lane.b32.xlu0 %v6607_v27, %s6409_s9  ;;  %5861 = vmatpush.bf16.msra.mxu3 %v5832_v28  ;;  %v6911_v3 = vld [vmem:[%s12175_s5 + $0x118] sm:$0xff] }
  0x21   :  { %882 = vmatpush.bf16.msra.mxu0 %v5832_v28  ;;  %1050 = vmatpush.bf16.msra.mxu1 %v6628_v30  ;;  %v5742_v28 = vld [vmem:[%s12170_s0 + $0x38] sm:$0xf0] }
  0x22   :  { %1220 = vmatpush.bf16.msra.mxu2 %v6643_v34 }
  0x24   :  { %5862 = vmatpush.bf16.msra.mxu3 %v5831_v31 }
  0x25   :  { %883 = vmatpush.bf16.msra.mxu0 %v5831_v31  ;;  %1051 = vmatpush.bf16.msra.mxu1 %v5840_v41  ;;  %v6812_v31 = vld [vmem:[%s12175_s5 + $0xc8] sm:$0xff] }
  0x26   :  { %1221 = vmatpush.bf16.msra.mxu2 %v6674_v43 }
  0x27   :  { %1539 = vrot.lane.b32.xlu2 %v6654_v37, %s6409_s9  ;;  %1537 = vrot.lane.b32.xlu1 %v6659_v38, %s6409_s9 }
  0x28   :  { %5863 = vmatpush.bf16.msrb.mxu3 %v6508_v10  ;;  %1535 = vrot.lane.b32.xlu0 %v6665_v40, %s6409_s9  ;;  %v5270_v10 = vld [vmem:[%s12170_s0 + $0x24] sm:$0xf0] }
  0x29   :  { %1004 = vmatmul.bf16.vlgmr.msra.gmra.mxu3 %v5545_v39  ;;  %884 = vmatmul.bf16.vlgmr.msra.gmra.mxu0 %v5257_v42  ;;  %v5282_v42 = vld [vmem:[%s12170_s0 + $0x3c] sm:$0xf0] }
  0x2a   :  { %1222 = vmatmul.bf16.vlgmr.msra.gmra.mxu2 %v5265_v46  ;;  %1052 = vmatpush.bf16.msra.mxu1 %v5839_v47 }
  0x2c   :  { %5864 = vmatpush.bf16.msrb.mxu3 %v6526_v12  ;;  %v6773_v12 = vld [vmem:[%s12175_s5 + $0xb8] sm:$0xff] }
  0x2d   :  { %1053 = vmatmul.bf16.vlgmr.msra.gmra.mxu1 %v5261_v52  ;;  %v6876_v52 = vld [vmem:[%s12175_s5 + $0x100] sm:$0xff] }
  0x2f   :  { %1545 = vrot.lane.b32.xlu2 %v6703_v50, %s6409_s9  ;;  %1543 = vrot.lane.b32.xlu1 %v6708_v51, %s6409_s9 }
  0x30   :  { %5865 = vmatpush.bf16.msrb.mxu3 %v6551_v17  ;;  %1541 = vrot.lane.b32.xlu0 %v6713_v53, %s6409_s9  ;;  %v5273_v17 = vor.u32 %v5738_v9, %v5270_v10  ;;  %v6921_v10 = vld [vmem:[%s12175_s5 + $0x108] sm:$0xff] }
  0x34   :  { %5866 = vmatpush.bf16.msrb.mxu3 %v6577_v21  ;;  %v5568_v21 = vld [vmem:[%s12170_s0 + $0x270] sm:$0xf] }
  0x35   :  { %v5569_v32 = vor.u32 %v5814_v22, %v5568_v21  ;;  %v5304_v21 = vld [vmem:[%s12170_s0 + $0x60] sm:$0xf]  ;;  %v5748_v22 = vld [vmem:[%s12170_s0 + $0x68] sm:$0xf0] }
  0x37   :  { %1551 = vrot.lane.b32.xlu2 %v6738_v58, %s6409_s9  ;;  %1549 = vrot.lane.b32.xlu1 %v6743_v59, %s6409_s9 }
  0x38   :  { %5867 = vmatpush.bf16.msrb.mxu3 %v6602_v26  ;;  %1547 = vrot.lane.b32.xlu0 %v6748_v61, %s6409_s9  ;;  %v5280_v26 = vld [vmem:[%s12170_s0 + $0x30] sm:$0xf] }
  0x39   :  { %1009 = vmatmul.bf16.gmra.mxu3 %v5557_v60  ;;  %889 = vmatmul.bf16.gmra.mxu0 %v5269_v62  ;;  %v5281_v35 = vor.u32 %v5742_v28, %v5280_v26  ;;  %v5746_v60 = vld [vmem:[%s12170_s0 + $0x58] sm:$0xf0]  ;;  %v6948_v26 = vld [vmem:[%s12175_s5 + $0x130] sm:$0xff]  ;;  %v6953_v28 = vld [vmem:[%s12175_s5 + $0x128] sm:$0xff] }
  0x3a   :  { %1227 = vmatmul.bf16.gmra.mxu2 %v5277_v4  ;;  %v5301_v62 = vor.u32 %v5746_v60, %v5300_v57  ;;  %v6916_v4 = vld [vmem:[%s12175_s5 + $0x110] sm:$0xff]  ;;  %v5823_v57 = vld [vmem:[%s12170_s0 + $0x2c0] sm:$0xf0]  ;;  %v5316_v60 = vld [vmem:[%s12170_s0 + $0x78] sm:$0xf] }
  0x3c   :  { %5868 = vmatpush.bf16.msrb.mxu3 %v6628_v30  ;;  %v6807_v30 = vld [vmem:[%s12175_s5 + $0xd0] sm:$0xff] }
  0x3d   :  { %1058 = vmatmul.bf16.gmra.mxu1 %v5273_v17  ;;  %v5592_v17 = vld [vmem:[%s12170_s0 + $0x2a0] sm:$0xf] }
  0x3f   :  { %1557 = vrot.lane.b32.xlu2 %v6773_v12, %s6409_s9  ;;  %1555 = vrot.lane.b32.xlu1 %v6778_v13, %s6409_s9 }
  0x40   :  { %5869 = vmatpush.bf16.msrb.mxu3 %v5840_v41  ;;  %1553 = vrot.lane.b32.xlu0 %v6783_v19, %s6409_s9  ;;  %v5741_v41 = vld [vmem:[%s12170_s0 + $0x34] sm:$0xf] }
  0x41   :  { %v5285_v46 = vor.u32 %v5741_v41, %v5282_v42  ;;  %v5747_v42 = vld [vmem:[%s12170_s0 + $0x64] sm:$0xf] }
  0x44   :  { %5870 = vmatpush.bf16.msrb.mxu3 %v5839_v47  ;;  %v6851_v47 = vld [vmem:[%s12175_s5 + $0xd8] sm:$0xff] }
  0x47   :  { %1563 = vrot.lane.b32.xlu2 %v6807_v30, %s6409_s9  ;;  %1561 = vrot.lane.b32.xlu1 %v6812_v31, %s6409_s9 }
  0x48   :  { %5871 = vmatpush.bf16.msra.mxu3 %v6495_v7  ;;  %v5288_v7 = vld [vmem:[%s12170_s0 + $0x38] sm:$0xf]  ;;  %1559 = vrot.lane.b32.xlu0 %v6817_v33, %s6409_s9 }
  0x49   :  { %1014 = vmatmul.bf16.gmra.mxu3 %v5569_v32  ;;  %v5289_v39 = vor.u32 %v5743_v36, %v5288_v7  ;;  %894 = vmatmul.bf16.gmra.mxu0 %v5281_v35  ;;  %v5305_v35 = vor.u32 %v5748_v22, %v5304_v21  ;;  %v5312_v7 = vld [vmem:[%s12170_s0 + $0x68] sm:$0xf]  ;;  %v5749_v36 = vld [vmem:[%s12170_s0 + $0x70] sm:$0xf0]  ;;  %v5324_v21 = vld [vmem:[%s12170_s0 + $0x80] sm:$0xf] }
  0x4a   :  { %v5313_v41 = vor.u32 %v5749_v36, %v5312_v7  ;;  %v5752_v22 = vld [vmem:[%s12170_s0 + $0x88] sm:$0xf0]  ;;  %v5750_v36 = vld [vmem:[%s12170_s0 + $0x7c] sm:$0xf] }
  0x4b   :  { %1232 = vmatmul.bf16.gmra.mxu2 %v5289_v39  ;;  %v5325_v7 = vor.u32 %v5752_v22, %v5324_v21  ;;  %v5328_v22 = vld [vmem:[%s12170_s0 + $0x90] sm:$0xf] }
  0x4c   :  { %5872 = vmatpush.bf16.msra.mxu3 %v6514_v11  ;;  %v5580_v11 = vld [vmem:[%s12170_s0 + $0x288] sm:$0xf] }
  0x4d   :  { %1063 = vmatmul.bf16.gmra.mxu1 %v5285_v46  ;;  %v5581_v55 = vor.u32 %v5817_v48, %v5580_v11  ;;  %v5306_v46 = vld [vmem:[%s12170_s0 + $0x6c] sm:$0xf0]  ;;  %v6983_v11 = vld [vmem:[%s12175_s5 + $0x148] sm:$0xff]  ;;  %v6988_v48 = vld [vmem:[%s12175_s5 + $0x140] sm:$0xff] }
  0x4f   :  { %1569 = vrot.lane.b32.xlu2 %v6841_v44, %s6409_s9  ;;  %1567 = vrot.lane.b32.xlu1 %v6846_v45, %s6409_s9 }
  0x50   :  { %5873 = vmatpush.bf16.msra.mxu3 %v6535_v14  ;;  %1565 = vrot.lane.b32.xlu0 %v6851_v47, %s6409_s9  ;;  %v5292_v14 = vld [vmem:[%s12170_s0 + $0x48] sm:$0xf] }
  0x51   :  { %v5293_v56 = vor.u32 %v5745_v49, %v5292_v14  ;;  %v5309_v14 = vor.u32 %v5747_v42, %v5306_v46  ;;  %v6993_v49 = vld [vmem:[%s12175_s5 + $0x138] sm:$0xff] }
  0x52   :  { %v7057_v46 = vld [vmem:[%s12175_s5 + $0x178] sm:$0xff] }
  0x53   :  { %12544 = vst [vmem:[#allocation14_spill] sm:$0xff] %v7057_v46 }
  0x54   :  { %5874 = vmatpush.bf16.msra.mxu3 %v6565_v20  ;;  %v6886_v20 = vld [vmem:[%s12175_s5 + $0xf0] sm:$0xff] }
  0x57   :  { %1575 = vrot.lane.b32.xlu2 %v6876_v52, %s6409_s9  ;;  %1573 = vrot.lane.b32.xlu1 %v6881_v54, %s6409_s9 }
  0x58   :  { %5875 = vmatpush.bf16.msra.mxu3 %v6586_v23  ;;  %1571 = vrot.lane.b32.xlu0 %v6886_v20, %s6409_s9  ;;  %v5744_v23 = vld [vmem:[%s12170_s0 + $0x4c] sm:$0xf] }
  0x59   :  { %1019 = vmatmul.bf16.gmra.mxu3 %v5581_v55  ;;  %899 = vmatmul.bf16.gmra.mxu0 %v5293_v56  ;;  %v5297_v9 = vor.u32 %v5744_v23, %v5294_v63  ;;  %v5604_v56 = vld [vmem:[%s12170_s0 + $0x2b8] sm:$0xf]  ;;  %v7018_v23 = vld [vmem:[%s12175_s5 + $0x160] sm:$0xff] }
  0x5a   :  { %v7023_v63 = vld [vmem:[%s12175_s5 + $0x158] sm:$0xff] }
  0x5b   :  { %1237 = vmatmul.bf16.gmra.mxu2 %v5301_v62  ;;  %v5751_v62 = vld [vmem:[%s12170_s0 + $0x80] sm:$0xf0] }
  0x5c   :  { %5876 = vmatpush.bf16.msra.mxu3 %v6616_v29 }
  0x5d   :  { %1068 = vmatmul.bf16.gmra.mxu1 %v5297_v9  ;;  %v5605_v9 = vor.u32 %v5823_v57, %v5604_v56  ;;  %v7067_v57 = vld [vmem:[%s12175_s5 + $0x168] sm:$0xff] }
  0x5f   :  { %1581 = vrot.lane.b32.xlu2 %v6911_v3, %s6409_s9  ;;  %1579 = vrot.lane.b32.xlu1 %v6916_v4, %s6409_s9 }
  0x60   :  { %5877 = vmatpush.bf16.msra.mxu3 %v6643_v34  ;;  %1577 = vrot.lane.b32.xlu0 %v6921_v10, %s6409_s9  ;;  %v5820_v34 = vld [vmem:[%s12170_s0 + $0x2a8] sm:$0xf0] }
  0x61   :  { %v6930_v29 = vpop.permute.xlu2 %1519  ;;  %v5593_v32 = vor.u32 %v5820_v34, %v5592_v17  ;;  %v7028_v17 = vld [vmem:[%s12175_s5 + $0x150] sm:$0xff]  ;;  %v5317_v34 = vor.u32 %v5751_v62, %v5316_v60 }
  0x62   :  { %12538 = vst [vmem:[#allocation8_spill] sm:$0xff] %v6930_v29  ;;  %v5330_v29 = vld [vmem:[%s12170_s0 + $0x9c] sm:$0xf0] }
  0x64   :  { %5878 = vmatpush.bf16.msra.mxu3 %v6674_v43  ;;  %v6958_v43 = vld [vmem:[%s12175_s5 + $0x120] sm:$0xff] }
  0x67   :  { %1587 = vrot.lane.b32.xlu2 %v6948_v26, %s6409_s9  ;;  %1585 = vrot.lane.b32.xlu1 %v6953_v28, %s6409_s9 }
  0x68   :  { %1583 = vrot.lane.b32.xlu0 %v6958_v43, %s6409_s9 }
  0x69   :  { %1024 = vmatmul.bf16.gmra.mxu3 %v5593_v32  ;;  %v6972_v39 = vpop.permute.xlu2 %1521  ;;  %904 = vmatmul.bf16.gmra.mxu0 %v5305_v35 }
  0x6a   :  { %12539 = vst [vmem:[#allocation9_spill] sm:$0xff] %v6972_v39 }
  0x6b   :  { %1242 = vmatmul.bf16.gmra.mxu2 %v5313_v41  ;;  %v5318_v41 = vld [vmem:[%s12170_s0 + $0x84] sm:$0xf0] }
  0x6c   :  { %v5321_v56 = vor.u32 %v5750_v36, %v5318_v41  ;;  %v7096_v36 = vld [vmem:[%s12175_s5 + $0x190] sm:$0xff]  ;;  %v7101_v41 = vld [vmem:[%s12175_s5 + $0x188] sm:$0xff] }
  0x6d   :  { %1073 = vmatmul.bf16.gmra.mxu1 %v5309_v14  ;;  %v7062_v14 = vld [vmem:[%s12175_s5 + $0x170] sm:$0xff]  ;;  %12548 = vst [vmem:[#allocation18_spill] sm:$0xff] %v7096_v36 }
  0x6f   :  { %1593 = vrot.lane.b32.xlu2 %v6983_v11, %s6409_s9  ;;  %1591 = vrot.lane.b32.xlu1 %v6988_v48, %s6409_s9 }
  0x70   :  { %1589 = vrot.lane.b32.xlu0 %v6993_v49, %s6409_s9 }
  0x71   :  { %v7001_v55 = vpop.permute.xlu2 %1527 }
  0x72   :  { %12540 = vst [vmem:[#allocation10_spill] sm:$0xff] %v7001_v55  ;;  %v5336_v55 = vld [vmem:[%s12170_s0 + $0x98] sm:$0xf] }
  0x77   :  { %1599 = vrot.lane.b32.xlu2 %v7018_v23, %s6409_s9  ;;  %1597 = vrot.lane.b32.xlu1 %v7023_v63, %s6409_s9 }
  0x78   :  { %1595 = vrot.lane.b32.xlu0 %v7028_v17, %s6409_s9 }
  0x79   :  { %1029 = vmatmul.bf16.gmra.mxu3 %v5605_v9  ;;  %v7042_v32 = vpop.permute.xlu2 %1533  ;;  %v7044_v35 = vpop.permute.xlu1 %1515  ;;  %909 = vmatmul.bf16.gmra.mxu0 %v5317_v34  ;;  %v5616_v9 = vld [vmem:[%s12170_s0 + $0x2d0] sm:$0xf]  ;;  %v5826_v34 = vld [vmem:[%s12170_s0 + $0x2d8] sm:$0xf0] }
  0x7a   :  { %12541 = vst [vmem:[#allocation11_spill] sm:$0xff] %v7042_v32  ;;  %v7052_v42 = vpop.permute.xlu0 %1511 }
  0x7b   :  { %12542 = vst [vmem:[#allocation12_spill] sm:$0xff] %v7044_v35  ;;  %1247 = vmatmul.bf16.gmra.mxu2 %v5325_v7  ;;  %v5754_v7 = vld [vmem:[%s12170_s0 + $0x98] sm:$0xf0]  ;;  %v5348_v35 = vld [vmem:[%s12170_s0 + $0xb0] sm:$0xf] }
  0x7c   :  { %12543 = vst [vmem:[#allocation13_spill] sm:$0xff] %v7052_v42  ;;  %v5329_v32 = vor.u32 %v5754_v7, %v5328_v22  ;;  %v5753_v7 = vld [vmem:[%s12170_s0 + $0x94] sm:$0xf] }
  0x7d   :  { %1078 = vmatmul.bf16.gmra.mxu1 %v5321_v56  ;;  %v5617_v56 = vor.u32 %v5826_v34, %v5616_v9 }
  0x7f   :  { %1605 = vrot.lane.b32.xlu2 %v7057_v46, %s6409_s9  ;;  %1603 = vrot.lane.b32.xlu1 %v7062_v14, %s6409_s9 }
  0x80   :  { %1601 = vrot.lane.b32.xlu0 %v7067_v57, %s6409_s9 }
  0x81   :  { %v7075_v60 = vpop.permute.xlu2 %1539  ;;  %v7077_v62 = vpop.permute.xlu1 %1517 }
  0x82   :  { %12545 = vst [vmem:[#allocation15_spill] sm:$0xff] %v7075_v60  ;;  %v7085_v21 = vpop.permute.xlu0 %1513  ;;  %v7106_v60 = vld [vmem:[%s12175_s5 + $0x180] sm:$0xff] }
  0x83   :  { %12546 = vst [vmem:[#allocation16_spill] sm:$0xff] %v7077_v62  ;;  %v5755_v62 = vld [vmem:[%s12170_s0 + $0xa0] sm:$0xf0] }
  0x84   :  { %12547 = vst [vmem:[#allocation17_spill] sm:$0xff] %v7085_v21  ;;  %v5337_v22 = vor.u32 %v5755_v62, %v5336_v55  ;;  %v7140_v55 = vld [vmem:[%s12175_s5 + $0x1a0] sm:$0xff]  ;;  %v7145_v62 = vld [vmem:[%s12175_s5 + $0x198] sm:$0xff] }
  0x85   :  { %12553 = vst [vmem:[#allocation23_spill] sm:$0xff] %v7140_v55 }
  0x86   :  { %12554 = vst [vmem:[#allocation24_spill] sm:$0xff] %v7145_v62 }
  0x87   :  { %1611 = vrot.lane.b32.xlu2 %v7096_v36, %s6409_s9  ;;  %1609 = vrot.lane.b32.xlu1 %v7101_v41, %s6409_s9 }
  0x88   :  { %1607 = vrot.lane.b32.xlu0 %v7106_v60, %s6409_s9 }
  0x89   :  { %1034 = vmatmul.bf16.gmra.mxu3 %v5617_v56  ;;  %v7120_v9 = vpop.permute.xlu2 %1545  ;;  %v7122_v34 = vpop.permute.xlu1 %1525  ;;  %914 = vmatmul.bf16.gmra.mxu0 %v5329_v32  ;;  %v7135_v56 = vld [vmem:[%s12175_s5 + $0x1a8] sm:$0xff]  ;;  %v5333_v32 = vor.u32 %v5753_v7, %v5330_v29 }
  0x8a   :  { %12549 = vst [vmem:[#allocation19_spill] sm:$0xff] %v7120_v9  ;;  %v7130_v39 = vpop.permute.xlu0 %1523  ;;  %v5628_v29 = vld [vmem:[%s12170_s0 + $0x2e8] sm:$0xf] }
  0x8b   :  { %12550 = vst [vmem:[#allocation20_spill] sm:$0xff] %v7122_v34  ;;  %1252 = vmatmul.bf16.gmra.mxu2 %v5337_v22  ;;  %v5829_v22 = vld [vmem:[%s12170_s0 + $0x2f0] sm:$0xf0] }
  0x8c   :  { %12551 = vst [vmem:[#allocation21_spill] sm:$0xff] %v7130_v39  ;;  %v5340_v39 = vld [vmem:[%s12170_s0 + $0xa8] sm:$0xf]  ;;  %v5629_v42 = vor.u32 %v5829_v22, %v5628_v29 }
  0x8d   :  { %12552 = vst [vmem:[#allocation22_spill] sm:$0xff] %v7135_v56  ;;  %1083 = vmatmul.bf16.gmra.mxu1 %v5333_v32  ;;  %v5757_v32 = vld [vmem:[%s12170_s0 + $0xb0] sm:$0xf0] }
  0x8e   :  { %v5341_v21 = vor.u32 %v5757_v32, %v5340_v39  ;;  %v5756_v32 = vld [vmem:[%s12170_s0 + $0xac] sm:$0xf] }
  0x8f   :  { %1617 = vrot.lane.b32.xlu2 %v7135_v56, %s6409_s9  ;;  %1615 = vrot.lane.b32.xlu1 %v7140_v55, %s6409_s9  ;;  %v5758_v56 = vld [vmem:[%s12170_s0 + $0xb8] sm:$0xf0] }
  0x90   :  { %1613 = vrot.lane.b32.xlu0 %v7145_v62, %s6409_s9  ;;  %v5349_v22 = vor.u32 %v5758_v56, %v5348_v35  ;;  %v7218_v35 = vld [vmem:[%s12175_s5 + $0x1d0] sm:$0xff]  ;;  %v7223_v56 = vld [vmem:[%s12175_s5 + $0x1c8] sm:$0xff]  ;;  %v5759_v62 = vld [vmem:[%s12170_s0 + $0xc4] sm:$0xf] }
  0x91   :  { %v7153_v9 = vpop.permute.xlu2 %1551  ;;  %v7155_v34 = vpop.permute.xlu1 %1531  ;;  %12565 = vst [vmem:[#allocation35_spill] sm:$0xff] %v7218_v35 }
  0x92   :  { %12555 = vst [vmem:[#allocation25_spill] sm:$0xff] %v7153_v9  ;;  %v7163_v7 = vpop.permute.xlu0 %1529  ;;  %v7174_v9 = vld [vmem:[%s12175_s5 + $0x1c0] sm:$0xff] }
  0x93   :  { %12556 = vst [vmem:[#allocation26_spill] sm:$0xff] %v7155_v34  ;;  %v7179_v34 = vld [vmem:[%s12175_s5 + $0x1b8] sm:$0xff] }
  0x94   :  { %12557 = vst [vmem:[#allocation27_spill] sm:$0xff] %v7163_v7  ;;  %v7184_v7 = vld [vmem:[%s12175_s5 + $0x1b0] sm:$0xff] }
  0x95   :  { %12558 = vst [vmem:[#allocation28_spill] sm:$0xff] %v7174_v9 }
  0x96   :  { %12559 = vst [vmem:[#allocation29_spill] sm:$0xff] %v7179_v34 }
  0x97   :  { %12560 = vst [vmem:[#allocation30_spill] sm:$0xff] %v7184_v7  ;;  %1623 = vrot.lane.b32.xlu2 %v7174_v9, %s6409_s9  ;;  %1621 = vrot.lane.b32.xlu1 %v7179_v34, %s6409_s9  ;;  %v5342_v9 = vld [vmem:[%s12170_s0 + $0xb4] sm:$0xf0]  ;;  %v5360_v34 = vld [vmem:[%s12170_s0 + $0xc8] sm:$0xf] }
  0x98   :  { %1619 = vrot.lane.b32.xlu0 %v7184_v7, %s6409_s9  ;;  %12566 = vst [vmem:[#allocation36_spill] sm:$0xff] %v7223_v56 }
  0x99   :  { %1039 = vmatmul.bf16.gmra.mxu3 %v5629_v42  ;;  %v7198_v29 = vpop.permute.xlu2 %1557  ;;  %v7200_v39 = vpop.permute.xlu1 %1537  ;;  %919 = vmatmul.bf16.gmra.mxu0 %v5341_v21  ;;  %v7213_v42 = vld [vmem:[%s12175_s5 + $0x1d8] sm:$0xff]  ;;  %v5345_v21 = vor.u32 %v5756_v32, %v5342_v9  ;;  %v5807_v9 = vld [vmem:[%s12170_s0 + $0x244] sm:$0xf] }
  0x9a   :  { %12561 = vst [vmem:[#allocation31_spill] sm:$0xff] %v7198_v29  ;;  %v7208_v36 = vpop.permute.xlu0 %1535 }
  0x9b   :  { %12562 = vst [vmem:[#allocation32_spill] sm:$0xff] %v7200_v39  ;;  %1257 = vmatmul.bf16.gmra.mxu2 %v5349_v22  ;;  %v5546_v22 = vld [vmem:[%s12170_s0 + $0x24c] sm:$0xf0] }
  0x9c   :  { %12563 = vst [vmem:[#allocation33_spill] sm:$0xff] %v7208_v36  ;;  %v5352_v36 = vld [vmem:[%s12170_s0 + $0xc0] sm:$0xf] }
  0x9d   :  { %12564 = vst [vmem:[#allocation34_spill] sm:$0xff] %v7213_v42  ;;  %1088 = vmatmul.bf16.gmra.mxu1 %v5345_v21  ;;  %v5760_v21 = vld [vmem:[%s12170_s0 + $0xc8] sm:$0xf0] }
  0x9f   :  { %1629 = vrot.lane.b32.xlu2 %v7213_v42, %s6409_s9  ;;  %1627 = vrot.lane.b32.xlu1 %v7218_v35, %s6409_s9  ;;  %v5549_v42 = vor.u32 %v5807_v9, %v5546_v22  ;;  %v7267_v35 = vld [vmem:[%s12172_s2] ss:$0 sm:$0xff]  ;;  %v5761_v9 = vld [vmem:[%s12170_s0 + $0xd0] sm:$0xf0] }
  0xa0   :  { %1625 = vrot.lane.b32.xlu0 %v7223_v56, %s6409_s9  ;;  %v5353_v56 = vor.u32 %v5760_v21, %v5352_v36  ;;  %v5361_v21 = vor.u32 %v5761_v9, %v5360_v34  ;;  %v7299_v34 = vld [vmem:[%s12175_s5 + $0x1f8] sm:$0xff] }
  0xa1   :  { %v7231_v29 = vpop.permute.xlu2 %1563  ;;  %v7233_v39 = vpop.permute.xlu1 %1543  ;;  %12576 = vst [vmem:[#allocation46_spill] sm:$0xff] %v7299_v34 }
  0xa2   :  { %12567 = vst [vmem:[#allocation37_spill] sm:$0xff] %v7231_v29  ;;  %v7241_v32 = vpop.permute.xlu0 %1541  ;;  %v7252_v29 = vld [vmem:[%s12175_s5 + $0x1f0] sm:$0xff] }
  0xa3   :  { %12568 = vst [vmem:[#allocation38_spill] sm:$0xff] %v7233_v39  ;;  %v7257_v39 = vld [vmem:[%s12175_s5 + $0x1e8] sm:$0xff] }
  0xa4   :  { %12569 = vst [vmem:[#allocation39_spill] sm:$0xff] %v7241_v32  ;;  %v7262_v32 = vld [vmem:[%s12175_s5 + $0x1e0] sm:$0xff] }
  0xa5   :  { %12570 = vst [vmem:[#allocation40_spill] sm:$0xff] %v7252_v29 }
  0xa6   :  { %12571 = vst [vmem:[#allocation41_spill] sm:$0xff] %v7257_v39  ;;  %v885_v7 = vpop.f32.mrf.mxu0 }
  0xa7   :  { %12572 = vst [vmem:[#allocation42_spill] sm:$0xff] %v7262_v32  ;;  %1635 = vrot.lane.b32.xlu2 %v7252_v29, %s6409_s9  ;;  %1633 = vrot.lane.b32.xlu1 %v7257_v39, %s6409_s9  ;;  %v5354_v29 = vld [vmem:[%s12170_s0 + $0xcc] sm:$0xf0]  ;;  %v886_v39 = vadd.f32 %v7267_v35, %v885_v7 }
  0xa8   :  { %1631 = vrot.lane.b32.xlu0 %v7262_v32, %s6409_s9 }
  0xa9   :  { %1173 = vmatmul.bf16.vlgmr.msrb.gmra.mxu3 %v5549_v42  ;;  %v7281_v36 = vpop.permute.xlu2 %1569  ;;  %v7283_v22 = vpop.permute.xlu1 %1549  ;;  %924 = vmatmul.bf16.gmra.mxu0 %v5353_v56  ;;  %v5357_v42 = vor.u32 %v5759_v62, %v5354_v29 }
  0xaa   :  { %12573 = vst [vmem:[#allocation43_spill] sm:$0xff] %v7281_v36  ;;  %v7291_v55 = vpop.permute.xlu0 %1547  ;;  %v1054_v56 = vpop.f32.mrf.mxu1 }
  0xab   :  { %12574 = vst [vmem:[#allocation44_spill] sm:$0xff] %v7283_v22  ;;  %1262 = vmatmul.bf16.gmra.mxu2 %v5361_v21  ;;  %v1055_v9 = vadd.f32 %v1054_v56, %v886_v39  ;;  %v5810_v39 = vld [vmem:[%s12170_s0 + $0x25c] sm:$0xf] }
  0xac   :  { %12575 = vst [vmem:[#allocation45_spill] sm:$0xff] %v7291_v55  ;;  %v7294_v32 = vpop.f32.mrf.mxu3 }
  0xad   :  { %v1223_v62 = vpop.f32.mrf.mxu2  ;;  %1093 = vmatmul.bf16.gmra.mxu1 %v5357_v42  ;;  %v5364_v42 = vld [vmem:[%s12170_s0 + $0xd8] sm:$0xf] }
  0xae   :  { %v887_v36 = vpop.f32.mrf.mxu0  ;;  %v7317_v21 = vadd.f32 %v1223_v62, %v1055_v9  ;;  %v5372_v62 = vld [vmem:[%s12170_s0 + $0xe0] sm:$0xf] }
  0xaf   :  { %1705 = vrot.lane.b32.xlu2 %v6500_v8, %s6410_s3  ;;  %1703 = vrot.lane.b32.xlu1 %v6468_v2, %s6410_s3  ;;  %v5558_v8 = vld [vmem:[%s12170_s0 + $0x264] sm:$0xf0]  ;;  %v888_v56 = vadd.f32 %v7267_v35, %v887_v36  ;;  %v5764_v36 = vld [vmem:[%s12170_s0 + $0xe8] sm:$0xf0] }
  0xb0   :  { %1637 = vrot.lane.b32.xlu0 %v7299_v34, %s6409_s9  ;;  %12579 = vst [vmem:[#allocation49_spill] sm:$0xff] %v7317_v21  ;;  %v5561_v22 = vor.u32 %v5810_v39, %v5558_v8 }
  0xb1   :  { %v7307_v7 = vpop.permute.xlu2 %1575  ;;  %v7309_v29 = vpop.permute.xlu1 %1555 }
  0xb2   :  { %12577 = vst [vmem:[#allocation47_spill] sm:$0xff] %v7307_v7  ;;  %v7319_v2 = vpop.permute.xlu0 %1553  ;;  %v5763_v7 = vld [vmem:[%s12170_s0 + $0xe0] sm:$0xf0]  ;;  %v1056_v55 = vpop.f32.mrf.mxu1 }
  0xb3   :  { %12578 = vst [vmem:[#allocation48_spill] sm:$0xff] %v7309_v29  ;;  %v5365_v34 = vor.u32 %v5763_v7, %v5364_v42  ;;  %v1057_v46 = vadd.f32 %v1056_v55, %v888_v56  ;;  %v5373_v56 = vor.u32 %v5764_v36, %v5372_v62 }
  0xb4   :  { %12580 = vst [vmem:[#allocation50_spill] sm:$0xff] %v7319_v2  ;;  %v7328_v29 = vpop.f32.mrf.mxu3 }
  0xb5   :  { %v1225_v55 = vpop.f32.mrf.mxu2 }
  0xb6   :  { %v890_v9 = vpop.f32.mrf.mxu0  ;;  %v7346_v8 = vadd.f32 %v1225_v55, %v1057_v46 }
  0xb7   :  { %1711 = vrot.lane.b32.xlu2 %v6458_v0, %s6410_s3  ;;  %1709 = vrot.lane.b32.xlu1 %v6490_v6, %s6410_s3  ;;  %v5762_v0 = vld [vmem:[%s12170_s0 + $0xdc] sm:$0xf]  ;;  %v5366_v6 = vld [vmem:[%s12170_s0 + $0xe4] sm:$0xf0] }
  0xb8   :  { %1707 = vrot.lane.b32.xlu0 %v6463_v1, %s6410_s3  ;;  %12583 = vst [vmem:[#allocation53_spill] sm:$0xff] %v7346_v8  ;;  %v891_v1 = vadd.f32 %v7267_v35, %v890_v9 }
  0xb9   :  { %1178 = vmatmul.bf16.gmra.mxu3 %v5561_v22  ;;  %v7342_v7 = vpop.permute.xlu2 %1581  ;;  %v7344_v39 = vpop.permute.xlu1 %1561  ;;  %929 = vmatmul.bf16.gmra.mxu0 %v5365_v34 }
  0xba   :  { %12581 = vst [vmem:[#allocation51_spill] sm:$0xff] %v7342_v7  ;;  %v7354_v42 = vpop.permute.xlu0 %1559  ;;  %v5369_v7 = vor.u32 %v5762_v0, %v5366_v6  ;;  %v1059_v46 = vpop.f32.mrf.mxu1  ;;  %v5766_v6 = vld [vmem:[%s12170_s0 + $0xf8] sm:$0xf0] }
  0xbb   :  { %12582 = vst [vmem:[#allocation52_spill] sm:$0xff] %v7344_v39  ;;  %1267 = vmatmul.bf16.gmra.mxu2 %v5373_v56  ;;  %v1060_v55 = vadd.f32 %v1059_v46, %v891_v1  ;;  %v5813_v56 = vld [vmem:[%s12170_s0 + $0x274] sm:$0xf] }
  0xbc   :  { %12584 = vst [vmem:[#allocation54_spill] sm:$0xff] %v7354_v42  ;;  %v7357_v22 = vpop.f32.mrf.mxu3  ;;  %v12643_v42 = vld [vmem:[#allocation30_spill] sm:$0xff] }
  0xbd   :  { %v1228_v34 = vpop.f32.mrf.mxu2  ;;  %1098 = vmatmul.bf16.gmra.mxu1 %v5369_v7  ;;  %v5376_v7 = vld [vmem:[%s12170_s0 + $0xf0] sm:$0xf] }
  0xbe   :  { %v892_v62 = vpop.f32.mrf.mxu0  ;;  %v7375_v0 = vadd.f32 %v1228_v34, %v1060_v55  ;;  %v5384_v34 = vld [vmem:[%s12170_s0 + $0xf8] sm:$0xf] }
  0xbf   :  { %1717 = vrot.lane.b32.xlu2 %v6545_v16, %s6410_s3  ;;  %1715 = vrot.lane.b32.xlu1 %v6556_v18, %s6410_s3  ;;  %v5570_v16 = vld [vmem:[%s12170_s0 + $0x27c] sm:$0xf0] }
  0xc0   :  { %1713 = vrot.lane.b32.xlu0 %v6485_v5, %s6410_s3  ;;  %12587 = vst [vmem:[#allocation57_spill] sm:$0xff] %v7375_v0  ;;  %v893_v5 = vadd.f32 %v7267_v35, %v892_v62  ;;  %v5573_v46 = vor.u32 %v5813_v56, %v5570_v16  ;;  %v5767_v62 = vld [vmem:[%s12170_s0 + $0x100] sm:$0xf0] }
  0xc1   :  { %v7365_v36 = vpop.permute.xlu2 %1587  ;;  %v7367_v9 = vpop.permute.xlu1 %1567 }
  0xc2   :  { %12585 = vst [vmem:[#allocation55_spill] sm:$0xff] %v7365_v36  ;;  %v7377_v18 = vpop.permute.xlu0 %1565  ;;  %v1061_v36 = vpop.f32.mrf.mxu1 }
  0xc3   :  { %12586 = vst [vmem:[#allocation56_spill] sm:$0xff] %v7367_v9  ;;  %v5377_v9 = vor.u32 %v5766_v6, %v5376_v7  ;;  %v1062_v39 = vadd.f32 %v1061_v36, %v893_v5  ;;  %v5385_v7 = vor.u32 %v5767_v62, %v5384_v34 }
  0xc4   :  { %12588 = vst [vmem:[#allocation58_spill] sm:$0xff] %v7377_v18  ;;  %v7386_v1 = vpop.f32.mrf.mxu3  ;;  %v12642_v18 = vld [vmem:[#allocation29_spill] sm:$0xff] }
  0xc5   :  { %v1230_v36 = vpop.f32.mrf.mxu2 }
  0xc6   :  { %v895_v55 = vpop.f32.mrf.mxu0  ;;  %v7404_v5 = vadd.f32 %v1230_v36, %v1062_v39 }
  0xc7   :  { %1723 = vrot.lane.b32.xlu2 %v6596_v25, %s6410_s3  ;;  %1721 = vrot.lane.b32.xlu1 %v6607_v27, %s6410_s3  ;;  %v5765_v25 = vld [vmem:[%s12170_s0 + $0xf4] sm:$0xf]  ;;  %v5378_v27 = vld [vmem:[%s12170_s0 + $0xfc] sm:$0xf0] }
  0xc8   :  { %1719 = vrot.lane.b32.xlu0 %v6540_v15, %s6410_s3  ;;  %12591 = vst [vmem:[#allocation61_spill] sm:$0xff] %v7404_v5  ;;  %v896_v15 = vadd.f32 %v7267_v35, %v895_v55 }
  0xc9   :  { %1183 = vmatmul.bf16.gmra.mxu3 %v5573_v46  ;;  %v7400_v56 = vpop.permute.xlu2 %1593  ;;  %v7402_v16 = vpop.permute.xlu1 %1573  ;;  %934 = vmatmul.bf16.gmra.mxu0 %v5377_v9 }
  0xca   :  { %12589 = vst [vmem:[#allocation59_spill] sm:$0xff] %v7400_v56  ;;  %v7412_v6 = vpop.permute.xlu0 %1571  ;;  %v5381_v56 = vor.u32 %v5765_v25, %v5378_v27  ;;  %v1064_v39 = vpop.f32.mrf.mxu1  ;;  %v5769_v27 = vld [vmem:[%s12170_s0 + $0x110] sm:$0xf0] }
  0xcb   :  { %12590 = vst [vmem:[#allocation60_spill] sm:$0xff] %v7402_v16  ;;  %1272 = vmatmul.bf16.gmra.mxu2 %v5385_v7  ;;  %v1065_v36 = vadd.f32 %v1064_v39, %v896_v15  ;;  %v5816_v7 = vld [vmem:[%s12170_s0 + $0x28c] sm:$0xf]  ;;  %v12638_v16 = vld [vmem:[#allocation24_spill] sm:$0xff] }
  0xcc   :  { %12592 = vst [vmem:[#allocation62_spill] sm:$0xff] %v7412_v6  ;;  %v7415_v46 = vpop.f32.mrf.mxu3 }
  0xcd   :  { %1103 = vmatmul.bf16.gmra.mxu1 %v5381_v56  ;;  %v5388_v56 = vld [vmem:[%s12170_s0 + $0x108] sm:$0xf] }
  0xce   :  { %v897_v34 = vpop.f32.mrf.mxu0  ;;  %v1233_v9 = vpop.f32.mrf.mxu2 }
  0xcf   :  { %1729 = vrot.lane.b32.xlu2 %v6659_v38, %s6410_s3  ;;  %1727 = vrot.lane.b32.xlu1 %v6665_v40, %s6410_s3  ;;  %v5582_v38 = vld [vmem:[%s12170_s0 + $0x294] sm:$0xf0]  ;;  %v7433_v25 = vadd.f32 %v1233_v9, %v1065_v36  ;;  %v5396_v9 = vld [vmem:[%s12170_s0 + $0x110] sm:$0xf] }
  0xd0   :  { %1725 = vrot.lane.b32.xlu0 %v6591_v24, %s6410_s3  ;;  %v898_v24 = vadd.f32 %v7267_v35, %v897_v34  ;;  %v5585_v39 = vor.u32 %v5816_v7, %v5582_v38  ;;  %v5770_v34 = vld [vmem:[%s12170_s0 + $0x118] sm:$0xf0] }
  0xd1   :  { %v7423_v62 = vpop.permute.xlu2 %1599  ;;  %v7425_v55 = vpop.permute.xlu1 %1579  ;;  %12595 = vst [vmem:[#allocation65_spill] sm:$0xff] %v7433_v25 }
  0xd2   :  { %12593 = vst [vmem:[#allocation63_spill] sm:$0xff] %v7423_v62  ;;  %v7435_v40 = vpop.permute.xlu0 %1577  ;;  %v5389_v62 = vor.u32 %v5769_v27, %v5388_v56  ;;  %v5397_v56 = vor.u32 %v5770_v34, %v5396_v9 }
  0xd3   :  { %12594 = vst [vmem:[#allocation64_spill] sm:$0xff] %v7425_v55  ;;  %v1066_v55 = vpop.f32.mrf.mxu1 }
  0xd4   :  { %12596 = vst [vmem:[#allocation66_spill] sm:$0xff] %v7435_v40  ;;  %v7444_v15 = vpop.f32.mrf.mxu3  ;;  %v1067_v6 = vadd.f32 %v1066_v55, %v898_v24  ;;  %v12637_v40 = vld [vmem:[#allocation23_spill] sm:$0xff] }
  0xd6   :  { %v900_v36 = vpop.f32.mrf.mxu0  ;;  %v1235_v55 = vpop.f32.mrf.mxu2 }
  0xd7   :  { %1735 = vrot.lane.b32.xlu2 %v6708_v51, %s6410_s3  ;;  %1733 = vrot.lane.b32.xlu1 %v6713_v53, %s6410_s3  ;;  %v7462_v24 = vadd.f32 %v1235_v55, %v1067_v6  ;;  %v5768_v51 = vld [vmem:[%s12170_s0 + $0x10c] sm:$0xf]  ;;  %v5390_v53 = vld [vmem:[%s12170_s0 + $0x114] sm:$0xf0] }
  0xd8   :  { %1731 = vrot.lane.b32.xlu0 %v6654_v37, %s6410_s3  ;;  %v901_v37 = vadd.f32 %v7267_v35, %v900_v36 }
  0xd9   :  { %1188 = vmatmul.bf16.gmra.mxu3 %v5585_v39  ;;  %v7458_v7 = vpop.permute.xlu2 %1605  ;;  %v7460_v38 = vpop.permute.xlu1 %1585  ;;  %12599 = vst [vmem:[#allocation69_spill] sm:$0xff] %v7462_v24  ;;  %939 = vmatmul.bf16.gmra.mxu0 %v5389_v62 }
  0xda   :  { %12597 = vst [vmem:[#allocation67_spill] sm:$0xff] %v7458_v7  ;;  %v7470_v27 = vpop.permute.xlu0 %1583  ;;  %v5393_v7 = vor.u32 %v5768_v51, %v5390_v53  ;;  %v5772_v53 = vld [vmem:[%s12170_s0 + $0x128] sm:$0xf0] }
  0xdb   :  { %12598 = vst [vmem:[#allocation68_spill] sm:$0xff] %v7460_v38  ;;  %1277 = vmatmul.bf16.gmra.mxu2 %v5397_v56  ;;  %v1069_v6 = vpop.f32.mrf.mxu1  ;;  %v5819_v56 = vld [vmem:[%s12170_s0 + $0x2a4] sm:$0xf]  ;;  %v5788_v38 = vld [vmem:[%s12170_s0 + $0x1a8] sm:$0xf0] }
  0xdc   :  { %12600 = vst [vmem:[#allocation70_spill] sm:$0xff] %v7470_v27  ;;  %v7473_v39 = vpop.f32.mrf.mxu3  ;;  %v1070_v55 = vadd.f32 %v1069_v6, %v901_v37 }
  0xdd   :  { %1108 = vmatmul.bf16.gmra.mxu1 %v5393_v7  ;;  %v5400_v7 = vld [vmem:[%s12170_s0 + $0x120] sm:$0xf] }
  0xde   :  { %v902_v9 = vpop.f32.mrf.mxu0  ;;  %v1238_v62 = vpop.f32.mrf.mxu2 }
  0xdf   :  { %1741 = vrot.lane.b32.xlu2 %v6743_v59, %s6410_s3  ;;  %1739 = vrot.lane.b32.xlu1 %v6748_v61, %s6410_s3  ;;  %v5594_v59 = vld [vmem:[%s12170_s0 + $0x2ac] sm:$0xf0]  ;;  %v7491_v51 = vadd.f32 %v1238_v62, %v1070_v55  ;;  %v5408_v62 = vld [vmem:[%s12170_s0 + $0x128] sm:$0xf] }
  0xe0   :  { %1737 = vrot.lane.b32.xlu0 %v6703_v50, %s6410_s3  ;;  %v903_v50 = vadd.f32 %v7267_v35, %v902_v9  ;;  %v5597_v6 = vor.u32 %v5819_v56, %v5594_v59  ;;  %v5773_v9 = vld [vmem:[%s12170_s0 + $0x130] sm:$0xf0] }
  0xe1   :  { %v7481_v34 = vpop.permute.xlu2 %1611  ;;  %v7483_v36 = vpop.permute.xlu1 %1591  ;;  %12603 = vst [vmem:[#allocation73_spill] sm:$0xff] %v7491_v51 }
  0xe2   :  { %12601 = vst [vmem:[#allocation71_spill] sm:$0xff] %v7481_v34  ;;  %v7493_v61 = vpop.permute.xlu0 %1589 }
  0xe3   :  { %12602 = vst [vmem:[#allocation72_spill] sm:$0xff] %v7483_v36  ;;  %v1071_v34 = vpop.f32.mrf.mxu1  ;;  %v5401_v36 = vor.u32 %v5772_v53, %v5400_v7  ;;  %v5409_v7 = vor.u32 %v5773_v9, %v5408_v62 }
  0xe4   :  { %12604 = vst [vmem:[#allocation74_spill] sm:$0xff] %v7493_v61  ;;  %v7502_v37 = vpop.f32.mrf.mxu3  ;;  %v1072_v27 = vadd.f32 %v1071_v34, %v903_v50 }
  0xe6   :  { %v905_v55 = vpop.f32.mrf.mxu0  ;;  %v1240_v34 = vpop.f32.mrf.mxu2 }
  0xe7   :  { %1747 = vrot.lane.b32.xlu2 %v6778_v13, %s6410_s3  ;;  %1745 = vrot.lane.b32.xlu1 %v6783_v19, %s6410_s3  ;;  %v7520_v50 = vadd.f32 %v1240_v34, %v1072_v27  ;;  %v5771_v13 = vld [vmem:[%s12170_s0 + $0x124] sm:$0xf]  ;;  %v5402_v19 = vld [vmem:[%s12170_s0 + $0x12c] sm:$0xf0] }
  0xe8   :  { %1743 = vrot.lane.b32.xlu0 %v6738_v58, %s6410_s3  ;;  %v906_v58 = vadd.f32 %v7267_v35, %v905_v55 }
  0xe9   :  { %1193 = vmatmul.bf16.gmra.mxu3 %v5597_v6  ;;  %v7516_v56 = vpop.permute.xlu2 %1617  ;;  %v7518_v59 = vpop.permute.xlu1 %1597  ;;  %12607 = vst [vmem:[#allocation77_spill] sm:$0xff] %v7520_v50  ;;  %944 = vmatmul.bf16.gmra.mxu0 %v5401_v36 }
  0xea   :  { %12605 = vst [vmem:[#allocation75_spill] sm:$0xff] %v7516_v56  ;;  %v7528_v53 = vpop.permute.xlu0 %1595  ;;  %v5405_v56 = vor.u32 %v5771_v13, %v5402_v19  ;;  %v5775_v19 = vld [vmem:[%s12170_s0 + $0x140] sm:$0xf0] }
  0xeb   :  { %12606 = vst [vmem:[#allocation76_spill] sm:$0xff] %v7518_v59  ;;  %1282 = vmatmul.bf16.gmra.mxu2 %v5409_v7  ;;  %v1074_v27 = vpop.f32.mrf.mxu1  ;;  %v5822_v7 = vld [vmem:[%s12170_s0 + $0x2bc] sm:$0xf] }
  0xec   :  { %12608 = vst [vmem:[#allocation78_spill] sm:$0xff] %v7528_v53  ;;  %v7531_v6 = vpop.f32.mrf.mxu3  ;;  %v1075_v34 = vadd.f32 %v1074_v27, %v906_v58 }
  0xed   :  { %1113 = vmatmul.bf16.gmra.mxu1 %v5405_v56  ;;  %v5412_v56 = vld [vmem:[%s12170_s0 + $0x138] sm:$0xf] }
  0xee   :  { %v907_v62 = vpop.f32.mrf.mxu0  ;;  %v1243_v36 = vpop.f32.mrf.mxu2 }
  0xef   :  { %1753 = vrot.lane.b32.xlu2 %v6812_v31, %s6410_s3  ;;  %1751 = vrot.lane.b32.xlu1 %v6817_v33, %s6410_s3  ;;  %v5606_v31 = vld [vmem:[%s12170_s0 + $0x2c4] sm:$0xf0]  ;;  %v7549_v13 = vadd.f32 %v1243_v36, %v1075_v34  ;;  %v5420_v36 = vld [vmem:[%s12170_s0 + $0x140] sm:$0xf] }
  0xf0   :  { %1749 = vrot.lane.b32.xlu0 %v6773_v12, %s6410_s3  ;;  %v908_v12 = vadd.f32 %v7267_v35, %v907_v62  ;;  %v5609_v27 = vor.u32 %v5822_v7, %v5606_v31  ;;  %v5776_v62 = vld [vmem:[%s12170_s0 + $0x148] sm:$0xf0] }
  0xf1   :  { %v7539_v9 = vpop.permute.xlu2 %1623  ;;  %v7541_v55 = vpop.permute.xlu1 %1603  ;;  %12611 = vst [vmem:[#allocation81_spill] sm:$0xff] %v7549_v13 }
  0xf2   :  { %12609 = vst [vmem:[#allocation79_spill] sm:$0xff] %v7539_v9  ;;  %v7551_v33 = vpop.permute.xlu0 %1601 }
  0xf3   :  { %12610 = vst [vmem:[#allocation80_spill] sm:$0xff] %v7541_v55  ;;  %v1076_v9 = vpop.f32.mrf.mxu1  ;;  %v5413_v55 = vor.u32 %v5775_v19, %v5412_v56  ;;  %v5421_v56 = vor.u32 %v5776_v62, %v5420_v36 }
  0xf4   :  { %12612 = vst [vmem:[#allocation82_spill] sm:$0xff] %v7551_v33  ;;  %v7560_v58 = vpop.f32.mrf.mxu3  ;;  %v1077_v53 = vadd.f32 %v1076_v9, %v908_v12 }
  0xf6   :  { %v910_v34 = vpop.f32.mrf.mxu0  ;;  %v1245_v9 = vpop.f32.mrf.mxu2 }
  0xf7   :  { %1759 = vrot.lane.b32.xlu2 %v6846_v45, %s6410_s3  ;;  %1757 = vrot.lane.b32.xlu1 %v6851_v47, %s6410_s3  ;;  %v7578_v12 = vadd.f32 %v1245_v9, %v1077_v53  ;;  %v5774_v45 = vld [vmem:[%s12170_s0 + $0x13c] sm:$0xf]  ;;  %v5414_v47 = vld [vmem:[%s12170_s0 + $0x144] sm:$0xf0] }
  0xf8   :  { %1755 = vrot.lane.b32.xlu0 %v6807_v30, %s6410_s3  ;;  %v911_v30 = vadd.f32 %v7267_v35, %v910_v34 }
  0xf9   :  { %1198 = vmatmul.bf16.gmra.mxu3 %v5609_v27  ;;  %v7574_v7 = vpop.permute.xlu2 %1629  ;;  %v7576_v31 = vpop.permute.xlu1 %1609  ;;  %12615 = vst [vmem:[#allocation85_spill] sm:$0xff] %v7578_v12  ;;  %949 = vmatmul.bf16.gmra.mxu0 %v5413_v55 }
  0xfa   :  { %12613 = vst [vmem:[#allocation83_spill] sm:$0xff] %v7574_v7  ;;  %v7586_v19 = vpop.permute.xlu0 %1607  ;;  %v5417_v7 = vor.u32 %v5774_v45, %v5414_v47  ;;  %v5778_v47 = vld [vmem:[%s12170_s0 + $0x158] sm:$0xf0] }
  0xfb   :  { %12614 = vst [vmem:[#allocation84_spill] sm:$0xff] %v7576_v31  ;;  %1287 = vmatmul.bf16.gmra.mxu2 %v5421_v56  ;;  %v1079_v53 = vpop.f32.mrf.mxu1  ;;  %v5825_v56 = vld [vmem:[%s12170_s0 + $0x2d4] sm:$0xf] }
  0xfc   :  { %12616 = vst [vmem:[#allocation86_spill] sm:$0xff] %v7586_v19  ;;  %v7589_v27 = vpop.f32.mrf.mxu3  ;;  %v1080_v9 = vadd.f32 %v1079_v53, %v911_v30 }
  0xfd   :  { %1118 = vmatmul.bf16.gmra.mxu1 %v5417_v7  ;;  %v5424_v7 = vld [vmem:[%s12170_s0 + $0x150] sm:$0xf] }
  0xfe   :  { %v912_v36 = vpop.f32.mrf.mxu0  ;;  %v1248_v55 = vpop.f32.mrf.mxu2 }
  0xff   :  { %1765 = vrot.lane.b32.xlu2 %v6881_v54, %s6410_s3  ;;  %1763 = vrot.lane.b32.xlu1 %v6886_v20, %s6410_s3  ;;  %v5618_v54 = vld [vmem:[%s12170_s0 + $0x2dc] sm:$0xf0]  ;;  %v7607_v45 = vadd.f32 %v1248_v55, %v1080_v9  ;;  %v5432_v55 = vld [vmem:[%s12170_s0 + $0x158] sm:$0xf] }
 0x100   :  { %1761 = vrot.lane.b32.xlu0 %v6841_v44, %s6410_s3  ;;  %v913_v44 = vadd.f32 %v7267_v35, %v912_v36  ;;  %v5621_v53 = vor.u32 %v5825_v56, %v5618_v54  ;;  %v5779_v36 = vld [vmem:[%s12170_s0 + $0x160] sm:$0xf0] }
 0x101   :  { %v7597_v62 = vpop.permute.xlu2 %1635  ;;  %v7599_v34 = vpop.permute.xlu1 %1615  ;;  %12619 = vst [vmem:[#allocation89_spill] sm:$0xff] %v7607_v45 }
 0x102   :  { %12617 = vst [vmem:[#allocation87_spill] sm:$0xff] %v7597_v62  ;;  %v7609_v20 = vpop.permute.xlu0 %1613 }
 0x103   :  { %12618 = vst [vmem:[#allocation88_spill] sm:$0xff] %v7599_v34  ;;  %v1081_v62 = vpop.f32.mrf.mxu1  ;;  %v5425_v34 = vor.u32 %v5778_v47, %v5424_v7  ;;  %v5433_v7 = vor.u32 %v5779_v36, %v5432_v55 }
 0x104   :  { %12620 = vst [vmem:[#allocation90_spill] sm:$0xff] %v7609_v20  ;;  %v7618_v30 = vpop.f32.mrf.mxu3  ;;  %v1082_v31 = vadd.f32 %v1081_v62, %v913_v44 }
 0x106   :  { %v915_v9 = vpop.f32.mrf.mxu0  ;;  %v1250_v62 = vpop.f32.mrf.mxu2 }
 0x107   :  { %1771 = vrot.lane.b32.xlu2 %v6916_v4, %s6410_s3  ;;  %1769 = vrot.lane.b32.xlu1 %v6921_v10, %s6410_s3  ;;  %v7636_v44 = vadd.f32 %v1250_v62, %v1082_v31  ;;  %v5777_v4 = vld [vmem:[%s12170_s0 + $0x154] sm:$0xf]  ;;  %v5426_v10 = vld [vmem:[%s12170_s0 + $0x15c] sm:$0xf0] }
 0x108   :  { %1767 = vrot.lane.b32.xlu0 %v6876_v52, %s6410_s3  ;;  %v916_v52 = vadd.f32 %v7267_v35, %v915_v9 }
 0x109   :  { %1203 = vmatmul.bf16.gmra.mxu3 %v5621_v53  ;;  %v7632_v56 = vpop.permute.xlu1 %1621  ;;  %v7634_v54 = vpop.permute.xlu2 %1705  ;;  %12622 = vst [vmem:[#allocation92_spill] sm:$0xff] %v7636_v44  ;;  %954 = vmatmul.bf16.gmra.mxu0 %v5425_v34 }
 0x10a   :  { %12621 = vst [vmem:[#allocation91_spill] sm:$0xff] %v7632_v56  ;;  %v7644_v47 = vpop.permute.xlu0 %1619  ;;  %v5429_v56 = vor.u32 %v5777_v4, %v5426_v10  ;;  %v5781_v10 = vld [vmem:[%s12170_s0 + $0x170] sm:$0xf0] }
 0x10b   :  { %12623 = vst [vmem:[#allocation93_spill] sm:$0xff] %v7644_v47  ;;  %1292 = vmatmul.bf16.gmra.mxu2 %v5433_v7  ;;  %v1084_v31 = vpop.f32.mrf.mxu1  ;;  %v5828_v7 = vld [vmem:[%s12170_s0 + $0x2ec] sm:$0xf] }
 0x10c   :  { %v7647_v53 = vpop.f32.mrf.mxu3  ;;  %v1085_v62 = vadd.f32 %v1084_v31, %v916_v52 }
 0x10d   :  { %1123 = vmatmul.bf16.gmra.mxu1 %v5429_v56  ;;  %v5436_v56 = vld [vmem:[%s12170_s0 + $0x168] sm:$0xf] }
 0x10e   :  { %v917_v55 = vpop.f32.mrf.mxu0  ;;  %v1253_v34 = vpop.f32.mrf.mxu2  ;;  %v5437_v47 = vor.u32 %v5781_v10, %v5436_v56 }
 0x10f   :  { %1777 = vrot.lane.b32.xlu2 %v6953_v28, %s6410_s3  ;;  %1775 = vrot.lane.b32.xlu1 %v6958_v43, %s6410_s3  ;;  %v5630_v28 = vld [vmem:[%s12170_s0 + $0x2f4] sm:$0xf0]  ;;  %v7665_v4 = vadd.f32 %v1253_v34, %v1085_v62  ;;  %v5444_v34 = vld [vmem:[%s12170_s0 + $0x170] sm:$0xf] }
 0x110   :  { %1773 = vrot.lane.b32.xlu0 %v6911_v3, %s6410_s3  ;;  %v918_v3 = vadd.f32 %v7267_v35, %v917_v55  ;;  %v5633_v31 = vor.u32 %v5828_v7, %v5630_v28  ;;  %v5782_v55 = vld [vmem:[%s12170_s0 + $0x178] sm:$0xf0] }
 0x111   :  { %v7655_v36 = vpop.permute.xlu1 %1627  ;;  %v7657_v9 = vpop.permute.xlu2 %1711  ;;  %12625 = vst [vmem:[#allocation95_spill] sm:$0xff] %v7665_v4  ;;  %v5445_v56 = vor.u32 %v5782_v55, %v5444_v34  ;;  %v8110_v4 = vld [vmem:[%s12175_s5 + $0x60] sm:$0xff] }
 0x112   :  { %12624 = vst [vmem:[#allocation94_spill] sm:$0xff] %v7655_v36  ;;  %v7667_v43 = vpop.permute.xlu0 %1625 }
 0x113   :  { %12626 = vst [vmem:[#allocation96_spill] sm:$0xff] %v7667_v43  ;;  %v1086_v36 = vpop.f32.mrf.mxu1 }
 0x114   :  { %v7676_v52 = vpop.f32.mrf.mxu3  ;;  %v1087_v20 = vadd.f32 %v1086_v36, %v918_v3 }
 0x116   :  { %v920_v62 = vpop.f32.mrf.mxu0  ;;  %v1255_v36 = vpop.f32.mrf.mxu2 }
 0x117   :  { %1783 = vrot.lane.b32.xlu2 %v6988_v48, %s6410_s3  ;;  %1781 = vrot.lane.b32.xlu1 %v6993_v49, %s6410_s3  ;;  %v7694_v3 = vadd.f32 %v1255_v36, %v1087_v20  ;;  %v5780_v48 = vld [vmem:[%s12170_s0 + $0x16c] sm:$0xf]  ;;  %v5438_v49 = vld [vmem:[%s12170_s0 + $0x174] sm:$0xf0] }
 0x118   :  { %1779 = vrot.lane.b32.xlu0 %v6948_v26, %s6410_s3  ;;  %v921_v26 = vadd.f32 %v7267_v35, %v920_v62 }
 0x119   :  { %1208 = vmatmul.bf16.gmra.mxu3 %v5633_v31  ;;  %v7690_v7 = vpop.permute.xlu1 %1633  ;;  %v7692_v28 = vpop.permute.xlu2 %1717  ;;  %12628 = vst [vmem:[#allocation98_spill] sm:$0xff] %v7694_v3  ;;  %959 = vmatmul.bf16.gmra.mxu0 %v5437_v47  ;;  %v5797_v3 = vld [vmem:[%s12170_s0 + $0x1f0] sm:$0xf0] }
 0x11a   :  { %12627 = vst [vmem:[#allocation97_spill] sm:$0xff] %v7690_v7  ;;  %v7702_v10 = vpop.permute.xlu0 %1631  ;;  %v5441_v7 = vor.u32 %v5780_v48, %v5438_v49  ;;  %v5784_v49 = vld [vmem:[%s12170_s0 + $0x188] sm:$0xf0] }
 0x11b   :  { %12629 = vst [vmem:[#allocation99_spill] sm:$0xff] %v7702_v10  ;;  %1297 = vmatmul.bf16.gmra.mxu2 %v5445_v56  ;;  %v1089_v20 = vpop.f32.mrf.mxu1  ;;  %v5552_v56 = vld [vmem:[%s12170_s0 + $0x248] sm:$0xf] }
 0x11c   :  { %v7705_v31 = vpop.f32.mrf.mxu3  ;;  %v1090_v36 = vadd.f32 %v1089_v20, %v921_v26 }
 0x11d   :  { %1128 = vmatmul.bf16.gmra.mxu1 %v5441_v7  ;;  %v5448_v7 = vld [vmem:[%s12170_s0 + $0x180] sm:$0xf] }
 0x11e   :  { %v922_v34 = vpop.f32.mrf.mxu0  ;;  %v1258_v47 = vpop.f32.mrf.mxu2  ;;  %v5449_v43 = vor.u32 %v5784_v49, %v5448_v7 }
 0x11f   :  { %1789 = vrot.lane.b32.xlu2 %v7023_v63, %s6410_s3  ;;  %1787 = vrot.lane.b32.xlu1 %v7028_v17, %s6410_s3  ;;  %v5809_v63 = vld [vmem:[%s12170_s0 + $0x250] sm:$0xf0]  ;;  %v7723_v48 = vadd.f32 %v1258_v47, %v1090_v36  ;;  %v5456_v47 = vld [vmem:[%s12170_s0 + $0x188] sm:$0xf] }
 0x120   :  { %1785 = vrot.lane.b32.xlu0 %v6983_v11, %s6410_s3  ;;  %v923_v11 = vadd.f32 %v7267_v35, %v922_v34  ;;  %v5553_v20 = vor.u32 %v5809_v63, %v5552_v56  ;;  %v5785_v34 = vld [vmem:[%s12170_s0 + $0x190] sm:$0xf0] }
 0x121   :  { %v7713_v55 = vpop.permute.xlu2 %1723  ;;  %v7715_v62 = vpop.permute.xlu1 %1703  ;;  %12630 = vst [vmem:[#allocation100_spill] sm:$0xff] %v7723_v48  ;;  %v5457_v7 = vor.u32 %v5785_v34, %v5456_v47 }
 0x122   :  { %v7725_v17 = vpop.permute.xlu0 %1637 }
 0x123   :  { %12631 = vst [vmem:[#allocation101_spill] sm:$0xff] %v7725_v17  ;;  %v1091_v10 = vpop.f32.mrf.mxu1 }
 0x124   :  { %v7734_v26 = vpop.f32.mrf.mxu3  ;;  %v1092_v19 = vadd.f32 %v1091_v10, %v923_v11 }
 0x126   :  { %v925_v36 = vpop.f32.mrf.mxu0  ;;  %v1260_v10 = vpop.f32.mrf.mxu2 }
 0x127   :  { %1795 = vrot.lane.b32.xlu2 %v7062_v14, %s6410_s3  ;;  %1793 = vrot.lane.b32.xlu1 %v7067_v57, %s6410_s3  ;;  %v7752_v11 = vadd.f32 %v1260_v10, %v1092_v19  ;;  %v5783_v14 = vld [vmem:[%s12170_s0 + $0x184] sm:$0xf]  ;;  %v5450_v57 = vld [vmem:[%s12170_s0 + $0x18c] sm:$0xf0] }
 0x128   :  { %1791 = vrot.lane.b32.xlu0 %v7018_v23, %s6410_s3  ;;  %v1006_v23 = vadd.f32 %v7267_v35, %v7294_v32  ;;  %v5453_v47 = vor.u32 %v5783_v14, %v5450_v57  ;;  %v12634_v32 = vld [vmem:[#allocation14_spill] sm:$0xff] }
 0x129   :  { %1342 = vmatmul.bf16.vlgmr.msra.gmra.mxu3 %v5553_v20  ;;  %v7748_v56 = vpop.permute.xlu2 %1729  ;;  %v7750_v63 = vpop.permute.xlu1 %1709  ;;  %12633 = vst [vmem:[#allocation103_spill] sm:$0xff] %v7752_v11  ;;  %964 = vmatmul.bf16.gmra.mxu0 %v5449_v43  ;;  %v926_v20 = vadd.f32 %v7267_v35, %v925_v36  ;;  %v5791_v11 = vld [vmem:[%s12170_s0 + $0x1c0] sm:$0xf0] }
 0x12a   :  { %12632 = vst [vmem:[#allocation102_spill] sm:$0xff] %v7748_v56  ;;  %v7762_v49 = vpop.permute.xlu0 %1707  ;;  %v8202_v56 = vld [vmem:[%s12175_s5 + $0x90] sm:$0xff] }
 0x12b   :  { %1302 = vmatmul.bf16.gmra.mxu2 %v5457_v7  ;;  %v1094_v43 = vpop.f32.mrf.mxu1  ;;  %v5564_v7 = vld [vmem:[%s12170_s0 + $0x260] sm:$0xf]  ;;  %12695 = vst [vmem:[#allocation135_spill] sm:$0xff] %v8202_v56 }
 0x12c   :  { %v1174_v17 = vpop.f32.mrf.mxu3  ;;  %v1095_v34 = vadd.f32 %v1094_v43, %v926_v20  ;;  %v5460_v20 = vld [vmem:[%s12170_s0 + $0x198] sm:$0xf] }
 0x12d   :  { %v7765_v19 = vadd.f32 %v1174_v17, %v1006_v23  ;;  %1133 = vmatmul.bf16.gmra.mxu1 %v5453_v47  ;;  %v5787_v47 = vld [vmem:[%s12170_s0 + $0x1a0] sm:$0xf0] }
 0x12e   :  { %v927_v10 = vpop.f32.mrf.mxu0  ;;  %v1263_v33 = vpop.f32.mrf.mxu2  ;;  %v5461_v59 = vor.u32 %v5787_v47, %v5460_v20 }
 0x12f   :  { %1801 = vrot.lane.b32.xlu2 %v7101_v41, %s6410_s3  ;;  %1799 = vrot.lane.b32.xlu1 %v7106_v60, %s6410_s3  ;;  %v5812_v41 = vld [vmem:[%s12170_s0 + $0x268] sm:$0xf0]  ;;  %v7783_v14 = vadd.f32 %v1263_v33, %v1095_v34  ;;  %v1008_v60 = vadd.f32 %v7267_v35, %v7328_v29  ;;  %v928_v23 = vadd.f32 %v7267_v35, %v927_v10  ;;  %v5468_v10 = vld [vmem:[%s12170_s0 + $0x1a0] sm:$0xf] }
 0x130   :  { %1797 = vrot.lane.b32.xlu0 %v12634_v32, %s6410_s3  ;;  %v5565_v33 = vor.u32 %v5812_v41, %v5564_v7  ;;  %v12639_v7 = vld [vmem:[#allocation18_spill] sm:$0xff]  ;;  %v5469_v47 = vor.u32 %v5788_v38, %v5468_v10 }
 0x131   :  { %v7773_v36 = vpop.permute.xlu2 %1735  ;;  %v7775_v17 = vpop.permute.xlu1 %1715  ;;  %12636 = vst [vmem:[#allocation104_spill] sm:$0xff] %v7783_v14  ;;  %v12647_v14 = vld [vmem:[#allocation35_spill] sm:$0xff] }
 0x132   :  { %12635 = vst [vmem:[#allocation14_spill] sm:$0xff] %v7773_v36  ;;  %v7787_v57 = vpop.permute.xlu0 %1713 }
 0x133   :  { %v1096_v34 = vpop.f32.mrf.mxu1 }
 0x134   :  { %v1176_v43 = vpop.f32.mrf.mxu3  ;;  %v1097_v61 = vadd.f32 %v1096_v34, %v928_v23 }
 0x135   :  { %v7796_v32 = vadd.f32 %v1176_v43, %v1008_v60  ;;  %v1011_v43 = vadd.f32 %v7267_v35, %v7357_v22  ;;  %v12644_v22 = vld [vmem:[#allocation22_spill] sm:$0xff] }
 0x136   :  { %v930_v29 = vpop.f32.mrf.mxu0  ;;  %v1265_v41 = vpop.f32.mrf.mxu2 }
 0x137   :  { %1807 = vrot.lane.b32.xlu2 %v12637_v40, %s6410_s3  ;;  %1805 = vrot.lane.b32.xlu1 %v12638_v16, %s6410_s3  ;;  %v7814_v20 = vadd.f32 %v1265_v41, %v1097_v61  ;;  %v5786_v40 = vld [vmem:[%s12170_s0 + $0x19c] sm:$0xf]  ;;  %v5462_v16 = vld [vmem:[%s12170_s0 + $0x1a4] sm:$0xf0]  ;;  %v931_v34 = vadd.f32 %v7267_v35, %v930_v29 }
 0x138   :  { %1803 = vrot.lane.b32.xlu0 %v12639_v7, %s6410_s3  ;;  %v5465_v38 = vor.u32 %v5786_v40, %v5462_v16 }
 0x139   :  { %1347 = vmatmul.bf16.gmra.mxu3 %v5565_v33  ;;  %v7810_v60 = vpop.permute.xlu2 %1741  ;;  %v7812_v23 = vpop.permute.xlu1 %1721  ;;  %12641 = vst [vmem:[#allocation24_spill] sm:$0xff] %v7814_v20  ;;  %969 = vmatmul.bf16.gmra.mxu0 %v5461_v59 }
 0x13a   :  { %12640 = vst [vmem:[#allocation23_spill] sm:$0xff] %v7810_v60  ;;  %v7824_v33 = vpop.permute.xlu0 %1719  ;;  %v12648_v60 = vld [vmem:[#allocation36_spill] sm:$0xff] }
 0x13b   :  { %1307 = vmatmul.bf16.gmra.mxu2 %v5469_v47  ;;  %v1099_v59 = vpop.f32.mrf.mxu1  ;;  %v5576_v47 = vld [vmem:[%s12170_s0 + $0x278] sm:$0xf] }
 0x13c   :  { %v1179_v7 = vpop.f32.mrf.mxu3  ;;  %v1100_v10 = vadd.f32 %v1099_v59, %v931_v34 }
 0x13d   :  { %v7827_v61 = vadd.f32 %v1179_v7, %v1011_v43  ;;  %1138 = vmatmul.bf16.gmra.mxu1 %v5465_v38  ;;  %v5472_v7 = vld [vmem:[%s12170_s0 + $0x1b0] sm:$0xf]  ;;  %v5790_v38 = vld [vmem:[%s12170_s0 + $0x1b8] sm:$0xf0] }
 0x13e   :  { %v932_v41 = vpop.f32.mrf.mxu0  ;;  %v1268_v2 = vpop.f32.mrf.mxu2 }
 0x13f   :  { %1813 = vrot.lane.b32.xlu2 %v12642_v18, %s6410_s3  ;;  %1811 = vrot.lane.b32.xlu1 %v12643_v42, %s6410_s3  ;;  %v5815_v18 = vld [vmem:[%s12170_s0 + $0x280] sm:$0xf0]  ;;  %v7845_v40 = vadd.f32 %v1268_v2, %v1100_v10  ;;  %v1013_v42 = vadd.f32 %v7267_v35, %v7386_v1  ;;  %v933_v34 = vadd.f32 %v7267_v35, %v932_v41  ;;  %v5480_v41 = vld [vmem:[%s12170_s0 + $0x1b8] sm:$0xf] }
 0x140   :  { %1809 = vrot.lane.b32.xlu0 %v12644_v22, %s6410_s3  ;;  %v5577_v2 = vor.u32 %v5815_v18, %v5576_v47  ;;  %v12649_v47 = vld [vmem:[#allocation28_spill] sm:$0xff] }
 0x141   :  { %v7835_v29 = vpop.permute.xlu2 %1747  ;;  %v7837_v43 = vpop.permute.xlu1 %1727  ;;  %12646 = vst [vmem:[#allocation29_spill] sm:$0xff] %v7845_v40 }
 0x142   :  { %12645 = vst [vmem:[#allocation18_spill] sm:$0xff] %v7835_v29  ;;  %v7849_v16 = vpop.permute.xlu0 %1725  ;;  %v5473_v29 = vor.u32 %v5790_v38, %v5472_v7  ;;  %v5481_v38 = vor.u32 %v5791_v11, %v5480_v41 }
 0x143   :  { %v1101_v10 = vpop.f32.mrf.mxu1 }
 0x144   :  { %v1181_v59 = vpop.f32.mrf.mxu3  ;;  %v1102_v40 = vadd.f32 %v1101_v10, %v933_v34 }
 0x145   :  { %v7858_v22 = vadd.f32 %v1181_v59, %v1013_v42  ;;  %v1016_v59 = vadd.f32 %v7267_v35, %v7415_v46  ;;  %v12656_v46 = vld [vmem:[#allocation34_spill] sm:$0xff] }
 0x146   :  { %v935_v1 = vpop.f32.mrf.mxu0  ;;  %v1270_v18 = vpop.f32.mrf.mxu2 }
 0x147   :  { %1819 = vrot.lane.b32.xlu2 %v12647_v14, %s6410_s3  ;;  %1817 = vrot.lane.b32.xlu1 %v12648_v60, %s6410_s3  ;;  %v7876_v7 = vadd.f32 %v1270_v18, %v1102_v40  ;;  %v5789_v14 = vld [vmem:[%s12170_s0 + $0x1b4] sm:$0xf]  ;;  %v5474_v60 = vld [vmem:[%s12170_s0 + $0x1bc] sm:$0xf0]  ;;  %v936_v10 = vadd.f32 %v7267_v35, %v935_v1 }
 0x148   :  { %1815 = vrot.lane.b32.xlu0 %v12649_v47, %s6410_s3  ;;  %v5477_v11 = vor.u32 %v5789_v14, %v5474_v60 }
 0x149   :  { %1352 = vmatmul.bf16.gmra.mxu3 %v5577_v2  ;;  %v7872_v42 = vpop.permute.xlu2 %1753  ;;  %v7874_v34 = vpop.permute.xlu1 %1733  ;;  %12652 = vst [vmem:[#allocation35_spill] sm:$0xff] %v7876_v7  ;;  %974 = vmatmul.bf16.gmra.mxu0 %v5473_v29  ;;  %v12655_v7 = vld [vmem:[#allocation42_spill] sm:$0xff] }
 0x14a   :  { %12650 = vst [vmem:[#allocation30_spill] sm:$0xff] %v7872_v42  ;;  %v7886_v2 = vpop.permute.xlu0 %1731  ;;  %v12654_v42 = vld [vmem:[#allocation41_spill] sm:$0xff] }
 0x14b   :  { %12651 = vst [vmem:[#allocation22_spill] sm:$0xff] %v7874_v34  ;;  %1312 = vmatmul.bf16.gmra.mxu2 %v5481_v38  ;;  %v1104_v29 = vpop.f32.mrf.mxu1  ;;  %v5588_v38 = vld [vmem:[%s12170_s0 + $0x290] sm:$0xf] }
 0x14c   :  { %v1184_v47 = vpop.f32.mrf.mxu3  ;;  %v1105_v41 = vadd.f32 %v1104_v29, %v936_v10  ;;  %v8018_v34 = vld [vmem:[%s12175_s5 + $0x30] sm:$0xff] }
 0x14d   :  { %v7889_v40 = vadd.f32 %v1184_v47, %v1016_v59  ;;  %1143 = vmatmul.bf16.gmra.mxu1 %v5477_v11  ;;  %v5484_v47 = vld [vmem:[%s12170_s0 + $0x1c8] sm:$0xf]  ;;  %v5793_v11 = vld [vmem:[%s12170_s0 + $0x1d0] sm:$0xf0] }
 0x14e   :  { %v937_v18 = vpop.f32.mrf.mxu0  ;;  %v1273_v20 = vpop.f32.mrf.mxu2 }
 0x14f   :  { %12653 = vst [vmem:[#allocation36_spill] sm:$0xff] %v7889_v40  ;;  %1825 = vrot.lane.b32.xlu2 %v12654_v42, %s6410_s3  ;;  %1823 = vrot.lane.b32.xlu1 %v12655_v7, %s6410_s3  ;;  %v5818_v42 = vld [vmem:[%s12170_s0 + $0x298] sm:$0xf0]  ;;  %v7907_v14 = vadd.f32 %v1273_v20, %v1105_v41  ;;  %v1018_v7 = vadd.f32 %v7267_v35, %v7444_v15 }
 0x150   :  { %1821 = vrot.lane.b32.xlu0 %v12656_v46, %s6410_s3  ;;  %v938_v10 = vadd.f32 %v7267_v35, %v937_v18  ;;  %v5589_v20 = vor.u32 %v5818_v42, %v5588_v38  ;;  %v5485_v40 = vor.u32 %v5793_v11, %v5484_v47  ;;  %v5492_v18 = vld [vmem:[%s12170_s0 + $0x1d0] sm:$0xf]  ;;  %v12663_v42 = vld [vmem:[#allocation40_spill] sm:$0xff] }
 0x151   :  { %v7897_v1 = vpop.permute.xlu2 %1759  ;;  %v7899_v59 = vpop.permute.xlu1 %1739  ;;  %12659 = vst [vmem:[#allocation42_spill] sm:$0xff] %v7907_v14  ;;  %v5794_v14 = vld [vmem:[%s12170_s0 + $0x1d8] sm:$0xf0]  ;;  %v12662_v38 = vld [vmem:[#allocation46_spill] sm:$0xff] }
 0x152   :  { %12657 = vst [vmem:[#allocation28_spill] sm:$0xff] %v7897_v1  ;;  %v7911_v60 = vpop.permute.xlu0 %1737 }
 0x153   :  { %12658 = vst [vmem:[#allocation41_spill] sm:$0xff] %v7899_v59  ;;  %v1106_v41 = vpop.f32.mrf.mxu1  ;;  %v7931_v59 = vld [vmem:[%s12175_s5] sm:$0xff] }
 0x154   :  { %12660 = vst [vmem:[#allocation34_spill] sm:$0xff] %v7911_v60  ;;  %v1186_v29 = vpop.f32.mrf.mxu3  ;;  %v1107_v1 = vadd.f32 %v1106_v41, %v938_v10  ;;  %v5792_v41 = vld [vmem:[%s12170_s0 + $0x1cc] sm:$0xf] }
 0x155   :  { %v7920_v46 = vadd.f32 %v1186_v29, %v1018_v7  ;;  %v5493_v29 = vor.u32 %v5794_v14, %v5492_v18 }
 0x156   :  { %v940_v15 = vpop.f32.mrf.mxu0  ;;  %v1275_v7 = vpop.f32.mrf.mxu2 }
 0x157   :  { %12661 = vst [vmem:[#allocation105_spill] sm:$0xff] %v7920_v46  ;;  %1895 = vrot.lane.b32.xlu2 %v7931_v59, %s6411_s30  ;;  %1829 = vrot.lane.b32.xlu1 %v12662_v38, %s6410_s3  ;;  %v7943_v11 = vadd.f32 %v1275_v7, %v1107_v1  ;;  %v5486_v38 = vld [vmem:[%s12170_s0 + $0x1d4] sm:$0xf0]  ;;  %v941_v46 = vadd.f32 %v7267_v35, %v940_v15 }
 0x158   :  { %1827 = vrot.lane.b32.xlu0 %v12663_v42, %s6410_s3  ;;  %v5489_v14 = vor.u32 %v5792_v41, %v5486_v38  ;;  %v5600_v41 = vld [vmem:[%s12170_s0 + $0x2a8] sm:$0xf]  ;;  %v5821_v38 = vld [vmem:[%s12170_s0 + $0x2b0] sm:$0xf0] }
 0x159   :  { %1357 = vmatmul.bf16.gmra.mxu3 %v5589_v20  ;;  %v7939_v10 = vpop.permute.xlu2 %1765  ;;  %v7941_v47 = vpop.permute.xlu1 %1745  ;;  %12666 = vst [vmem:[#allocation106_spill] sm:$0xff] %v7943_v11  ;;  %979 = vmatmul.bf16.gmra.mxu0 %v5485_v40  ;;  %v1021_v20 = vadd.f32 %v7267_v35, %v7473_v39  ;;  %v7961_v11 = vld [vmem:[%s12175_s5 + $0x18] sm:$0xff]  ;;  %v7968_v39 = vld [vmem:[%s12175_s5 + $0x10] sm:$0xff] }
 0x15a   :  { %12664 = vst [vmem:[#allocation46_spill] sm:$0xff] %v7939_v10  ;;  %v7953_v42 = vpop.permute.xlu0 %1743 }
 0x15b   :  { %12665 = vst [vmem:[#allocation40_spill] sm:$0xff] %v7941_v47  ;;  %1317 = vmatmul.bf16.gmra.mxu2 %v5493_v29  ;;  %v1109_v40 = vpop.f32.mrf.mxu1 }
 0x15c   :  { %12667 = vst [vmem:[#allocation107_spill] sm:$0xff] %v7953_v42  ;;  %v1189_v10 = vpop.f32.mrf.mxu3  ;;  %v1110_v18 = vadd.f32 %v1109_v40, %v941_v46  ;;  %v7975_v46 = vld [vmem:[%s12175_s5 + $0x8] sm:$0xff]  ;;  %v1023_v40 = vadd.f32 %v7267_v35, %v7502_v37  ;;  %v5601_v35 = vor.u32 %v5821_v38, %v5600_v41 }
 0x15d   :  { %v7956_v1 = vadd.f32 %v1189_v10, %v1021_v20  ;;  %1148 = vmatmul.bf16.gmra.mxu1 %v5489_v14  ;;  %v7998_v14 = vld [vmem:[%s12172_s2] ss:$0 sm:$0xff] }
 0x15e   :  { %v942_v7 = vpop.f32.mrf.mxu0  ;;  %v1278_v15 = vpop.f32.mrf.mxu2 }
 0x15f   :  { %12668 = vst [vmem:[#allocation108_spill] sm:$0xff] %v7956_v1  ;;  %1901 = vrot.lane.b32.xlu2 %v7961_v11, %s6411_s30  ;;  %1899 = vrot.lane.b32.xlu1 %v7968_v39, %s6411_s30  ;;  %v7989_v20 = vadd.f32 %v1278_v15, %v1110_v18  ;;  %v5796_v18 = vld [vmem:[%s12170_s0 + $0x1e8] sm:$0xf0] }
 0x160   :  { %1897 = vrot.lane.b32.xlu0 %v7975_v46, %s6411_s30 }
 0x161   :  { %v7979_v10 = vpop.permute.xlu2 %1771  ;;  %v7981_v29 = vpop.permute.xlu1 %1751  ;;  %12671 = vst [vmem:[#allocation111_spill] sm:$0xff] %v7989_v20 }
 0x162   :  { %12669 = vst [vmem:[#allocation109_spill] sm:$0xff] %v7979_v10  ;;  %v7993_v1 = vpop.permute.xlu0 %1749  ;;  %v943_v10 = vadd.f32 %v7998_v14, %v942_v7  ;;  %v5504_v7 = vld [vmem:[%s12170_s0 + $0x1e8] sm:$0xf] }
 0x163   :  { %12670 = vst [vmem:[#allocation110_spill] sm:$0xff] %v7981_v29  ;;  %v5496_v29 = vld [vmem:[%s12170_s0 + $0x1e0] sm:$0xf]  ;;  %v1111_v37 = vpop.f32.mrf.mxu1 }
 0x164   :  { %12672 = vst [vmem:[#allocation112_spill] sm:$0xff] %v7993_v1  ;;  %v1191_v15 = vpop.f32.mrf.mxu3  ;;  %v5497_v47 = vor.u32 %v5796_v18, %v5496_v29  ;;  %v1112_v1 = vadd.f32 %v1111_v37, %v943_v10  ;;  %v8025_v10 = vld [vmem:[%s12175_s5 + $0x28] sm:$0xff]  ;;  %v8032_v29 = vld [vmem:[%s12175_s5 + $0x20] sm:$0xff] }
 0x165   :  { %v8007_v20 = vadd.f32 %v1191_v15, %v1023_v40  ;;  %v5505_v15 = vor.u32 %v5797_v3, %v5504_v7  ;;  %v5795_v37 = vld [vmem:[%s12170_s0 + $0x1e4] sm:$0xf] }
 0x166   :  { %v945_v42 = vpop.f32.mrf.mxu0  ;;  %v1280_v41 = vpop.f32.mrf.mxu2 }
 0x167   :  { %12673 = vst [vmem:[#allocation113_spill] sm:$0xff] %v8007_v20  ;;  %1907 = vrot.lane.b32.xlu2 %v8018_v34, %s6411_s30  ;;  %1905 = vrot.lane.b32.xlu1 %v8025_v10, %s6411_s30  ;;  %v8040_v18 = vadd.f32 %v1280_v41, %v1112_v1  ;;  %v5498_v20 = vld [vmem:[%s12170_s0 + $0x1ec] sm:$0xf0] }
 0x168   :  { %1903 = vrot.lane.b32.xlu0 %v8032_v29, %s6411_s30  ;;  %v5501_v3 = vor.u32 %v5795_v37, %v5498_v20  ;;  %v5824_v37 = vld [vmem:[%s12170_s0 + $0x2c8] sm:$0xf0] }
 0x169   :  { %1362 = vmatmul.bf16.gmra.mxu3 %v5601_v35  ;;  %v8036_v38 = vpop.permute.xlu2 %1777  ;;  %v8038_v40 = vpop.permute.xlu1 %1757  ;;  %12676 = vst [vmem:[#allocation116_spill] sm:$0xff] %v8040_v18  ;;  %984 = vmatmul.bf16.gmra.mxu0 %v5497_v47  ;;  %v1026_v35 = vadd.f32 %v7998_v14, %v7531_v6  ;;  %v8058_v18 = vld [vmem:[%s12175_s5 + $0x48] sm:$0xff]  ;;  %v8065_v6 = vld [vmem:[%s12175_s5 + $0x40] sm:$0xff] }
 0x16a   :  { %12674 = vst [vmem:[#allocation114_spill] sm:$0xff] %v8036_v38  ;;  %v8050_v48 = vpop.permute.xlu0 %1755  ;;  %v946_v38 = vadd.f32 %v7998_v14, %v945_v42  ;;  %v8072_v42 = vld [vmem:[%s12175_s5 + $0x38] sm:$0xff] }
 0x16b   :  { %12675 = vst [vmem:[#allocation115_spill] sm:$0xff] %v8038_v40  ;;  %1322 = vmatmul.bf16.gmra.mxu2 %v5505_v15  ;;  %v1114_v47 = vpop.f32.mrf.mxu1  ;;  %v5612_v15 = vld [vmem:[%s12170_s0 + $0x2c0] sm:$0xf] }
 0x16c   :  { %12677 = vst [vmem:[#allocation117_spill] sm:$0xff] %v8050_v48  ;;  %v1194_v40 = vpop.f32.mrf.mxu3  ;;  %v1115_v7 = vadd.f32 %v1114_v47, %v946_v38  ;;  %v1028_v47 = vadd.f32 %v7998_v14, %v7560_v58 }
 0x16d   :  { %v8053_v1 = vadd.f32 %v1194_v40, %v1026_v35  ;;  %1153 = vmatmul.bf16.gmra.mxu1 %v5501_v3 }
 0x16e   :  { %v947_v41 = vpop.f32.mrf.mxu0  ;;  %v1283_v20 = vpop.f32.mrf.mxu2 }
 0x16f   :  { %12678 = vst [vmem:[#allocation118_spill] sm:$0xff] %v8053_v1  ;;  %1913 = vrot.lane.b32.xlu2 %v8058_v18, %s6411_s30  ;;  %1911 = vrot.lane.b32.xlu1 %v8065_v6, %s6411_s30  ;;  %v8086_v35 = vadd.f32 %v1283_v20, %v1115_v7  ;;  %v948_v3 = vadd.f32 %v7998_v14, %v947_v41  ;;  %v5516_v41 = vld [vmem:[%s12170_s0 + $0x200] sm:$0xf] }
 0x170   :  { %1909 = vrot.lane.b32.xlu0 %v8072_v42, %s6411_s30  ;;  %v5613_v7 = vor.u32 %v5824_v37, %v5612_v15 }
 0x171   :  { %v8076_v38 = vpop.permute.xlu2 %1783  ;;  %v8078_v40 = vpop.permute.xlu1 %1763  ;;  %12681 = vst [vmem:[#allocation121_spill] sm:$0xff] %v8086_v35 }
 0x172   :  { %12679 = vst [vmem:[#allocation119_spill] sm:$0xff] %v8076_v38  ;;  %v8090_v1 = vpop.permute.xlu0 %1761  ;;  %v5508_v38 = vld [vmem:[%s12170_s0 + $0x1f8] sm:$0xf] }
 0x173   :  { %12680 = vst [vmem:[#allocation120_spill] sm:$0xff] %v8078_v40  ;;  %v5799_v40 = vld [vmem:[%s12170_s0 + $0x200] sm:$0xf0]  ;;  %v1116_v20 = vpop.f32.mrf.mxu1 }
 0x174   :  { %12682 = vst [vmem:[#allocation122_spill] sm:$0xff] %v8090_v1  ;;  %v1196_v48 = vpop.f32.mrf.mxu3  ;;  %v5509_v35 = vor.u32 %v5799_v40, %v5508_v38  ;;  %v1117_v36 = vadd.f32 %v1116_v20, %v948_v3  ;;  %v5800_v1 = vld [vmem:[%s12170_s0 + $0x208] sm:$0xf0]  ;;  %v8124_v38 = vld [vmem:[%s12175_s5 + $0x50] sm:$0xff]  ;;  %v5798_v20 = vld [vmem:[%s12170_s0 + $0x1fc] sm:$0xf] }
 0x175   :  { %v8099_v60 = vadd.f32 %v1196_v48, %v1028_v47  ;;  %v8117_v48 = vld [vmem:[%s12175_s5 + $0x58] sm:$0xff]  ;;  %v5517_v3 = vor.u32 %v5800_v1, %v5516_v41 }
 0x176   :  { %v950_v58 = vpop.f32.mrf.mxu0  ;;  %v1285_v40 = vpop.f32.mrf.mxu2 }
 0x177   :  { %12683 = vst [vmem:[#allocation123_spill] sm:$0xff] %v8099_v60  ;;  %1919 = vrot.lane.b32.xlu2 %v8110_v4, %s6411_s30  ;;  %1917 = vrot.lane.b32.xlu1 %v8117_v48, %s6411_s30  ;;  %v8132_v47 = vadd.f32 %v1285_v40, %v1117_v36  ;;  %v5510_v60 = vld [vmem:[%s12170_s0 + $0x204] sm:$0xf0] }
 0x178   :  { %1915 = vrot.lane.b32.xlu0 %v8124_v38, %s6411_s30  ;;  %v5513_v1 = vor.u32 %v5798_v20, %v5510_v60  ;;  %v8164_v60 = vld [vmem:[%s12175_s5 + $0x68] sm:$0xff]  ;;  %v5827_v20 = vld [vmem:[%s12170_s0 + $0x2e0] sm:$0xf0] }
 0x179   :  { %1367 = vmatmul.bf16.gmra.mxu3 %v5613_v7  ;;  %v8128_v15 = vpop.permute.xlu2 %1789  ;;  %v8130_v37 = vpop.permute.xlu1 %1769  ;;  %12686 = vst [vmem:[#allocation126_spill] sm:$0xff] %v8132_v47  ;;  %989 = vmatmul.bf16.gmra.mxu0 %v5509_v35  ;;  %v1031_v7 = vadd.f32 %v7998_v14, %v7589_v27  ;;  %v8150_v47 = vld [vmem:[%s12175_s5 + $0x78] sm:$0xff]  ;;  %v8157_v27 = vld [vmem:[%s12175_s5 + $0x70] sm:$0xff] }
 0x17a   :  { %12684 = vst [vmem:[#allocation124_spill] sm:$0xff] %v8128_v15  ;;  %v8142_v12 = vpop.permute.xlu0 %1767  ;;  %v951_v15 = vadd.f32 %v7998_v14, %v950_v58 }
 0x17b   :  { %12685 = vst [vmem:[#allocation125_spill] sm:$0xff] %v8130_v37  ;;  %1327 = vmatmul.bf16.gmra.mxu2 %v5517_v3  ;;  %v1119_v35 = vpop.f32.mrf.mxu1  ;;  %v5624_v3 = vld [vmem:[%s12170_s0 + $0x2d8] sm:$0xf] }
 0x17c   :  { %12687 = vst [vmem:[#allocation127_spill] sm:$0xff] %v8142_v12  ;;  %v1199_v37 = vpop.f32.mrf.mxu3  ;;  %v1120_v41 = vadd.f32 %v1119_v35, %v951_v15  ;;  %v1033_v35 = vadd.f32 %v7998_v14, %v7618_v30 }
 0x17d   :  { %v8145_v36 = vadd.f32 %v1199_v37, %v1031_v7  ;;  %12689 = vst [vmem:[#allocation129_spill] sm:$0xff] %v8150_v47  ;;  %1158 = vmatmul.bf16.gmra.mxu1 %v5513_v1 }
 0x17e   :  { %v952_v40 = vpop.f32.mrf.mxu0  ;;  %v1288_v58 = vpop.f32.mrf.mxu2 }
 0x17f   :  { %12688 = vst [vmem:[#allocation128_spill] sm:$0xff] %v8145_v36  ;;  %1925 = vrot.lane.b32.xlu2 %v8150_v47, %s6411_s30  ;;  %1923 = vrot.lane.b32.xlu1 %v8157_v27, %s6411_s30  ;;  %v8178_v7 = vadd.f32 %v1288_v58, %v1120_v41  ;;  %v953_v1 = vadd.f32 %v7998_v14, %v952_v40  ;;  %v5528_v40 = vld [vmem:[%s12170_s0 + $0x218] sm:$0xf] }
 0x180   :  { %1921 = vrot.lane.b32.xlu0 %v8164_v60, %s6411_s30  ;;  %v5625_v41 = vor.u32 %v5827_v20, %v5624_v3 }
 0x181   :  { %v8168_v15 = vpop.permute.xlu2 %1795  ;;  %v8170_v37 = vpop.permute.xlu1 %1775  ;;  %12692 = vst [vmem:[#allocation132_spill] sm:$0xff] %v8178_v7 }
 0x182   :  { %12690 = vst [vmem:[#allocation130_spill] sm:$0xff] %v8168_v15  ;;  %v8182_v36 = vpop.permute.xlu0 %1773  ;;  %v5520_v15 = vld [vmem:[%s12170_s0 + $0x210] sm:$0xf] }
 0x183   :  { %12691 = vst [vmem:[#allocation131_spill] sm:$0xff] %v8170_v37  ;;  %v5802_v37 = vld [vmem:[%s12170_s0 + $0x218] sm:$0xf0]  ;;  %v1121_v58 = vpop.f32.mrf.mxu1 }
 0x184   :  { %12693 = vst [vmem:[#allocation133_spill] sm:$0xff] %v8182_v36  ;;  %v1201_v12 = vpop.f32.mrf.mxu3  ;;  %v5521_v7 = vor.u32 %v5802_v37, %v5520_v15  ;;  %v1122_v45 = vadd.f32 %v1121_v58, %v953_v1  ;;  %v5803_v36 = vld [vmem:[%s12170_s0 + $0x220] sm:$0xf0]  ;;  %v5801_v58 = vld [vmem:[%s12170_s0 + $0x214] sm:$0xf] }
 0x185   :  { %v8191_v47 = vadd.f32 %v1201_v12, %v1033_v35  ;;  %v8209_v12 = vld [vmem:[%s12175_s5 + $0x88] sm:$0xff]  ;;  %v8216_v15 = vld [vmem:[%s12175_s5 + $0x80] sm:$0xff]  ;;  %v5529_v1 = vor.u32 %v5803_v36, %v5528_v40 }
 0x186   :  { %v955_v30 = vpop.f32.mrf.mxu0  ;;  %12696 = vst [vmem:[#allocation136_spill] sm:$0xff] %v8216_v15  ;;  %v1290_v37 = vpop.f32.mrf.mxu2 }
 0x187   :  { %12694 = vst [vmem:[#allocation134_spill] sm:$0xff] %v8191_v47  ;;  %1931 = vrot.lane.b32.xlu2 %v8202_v56, %s6411_s30  ;;  %1929 = vrot.lane.b32.xlu1 %v8209_v12, %s6411_s30  ;;  %v8224_v35 = vadd.f32 %v1290_v37, %v1122_v45  ;;  %v5522_v47 = vld [vmem:[%s12170_s0 + $0x21c] sm:$0xf0] }
 0x188   :  { %1927 = vrot.lane.b32.xlu0 %v8216_v15, %s6411_s30  ;;  %v5525_v36 = vor.u32 %v5801_v58, %v5522_v47  ;;  %v8256_v47 = vld [vmem:[%s12175_s5 + $0x98] sm:$0xff]  ;;  %v8282_v15 = vld [vmem:[%s12175_s5 + $0xc0] sm:$0xff] }
 0x189   :  { %1372 = vmatmul.bf16.gmra.mxu3 %v5625_v41  ;;  %v8220_v3 = vpop.permute.xlu2 %1801  ;;  %v8222_v20 = vpop.permute.xlu1 %1781  ;;  %12699 = vst [vmem:[#allocation139_spill] sm:$0xff] %v8224_v35  ;;  %994 = vmatmul.bf16.gmra.mxu0 %v5521_v7  ;;  %v1036_v41 = vadd.f32 %v7998_v14, %v7647_v53  ;;  %v8242_v35 = vld [vmem:[%s12175_s5 + $0xa8] sm:$0xff]  ;;  %v8249_v53 = vld [vmem:[%s12175_s5 + $0xa0] sm:$0xff]  ;;  %v5830_v58 = vld [vmem:[%s12170_s0 + $0x2f8] sm:$0xf0] }
 0x18a   :  { %12697 = vst [vmem:[#allocation137_spill] sm:$0xff] %v8220_v3  ;;  %v8234_v56 = vpop.permute.xlu0 %1779  ;;  %v956_v3 = vadd.f32 %v7998_v14, %v955_v30 }
 0x18b   :  { %12698 = vst [vmem:[#allocation138_spill] sm:$0xff] %v8222_v20  ;;  %1332 = vmatmul.bf16.gmra.mxu2 %v5529_v1  ;;  %v1124_v7 = vpop.f32.mrf.mxu1  ;;  %v5636_v1 = vld [vmem:[%s12170_s0 + $0x2f0] sm:$0xf] }
 0x18c   :  { %12700 = vst [vmem:[#allocation140_spill] sm:$0xff] %v8234_v56  ;;  %v1204_v20 = vpop.f32.mrf.mxu3  ;;  %v1125_v40 = vadd.f32 %v1124_v7, %v956_v3  ;;  %v1038_v7 = vadd.f32 %v7998_v14, %v7676_v52  ;;  %v8289_v52 = vld [vmem:[%s12175_s5 + $0xb8] sm:$0xff] }
 0x18d   :  { %v8237_v45 = vadd.f32 %v1204_v20, %v1036_v41  ;;  %12702 = vst [vmem:[#allocation142_spill] sm:$0xff] %v8242_v35  ;;  %1163 = vmatmul.bf16.gmra.mxu1 %v5525_v36 }
 0x18e   :  { %v957_v37 = vpop.f32.mrf.mxu0  ;;  %12703 = vst [vmem:[#allocation143_spill] sm:$0xff] %v8249_v53  ;;  %v1293_v30 = vpop.f32.mrf.mxu2 }
 0x18f   :  { %12701 = vst [vmem:[#allocation141_spill] sm:$0xff] %v8237_v45  ;;  %1937 = vrot.lane.b32.xlu2 %v8242_v35, %s6411_s30  ;;  %1935 = vrot.lane.b32.xlu1 %v8249_v53, %s6411_s30  ;;  %v8270_v41 = vadd.f32 %v1293_v30, %v1125_v40  ;;  %v958_v36 = vadd.f32 %v7998_v14, %v957_v37 }
 0x190   :  { %12704 = vst [vmem:[#allocation144_spill] sm:$0xff] %v8256_v47  ;;  %1933 = vrot.lane.b32.xlu0 %v8256_v47, %s6411_s30 }
 0x191   :  { %v8260_v3 = vpop.permute.xlu2 %1807  ;;  %v8262_v20 = vpop.permute.xlu1 %1787  ;;  %12707 = vst [vmem:[#allocation147_spill] sm:$0xff] %v8270_v41  ;;  %v5804_v41 = vld [vmem:[%s12170_s0 + $0x22c] sm:$0xf] }
 0x192   :  { %12705 = vst [vmem:[#allocation145_spill] sm:$0xff] %v8260_v3  ;;  %v8274_v45 = vpop.permute.xlu0 %1785 }
 0x193   :  { %12706 = vst [vmem:[#allocation146_spill] sm:$0xff] %v8262_v20  ;;  %v5637_v20 = vor.u32 %v5830_v58, %v5636_v1  ;;  %v1126_v35 = vpop.f32.mrf.mxu1  ;;  %v1041_v1 = vadd.f32 %v7998_v14, %v7705_v31  ;;  %v8322_v31 = vld [vmem:[%s12175_s5 + $0xd8] sm:$0xff] }
 0x194   :  { %12708 = vst [vmem:[#allocation148_spill] sm:$0xff] %v8274_v45  ;;  %v1206_v3 = vpop.f32.mrf.mxu3  ;;  %v1127_v47 = vadd.f32 %v1126_v35, %v958_v36  ;;  %v8296_v35 = vld [vmem:[%s12175_s5 + $0xb0] sm:$0xff] }
 0x195   :  { %v8277_v56 = vadd.f32 %v1206_v3, %v1038_v7  ;;  %12710 = vst [vmem:[#allocation150_spill] sm:$0xff] %v8282_v15 }
 0x196   :  { %v960_v53 = vpop.f32.mrf.mxu0  ;;  %12711 = vst [vmem:[#allocation151_spill] sm:$0xff] %v8289_v52  ;;  %v1295_v40 = vpop.f32.mrf.mxu2 }
 0x197   :  { %12709 = vst [vmem:[#allocation149_spill] sm:$0xff] %v8277_v56  ;;  %1943 = vrot.lane.b32.xlu2 %v8282_v15, %s6411_s30  ;;  %1941 = vrot.lane.b32.xlu1 %v8289_v52, %s6411_s30  ;;  %v8304_v3 = vadd.f32 %v1295_v40, %v1127_v47  ;;  %v961_v7 = vadd.f32 %v7998_v14, %v960_v53  ;;  %v5806_v47 = vld [vmem:[%s12170_s0 + $0x238] sm:$0xf0]  ;;  %v8329_v53 = vld [vmem:[%s12175_s5 + $0xd0] sm:$0xff] }
 0x198   :  { %12712 = vst [vmem:[#allocation152_spill] sm:$0xff] %v8296_v35  ;;  %1939 = vrot.lane.b32.xlu0 %v8296_v35, %s6411_s30  ;;  %v6325_v15 = vld [vmem:[%s12175_s5 + $0x1b0] sm:$0xff] }
 0x199   :  { %1377 = vmatmul.bf16.gmra.mxu3 %v5637_v20  ;;  %v8300_v37 = vpop.permute.xlu2 %1813  ;;  %v8302_v30 = vpop.permute.xlu1 %1793  ;;  %12715 = vst [vmem:[#allocation155_spill] sm:$0xff] %v8304_v3  ;;  %v5540_v20 = vld [vmem:[%s12170_s0 + $0x230] sm:$0xf]  ;;  %v5534_v3 = vld [vmem:[%s12170_s0 + $0x234] sm:$0xf0] }
 0x19a   :  { %12713 = vst [vmem:[#allocation153_spill] sm:$0xff] %v8300_v37  ;;  %v8308_v58 = vpop.permute.xlu0 %1791 }
 0x19b   :  { %12714 = vst [vmem:[#allocation154_spill] sm:$0xff] %v8302_v30  ;;  %v1129_v45 = vpop.f32.mrf.mxu1  ;;  %v5541_v30 = vor.u32 %v5806_v47, %v5540_v20 }
 0x19c   :  { %12716 = vst [vmem:[#allocation156_spill] sm:$0xff] %v8308_v58  ;;  %v1209_v36 = vpop.f32.mrf.mxu3  ;;  %v1130_v40 = vadd.f32 %v1129_v45, %v961_v7  ;;  %v5532_v45 = vld [vmem:[%s12170_s0 + $0x228] sm:$0xf] }
 0x19d   :  { %v8311_v56 = vadd.f32 %v1209_v36, %v1041_v1  ;;  %12718 = vst [vmem:[#allocation158_spill] sm:$0xff] %v8322_v31  ;;  %v5805_v1 = vld [vmem:[%s12170_s0 + $0x230] sm:$0xf0]  ;;  %v8342_v7 = vld [vmem:[%s12175_s5 + $0xc8] sm:$0xff]  ;;  %1337 = vmatmul.bf16.gmra.mxu2 %v5541_v30 }
 0x19e   :  { %v962_v37 = vpop.f32.mrf.mxu0  ;;  %12719 = vst [vmem:[#allocation159_spill] sm:$0xff] %v8329_v53  ;;  %v1298_v36 = vpop.f32.mrf.mxu2  ;;  %v5533_v20 = vor.u32 %v5805_v1, %v5532_v45  ;;  %v5537_v45 = vor.u32 %v5804_v41, %v5534_v3  ;;  %v8382_v41 = vld [vmem:[%s12175_s5 + $0xe0] sm:$0xff] }
 0x19f   :  { %12717 = vst [vmem:[#allocation157_spill] sm:$0xff] %v8311_v56  ;;  %1949 = vrot.lane.b32.xlu2 %v8322_v31, %s6411_s30  ;;  %1947 = vrot.lane.b32.xlu1 %v8329_v53, %s6411_s30  ;;  %v8350_v58 = vadd.f32 %v1298_v36, %v1130_v40  ;;  %v1043_v31 = vadd.f32 %v7998_v14, %v7734_v26  ;;  %v8375_v26 = vld [vmem:[%s12175_s5 + $0xe8] sm:$0xff] }
 0x1a0   :  { %12720 = vst [vmem:[#allocation160_spill] sm:$0xff] %v8342_v7  ;;  %1945 = vrot.lane.b32.xlu0 %v8342_v7, %s6411_s30  ;;  %v963_v30 = vadd.f32 %v7998_v14, %v962_v37  ;;  %999 = vmatmul.bf16.gmra.mxu0 %v5533_v20 }
 0x1a1   :  { %v8346_v47 = vpop.permute.xlu2 %1819  ;;  %v8348_v56 = vpop.permute.xlu1 %1799  ;;  %12723 = vst [vmem:[#allocation163_spill] sm:$0xff] %v8350_v58  ;;  %1168 = vmatmul.bf16.gmra.mxu1 %v5537_v45  ;;  %v8368_v58 = vld [vmem:[%s12175_s5 + $0xf0] sm:$0xff] }
 0x1a2   :  { %12721 = vst [vmem:[#allocation161_spill] sm:$0xff] %v8346_v47  ;;  %v8360_v7 = vpop.permute.xlu0 %1797 }
 0x1a3   :  { %12722 = vst [vmem:[#allocation162_spill] sm:$0xff] %v8348_v56  ;;  %v1131_v36 = vpop.f32.mrf.mxu1 }
 0x1a4   :  { %12724 = vst [vmem:[#allocation164_spill] sm:$0xff] %v8360_v7  ;;  %v1211_v1 = vpop.f32.mrf.mxu3  ;;  %v1132_v47 = vadd.f32 %v1131_v36, %v963_v30 }
 0x1a5   :  { %v8363_v40 = vadd.f32 %v1211_v1, %v1043_v31  ;;  %12726 = vst [vmem:[#allocation166_spill] sm:$0xff] %v8368_v58 }
 0x1a6   :  { %v965_v56 = vpop.f32.mrf.mxu0  ;;  %12727 = vst [vmem:[#allocation167_spill] sm:$0xff] %v8375_v26  ;;  %v1300_v37 = vpop.f32.mrf.mxu2 }
 0x1a7   :  { %12725 = vst [vmem:[#allocation165_spill] sm:$0xff] %v8363_v40  ;;  %1955 = vrot.lane.b32.xlu2 %v8368_v58, %s6411_s30  ;;  %1953 = vrot.lane.b32.xlu1 %v8375_v26, %s6411_s30  ;;  %v8390_v20 = vadd.f32 %v1300_v37, %v1132_v47  ;;  %v966_v45 = vadd.f32 %v7998_v14, %v965_v56  ;;  %v8408_v47 = vld [vmem:[%s12175_s5 + $0x100] sm:$0xff]  ;;  %v8415_v56 = vld [vmem:[%s12175_s5 + $0xf8] sm:$0xff] }
 0x1a8   :  { %12728 = vst [vmem:[#allocation168_spill] sm:$0xff] %v8382_v41  ;;  %1951 = vrot.lane.b32.xlu0 %v8382_v41, %s6411_s30  ;;  %v8401_v41 = vld [vmem:[%s12175_s5 + $0x108] sm:$0xff] }
 0x1a9   :  { %v8386_v3 = vpop.permute.xlu2 %1825  ;;  %v8388_v31 = vpop.permute.xlu1 %1805  ;;  %12731 = vst [vmem:[#allocation171_spill] sm:$0xff] %v8390_v20 }
 0x1aa   :  { %12729 = vst [vmem:[#allocation169_spill] sm:$0xff] %v8386_v3  ;;  %v8392_v30 = vpop.permute.xlu0 %1803 }
 0x1ab   :  { %12730 = vst [vmem:[#allocation170_spill] sm:$0xff] %v8388_v31  ;;  %v1134_v40 = vpop.f32.mrf.mxu1 }
 0x1ac   :  { %12732 = vst [vmem:[#allocation172_spill] sm:$0xff] %v8392_v30  ;;  %v1343_v1 = vpop.f32.mrf.mxu3  ;;  %v1135_v7 = vadd.f32 %v1134_v40, %v966_v45 }
 0x1ad   :  { %v8396_v36 = vadd.f32 %v1343_v1, %v7765_v19  ;;  %12734 = vst [vmem:[#allocation174_spill] sm:$0xff] %v8401_v41 }
 0x1ae   :  { %v967_v58 = vpop.f32.mrf.mxu0  ;;  %12735 = vst [vmem:[#allocation175_spill] sm:$0xff] %v8408_v47  ;;  %v1303_v19 = vpop.f32.mrf.mxu2 }
 0x1af   :  { %12733 = vst [vmem:[#allocation173_spill] sm:$0xff] %v8396_v36  ;;  %1961 = vrot.lane.b32.xlu2 %v8401_v41, %s6411_s30  ;;  %1959 = vrot.lane.b32.xlu1 %v8408_v47, %s6411_s30  ;;  %v8423_v45 = vadd.f32 %v1303_v19, %v1135_v7  ;;  %v968_v3 = vadd.f32 %v7998_v14, %v967_v58  ;;  %v8441_v7 = vld [vmem:[%s12175_s5 + $0x118] sm:$0xff] }
 0x1b0   :  { %12736 = vst [vmem:[#allocation176_spill] sm:$0xff] %v8415_v56  ;;  %1957 = vrot.lane.b32.xlu0 %v8415_v56, %s6411_s30  ;;  %v8434_v56 = vld [vmem:[%s12175_s5 + $0x120] sm:$0xff] }
 0x1b1   :  { %v8419_v40 = vpop.permute.xlu2 %1895  ;;  %v8421_v37 = vpop.permute.xlu1 %1811  ;;  %12738 = vst [vmem:[#allocation178_spill] sm:$0xff] %v8423_v45 }
 0x1b2   :  { %12737 = vst [vmem:[#allocation177_spill] sm:$0xff] %v8421_v37  ;;  %v8425_v1 = vpop.permute.xlu0 %1809 }
 0x1b3   :  { %12739 = vst [vmem:[#allocation179_spill] sm:$0xff] %v8425_v1  ;;  %v1136_v30 = vpop.f32.mrf.mxu1 }
 0x1b4   :  { %v1345_v31 = vpop.f32.mrf.mxu3  ;;  %v1137_v20 = vadd.f32 %v1136_v30, %v968_v3  ;;  %12741 = vst [vmem:[#allocation181_spill] sm:$0xff] %v8434_v56 }
 0x1b5   :  { %v8429_v36 = vadd.f32 %v1345_v31, %v7796_v32  ;;  %12742 = vst [vmem:[#allocation182_spill] sm:$0xff] %v8441_v7  ;;  %v8448_v32 = vld [vmem:[%s12175_s5 + $0x110] sm:$0xff] }
 0x1b6   :  { %v970_v41 = vpop.f32.mrf.mxu0  ;;  %12743 = vst [vmem:[#allocation183_spill] sm:$0xff] %v8448_v32  ;;  %v1305_v58 = vpop.f32.mrf.mxu2 }
 0x1b7   :  { %12740 = vst [vmem:[#allocation180_spill] sm:$0xff] %v8429_v36  ;;  %1967 = vrot.lane.b32.xlu2 %v8434_v56, %s6411_s30  ;;  %1965 = vrot.lane.b32.xlu1 %v8441_v7, %s6411_s30  ;;  %v8456_v30 = vadd.f32 %v1305_v58, %v1137_v20  ;;  %v971_v37 = vadd.f32 %v7998_v14, %v970_v41  ;;  %v8474_v20 = vld [vmem:[%s12175_s5 + $0x130] sm:$0xff] }
 0x1b8   :  { %1963 = vrot.lane.b32.xlu0 %v8448_v32, %s6411_s30  ;;  %v8467_v32 = vld [vmem:[%s12175_s5 + $0x138] sm:$0xff]  ;;  %12749 = vst [vmem:[#allocation189_spill] sm:$0xff] %v8474_v20 }
 0x1b9   :  { %v8452_v3 = vpop.permute.xlu2 %1901  ;;  %v8454_v31 = vpop.permute.xlu1 %1817  ;;  %12745 = vst [vmem:[#allocation185_spill] sm:$0xff] %v8456_v30 }
 0x1ba   :  { %12744 = vst [vmem:[#allocation184_spill] sm:$0xff] %v8454_v31  ;;  %v8458_v19 = vpop.permute.xlu0 %1815 }
 0x1bb   :  { %12746 = vst [vmem:[#allocation186_spill] sm:$0xff] %v8458_v19  ;;  %v1139_v45 = vpop.f32.mrf.mxu1 }
 0x1bc   :  { %v1348_v36 = vpop.f32.mrf.mxu3  ;;  %v1140_v56 = vadd.f32 %v1139_v45, %v971_v37  ;;  %12748 = vst [vmem:[#allocation188_spill] sm:$0xff] %v8467_v32 }
 0x1bd   :  { %v8462_v1 = vadd.f32 %v1348_v36, %v7827_v61  ;;  %v8481_v61 = vld [vmem:[%s12175_s5 + $0x128] sm:$0xff] }
 0x1be   :  { %v972_v7 = vpop.f32.mrf.mxu0  ;;  %12750 = vst [vmem:[#allocation190_spill] sm:$0xff] %v8481_v61  ;;  %v1308_v41 = vpop.f32.mrf.mxu2 }
 0x1bf   :  { %12747 = vst [vmem:[#allocation187_spill] sm:$0xff] %v8462_v1  ;;  %1973 = vrot.lane.b32.xlu2 %v8467_v32, %s6411_s30  ;;  %1971 = vrot.lane.b32.xlu1 %v8474_v20, %s6411_s30  ;;  %v8489_v45 = vadd.f32 %v1308_v41, %v1140_v56  ;;  %v973_v31 = vadd.f32 %v7998_v14, %v972_v7  ;;  %v8507_v56 = vld [vmem:[%s12175_s5 + $0x148] sm:$0xff]  ;;  %v12768_v20 = vld [vmem:[#allocation12_spill] sm:$0xff] }
 0x1c0   :  { %1969 = vrot.lane.b32.xlu0 %v8481_v61, %s6411_s30  ;;  %v8500_v61 = vld [vmem:[%s12175_s5 + $0x150] sm:$0xff]  ;;  %12756 = vst [vmem:[#allocation196_spill] sm:$0xff] %v8507_v56  ;;  %v2090_v47 = vsel %vm2087_vm0, %v7968_v39, %v12768_v20  ;;  %v12770_v39 = vld [vmem:[#allocation13_spill] sm:$0xff] }
 0x1c1   :  { %v8485_v36 = vpop.permute.xlu2 %1907  ;;  %v8487_v37 = vpop.permute.xlu1 %1823  ;;  %12752 = vst [vmem:[#allocation192_spill] sm:$0xff] %v8489_v45 }
 0x1c2   :  { %12751 = vst [vmem:[#allocation191_spill] sm:$0xff] %v8487_v37  ;;  %v8491_v58 = vpop.permute.xlu0 %1821 }
 0x1c3   :  { %12753 = vst [vmem:[#allocation193_spill] sm:$0xff] %v8491_v58  ;;  %v1141_v30 = vpop.f32.mrf.mxu1 }
 0x1c4   :  { %v1350_v19 = vpop.f32.mrf.mxu3  ;;  %v1142_v32 = vadd.f32 %v1141_v30, %v973_v31  ;;  %12755 = vst [vmem:[#allocation195_spill] sm:$0xff] %v8500_v61 }
 0x1c5   :  { %v8495_v1 = vadd.f32 %v1350_v19, %v7858_v22  ;;  %v8514_v22 = vld [vmem:[%s12175_s5 + $0x140] sm:$0xff] }
 0x1c6   :  { %12757 = vst [vmem:[#allocation197_spill] sm:$0xff] %v8514_v22  ;;  %v1310_v7 = vpop.f32.mrf.mxu2  ;;  %v975_v31 = vpop.f32.mrf.mxu0 }
 0x1c7   :  { %12754 = vst [vmem:[#allocation194_spill] sm:$0xff] %v8495_v1  ;;  %1979 = vrot.lane.b32.xlu2 %v8500_v61, %s6411_s30  ;;  %1977 = vrot.lane.b32.xlu1 %v8507_v56, %s6411_s30  ;;  %v8522_v41 = vadd.f32 %v1310_v7, %v1142_v32  ;;  %v976_v58 = vadd.f32 %v7998_v14, %v975_v31  ;;  %v8530_v61 = vld [vmem:[%s12175_s5 + $0x168] sm:$0xff]  ;;  %v8544_v14 = vld [vmem:[%s12175_s5 + $0x158] sm:$0xff] }
 0x1c8   :  { %1975 = vrot.lane.b32.xlu0 %v8514_v22, %s6411_s30  ;;  %12761 = vst [vmem:[#allocation201_spill] sm:$0xff] %v8530_v61  ;;  %v6323_v22 = vld [vmem:[%s12175_s5 + $0x190] sm:$0xff] }
 0x1c9   :  { %v8518_v30 = vpop.permute.xlu2 %1913  ;;  %v8520_v19 = vpop.permute.xlu1 %1829  ;;  %12759 = vst [vmem:[#allocation199_spill] sm:$0xff] %v8522_v41  ;;  %v8559_v41 = vld [vmem:[%s12175_s5 + $0x178] sm:$0xff] }
 0x1ca   :  { %12758 = vst [vmem:[#allocation198_spill] sm:$0xff] %v8520_v19  ;;  %v8524_v37 = vpop.permute.xlu0 %1827  ;;  %v8537_v19 = vld [vmem:[%s12175_s5 + $0x160] sm:$0xff] }
 0x1cb   :  { %12760 = vst [vmem:[#allocation200_spill] sm:$0xff] %v8524_v37  ;;  %v1144_v1 = vpop.f32.mrf.mxu1  ;;  %v6319_v37 = vld [vmem:[%s12175_s5 + $0x180] sm:$0xff] }
 0x1cc   :  { %v1145_v45 = vadd.f32 %v1144_v1, %v976_v58  ;;  %12762 = vst [vmem:[#allocation202_spill] sm:$0xff] %v8537_v19 }
 0x1cd   :  { %12763 = vst [vmem:[#allocation203_spill] sm:$0xff] %v8544_v14 }
 0x1ce   :  { %v1313_v1 = vpop.f32.mrf.mxu2  ;;  %12765 = vst [vmem:[#allocation205_spill] sm:$0xff] %v8559_v41 }
 0x1cf   :  { %1985 = vrot.lane.b32.xlu2 %v8530_v61, %s6411_s30  ;;  %1983 = vrot.lane.b32.xlu1 %v8537_v19, %s6411_s30  ;;  %v8550_v7 = vadd.f32 %v1313_v1, %v1145_v45  ;;  %v8566_v45 = vld [vmem:[%s12175_s5 + $0x170] sm:$0xff]  ;;  %v2474_v61 = vlaneseq }
 0x1d0   :  { %1981 = vrot.lane.b32.xlu0 %v8544_v14, %s6411_s30  ;;  %12766 = vst [vmem:[#allocation206_spill] sm:$0xff] %v8566_v45  ;;  %v6322_v14 = vld [vmem:[%s12175_s5 + $0x198] sm:$0xff] }
 0x1d1   :  { %v8548_v32 = vpop.permute.xlu2 %1919  ;;  %v1900_v58 = vpop.permute.xlu1 %1899  ;;  %12764 = vst [vmem:[#allocation204_spill] sm:$0xff] %v8550_v7 }
 0x1d2   :  { %v1898_v31 = vpop.permute.xlu0 %1897 }
 0x1d7   :  { %1991 = vrot.lane.b32.xlu2 %v6319_v37, %s6411_s30  ;;  %1989 = vrot.lane.b32.xlu1 %v8559_v41, %s6411_s30 }
 0x1d8   :  { %1987 = vrot.lane.b32.xlu0 %v8566_v45, %s6411_s30  ;;  %v6324_v45 = vld [vmem:[%s12175_s5 + $0x188] sm:$0xff] }
 0x1d9   :  { %v8570_v1 = vpop.permute.xlu2 %1925  ;;  %v1906_v7 = vpop.permute.xlu1 %1905 }
 0x1da   :  { %v8572_v37 = vpop.permute.xlu0 %1903 }
 0x1df   :  { %1997 = vrot.lane.b32.xlu2 %v6322_v14, %s6411_s30  ;;  %1995 = vrot.lane.b32.xlu1 %v6323_v22, %s6411_s30  ;;  %v2475_v14 = vand.u32 127, %v2474_v61  ;;  %v12769_v22 = vld [vmem:[#allocation17_spill] sm:$0xff] }
 0x1e0   :  { %1993 = vrot.lane.b32.xlu0 %v6324_v45, %s6411_s30  ;;  %v2089_v26 = vsel %vm2087_vm0, %v7975_v46, %v12769_v22  ;;  %v2155_v45 = vsel %vm2152_vm1, %v2090_v47, %v7762_v49  ;;  %v6326_v61 = vld [vmem:[%s12175_s5 + $0x1a8] sm:$0xff]  ;;  %v2088_v46 = vsel %vm2087_vm0, %v7931_v59, %v12770_v39  ;;  %v2284_v47 = vld [vmem:[#allocation2 + $0x10] sm:$0xff] }
 0x1e1   :  { %v8586_v41 = vpop.permute.xlu2 %1931  ;;  %v8588_v19 = vpop.permute.xlu1 %1911  ;;  %vm2476_vm3 = vcmp.lt.s32.totalorder %v2475_v14, 64  ;;  %v2154_v49 = vsel %vm2152_vm1, %v2089_v26, %v7634_v54  ;;  %v2220_v22 = vsel %vm2217_vm2, %v2155_v45, %v1900_v58  ;;  %v2153_v20 = vsel %vm2152_vm1, %v2088_v46, %v7715_v62  ;;  %v2282_v54 = vld [vmem:[#allocation2] sm:$0xff] }
 0x1e2   :  { %12767 = vst [vmem:[#allocation207_spill] sm:$0xff] %v8586_v41  ;;  %v8590_v56 = vpop.permute.xlu0 %1909  ;;  %v2219_v53 = vsel %vm2217_vm2, %v2154_v49, %v1898_v31  ;;  %v12319_v26 = vmov 0.0   ;;  %v2218_v45 = vsel %vm2217_vm2, %v2153_v20, %v8419_v40  ;;  %v12772_v31 = vld [vmem:[#allocation9_spill] sm:$0xff]  ;;  %v6329_v20 = vld [vmem:[%s12175_s5 + $0x1c0] sm:$0xff] }
 0x1e3   :  { %v5734_v58 = vsel %vm2476_vm3, 1.0, %v12319_v26  ;;  %v2346_v46 = vmul.f32 %v2282_v54, %v2218_v45  ;;  %v2093_v49 = vsel %vm2087_vm0, %v8025_v10, %v12772_v31  ;;  %v12774_v10 = vld [vmem:[#allocation16_spill] sm:$0xff]  ;;  %v6330_v54 = vld [vmem:[%s12175_s5 + $0x1b8] sm:$0xff]  ;;  %v12776_v26 = vld [vmem:[#allocation10_spill] sm:$0xff] }
 0x1e4   :  { %v8631_v62 = vmul.f32 0.5, %v5734_v58  ;;  %v2158_v14 = vsel %vm2152_vm1, %v2093_v49, %v7787_v57 }
 0x1e6   :  { %v8664_v45 = vsub.f32 1.0, %v8631_v62 }
 0x1e7   :  { %2003 = vrot.lane.b32.xlu2 %v6325_v15, %s6411_s30  ;;  %2001 = vrot.lane.b32.xlu1 %v6326_v61, %s6411_s30  ;;  %v6327_v15 = vld [vmem:[%s12175_s5 + $0x1a0] sm:$0xff]  ;;  %v2283_v61 = vld [vmem:[#allocation2 + $0x8] sm:$0xff] }
 0x1e8   :  { %1999 = vrot.lane.b32.xlu0 %v6327_v15, %s6411_s30  ;;  %v2348_v15 = vmul.f32 %v2284_v47, %v2220_v22  ;;  %v2347_v52 = vmul.f32 %v2283_v61, %v2219_v53  ;;  %v6328_v53 = vld [vmem:[%s12175_s5 + $0x1c8] sm:$0xff]  ;;  %v2223_v61 = vsel %vm2217_vm2, %v2158_v14, %v1906_v7 }
 0x1e9   :  { %v8621_v35 = vpop.permute.xlu2 %1937  ;;  %v8623_v59 = vpop.permute.xlu1 %1917  ;;  %v2287_v47 = vld [vmem:[#allocation2 + $0x28] sm:$0xff] }
 0x1ea   :  { %12771 = vst [vmem:[#allocation208_spill] sm:$0xff] %v8621_v35  ;;  %v8629_v39 = vpop.permute.xlu0 %1915  ;;  %v12773_v35 = vld [vmem:[#allocation8_spill] sm:$0xff]  ;;  %v2412_v40 = vadd.f32 %v2348_v15, %v7375_v0  ;;  %v2411_v22 = vadd.f32 %v2347_v52, %v7346_v8  ;;  %v2285_v15 = vld [vmem:[#allocation2 + $0x18] sm:$0xff]  ;;  %v2096_v8 = vsel %vm2087_vm0, %v8065_v6, %v12776_v26 }
 0x1eb   :  { %v2092_v41 = vsel %vm2087_vm0, %v8032_v29, %v12773_v35  ;;  %v2091_v29 = vsel %vm2087_vm0, %v7961_v11, %v12774_v10  ;;  %v2410_v11 = vadd.f32 %v2346_v46, %v7317_v21  ;;  %v6331_v6 = vld [vmem:[%s12175_s5 + $0x1e0] sm:$0xff]  ;;  %v12821_v26 = vld [vmem:[#allocation151_spill] sm:$0xff] }
 0x1ec   :  { %v2157_v57 = vsel %vm2152_vm1, %v2092_v41, %v7657_v9  ;;  %v2156_v58 = vsel %vm2152_vm1, %v2091_v29, %v7750_v63  ;;  %v2286_v9 = vld [vmem:[#allocation2 + $0x20] sm:$0xff]  ;;  %v2483_v63 = vmul.f32 %v8664_v45, %v2412_v40  ;;  %v12775_v29 = vld [vmem:[#allocation21_spill] sm:$0xff] }
 0x1ed   :  { %v2222_v52 = vsel %vm2217_vm2, %v2157_v57, %v8572_v37  ;;  %v2221_v49 = vsel %vm2217_vm2, %v2156_v58, %v8452_v3  ;;  %v2094_v37 = vsel %vm2087_vm0, %v8018_v34, %v12775_v29  ;;  %v2481_v57 = vmul.f32 %v8664_v45, %v2410_v11  ;;  %v12777_v3 = vld [vmem:[#allocation20_spill] sm:$0xff]  ;;  %v2288_v34 = vld [vmem:[#allocation2 + $0x30] sm:$0xff] }
 0x1ee   :  { %v2350_v46 = vmul.f32 %v2286_v9, %v2222_v52  ;;  %v2095_v58 = vsel %vm2087_vm0, %v8072_v42, %v12777_v3  ;;  %v2159_v40 = vsel %vm2152_vm1, %v2094_v37, %v7775_v17  ;;  %5888 = vtanh.f32 %v2483_v63  ;;  %v6332_v17 = vld [vmem:[%s12175_s5 + $0x1d8] sm:$0xff]  ;;  %v2290_v42 = vld [vmem:[#allocation2 + $0x40] sm:$0xff]  ;;  %v6333_v9 = vld [vmem:[%s12175_s5 + $0x1d0] sm:$0xff] }
 0x1ef   :  { %2009 = vrot.lane.b32.xlu2 %v6328_v53, %s6411_s30  ;;  %2007 = vrot.lane.b32.xlu1 %v6329_v20, %s6411_s30  ;;  %v2351_v53 = vmul.f32 %v2287_v47, %v2223_v61  ;;  %v2482_v20 = vmul.f32 %v8664_v45, %v2411_v22  ;;  %v8691_v22 = vpop.f32.mrf.mxu0  ;;  %v2161_v47 = vsel %vm2152_vm1, %v2096_v8, %v7824_v33  ;;  %v12801_v21 = vld [vmem:[#allocation100_spill] sm:$0xff]  ;;  %v12820_v3 = vld [vmem:[#allocation31_spill] sm:$0xff]  ;;  %v12832_v29 = vld [vmem:[#allocation42_spill] sm:$0xff] }
 0x1f0   :  { %2005 = vrot.lane.b32.xlu0 %v6330_v54, %s6411_s30  ;;  %v2349_v54 = vmul.f32 %v2285_v15, %v2221_v49  ;;  %v2224_v61 = vsel %vm2217_vm2, %v2159_v40, %v8485_v36  ;;  %v2160_v8 = vsel %vm2152_vm1, %v2095_v58, %v7692_v28  ;;  %v2414_v33 = vadd.f32 %v2350_v46, %v7433_v25  ;;  %v2289_v15 = vld [vmem:[#allocation2 + $0x38] sm:$0xff] }
 0x1f1   :  { %v8669_v41 = vpop.permute.xlu2 %1943  ;;  %v8671_v7 = vpop.permute.xlu1 %1923  ;;  %v2415_v11 = vadd.f32 %v2351_v53, %v7462_v24  ;;  %5890 = vtanh.f32 %v2482_v20  ;;  %v2226_v36 = vsel %vm2217_vm2, %v2161_v47, %v8588_v19  ;;  %v2225_v28 = vsel %vm2217_vm2, %v2160_v8, %v8590_v56  ;;  %v12778_v56 = vld [vmem:[#allocation11_spill] sm:$0xff] }
 0x1f2   :  { %v8675_v14 = vpop.permute.xlu0 %1921  ;;  %5892 = vtanh.f32 %v2481_v57  ;;  %v2413_v52 = vadd.f32 %v2349_v54, %v7404_v5  ;;  %v2352_v53 = vmul.f32 %v2288_v34, %v2224_v61  ;;  %v8722_v20 = vpop.f32.mrf.mxu1  ;;  %v2354_v37 = vmul.f32 %v2290_v42, %v2226_v36  ;;  %v12780_v61 = vld [vmem:[#allocation27_spill] sm:$0xff]  ;;  %v12800_v5 = vld [vmem:[#allocation34_spill] sm:$0xff] }
 0x1f3   :  { %v2486_v46 = vmul.f32 %v8664_v45, %v2415_v11  ;;  %v2485_v57 = vmul.f32 %v8664_v45, %v2414_v33  ;;  %v2353_v58 = vmul.f32 %v2289_v15, %v2225_v28  ;;  %v2097_v11 = vsel %vm2087_vm0, %v8058_v18, %v12780_v61  ;;  %v8739_v33 = vpop.f32.mrf.mxu2  ;;  %v6335_v18 = vld [vmem:[%s12175_s5 + $0x1f0] sm:$0xff]  ;;  %v12790_v25 = vld [vmem:[#allocation19_spill] sm:$0xff]  ;;  %v12828_v61 = vld [vmem:[#allocation29_spill] sm:$0xff] }
 0x1f4   :  { %v5889_v54 = vpop.eup %5888  ;;  %v2484_v40 = vmul.f32 %v8664_v45, %v2413_v52  ;;  %v2416_v8 = vadd.f32 %v2352_v53, %v7491_v51  ;;  %v2293_v52 = vld [vmem:[#allocation2 + $0x58] sm:$0xff]  ;;  %v6336_v53 = vld [vmem:[%s12175_s5 + $0x1e8] sm:$0xff] }
 0x1f5   :  { %5894 = vtanh.f32 %v2486_v46  ;;  %v2292_v46 = vld [vmem:[#allocation2 + $0x50] sm:$0xff]  ;;  %v12797_v51 = vld [vmem:[#allocation95_spill] sm:$0xff] }
 0x1f6   :  { %5896 = vtanh.f32 %v2485_v57 }
 0x1f7   :  { %2015 = vrot.lane.b32.xlu2 %v6331_v6, %s6411_s30  ;;  %2013 = vrot.lane.b32.xlu1 %v6332_v17, %s6411_s30  ;;  %v5891_v47 = vpop.eup %5890  ;;  %v2099_v6 = vsel %vm2087_vm0, %v8117_v48, %v12778_v56  ;;  %v12779_v17 = vld [vmem:[#allocation26_spill] sm:$0xff]  ;;  %v2418_v48 = vadd.f32 %v2354_v37, %v7549_v13  ;;  %v8759_v28 = vpop.f32.mrf.mxu0  ;;  %5898 = vtanh.f32 %v2484_v40 }
 0x1f8   :  { %2011 = vrot.lane.b32.xlu0 %v6333_v9, %s6411_s30  ;;  %v2098_v34 = vsel %vm2087_vm0, %v8124_v38, %v12779_v17  ;;  %v5893_v42 = vpop.eup %5892  ;;  %v2164_v9 = vsel %vm2152_vm1, %v2099_v6, %v7849_v16  ;;  %v6334_v38 = vld [vmem:[%s12175_s5 + $0x1f8] sm:$0xff]  ;;  %v2417_v16 = vadd.f32 %v2353_v58, %v7520_v50  ;;  %v2611_v58 = vmul.f32 %v5889_v54, %v8664_v45  ;;  %v12782_v50 = vld [vmem:[#allocation33_spill] sm:$0xff]  ;;  %v12816_v17 = vld [vmem:[#allocation24_spill] sm:$0xff] }
 0x1f9   :  { %v8718_v49 = vpop.permute.xlu2 %1949  ;;  %v8720_v63 = vpop.permute.xlu1 %1929  ;;  %v2163_v36 = vsel %vm2152_vm1, %v2098_v34, %v7713_v55  ;;  %v2162_v55 = vsel %vm2152_vm1, %v2097_v11, %v7812_v23  ;;  %v2229_v15 = vsel %vm2217_vm2, %v2164_v9, %v8623_v59  ;;  %v2610_v59 = vmul.f32 %v5891_v47, %v8664_v45  ;;  %v2291_v34 = vld [vmem:[#allocation2 + $0x48] sm:$0xff] }
 0x1fa   :  { %v8724_v19 = vpop.permute.xlu0 %1927  ;;  %v2228_v23 = vsel %vm2217_vm2, %v2163_v36, %v8629_v39  ;;  %v2487_v6 = vmul.f32 %v8664_v45, %v2416_v8  ;;  %v2227_v11 = vsel %vm2217_vm2, %v2162_v55, %v8518_v30  ;;  %v2609_v40 = vmul.f32 %v5893_v42, %v8664_v45 }
 0x1fb   :  { %v2489_v39 = vmul.f32 %v8664_v45, %v2418_v48  ;;  %v2357_v36 = vmul.f32 %v2293_v52, %v2229_v15  ;;  %v2488_v54 = vmul.f32 %v8664_v45, %v2417_v16  ;;  %v2356_v47 = vmul.f32 %v2292_v46, %v2228_v23  ;;  %v5895_v8 = vpop.eup %5894  ;;  %v12785_v15 = vld [vmem:[#allocation32_spill] sm:$0xff] }
 0x1fc   :  { %v2100_v30 = vsel %vm2087_vm0, %v8110_v4, %v12782_v50  ;;  %v2355_v55 = vmul.f32 %v2291_v34, %v2227_v11  ;;  %v8790_v42 = vadd.f32 %v2611_v58, %v8631_v62  ;;  %v8793_v48 = vadd.f32 %v2610_v59, %v8631_v62  ;;  %v5897_v52 = vpop.eup %5896  ;;  %v2294_v58 = vld [vmem:[#allocation2 + $0x60] sm:$0xff] }
 0x1fd   :  { %v2165_v16 = vsel %vm2152_vm1, %v2100_v30, %v7837_v43  ;;  %5900 = vtanh.f32 %v2487_v6  ;;  %v8801_v46 = vadd.f32 %v2609_v40, %v8631_v62  ;;  %v5899_v4 = vpop.eup %5898  ;;  %v2421_v34 = vadd.f32 %v2357_v36, %v7636_v44  ;;  %v12787_v43 = vld [vmem:[#allocation102_spill] sm:$0xff]  ;;  %v12788_v6 = vld [vmem:[#allocation89_spill] sm:$0xff] }
 0x1fe   :  { %12783 = vst [vmem:[#allocation209_spill] sm:$0xff] %v8790_v42  ;;  %v2230_v59 = vsel %vm2217_vm2, %v2165_v16, %v8548_v32  ;;  %5902 = vtanh.f32 %v2489_v39  ;;  %v2420_v11 = vadd.f32 %v2356_v47, %v12788_v6  ;;  %v8817_v32 = vpop.f32.mrf.mxu2  ;;  %v12789_v39 = vld [vmem:[#allocation85_spill] sm:$0xff]  ;;  %v2614_v47 = vmul.f32 %v5895_v8, %v8664_v45 }
 0x1ff   :  { %2021 = vrot.lane.b32.xlu2 %v6334_v38, %s6411_s30  ;;  %2019 = vrot.lane.b32.xlu1 %v6335_v18, %s6411_s30  ;;  %v12781_v38 = vld [vmem:[#allocation15_spill] sm:$0xff]  ;;  %12784 = vst [vmem:[#allocation210_spill] sm:$0xff] %v8793_v48  ;;  %5904 = vtanh.f32 %v2488_v54  ;;  %v2419_v36 = vadd.f32 %v2355_v55, %v12789_v39  ;;  %v2612_v6 = vmul.f32 %v5899_v4, %v8664_v45 }
 0x200   :  { %2017 = vrot.lane.b32.xlu0 %v6336_v53, %s6411_s30  ;;  %v2102_v18 = vsel %vm2087_vm0, %v8157_v27, %v12781_v38  ;;  %v8784_v53 = vpop.f32.mrf.mxu1  ;;  %v2101_v27 = vsel %vm2087_vm0, %v8164_v60, %v12785_v15  ;;  %12786 = vst [vmem:[#allocation211_spill] sm:$0xff] %v8801_v46  ;;  %v2492_v55 = vmul.f32 %v8664_v45, %v2421_v34  ;;  %v12793_v34 = vld [vmem:[#allocation38_spill] sm:$0xff] }
 0x201   :  { %v8767_v37 = vpop.permute.xlu2 %1955  ;;  %v8769_v57 = vpop.permute.xlu1 %1935  ;;  %v2167_v23 = vsel %vm2152_vm1, %v2102_v18, %v7886_v2  ;;  %v2166_v60 = vsel %vm2152_vm1, %v2101_v27, %v12787_v43  ;;  %v2296_v2 = vld [vmem:[#allocation2 + $0x70] sm:$0xff]  ;;  %v2295_v18 = vld [vmem:[#allocation2 + $0x68] sm:$0xff]  ;;  %v2613_v27 = vmul.f32 %v5897_v52, %v8664_v45  ;;  %v2105_v8 = vsel %vm2087_vm0, %v8209_v12, %v12790_v25 }
 0x202   :  { %v8776_v9 = vpop.permute.xlu0 %1933  ;;  %v2232_v40 = vsel %vm2217_vm2, %v2167_v23, %v8671_v7  ;;  %v2231_v30 = vsel %vm2217_vm2, %v2166_v60, %v8675_v14  ;;  %v2358_v7 = vmul.f32 %v2294_v58, %v2230_v59  ;;  %v8830_v23 = vpop.f32.mrf.mxu0  ;;  %v2491_v14 = vmul.f32 %v8664_v45, %v2420_v11  ;;  %v12795_v11 = vld [vmem:[#allocation39_spill] sm:$0xff] }
 0x203   :  { %v2360_v44 = vmul.f32 %v2296_v2, %v2232_v40  ;;  %v5901_v39 = vpop.eup %5900  ;;  %v2359_v60 = vmul.f32 %v2295_v18, %v2231_v30  ;;  %v2490_v52 = vmul.f32 %v8664_v45, %v2419_v36  ;;  %v8842_v58 = vadd.f32 %v2614_v47, %v8631_v62  ;;  %v12794_v2 = vld [vmem:[#allocation136_spill] sm:$0xff]  ;;  %v12796_v18 = vld [vmem:[#allocation129_spill] sm:$0xff]  ;;  %v12799_v47 = vld [vmem:[#allocation14_spill] sm:$0xff] }
 0x204   :  { %v5903_v13 = vpop.eup %5902  ;;  %v8845_v59 = vadd.f32 %v2613_v27, %v8631_v62  ;;  %v2104_v40 = vsel %vm2087_vm0, %v12794_v2, %v12793_v34  ;;  %v2103_v30 = vsel %vm2087_vm0, %v12796_v18, %v12795_v11  ;;  %v2422_v24 = vadd.f32 %v2358_v7, %v12797_v51  ;;  %v12802_v7 = vld [vmem:[#allocation22_spill] sm:$0xff]  ;;  %v2299_v34 = vld [vmem:[#allocation2 + $0x88] sm:$0xff] }
 0x205   :  { %12791 = vst [vmem:[#allocation102_spill] sm:$0xff] %v8842_v58  ;;  %v5905_v4 = vpop.eup %5904  ;;  %v8857_v36 = vadd.f32 %v2612_v6, %v8631_v62  ;;  %v2169_v27 = vsel %vm2152_vm1, %v2104_v40, %v12799_v47  ;;  %v2170_v0 = vsel %vm2152_vm1, %v2105_v8, %v12800_v5  ;;  %5906 = vtanh.f32 %v2492_v55  ;;  %v12803_v6 = vld [vmem:[#allocation98_spill] sm:$0xff]  ;;  %v2298_v5 = vld [vmem:[#allocation2 + $0x80] sm:$0xff]  ;;  %v2297_v47 = vld [vmem:[#allocation2 + $0x78] sm:$0xff] }
 0x206   :  { %12792 = vst [vmem:[#allocation212_spill] sm:$0xff] %v8845_v59  ;;  %v2424_v2 = vadd.f32 %v2360_v44, %v12801_v21  ;;  %v2168_v18 = vsel %vm2152_vm1, %v2103_v30, %v12802_v7  ;;  %5908 = vtanh.f32 %v2491_v14  ;;  %v2423_v51 = vadd.f32 %v2359_v60, %v12803_v6  ;;  %v12804_v6 = vld [vmem:[#allocation25_spill] sm:$0xff]  ;;  %v12805_v21 = vld [vmem:[#allocation143_spill] sm:$0xff] }
 0x207   :  { %2869 = vrot.lane.b32.xlu2 %v8790_v42, %s6410_s3  ;;  %2867 = vrot.lane.b32.xlu1 %v8793_v48, %s6410_s3  ;;  %12798 = vst [vmem:[#allocation136_spill] sm:$0xff] %v8857_v36  ;;  %v2235_v40 = vsel %vm2217_vm2, %v2170_v0, %v8720_v63  ;;  %5910 = vtanh.f32 %v2490_v52  ;;  %v2234_v44 = vsel %vm2217_vm2, %v2169_v27, %v8724_v19  ;;  %v8886_v63 = vpop.f32.mrf.mxu2 }
 0x208   :  { %2865 = vrot.lane.b32.xlu0 %v8801_v46, %s6410_s3  ;;  %v8854_v12 = vpop.f32.mrf.mxu1  ;;  %v2617_v14 = vmul.f32 %v5903_v13, %v8664_v45  ;;  %v2616_v60 = vmul.f32 %v5905_v4, %v8664_v45  ;;  %v2493_v30 = vmul.f32 %v8664_v45, %v2422_v24  ;;  %v2233_v0 = vsel %vm2217_vm2, %v2168_v18, %v8570_v1  ;;  %v12806_v1 = vld [vmem:[#allocation45_spill] sm:$0xff]  ;;  %v12807_v18 = vld [vmem:[#allocation135_spill] sm:$0xff] }
 0x209   :  { %v8824_v16 = vpop.permute.xlu2 %1961  ;;  %v8826_v54 = vpop.permute.xlu1 %1941  ;;  %v2615_v19 = vmul.f32 %v5901_v39, %v8664_v45  ;;  %v2495_v27 = vmul.f32 %v8664_v45, %v2424_v2  ;;  %v2363_v7 = vmul.f32 %v2299_v34, %v2235_v40  ;;  %v2108_v13 = vsel %vm2087_vm0, %v12805_v21, %v12804_v6  ;;  %v12810_v40 = vld [vmem:[#allocation44_spill] sm:$0xff] }
 0x20a   :  { %v8832_v43 = vpop.permute.xlu0 %1939  ;;  %v2494_v4 = vmul.f32 %v8664_v45, %v2423_v51  ;;  %v2362_v24 = vmul.f32 %v2298_v5, %v2234_v44  ;;  %v8896_v25 = vpop.f32.mrf.mxu0  ;;  %v2106_v38 = vsel %vm2087_vm0, %v12807_v18, %v12806_v1  ;;  %v2361_v11 = vmul.f32 %v2297_v47, %v2233_v0  ;;  %v12811_v21 = vld [vmem:[#allocation144_spill] sm:$0xff]  ;;  %v12812_v5 = vld [vmem:[#allocation41_spill] sm:$0xff]  ;;  %v12814_v47 = vld [vmem:[#allocation107_spill] sm:$0xff] }
 0x20b   :  { %v5907_v15 = vpop.eup %5906  ;;  %v8902_v39 = vadd.f32 %v2617_v14, %v8631_v62  ;;  %v8905_v34 = vadd.f32 %v2616_v60, %v8631_v62  ;;  %v2107_v51 = vsel %vm2087_vm0, %v12811_v21, %v12810_v40  ;;  %v2171_v44 = vsel %vm2152_vm1, %v2106_v38, %v12812_v5  ;;  %v2300_v0 = vld [vmem:[#allocation2 + $0x90] sm:$0xff]  ;;  %v12815_v1 = vld [vmem:[#allocation207_spill] sm:$0xff]  ;;  %v2302_v5 = vld [vmem:[#allocation2 + $0xa0] sm:$0xff] }
 0x20c   :  { %v5909_v2 = vpop.eup %5908  ;;  %5912 = vtanh.f32 %v2493_v30  ;;  %v8913_v6 = vadd.f32 %v2615_v19, %v8631_v62  ;;  %v2173_v14 = vsel %vm2152_vm1, %v2108_v13, %v12814_v47  ;;  %v2236_v60 = vsel %vm2217_vm2, %v2171_v44, %v12815_v1  ;;  %v12817_v38 = vld [vmem:[#allocation23_spill] sm:$0xff]  ;;  %v12818_v19 = vld [vmem:[#allocation104_spill] sm:$0xff] }
 0x20d   :  { %12808 = vst [vmem:[#allocation129_spill] sm:$0xff] %v8902_v39  ;;  %v5911_v18 = vpop.eup %5910  ;;  %5914 = vtanh.f32 %v2495_v27  ;;  %v2427_v56 = vadd.f32 %v2363_v7, %v12816_v17  ;;  %v2172_v30 = vsel %vm2152_vm1, %v2107_v51, %v12817_v38  ;;  %v2426_v21 = vadd.f32 %v2362_v24, %v12818_v19  ;;  %v12819_v7 = vld [vmem:[#allocation103_spill] sm:$0xff] }
 0x20e   :  { %12809 = vst [vmem:[#allocation14_spill] sm:$0xff] %v8905_v34  ;;  %5916 = vtanh.f32 %v2494_v4  ;;  %v2238_v27 = vsel %vm2217_vm2, %v2173_v14, %v8769_v57  ;;  %v2425_v1 = vadd.f32 %v2361_v11, %v12819_v7  ;;  %v2301_v44 = vld [vmem:[#allocation2 + $0x98] sm:$0xff]  ;;  %v2237_v47 = vsel %vm2217_vm2, %v2172_v30, %v8776_v9 }
 0x20f   :  { %2875 = vrot.lane.b32.xlu2 %v8842_v58, %s6410_s3  ;;  %2873 = vrot.lane.b32.xlu1 %v8845_v59, %s6410_s3  ;;  %12813 = vst [vmem:[#allocation34_spill] sm:$0xff] %v8913_v6  ;;  %v2620_v24 = vmul.f32 %v5907_v15, %v8664_v45  ;;  %v2619_v51 = vmul.f32 %v5909_v2, %v8664_v45  ;;  %v8947_v30 = vpop.f32.mrf.mxu2  ;;  %v12856_v58 = vld [vmem:[#allocation167_spill] sm:$0xff]  ;;  %v12881_v59 = vld [vmem:[#allocation60_spill] sm:$0xff] }
 0x210   :  { %2871 = vrot.lane.b32.xlu0 %v8857_v36, %s6410_s3  ;;  %v8927_v13 = vpop.f32.mrf.mxu1  ;;  %v2364_v38 = vmul.f32 %v2300_v0, %v2236_v60  ;;  %v2618_v57 = vmul.f32 %v5911_v18, %v8664_v45  ;;  %v2498_v14 = vmul.f32 %v8664_v45, %v2427_v56  ;;  %v2366_v11 = vmul.f32 %v2302_v5, %v2238_v27  ;;  %v12824_v60 = vld [vmem:[#allocation48_spill] sm:$0xff]  ;;  %v12826_v27 = vld [vmem:[#allocation50_spill] sm:$0xff] }
 0x211   :  { %v8877_v55 = vpop.permute.xlu2 %1967  ;;  %v8879_v8 = vpop.permute.xlu1 %1947  ;;  %v2497_v40 = vmul.f32 %v8664_v45, %v2426_v21  ;;  %v2365_v9 = vmul.f32 %v2301_v44, %v2237_v47  ;;  %v2111_v15 = vsel %vm2087_vm0, %v12821_v26, %v12820_v3  ;;  %v2496_v2 = vmul.f32 %v8664_v45, %v2425_v1  ;;  %v12825_v5 = vld [vmem:[#allocation152_spill] sm:$0xff]  ;;  %v12827_v44 = vld [vmem:[#allocation142_spill] sm:$0xff] }
 0x212   :  { %v8888_v52 = vpop.permute.xlu0 %1945  ;;  %v5913_v7 = vpop.eup %5912  ;;  %v8954_v0 = vadd.f32 %v2620_v24, %v8631_v62  ;;  %v8957_v18 = vadd.f32 %v2619_v51, %v8631_v62  ;;  %v2110_v21 = vsel %vm2087_vm0, %v12825_v5, %v12824_v60  ;;  %v2109_v47 = vsel %vm2087_vm0, %v12827_v44, %v12826_v27  ;;  %v12830_v24 = vld [vmem:[#allocation18_spill] sm:$0xff]  ;;  %v12831_v3 = vld [vmem:[#allocation112_spill] sm:$0xff]  ;;  %v2305_v60 = vld [vmem:[#allocation2 + $0xb8] sm:$0xff] }
 0x213   :  { %v5915_v50 = vpop.eup %5914  ;;  %v2428_v35 = vadd.f32 %v2364_v38, %v12828_v61  ;;  %v8966_v26 = vpop.f32.mrf.mxu0  ;;  %v8969_v1 = vadd.f32 %v2618_v57, %v8631_v62  ;;  %v2175_v51 = vsel %vm2152_vm1, %v2110_v21, %v12830_v24  ;;  %v2176_v31 = vsel %vm2152_vm1, %v2111_v15, %v12831_v3  ;;  %v12833_v38 = vld [vmem:[#allocation40_spill] sm:$0xff]  ;;  %v12834_v57 = vld [vmem:[#allocation35_spill] sm:$0xff]  ;;  %v2304_v3 = vld [vmem:[#allocation2 + $0xb0] sm:$0xff] }
 0x214   :  { %12822 = vst [vmem:[#allocation22_spill] sm:$0xff] %v8954_v0  ;;  %v5917_v56 = vpop.eup %5916  ;;  %5918 = vtanh.f32 %v2498_v14  ;;  %v2430_v5 = vadd.f32 %v2366_v11, %v12832_v29  ;;  %v2174_v44 = vsel %vm2152_vm1, %v2109_v47, %v12833_v38  ;;  %v2429_v61 = vadd.f32 %v2365_v9, %v12834_v57  ;;  %v2303_v24 = vld [vmem:[#allocation2 + $0xa8] sm:$0xff]  ;;  %v12838_v27 = vld [vmem:[#allocation159_spill] sm:$0xff]  ;;  %v12868_v36 = vld [vmem:[#allocation132_spill] sm:$0xff] }
 0x215   :  { %12823 = vst [vmem:[#allocation143_spill] sm:$0xff] %v8957_v18  ;;  %5920 = vtanh.f32 %v2497_v40  ;;  %v2241_v21 = vsel %vm2217_vm2, %v2176_v31, %v8826_v54  ;;  %v2240_v14 = vsel %vm2217_vm2, %v2175_v51, %v8832_v43  ;;  %v2623_v40 = vmul.f32 %v5915_v50, %v8664_v45  ;;  %v12836_v31 = vld [vmem:[#allocation208_spill] sm:$0xff]  ;;  %v12837_v29 = vld [vmem:[#allocation37_spill] sm:$0xff] }
 0x216   :  { %12829 = vst [vmem:[#allocation135_spill] sm:$0xff] %v8969_v1  ;;  %5922 = vtanh.f32 %v2496_v2  ;;  %v2622_v9 = vmul.f32 %v5917_v56, %v8664_v45  ;;  %v2499_v47 = vmul.f32 %v8664_v45, %v2428_v35  ;;  %v2239_v54 = vsel %vm2217_vm2, %v2174_v44, %v12836_v31  ;;  %v9007_v56 = vpop.f32.mrf.mxu3  ;;  %v12840_v44 = vld [vmem:[#allocation54_spill] sm:$0xff] }
 0x217   :  { %2881 = vrot.lane.b32.xlu2 %v8902_v39, %s6410_s3  ;;  %2879 = vrot.lane.b32.xlu1 %v8905_v34, %s6410_s3  ;;  %v2621_v43 = vmul.f32 %v5913_v7, %v8664_v45  ;;  %v2501_v51 = vmul.f32 %v8664_v45, %v2430_v5  ;;  %v2369_v57 = vmul.f32 %v2305_v60, %v2241_v21  ;;  %v12841_v31 = vld [vmem:[#allocation150_spill] sm:$0xff]  ;;  %v12844_v21 = vld [vmem:[#allocation52_spill] sm:$0xff] }
 0x218   :  { %2877 = vrot.lane.b32.xlu0 %v8913_v6, %s6410_s3  ;;  %v8998_v38 = vpop.f32.mrf.mxu1  ;;  %v2114_v50 = vsel %vm2087_vm0, %v12838_v27, %v12837_v29  ;;  %12839 = vst [vmem:[#allocation41_spill] sm:$0xff] %v9007_v56  ;;  %v2500_v35 = vmul.f32 %v8664_v45, %v2429_v61  ;;  %v2368_v10 = vmul.f32 %v2304_v3, %v2240_v14  ;;  %v12845_v27 = vld [vmem:[#allocation160_spill] sm:$0xff]  ;;  %5924 = vtanh.f32 %v2499_v47  ;;  %v9024_v3 = vpop.f32.mrf.mxu2  ;;  %v12851_v47 = vld [vmem:[#allocation111_spill] sm:$0xff]  ;;  %v12867_v34 = vld [vmem:[#allocation122_spill] sm:$0xff] }
 0x219   :  { %v8936_v17 = vpop.permute.xlu2 %1973  ;;  %v8938_v4 = vpop.permute.xlu1 %1953  ;;  %v2112_v39 = vsel %vm2087_vm0, %v12841_v31, %v12840_v44  ;;  %v9014_v7 = vadd.f32 %v2623_v40, %v8631_v62  ;;  %v9017_v60 = vadd.f32 %v2622_v9, %v8631_v62  ;;  %v2113_v29 = vsel %vm2087_vm0, %v12845_v27, %v12844_v21  ;;  %v12848_v40 = vld [vmem:[#allocation117_spill] sm:$0xff]  ;;  %v2306_v9 = vld [vmem:[#allocation2 + $0xc0] sm:$0xff]  ;;  %v12883_v56 = vld [vmem:[#allocation62_spill] sm:$0xff] }
 0x21a   :  { %v8942_v19 = vpop.permute.xlu0 %1951  ;;  %v9027_v14 = vadd.f32 %v2621_v43, %v8631_v62  ;;  %5926 = vtanh.f32 %v2501_v51  ;;  %v12849_v44 = vld [vmem:[#allocation116_spill] sm:$0xff]  ;;  %v2432_v43 = vadd.f32 %v2368_v10, %v12851_v47 }
 0x21b   :  { %12842 = vst [vmem:[#allocation107_spill] sm:$0xff] %v9014_v7  ;;  %v2433_v27 = vadd.f32 %v2369_v57, %v12849_v44  ;;  %5928 = vtanh.f32 %v2500_v35  ;;  %v12852_v57 = vld [vmem:[#allocation106_spill] sm:$0xff] }
 0x21c   :  { %12843 = vst [vmem:[#allocation207_spill] sm:$0xff] %v9017_v60 }
 0x21d   :  { %12847 = vst [vmem:[#allocation23_spill] sm:$0xff] %v9027_v14 }
 0x21e   :  { %v9079_v6 = vpop.f32.mrf.mxu3 }
 0x21f   :  { %2887 = vrot.lane.b32.xlu2 %v8954_v0, %s6410_s3  ;;  %2885 = vrot.lane.b32.xlu1 %v8957_v18, %s6410_s3  ;;  %v5919_v0 = vpop.eup %5918  ;;  %v12846_v18 = vld [vmem:[#allocation110_spill] sm:$0xff]  ;;  %12863 = vst [vmem:[#allocation112_spill] sm:$0xff] %v9079_v6 }
 0x220   :  { %2883 = vrot.lane.b32.xlu0 %v8969_v1, %s6410_s3  ;;  %v2367_v1 = vmul.f32 %v2303_v24, %v2239_v54  ;;  %v5921_v5 = vpop.eup %5920  ;;  %v2177_v61 = vsel %vm2152_vm1, %v2112_v39, %v12846_v18  ;;  %v2179_v54 = vsel %vm2152_vm1, %v2114_v50, %v12848_v40  ;;  %v12850_v39 = vld [vmem:[#allocation30_spill] sm:$0xff]  ;;  %v9041_v50 = vpop.f32.mrf.mxu0  ;;  %v2626_v10 = vmul.f32 %v5919_v0, %v8664_v45 }
 0x221   :  { %v8989_v11 = vpop.permute.xlu2 %1979  ;;  %v8991_v15 = vpop.permute.xlu1 %1959  ;;  %v2242_v31 = vsel %vm2217_vm2, %v2177_v61, %v8669_v41  ;;  %v2178_v18 = vsel %vm2152_vm1, %v2113_v29, %v12850_v39  ;;  %v2308_v40 = vld [vmem:[#allocation2 + $0xd0] sm:$0xff]  ;;  %v2244_v41 = vsel %vm2217_vm2, %v2179_v54, %v8879_v8  ;;  %v2307_v61 = vld [vmem:[#allocation2 + $0xc8] sm:$0xff]  ;;  %v2625_v35 = vmul.f32 %v5921_v5, %v8664_v45 }
 0x222   :  { %12835 = vst [vmem:[#allocation144_spill] sm:$0xff] %v8989_v11  ;;  %v9000_v2 = vpop.permute.xlu0 %1957  ;;  %v5923_v24 = vpop.eup %5922  ;;  %v2431_v51 = vadd.f32 %v2367_v1, %v12852_v57  ;;  %v2243_v44 = vsel %vm2217_vm2, %v2178_v18, %v8888_v52  ;;  %v2370_v39 = vmul.f32 %v2306_v9, %v2242_v31  ;;  %v2504_v54 = vmul.f32 %v8664_v45, %v2433_v27  ;;  %v12859_v27 = vld [vmem:[#allocation56_spill] sm:$0xff]  ;;  %v12884_v6 = vld [vmem:[#allocation166_spill] sm:$0xff] }
 0x223   :  { %v2624_v8 = vmul.f32 %v5923_v24, %v8664_v45  ;;  %v2372_v1 = vmul.f32 %v2308_v40, %v2244_v41  ;;  %v5925_v57 = vpop.eup %5924  ;;  %v9061_v52 = vpop.f32.mrf.mxu1  ;;  %v2371_v18 = vmul.f32 %v2307_v61, %v2243_v44  ;;  %v9068_v9 = vadd.f32 %v2626_v10, %v8631_v62  ;;  %v12860_v40 = vld [vmem:[#allocation168_spill] sm:$0xff]  ;;  %v12861_v41 = vld [vmem:[#allocation58_spill] sm:$0xff] }
 0x224   :  { %12854 = vst [vmem:[#allocation152_spill] sm:$0xff] %v9061_v52  ;;  %v2502_v5 = vmul.f32 %v8664_v45, %v2431_v51  ;;  %v9071_v24 = vadd.f32 %v2625_v35, %v8631_v62  ;;  %v12862_v44 = vld [vmem:[#allocation158_spill] sm:$0xff]  ;;  %v12866_v10 = vld [vmem:[#allocation28_spill] sm:$0xff]  ;;  %5930 = vtanh.f32 %v2504_v54 }
 0x225   :  { %12857 = vst [vmem:[#allocation142_spill] sm:$0xff] %v9068_v9  ;;  %v2115_v61 = vsel %vm2087_vm0, %v12862_v44, %v12861_v41  ;;  %v9083_v51 = vadd.f32 %v2624_v8, %v8631_v62  ;;  %v12869_v44 = vld [vmem:[#allocation115_spill] sm:$0xff]  ;;  %v12870_v8 = vld [vmem:[#allocation126_spill] sm:$0xff]  ;;  %v2310_v54 = vld [vmem:[#allocation2 + $0xe0] sm:$0xff] }
 0x226   :  { %12858 = vst [vmem:[#allocation18_spill] sm:$0xff] %v9071_v24  ;;  %v12875_v41 = vld [vmem:[#allocation51_spill] sm:$0xff] }
 0x227   :  { %2893 = vrot.lane.b32.xlu2 %v9014_v7, %s6410_s3  ;;  %2891 = vrot.lane.b32.xlu1 %v9017_v60, %s6410_s3  ;;  %v2503_v7 = vmul.f32 %v8664_v45, %v2432_v43  ;;  %v12855_v60 = vld [vmem:[#allocation43_spill] sm:$0xff]  ;;  %v2116_v43 = vsel %vm2087_vm0, %v12860_v40, %v12859_v27  ;;  %12865 = vst [vmem:[#allocation40_spill] sm:$0xff] %v9083_v51  ;;  %v9097_v27 = vpop.f32.mrf.mxu2 }
 0x228   :  { %2889 = vrot.lane.b32.xlu0 %v9027_v14, %s6410_s3  ;;  %v5927_v14 = vpop.eup %5926  ;;  %v2117_v0 = vsel %vm2087_vm0, %v12856_v58, %v12855_v60  ;;  %v12864_v58 = vld [vmem:[#allocation121_spill] sm:$0xff]  ;;  %v2181_v35 = vsel %vm2152_vm1, %v2116_v43, %v12866_v10  ;;  %v2436_v40 = vadd.f32 %v2372_v1, %v12868_v36  ;;  %12871 = vst [vmem:[#allocation208_spill] sm:$0xff] %v9097_v27  ;;  %v12873_v10 = vld [vmem:[#allocation47_spill] sm:$0xff]  ;;  %v9117_v36 = vpop.f32.mrf.mxu0 }
 0x229   :  { %v9050_v21 = vpop.permute.xlu2 %1985  ;;  %v9052_v29 = vpop.permute.xlu1 %1965  ;;  %v2434_v60 = vadd.f32 %v2370_v39, %v12864_v58  ;;  %v2182_v42 = vsel %vm2152_vm1, %v2117_v0, %v12867_v34  ;;  %v2180_v39 = vsel %vm2152_vm1, %v2115_v61, %v12869_v44  ;;  %5932 = vtanh.f32 %v2503_v7  ;;  %v2311_v43 = vld [vmem:[#allocation2 + $0xe8] sm:$0xff]  ;;  %v12874_v44 = vld [vmem:[#allocation175_spill] sm:$0xff] }
 0x22a   :  { %12853 = vst [vmem:[#allocation151_spill] sm:$0xff] %v9050_v21  ;;  %v9056_v47 = vpop.permute.xlu0 %1963  ;;  %v5929_v31 = vpop.eup %5928  ;;  %v2435_v58 = vadd.f32 %v2371_v18, %v12870_v8  ;;  %v2247_v34 = vsel %vm2217_vm2, %v2182_v42, %v8938_v4  ;;  %5934 = vtanh.f32 %v2502_v5  ;;  %v2246_v1 = vsel %vm2217_vm2, %v2181_v35, %v8942_v19  ;;  %v2309_v8 = vld [vmem:[#allocation2 + $0xd8] sm:$0xff]  ;;  %v12912_v21 = vld [vmem:[#allocation72_spill] sm:$0xff] }
 0x22b   :  { %v2629_v7 = vmul.f32 %v5927_v14, %v8664_v45  ;;  %v2628_v18 = vmul.f32 %v5929_v31, %v8664_v45  ;;  %v2120_v42 = vsel %vm2087_vm0, %v12874_v44, %v12873_v10  ;;  %v2505_v4 = vmul.f32 %v8664_v45, %v2434_v60  ;;  %v12876_v14 = vld [vmem:[#allocation182_spill] sm:$0xff]  ;;  %v5931_v48 = vpop.eup %5930 }
 0x22c   :  { %v2245_v5 = vsel %vm2217_vm2, %v2180_v39, %v8718_v49  ;;  %v2627_v35 = vmul.f32 %v5925_v57, %v8664_v45  ;;  %v9125_v31 = vsel %vm2087_vm0, %v12876_v14, %v12875_v41  ;;  %v2507_v60 = vmul.f32 %v8664_v45, %v2436_v40  ;;  %v12879_v49 = vld [vmem:[#allocation59_spill] sm:$0xff]  ;;  %v12880_v39 = vld [vmem:[#allocation196_spill] sm:$0xff] }
 0x22d   :  { %v2375_v10 = vmul.f32 %v2311_v43, %v2247_v34  ;;  %v12882_v57 = vld [vmem:[#allocation176_spill] sm:$0xff]  ;;  %v2506_v14 = vmul.f32 %v8664_v45, %v2435_v58  ;;  %v2374_v41 = vmul.f32 %v2310_v54, %v2246_v1  ;;  %v9146_v40 = vadd.f32 %v2629_v7, %v8631_v62  ;;  %v9158_v1 = vpop.f32.mrf.mxu1  ;;  %v12893_v7 = vld [vmem:[#allocation127_spill] sm:$0xff] }
 0x22e   :  { %v2119_v46 = vsel %vm2087_vm0, %v12882_v57, %v12881_v59  ;;  %v9149_v43 = vadd.f32 %v2628_v18, %v8631_v62  ;;  %v12890_v58 = vld [vmem:[#allocation120_spill] sm:$0xff]  ;;  %5936 = vtanh.f32 %v2505_v4  ;;  %12891 = vst [vmem:[#allocation117_spill] sm:$0xff] %v9158_v1  ;;  %v2185_v18 = vsel %vm2152_vm1, %v2120_v42, %v12893_v7  ;;  %v12895_v4 = vld [vmem:[#allocation46_spill] sm:$0xff]  ;;  %v12897_v42 = vld [vmem:[#allocation147_spill] sm:$0xff] }
 0x22f   :  { %2899 = vrot.lane.b32.xlu2 %v9068_v9, %s6410_s3  ;;  %2897 = vrot.lane.b32.xlu1 %v9071_v24, %s6410_s3  ;;  %v12877_v9 = vld [vmem:[#allocation55_spill] sm:$0xff]  ;;  %v9136_v24 = vsel %vm2087_vm0, %v12880_v39, %v12879_v49  ;;  %12885 = vst [vmem:[#allocation150_spill] sm:$0xff] %v9146_v40  ;;  %v5933_v34 = vpop.eup %5932  ;;  %v12888_v49 = vld [vmem:[#allocation202_spill] sm:$0xff]  ;;  %5938 = vtanh.f32 %v2507_v60  ;;  %v2314_v7 = vld [vmem:[#allocation2 + $0x100] sm:$0xff] }
 0x230   :  { %2895 = vrot.lane.b32.xlu0 %v9083_v51, %s6410_s3  ;;  %v12878_v51 = vld [vmem:[#allocation189_spill] sm:$0xff]  ;;  %12886 = vst [vmem:[#allocation160_spill] sm:$0xff] %v9149_v43  ;;  %v12887_v39 = vld [vmem:[#allocation63_spill] sm:$0xff]  ;;  %5940 = vtanh.f32 %v2506_v14  ;;  %v2632_v14 = vmul.f32 %v5931_v48, %v8664_v45  ;;  %v12914_v1 = vld [vmem:[#allocation74_spill] sm:$0xff] }
 0x231   :  { %v9105_v0 = vpop.permute.xlu2 %1991  ;;  %v9107_v61 = vpop.permute.xlu1 %1971  ;;  %v9130_v44 = vsel %vm2087_vm0, %v12878_v51, %v12877_v9  ;;  %v2118_v51 = vsel %vm2087_vm0, %v12884_v6, %v12883_v56  ;;  %v2373_v9 = vmul.f32 %v2309_v8, %v2245_v5  ;;  %v9154_v57 = vsel %vm2087_vm0, %v12888_v49, %v12887_v39  ;;  %v2312_v5 = vld [vmem:[#allocation2 + $0xf0] sm:$0xff]  ;;  %v12894_v49 = vld [vmem:[#allocation155_spill] sm:$0xff] }
 0x232   :  { %12872 = vst [vmem:[#allocation159_spill] sm:$0xff] %v9105_v0  ;;  %v9119_v19 = vpop.permute.xlu0 %1969  ;;  %v2183_v54 = vsel %vm2152_vm1, %v2118_v51, %v12890_v58  ;;  %v9161_v6 = vadd.f32 %v2627_v35, %v8631_v62  ;;  %v5935_v8 = vpop.eup %5934  ;;  %v2439_v39 = vadd.f32 %v2375_v10, %v12894_v49  ;;  %v2184_v35 = vsel %vm2152_vm1, %v2119_v46, %v12895_v4  ;;  %v12898_v10 = vld [vmem:[#allocation139_spill] sm:$0xff]  ;;  %v12900_v4 = vld [vmem:[#allocation64_spill] sm:$0xff] }
 0x233   :  { %12889 = vst [vmem:[#allocation110_spill] sm:$0xff] %v9154_v57  ;;  %v2248_v59 = vsel %vm2217_vm2, %v2183_v54, %v8767_v37  ;;  %v9174_v51 = vpop.f32.mrf.mxu3  ;;  %v2438_v58 = vadd.f32 %v2374_v41, %v12897_v42  ;;  %v2250_v37 = vsel %vm2217_vm2, %v2185_v18, %v8991_v15  ;;  %v2437_v60 = vadd.f32 %v2373_v9, %v12898_v10  ;;  %v2313_v54 = vld [vmem:[#allocation2 + $0xf8] sm:$0xff]  ;;  %v12902_v18 = vld [vmem:[#allocation66_spill] sm:$0xff] }
 0x234   :  { %12892 = vst [vmem:[#allocation30_spill] sm:$0xff] %v9161_v6  ;;  %v2249_v49 = vsel %vm2217_vm2, %v2184_v35, %v9000_v2  ;;  %v2631_v41 = vmul.f32 %v5933_v34, %v8664_v45  ;;  %v12901_v42 = vld [vmem:[#allocation183_spill] sm:$0xff]  ;;  %v2376_v10 = vmul.f32 %v2312_v5, %v2248_v59  ;;  %v2630_v35 = vmul.f32 %v5935_v8, %v8664_v45  ;;  %v12908_v34 = vld [vmem:[#allocation68_spill] sm:$0xff]  ;;  %v12910_v59 = vld [vmem:[#allocation70_spill] sm:$0xff] }
 0x235   :  { %12896 = vst [vmem:[#allocation167_spill] sm:$0xff] %v9174_v51  ;;  %v2122_v15 = vsel %vm2087_vm0, %v12901_v42, %v12900_v4  ;;  %v12906_v51 = vld [vmem:[#allocation205_spill] sm:$0xff]  ;;  %v2510_v4 = vmul.f32 %v8664_v45, %v2439_v39  ;;  %v2378_v0 = vmul.f32 %v2314_v7, %v2250_v37  ;;  %v2509_v27 = vmul.f32 %v8664_v45, %v2438_v58  ;;  %v12919_v58 = vld [vmem:[#allocation203_spill] sm:$0xff]  ;;  %v12926_v57 = vld [vmem:[#allocation178_spill] sm:$0xff] }
 0x236   :  { %v12911_v5 = vld [vmem:[#allocation181_spill] sm:$0xff]  ;;  %v2508_v7 = vmul.f32 %v8664_v45, %v2437_v60  ;;  %v9226_v37 = vadd.f32 %v2632_v14, %v8631_v62  ;;  %v9241_v60 = vadd.f32 %v2630_v35, %v8631_v62 }
 0x237   :  { %2905 = vrot.lane.b32.xlu2 %v9146_v40, %s6410_s3  ;;  %2903 = vrot.lane.b32.xlu1 %v9149_v43, %s6410_s3  ;;  %v12903_v40 = vld [vmem:[#allocation174_spill] sm:$0xff]  ;;  %v12905_v43 = vld [vmem:[#allocation67_spill] sm:$0xff]  ;;  %v12924_v14 = vld [vmem:[#allocation109_spill] sm:$0xff]  ;;  %5942 = vtanh.f32 %v2510_v4 }
 0x238   :  { %2901 = vrot.lane.b32.xlu0 %v9161_v6, %s6410_s3  ;;  %v2121_v9 = vsel %vm2087_vm0, %v12903_v40, %v12902_v18  ;;  %v9196_v6 = vpop.f32.mrf.mxu2  ;;  %v9204_v48 = vsel %vm2087_vm0, %v12906_v51, %v12905_v43  ;;  %v5937_v40 = vpop.eup %5936  ;;  %v2124_v18 = vsel %vm2087_vm0, %v12911_v5, %v12910_v59  ;;  %v2377_v43 = vmul.f32 %v2313_v54, %v2249_v49  ;;  %v12920_v49 = vld [vmem:[#allocation78_spill] sm:$0xff]  ;;  %v12921_v54 = vld [vmem:[#allocation195_spill] sm:$0xff] }
 0x239   :  { %v9184_v56 = vpop.permute.xlu2 %1997  ;;  %v9186_v46 = vpop.permute.xlu1 %1977  ;;  %12904 = vst [vmem:[#allocation158_spill] sm:$0xff] %v9196_v6  ;;  %v12913_v6 = vld [vmem:[#allocation197_spill] sm:$0xff]  ;;  %v9229_v5 = vadd.f32 %v2631_v41, %v8631_v62  ;;  %v9237_v59 = vsel %vm2087_vm0, %v12921_v54, %v12920_v49  ;;  %v2187_v11 = vsel %vm2152_vm1, %v2122_v15, %v12924_v14  ;;  %5944 = vtanh.f32 %v2509_v27  ;;  %v12928_v15 = vld [vmem:[#allocation171_spill] sm:$0xff] }
 0x23a   :  { %12899 = vst [vmem:[#allocation168_spill] sm:$0xff] %v9184_v56  ;;  %v9198_v2 = vpop.permute.xlu0 %1975  ;;  %v12909_v56 = vld [vmem:[#allocation190_spill] sm:$0xff]  ;;  %v2128_v8 = vsel %vm2087_vm0, %v12913_v6, %v12912_v21  ;;  %v9217_v51 = vpop.f32.mrf.mxu0  ;;  %v12918_v21 = vld [vmem:[#allocation76_spill] sm:$0xff]  ;;  %v12925_v41 = vld [vmem:[#allocation133_spill] sm:$0xff]  ;;  %v2441_v14 = vadd.f32 %v2377_v43, %v12928_v15  ;;  %5946 = vtanh.f32 %v2508_v7  ;;  %v2252_v4 = vsel %vm2217_vm2, %v2187_v11, %v9056_v47 }
 0x23b   :  { %12907 = vst [vmem:[#allocation28_spill] sm:$0xff] %v9204_v48  ;;  %v2125_v42 = vsel %vm2087_vm0, %v12909_v56, %v12908_v34  ;;  %v5939_v48 = vpop.eup %5938  ;;  %v12915_v56 = vld [vmem:[#allocation188_spill] sm:$0xff]  ;;  %v2131_v34 = vsel %vm2087_vm0, %v12919_v58, %v12918_v21  ;;  %v2188_v52 = vsel %vm2152_vm1, %v9125_v31, %v12925_v41  ;;  %v2442_v58 = vadd.f32 %v2378_v0, %v12926_v57  ;;  %v9255_v54 = vpop.f32.mrf.mxu1  ;;  %v2316_v0 = vld [vmem:[#allocation2 + $0x110] sm:$0xff]  ;;  %v2315_v57 = vld [vmem:[#allocation2 + $0x108] sm:$0xff] }
 0x23c   :  { %v9222_v39 = vsel %vm2087_vm0, %v12915_v56, %v12914_v1  ;;  %12916 = vst [vmem:[#allocation122_spill] sm:$0xff] %v9226_v37  ;;  %v5941_v6 = vpop.eup %5940  ;;  %v12922_v56 = vld [vmem:[#allocation163_spill] sm:$0xff]  ;;  %v2253_v31 = vsel %vm2217_vm2, %v2188_v52, %v9052_v29  ;;  %v2635_v27 = vmul.f32 %v5939_v48, %v8664_v45  ;;  %v12930_v15 = vld [vmem:[#allocation206_spill] sm:$0xff]  ;;  %v9275_v52 = vpop.f32.mrf.mxu3  ;;  %v2633_v21 = vmul.f32 %v5937_v40, %v8664_v45  ;;  %v12933_v49 = vld [vmem:[#allocation201_spill] sm:$0xff] }
 0x23d   :  { %12917 = vst [vmem:[#allocation115_spill] sm:$0xff] %v9229_v5  ;;  %v2440_v1 = vadd.f32 %v2376_v10, %v12922_v56  ;;  %v12927_v10 = vld [vmem:[#allocation125_spill] sm:$0xff]  ;;  %v2317_v56 = vld [vmem:[#allocation2 + $0x118] sm:$0xff]  ;;  %v2634_v43 = vmul.f32 %v5941_v6, %v8664_v45  ;;  %v12932_v48 = vld [vmem:[#allocation82_spill] sm:$0xff] }
 0x23e   :  { %12923 = vst [vmem:[#allocation175_spill] sm:$0xff] %v9241_v60  ;;  %v2186_v35 = vsel %vm2152_vm1, %v2121_v9, %v12927_v10  ;;  %v12929_v10 = vld [vmem:[#allocation80_spill] sm:$0xff]  ;;  %v9286_v6 = vsel %vm2087_vm0, %v12933_v49, %v12932_v48  ;;  %v2512_v49 = vmul.f32 %v8664_v45, %v2441_v14 }
 0x23f   :  { %2911 = vrot.lane.b32.xlu2 %v9226_v37, %s6410_s3  ;;  %2909 = vrot.lane.b32.xlu1 %v9229_v5, %s6410_s3  ;;  %v9273_v29 = vsel %vm2087_vm0, %v12930_v15, %v12929_v10  ;;  %12931 = vst [vmem:[#allocation182_spill] sm:$0xff] %v9275_v52  ;;  %v2511_v7 = vmul.f32 %v8664_v45, %v2440_v1  ;;  %v12934_v37 = vld [vmem:[#allocation114_spill] sm:$0xff]  ;;  %v12935_v1 = vld [vmem:[#allocation119_spill] sm:$0xff] }
 0x240   :  { %2907 = vrot.lane.b32.xlu0 %v9241_v60, %s6410_s3  ;;  %v2251_v11 = vsel %vm2217_vm2, %v2186_v35, %v8824_v16  ;;  %v2190_v15 = vsel %vm2152_vm1, %v2125_v42, %v12934_v37  ;;  %v2513_v10 = vmul.f32 %v8664_v45, %v2442_v58  ;;  %v2381_v60 = vmul.f32 %v2317_v56, %v2253_v31  ;;  %v9298_v16 = vld [vmem:[%s12172_s2] ss:$0 sm:$0xff]  ;;  %v9303_v35 = vpop.f32.mrf.mxu2  ;;  %v5943_v37 = vpop.eup %5942  ;;  %v12939_v52 = vld [vmem:[#allocation131_spill] sm:$0xff] }
 0x241   :  { %v9264_v41 = vpop.permute.xlu2 %2003  ;;  %v9266_v9 = vpop.permute.xlu1 %1983  ;;  %v9293_v5 = vsel %vm2152_vm1, %v2128_v8, %v12935_v1  ;;  %v981_v40 = vadd.f32 %v9298_v16, %v8759_v28  ;;  %v2380_v42 = vmul.f32 %v2316_v0, %v2252_v4  ;;  %v12936_v58 = vld [vmem:[#allocation124_spill] sm:$0xff]  ;;  %v2379_v8 = vmul.f32 %v2315_v57, %v2251_v11 }
 0x242   :  { %v9280_v47 = vpop.permute.xlu0 %1981  ;;  %v9307_v56 = vsel %vm2152_vm1, %v2131_v34, %v12936_v58  ;;  %v9310_v31 = vadd.f32 %v2635_v27, %v8631_v62  ;;  %v9313_v1 = vadd.f32 %v2634_v43, %v8631_v62  ;;  %v5945_v48 = vpop.eup %5944  ;;  %v2189_v28 = vsel %vm2152_vm1, %v2124_v18, %v12939_v52  ;;  %v12940_v4 = vld [vmem:[#allocation140_spill] sm:$0xff]  ;;  %v12941_v18 = vld [vmem:[#allocation199_spill] sm:$0xff]  ;;  %v2320_v58 = vld [vmem:[#allocation2 + $0x130] sm:$0xff] }
 0x243   :  { %v978_v14 = vadd.f32 %v9298_v16, %v8691_v22  ;;  %5948 = vtanh.f32 %v2511_v7  ;;  %v9319_v0 = vpop.f32.mrf.mxu0  ;;  %v9322_v34 = vadd.f32 %v2633_v21, %v8631_v62  ;;  %v5947_v57 = vpop.eup %5946  ;;  %v2191_v27 = vsel %vm2152_vm1, %v9130_v44, %v12940_v4  ;;  %v2318_v43 = vld [vmem:[#allocation2 + $0x120] sm:$0xff] }
 0x244   :  { %12937 = vst [vmem:[#allocation189_spill] sm:$0xff] %v9310_v31  ;;  %v2254_v11 = vsel %vm2217_vm2, %v2189_v28, %v8877_v55  ;;  %5950 = vtanh.f32 %v2513_v10  ;;  %v2445_v52 = vadd.f32 %v2381_v60, %v12941_v18  ;;  %v1150_v22 = vadd.f32 %v8784_v53, %v981_v40  ;;  %v12942_v21 = vld [vmem:[#allocation192_spill] sm:$0xff]  ;;  %v12943_v55 = vld [vmem:[#allocation185_spill] sm:$0xff] }
 0x245   :  { %12938 = vst [vmem:[#allocation196_spill] sm:$0xff] %v9313_v1  ;;  %5952 = vtanh.f32 %v2512_v49  ;;  %v2444_v7 = vadd.f32 %v2380_v42, %v12942_v21  ;;  %v2256_v44 = vsel %vm2217_vm2, %v2191_v27, %v9107_v61  ;;  %v2443_v60 = vadd.f32 %v2379_v8, %v12943_v55  ;;  %v2319_v10 = vld [vmem:[#allocation2 + $0x128] sm:$0xff]  ;;  %v12944_v49 = vld [vmem:[#allocation138_spill] sm:$0xff] }
 0x246   :  { %v2255_v28 = vsel %vm2217_vm2, %v2190_v15, %v9119_v19  ;;  %v2638_v53 = vmul.f32 %v5943_v37, %v8664_v45  ;;  %v2637_v40 = vmul.f32 %v5945_v48, %v8664_v45  ;;  %v2192_v61 = vsel %vm2152_vm1, %v9222_v39, %v12944_v49  ;;  %v9360_v37 = vpop.f32.mrf.mxu1  ;;  %v12945_v39 = vld [vmem:[#allocation146_spill] sm:$0xff]  ;;  %v12947_v49 = vld [vmem:[#allocation148_spill] sm:$0xff] }
 0x247   :  { %2917 = vrot.lane.b32.xlu2 %v9310_v31, %s6410_s3  ;;  %2915 = vrot.lane.b32.xlu1 %v9313_v1, %s6410_s3  ;;  %v1147_v42 = vadd.f32 %v8722_v20, %v978_v14  ;;  %v2382_v27 = vmul.f32 %v2318_v43, %v2254_v11  ;;  %v2636_v21 = vmul.f32 %v5947_v57, %v8664_v45  ;;  %v9368_v14 = vpop.f32.mrf.mxu3 }
 0x248   :  { %2913 = vrot.lane.b32.xlu0 %v9322_v34, %s6410_s3  ;;  %v983_v19 = vadd.f32 %v9298_v16, %v8830_v23  ;;  %v988_v15 = vadd.f32 %v9298_v16, %v8966_v26  ;;  %v2516_v48 = vmul.f32 %v8664_v45, %v2445_v52  ;;  %v2384_v55 = vmul.f32 %v2320_v58, %v2256_v44 }
 0x249   :  { %v9343_v4 = vpop.permute.xlu2 %2009  ;;  %v9345_v18 = vpop.permute.xlu1 %1989  ;;  %v9366_v20 = vsel %vm2152_vm1, %v9237_v59, %v12945_v39  ;;  %v986_v57 = vadd.f32 %v9298_v16, %v8896_v25  ;;  %v2515_v23 = vmul.f32 %v8664_v45, %v2444_v7  ;;  %v2383_v43 = vmul.f32 %v2319_v10, %v2255_v28  ;;  %v12949_v10 = vld [vmem:[#allocation204_spill] sm:$0xff] }
 0x24a   :  { %v9353_v8 = vpop.permute.xlu0 %1987  ;;  %v5949_v31 = vpop.eup %5948  ;;  %v9374_v11 = vadd.f32 %v8817_v32, %v1150_v22  ;;  %v2514_v52 = vmul.f32 %v8664_v45, %v2443_v60  ;;  %v9378_v58 = vadd.f32 %v2638_v53, %v8631_v62  ;;  %v9381_v59 = vadd.f32 %v2637_v40, %v8631_v62 }
 0x24b   :  { %v5951_v26 = vpop.eup %5950  ;;  %v2194_v25 = vsel %vm2152_vm1, %v9136_v24, %v12947_v49  ;;  %v9387_v7 = vadd.f32 %v8739_v33, %v1147_v42  ;;  %v2446_v28 = vadd.f32 %v2382_v27, %v12949_v10  ;;  %v9390_v32 = vpop.f32.mrf.mxu2  ;;  %v9395_v60 = vadd.f32 %v2636_v21, %v8631_v62  ;;  %v2323_v21 = vld [vmem:[#allocation2 + $0x148] sm:$0xff] }
 0x24c   :  { %12946 = vst [vmem:[#allocation176_spill] sm:$0xff] %v9374_v11  ;;  %v5953_v44 = vpop.eup %5952  ;;  %v9392_v22 = vpop.f32.mrf.mxu0  ;;  %v1152_v53 = vadd.f32 %v8854_v12, %v983_v19  ;;  %v1157_v40 = vadd.f32 %v8998_v38, %v988_v15  ;;  %5954 = vtanh.f32 %v2516_v48  ;;  %v2448_v39 = vadd.f32 %v2384_v55, %v9374_v11  ;;  %v2322_v38 = vld [vmem:[#allocation2 + $0x140] sm:$0xff]  ;;  %v2321_v48 = vld [vmem:[#allocation2 + $0x138] sm:$0xff] }
 0x24d   :  { %12948 = vst [vmem:[#allocation166_spill] sm:$0xff] %v9387_v7  ;;  %v1155_v33 = vadd.f32 %v8927_v13, %v986_v57  ;;  %5956 = vtanh.f32 %v2515_v23  ;;  %v2447_v24 = vadd.f32 %v2383_v43, %v9387_v7  ;;  %v2259_v12 = vsel %vm2217_vm2, %v2194_v25, %v9186_v46 }
 0x24e   :  { %5958 = vtanh.f32 %v2514_v52  ;;  %v2258_v55 = vsel %vm2217_vm2, %v9293_v5, %v9198_v2  ;;  %v2641_v13 = vmul.f32 %v5951_v26, %v8664_v45  ;;  %v2640_v19 = vmul.f32 %v5953_v44, %v8664_v45 }
 0x24f   :  { %2923 = vrot.lane.b32.xlu2 %v9378_v58, %s6410_s3  ;;  %2921 = vrot.lane.b32.xlu1 %v9381_v59, %s6410_s3  ;;  %v991_v46 = vadd.f32 %v9298_v16, %v9041_v50  ;;  %v2517_v15 = vmul.f32 %v8664_v45, %v2446_v28  ;;  %v2257_v57 = vsel %vm2217_vm2, %v2192_v61, %v8936_v17  ;;  %v9433_v50 = vpop.f32.mrf.mxu1 }
 0x250   :  { %2919 = vrot.lane.b32.xlu0 %v9395_v60, %s6410_s3  ;;  %v2639_v2 = vmul.f32 %v5949_v31, %v8664_v45  ;;  %v9428_v5 = vadd.f32 %v9024_v3, %v1157_v40  ;;  %v996_v43 = vadd.f32 %v9298_v16, %v9217_v51  ;;  %v2519_v26 = vmul.f32 %v8664_v45, %v2448_v39  ;;  %v12954_v39 = vld [vmem:[#allocation110_spill] sm:$0xff] }
 0x251   :  { %v9413_v42 = vpop.permute.xlu2 %2015  ;;  %v9415_v27 = vpop.permute.xlu1 %1995  ;;  %v2387_v52 = vmul.f32 %v2323_v21, %v2259_v12  ;;  %v9436_v44 = vadd.f32 %v8947_v30, %v1155_v33  ;;  %v993_v17 = vadd.f32 %v9298_v16, %v9117_v36  ;;  %v2518_v61 = vmul.f32 %v8664_v45, %v2447_v24  ;;  %v12953_v30 = vld [vmem:[#allocation156_spill] sm:$0xff] }
 0x252   :  { %v9424_v23 = vpop.permute.xlu0 %1993  ;;  %12950 = vst [vmem:[#allocation202_spill] sm:$0xff] %v9428_v5  ;;  %v2386_v31 = vmul.f32 %v2322_v38, %v2258_v55  ;;  %v5955_v49 = vpop.eup %5954  ;;  %v9442_v3 = vadd.f32 %v8886_v63, %v1152_v53  ;;  %v2385_v25 = vmul.f32 %v2321_v48, %v2257_v57  ;;  %v9445_v51 = vadd.f32 %v2641_v13, %v8631_v62  ;;  %v12955_v24 = vld [vmem:[#allocation152_spill] sm:$0xff]  ;;  %v2324_v55 = vld [vmem:[#allocation2 + $0x150] sm:$0xff] }
 0x253   :  { %12951 = vst [vmem:[#allocation120_spill] sm:$0xff] %v9436_v44  ;;  %v9448_v28 = vadd.f32 %v2640_v19, %v8631_v62  ;;  %v5957_v40 = vpop.eup %5956  ;;  %v2197_v33 = vsel %vm2152_vm1, %v12954_v39, %v12953_v30  ;;  %v9453_v36 = vpop.f32.mrf.mxu3  ;;  %v1160_v21 = vadd.f32 %v12955_v24, %v991_v46  ;;  %5960 = vtanh.f32 %v2517_v15  ;;  %v12956_v13 = vld [vmem:[#allocation144_spill] sm:$0xff]  ;;  %v12957_v46 = vld [vmem:[#allocation117_spill] sm:$0xff] }
 0x254   :  { %12952 = vst [vmem:[#allocation127_spill] sm:$0xff] %v9442_v3  ;;  %v9456_v12 = vpop.f32.mrf.mxu2  ;;  %v9459_v63 = vadd.f32 %v2639_v2, %v8631_v62  ;;  %v5959_v53 = vpop.eup %5958  ;;  %v1165_v38 = vadd.f32 %v9255_v54, %v996_v43  ;;  %v2260_v19 = vsel %vm2217_vm2, %v9366_v20, %v12956_v13  ;;  %5962 = vtanh.f32 %v2519_v26  ;;  %v2326_v54 = vld [vmem:[#allocation2 + $0x160] sm:$0xff]  ;;  %v2325_v26 = vld [vmem:[#allocation2 + $0x158] sm:$0xff] }
 0x255   :  { %v2451_v48 = vadd.f32 %v2387_v52, %v9428_v5  ;;  %v1162_v15 = vadd.f32 %v12957_v46, %v993_v17  ;;  %5964 = vtanh.f32 %v2518_v61  ;;  %v2450_v57 = vadd.f32 %v2386_v31, %v9436_v44  ;;  %v1002_v43 = vpop.f32.mrf.mxu0  ;;  %v12987_v5 = vld [vmem:[#allocation145_spill] sm:$0xff] }
 0x256   :  { %v2262_v2 = vsel %vm2217_vm2, %v2197_v33, %v9266_v9  ;;  %v2449_v20 = vadd.f32 %v2385_v25, %v9442_v3  ;;  %v2261_v52 = vsel %vm2217_vm2, %v9307_v56, %v9280_v47  ;;  %v2644_v61 = vmul.f32 %v5955_v49, %v8664_v45  ;;  %v12958_v9 = vld [vmem:[#allocation208_spill] sm:$0xff]  ;;  %v12988_v3 = vld [vmem:[#allocation179_spill] sm:$0xff] }
 0x257   :  { %2929 = vrot.lane.b32.xlu2 %v9445_v51, %s6410_s3  ;;  %2927 = vrot.lane.b32.xlu1 %v9448_v28, %s6410_s3  ;;  %v2643_v31 = vmul.f32 %v5957_v40, %v8664_v45  ;;  %v9487_v39 = vadd.f32 %v12958_v9, %v1160_v21  ;;  %v2388_v33 = vmul.f32 %v2324_v55, %v2260_v19  ;;  %v12961_v21 = vld [vmem:[#allocation158_spill] sm:$0xff] }
 0x258   :  { %2925 = vrot.lane.b32.xlu0 %v9459_v63, %s6410_s3  ;;  %v998_v25 = vadd.f32 %v9298_v16, %v9319_v0  ;;  %v2642_v13 = vmul.f32 %v5959_v53, %v8664_v45  ;;  %v9495_v47 = vadd.f32 %v9303_v35, %v1165_v38  ;;  %v2522_v56 = vmul.f32 %v8664_v45, %v2451_v48  ;;  %v12963_v53 = vld [vmem:[#allocation130_spill] sm:$0xff]  ;;  %v1171_v48 = vpop.f32.mrf.mxu1 }
 0x259   :  { %v9480_v30 = vpop.permute.xlu2 %2021  ;;  %v9482_v17 = vpop.permute.xlu1 %2001  ;;  %12959 = vst [vmem:[#allocation46_spill] sm:$0xff] %v9487_v39  ;;  %v1001_v49 = vadd.f32 %v9298_v16, %v9392_v22  ;;  %v2390_v40 = vmul.f32 %v2326_v54, %v2262_v2  ;;  %v9501_v9 = vadd.f32 %v12961_v21, %v1162_v15  ;;  %v2521_v55 = vmul.f32 %v8664_v45, %v2450_v57  ;;  %v12965_v2 = vld [vmem:[#allocation154_spill] sm:$0xff] }
 0x25a   :  { %v9491_v24 = vpop.permute.xlu0 %1999  ;;  %12960 = vst [vmem:[#allocation183_spill] sm:$0xff] %v9495_v47  ;;  %v5961_v46 = vpop.eup %5960  ;;  %v2389_v0 = vmul.f32 %v2325_v26, %v2261_v52  ;;  %v1003_v19 = vadd.f32 %v9298_v16, %v1002_v43  ;;  %v2199_v35 = vsel %vm2152_vm1, %v9273_v29, %v12963_v53  ;;  %v2520_v38 = vmul.f32 %v8664_v45, %v2449_v20  ;;  %v12966_v16 = vld [vmem:[#allocation164_spill] sm:$0xff]  ;;  %v2328_v21 = vld [vmem:[#allocation2 + $0x170] sm:$0xff]  ;;  %v12968_v53 = vld [vmem:[#allocation151_spill] sm:$0xff] }
 0x25b   :  { %12962 = vst [vmem:[#allocation174_spill] sm:$0xff] %v9501_v9  ;;  %v5963_v44 = vpop.eup %5962  ;;  %v9510_v22 = vadd.f32 %v2644_v61, %v8631_v62  ;;  %v9513_v54 = vadd.f32 %v2643_v31, %v8631_v62  ;;  %v2198_v57 = vsel %vm2152_vm1, %v9286_v6, %v12965_v2  ;;  %v12967_v43 = vld [vmem:[#allocation28_spill] sm:$0xff]  ;;  %v2452_v29 = vadd.f32 %v2388_v33, %v9487_v39  ;;  %v9532_v6 = vpop.f32.mrf.mxu3  ;;  %v12969_v2 = vld [vmem:[#allocation71_spill] sm:$0xff] }
 0x25c   :  { %v5965_v15 = vpop.eup %5964  ;;  %v2200_v26 = vsel %vm2152_vm1, %v12967_v43, %v12966_v16  ;;  %v9523_v20 = vadd.f32 %v2642_v13, %v8631_v62  ;;  %v1167_v52 = vadd.f32 %v9360_v37, %v998_v25  ;;  %5966 = vtanh.f32 %v2522_v56  ;;  %v1340_v25 = vpop.f32.mrf.mxu2 }
 0x25d   :  { %12964 = vst [vmem:[#allocation205_spill] sm:$0xff] %v9513_v54  ;;  %v1170_v61 = vadd.f32 %v9433_v50, %v1001_v49  ;;  %v2454_v31 = vadd.f32 %v2390_v40, %v9495_v47  ;;  %5968 = vtanh.f32 %v2521_v55  ;;  %v2453_v33 = vadd.f32 %v2389_v0, %v9501_v9  ;;  %v2329_v50 = vld [vmem:[#allocation2 + $0x178] sm:$0xff] }
 0x25e   :  { %v1172_v13 = vadd.f32 %v1171_v48, %v1003_v19  ;;  %v2264_v37 = vsel %vm2217_vm2, %v2199_v35, %v9353_v8  ;;  %5970 = vtanh.f32 %v2520_v38  ;;  %v2265_v56 = vsel %vm2217_vm2, %v2200_v26, %v9345_v18  ;;  %v2327_v8 = vld [vmem:[#allocation2 + $0x168] sm:$0xff]  ;;  %v6338_v18 = vld [vmem:[%s12175_s5 + $0x190] sm:$0xff] }
 0x25f   :  { %2935 = vrot.lane.b32.xlu2 %v9510_v22, %s6410_s3  ;;  %2933 = vrot.lane.b32.xlu1 %v9513_v54, %s6410_s3  ;;  %v2647_v55 = vmul.f32 %v5963_v44, %v8664_v45  ;;  %v2646_v0 = vmul.f32 %v5965_v15, %v8664_v45  ;;  %v2523_v19 = vmul.f32 %v8664_v45, %v2452_v29  ;;  %v12971_v26 = vld [vmem:[#allocation86_spill] sm:$0xff] }
 0x260   :  { %2931 = vrot.lane.b32.xlu0 %v9523_v20, %s6410_s3  ;;  %v2263_v35 = vsel %vm2217_vm2, %v2198_v57, %v12968_v53  ;;  %v2645_v38 = vmul.f32 %v5961_v46, %v8664_v45  ;;  %v2138_v16 = vsel %vm2087_vm0, %v6338_v18, %v12969_v2  ;;  %v2525_v44 = vmul.f32 %v8664_v45, %v2454_v31  ;;  %v6339_v57 = vld [vmem:[%s12175_s5 + $0x180] sm:$0xff] }
 0x261   :  { %v9541_v49 = vpop.permute.xlu1 %2007  ;;  %v9543_v40 = vpop.permute.xlu2 %2869  ;;  %v9560_v15 = vadd.f32 %v9456_v12, %v1170_v61  ;;  %v2392_v43 = vmul.f32 %v2328_v21, %v2264_v37  ;;  %v2136_v46 = vsel %vm2087_vm0, %v6339_v57, %v12971_v26  ;;  %v2524_v29 = vmul.f32 %v8664_v45, %v2453_v33  ;;  %v6340_v37 = vld [vmem:[%s12175_s5 + $0x188] sm:$0xff]  ;;  %v12976_v33 = vld [vmem:[#allocation84_spill] sm:$0xff] }
 0x262   :  { %v9550_v48 = vpop.permute.xlu0 %2005  ;;  %v2393_v53 = vmul.f32 %v2329_v50, %v2265_v56  ;;  %v9568_v9 = vadd.f32 %v1340_v25, %v1172_v13  ;;  %v5967_v47 = vpop.eup %5966  ;;  %v2391_v18 = vmul.f32 %v2327_v8, %v2263_v35  ;;  %v9571_v31 = vadd.f32 %v9390_v32, %v1167_v52  ;;  %v12977_v25 = vld [vmem:[#allocation162_spill] sm:$0xff]  ;;  %v12978_v56 = vld [vmem:[#allocation172_spill] sm:$0xff]  ;;  %v12979_v8 = vld [vmem:[#allocation159_spill] sm:$0xff] }
 0x263   :  { %12970 = vst [vmem:[#allocation190_spill] sm:$0xff] %v9560_v15  ;;  %v9574_v12 = vadd.f32 %v2647_v55, %v8631_v62  ;;  %v9577_v61 = vadd.f32 %v2646_v0, %v8631_v62  ;;  %v5969_v21 = vpop.eup %5968  ;;  %v2137_v13 = vsel %vm2087_vm0, %v6340_v37, %v12976_v33  ;;  %v2201_v50 = vsel %vm2152_vm1, %v2136_v46, %v12977_v25  ;;  %v2330_v0 = vld [vmem:[#allocation2 + $0x180] sm:$0xff]  ;;  %v13001_v26 = vld [vmem:[#allocation177_spill] sm:$0xff] }
 0x264   :  { %12972 = vst [vmem:[#allocation181_spill] sm:$0xff] %v9568_v9  ;;  %5972 = vtanh.f32 %v2523_v19  ;;  %v9587_v32 = vadd.f32 %v2645_v38, %v8631_v62  ;;  %v5971_v52 = vpop.eup %5970  ;;  %v2203_v55 = vsel %vm2152_vm1, %v2138_v16, %v12978_v56  ;;  %v2266_v35 = vsel %vm2217_vm2, %v2201_v50, %v12979_v8  ;;  %v12980_v19 = vld [vmem:[#allocation137_spill] sm:$0xff]  ;;  %v2332_v16 = vld [vmem:[#allocation2 + $0x190] sm:$0xff] }
 0x265   :  { %12973 = vst [vmem:[#allocation197_spill] sm:$0xff] %v9571_v31  ;;  %5974 = vtanh.f32 %v2525_v44  ;;  %v2456_v57 = vadd.f32 %v2392_v43, %v9560_v15  ;;  %v2202_v38 = vsel %vm2152_vm1, %v2137_v13, %v12980_v19  ;;  %v2457_v46 = vadd.f32 %v2393_v53, %v9568_v9  ;;  %v2331_v43 = vld [vmem:[#allocation2 + $0x188] sm:$0xff]  ;;  %v9614_v13 = vpop.f32.mrf.mxu3 }
 0x266   :  { %12974 = vst [vmem:[#allocation188_spill] sm:$0xff] %v9574_v12  ;;  %5976 = vtanh.f32 %v2524_v29  ;;  %v2268_v37 = vsel %vm2217_vm2, %v2203_v55, %v9415_v27  ;;  %v2455_v44 = vadd.f32 %v2391_v18, %v9571_v31  ;;  %v2267_v25 = vsel %vm2217_vm2, %v2202_v38, %v9424_v23  ;;  %v2335_v15 = vld [vmem:[#allocation2 + $0x1a8] sm:$0xff] }
 0x267   :  { %12975 = vst [vmem:[#allocation203_spill] sm:$0xff] %v9577_v61  ;;  %2941 = vrot.lane.b32.xlu2 %v9574_v12, %s6410_s3  ;;  %2939 = vrot.lane.b32.xlu1 %v9577_v61, %s6410_s3  ;;  %v2650_v29 = vmul.f32 %v5967_v47, %v8664_v45  ;;  %v2649_v53 = vmul.f32 %v5969_v21, %v8664_v45  ;;  %v6341_v47 = vld [vmem:[%s12175_s5 + $0x1a8] sm:$0xff]  ;;  %v12981_v21 = vld [vmem:[#allocation75_spill] sm:$0xff] }
 0x268   :  { %2937 = vrot.lane.b32.xlu0 %v9587_v32, %s6410_s3  ;;  %v2394_v27 = vmul.f32 %v2330_v0, %v2266_v35  ;;  %v2648_v8 = vmul.f32 %v5971_v52, %v8664_v45  ;;  %v2527_v18 = vmul.f32 %v8664_v45, %v2456_v57  ;;  %v2396_v19 = vmul.f32 %v2332_v16, %v2268_v37  ;;  %v12984_v16 = vld [vmem:[#allocation88_spill] sm:$0xff] }
 0x269   :  { %v9608_v50 = vpop.permute.xlu1 %2013  ;;  %v9610_v56 = vpop.permute.xlu2 %2875  ;;  %v2528_v23 = vmul.f32 %v8664_v45, %v2457_v46  ;;  %v2395_v38 = vmul.f32 %v2331_v43, %v2267_v25  ;;  %v2141_v39 = vsel %vm2087_vm0, %v6341_v47, %v12981_v21  ;;  %v2526_v0 = vmul.f32 %v8664_v45, %v2455_v44  ;;  %v6342_v46 = vld [vmem:[%s12175_s5 + $0x1a0] sm:$0xff]  ;;  %v6343_v43 = vld [vmem:[%s12175_s5 + $0x198] sm:$0xff]  ;;  %v12985_v25 = vld [vmem:[#allocation90_spill] sm:$0xff] }
 0x26a   :  { %v9616_v55 = vpop.permute.xlu0 %2011  ;;  %v5973_v9 = vpop.eup %5972  ;;  %v9628_v35 = vadd.f32 %v2650_v29, %v8631_v62  ;;  %v9631_v52 = vadd.f32 %v2649_v53, %v8631_v62  ;;  %v2140_v37 = vsel %vm2087_vm0, %v6342_v46, %v12984_v16  ;;  %v2139_v44 = vsel %vm2087_vm0, %v6343_v43, %v12985_v25  ;;  %v12986_v29 = vld [vmem:[#allocation173_spill] sm:$0xff]  ;;  %v12989_v46 = vld [vmem:[#allocation187_spill] sm:$0xff]  ;;  %v12990_v43 = vld [vmem:[#allocation170_spill] sm:$0xff] }
 0x26b   :  { %v5975_v31 = vpop.eup %5974  ;;  %v2458_v47 = vadd.f32 %v2394_v27, %v12986_v29  ;;  %v9645_v53 = vadd.f32 %v2648_v8, %v8631_v62  ;;  %v2205_v7 = vsel %vm2152_vm1, %v2140_v37, %v12987_v5  ;;  %v2206_v11 = vsel %vm2152_vm1, %v2141_v39, %v12988_v3  ;;  %v12991_v8 = vld [vmem:[#allocation180_spill] sm:$0xff] }
 0x26c   :  { %12982 = vst [vmem:[#allocation195_spill] sm:$0xff] %v9628_v35  ;;  %v5977_v57 = vpop.eup %5976  ;;  %5978 = vtanh.f32 %v2527_v18  ;;  %v2460_v10 = vadd.f32 %v2396_v19, %v12989_v46  ;;  %v2204_v27 = vsel %vm2152_vm1, %v2139_v44, %v12990_v43  ;;  %v2459_v29 = vadd.f32 %v2395_v38, %v12991_v8  ;;  %v2334_v3 = vld [vmem:[#allocation2 + $0x1a0] sm:$0xff]  ;;  %v2333_v44 = vld [vmem:[#allocation2 + $0x198] sm:$0xff] }
 0x26d   :  { %12983 = vst [vmem:[#allocation109_spill] sm:$0xff] %v9631_v52  ;;  %5980 = vtanh.f32 %v2528_v23  ;;  %v2271_v5 = vsel %vm2217_vm2, %v2206_v11, %v9482_v17  ;;  %v2270_v39 = vsel %vm2217_vm2, %v2205_v7, %v9491_v24  ;;  %v2653_v23 = vmul.f32 %v5975_v31, %v8664_v45  ;;  %v12992_v11 = vld [vmem:[#allocation168_spill] sm:$0xff]  ;;  %v12993_v24 = vld [vmem:[#allocation79_spill] sm:$0xff]  ;;  %v9693_v21 = vpop.f32.mrf.mxu3 }
 0x26e   :  { %5982 = vtanh.f32 %v2526_v0  ;;  %v2652_v38 = vmul.f32 %v5977_v57, %v8664_v45  ;;  %v2529_v37 = vmul.f32 %v8664_v45, %v2458_v47  ;;  %v2269_v17 = vsel %vm2217_vm2, %v2204_v27, %v12992_v11  ;;  %v6344_v7 = vld [vmem:[%s12175_s5 + $0x1c0] sm:$0xff]  ;;  %v6345_v47 = vld [vmem:[%s12175_s5 + $0x1b8] sm:$0xff]  ;;  %v12995_v11 = vld [vmem:[#allocation93_spill] sm:$0xff] }
 0x26f   :  { %2947 = vrot.lane.b32.xlu2 %v9628_v35, %s6410_s3  ;;  %2945 = vrot.lane.b32.xlu1 %v9631_v52, %s6410_s3  ;;  %v2651_v0 = vmul.f32 %v5973_v9, %v8664_v45  ;;  %v2144_v46 = vsel %vm2087_vm0, %v6344_v7, %v12993_v24  ;;  %v2531_v31 = vmul.f32 %v8664_v45, %v2460_v10  ;;  %v12994_v8 = vld [vmem:[#allocation91_spill] sm:$0xff]  ;;  %v6346_v9 = vld [vmem:[%s12175_s5 + $0x1b0] sm:$0xff]  ;;  %v12997_v24 = vld [vmem:[#allocation112_spill] sm:$0xff] }
 0x270   :  { %2943 = vrot.lane.b32.xlu0 %v9645_v53, %s6410_s3  ;;  %v2399_v57 = vmul.f32 %v2335_v15, %v2271_v5  ;;  %v2143_v27 = vsel %vm2087_vm0, %v6345_v47, %v12994_v8  ;;  %v2142_v16 = vsel %vm2087_vm0, %v6346_v9, %v12995_v11  ;;  %v2530_v7 = vmul.f32 %v8664_v45, %v2459_v29  ;;  %v12996_v5 = vld [vmem:[#allocation105_spill] sm:$0xff]  ;;  %v13002_v11 = vld [vmem:[#allocation36_spill] sm:$0xff] }
 0x271   :  { %v9665_v18 = vpop.permute.xlu1 %2019  ;;  %v9667_v19 = vpop.permute.xlu2 %2881  ;;  %v2398_v10 = vmul.f32 %v2334_v3, %v2270_v39  ;;  %v9698_v33 = vadd.f32 %v12997_v24, %v12996_v5  ;;  %v2397_v2 = vmul.f32 %v2333_v44, %v2269_v17  ;;  %v9701_v47 = vadd.f32 %v2653_v23, %v8631_v62  ;;  %v13003_v35 = vld [vmem:[#allocation41_spill] sm:$0xff]  ;;  %v13006_v44 = vld [vmem:[#allocation186_spill] sm:$0xff] }
 0x272   :  { %v9674_v43 = vpop.permute.xlu0 %2017  ;;  %v5979_v15 = vpop.eup %5978  ;;  %v9704_v8 = vadd.f32 %v2652_v38, %v8631_v62  ;;  %v2207_v9 = vsel %vm2152_vm1, %v2142_v16, %v13001_v26  ;;  %v9710_v29 = vadd.f32 %v13003_v35, %v13002_v11  ;;  %5984 = vtanh.f32 %v2529_v37  ;;  %v2336_v17 = vld [vmem:[#allocation2 + $0x1b0] sm:$0xff]  ;;  %v13007_v26 = vld [vmem:[#allocation153_spill] sm:$0xff] }
 0x273   :  { %12998 = vst [vmem:[#allocation133_spill] sm:$0xff] %v9698_v33  ;;  %v5981_v25 = vpop.eup %5980  ;;  %v9713_v3 = vadd.f32 %v2651_v0, %v8631_v62  ;;  %v2209_v23 = vsel %vm2152_vm1, %v2144_v46, %v13006_v44  ;;  %v2272_v38 = vsel %vm2217_vm2, %v2207_v9, %v9264_v41  ;;  %5986 = vtanh.f32 %v2531_v31  ;;  %v2338_v46 = vld [vmem:[#allocation2 + $0x1c0] sm:$0xff]  ;;  %v13008_v41 = vld [vmem:[#allocation194_spill] sm:$0xff]  ;;  %v2337_v31 = vld [vmem:[#allocation2 + $0x1b8] sm:$0xff] }
 0x274   :  { %12999 = vst [vmem:[#allocation125_spill] sm:$0xff] %v9701_v47  ;;  %v5983_v39 = vpop.eup %5982  ;;  %v2463_v24 = vadd.f32 %v2399_v57, %v9698_v33  ;;  %v2208_v35 = vsel %vm2152_vm1, %v2143_v27, %v13007_v26  ;;  %5988 = vtanh.f32 %v2530_v7  ;;  %v2462_v16 = vadd.f32 %v2398_v10, %v9710_v29  ;;  %v13009_v44 = vld [vmem:[#allocation83_spill] sm:$0xff] }
 0x275   :  { %13000 = vst [vmem:[#allocation206_spill] sm:$0xff] %v9704_v8  ;;  %v2274_v37 = vsel %vm2217_vm2, %v2209_v23, %v9541_v49  ;;  %v2461_v0 = vadd.f32 %v2397_v2, %v13008_v41  ;;  %v2273_v57 = vsel %vm2217_vm2, %v2208_v35, %v9550_v48  ;;  %v2656_v27 = vmul.f32 %v5981_v25, %v8664_v45  ;;  %v6347_v2 = vld [vmem:[%s12175_s5 + $0x1d8] sm:$0xff]  ;;  %v6348_v25 = vld [vmem:[%s12175_s5 + $0x1d0] sm:$0xff] }
 0x276   :  { %13004 = vst [vmem:[#allocation201_spill] sm:$0xff] %v9710_v29  ;;  %v2655_v7 = vmul.f32 %v5979_v15, %v8664_v45  ;;  %v2400_v10 = vmul.f32 %v2336_v17, %v2272_v38  ;;  %v2654_v49 = vmul.f32 %v5983_v39, %v8664_v45  ;;  %v2147_v48 = vsel %vm2087_vm0, %v6347_v2, %v13009_v44  ;;  %v13010_v15 = vld [vmem:[#allocation94_spill] sm:$0xff]  ;;  %v13011_v38 = vld [vmem:[#allocation108_spill] sm:$0xff]  ;;  %v13012_v39 = vld [vmem:[#allocation167_spill] sm:$0xff] }
 0x277   :  { %13005 = vst [vmem:[#allocation114_spill] sm:$0xff] %v9713_v3  ;;  %2953 = vrot.lane.b32.xlu2 %v9701_v47, %s6410_s3  ;;  %2951 = vrot.lane.b32.xlu1 %v9704_v8, %s6410_s3  ;;  %v2534_v23 = vmul.f32 %v8664_v45, %v2463_v24  ;;  %v2402_v26 = vmul.f32 %v2338_v46, %v2274_v37  ;;  %v13014_v2 = vld [vmem:[#allocation118_spill] sm:$0xff] }
 0x278   :  { %2949 = vrot.lane.b32.xlu0 %v9713_v3, %s6410_s3  ;;  %v5985_v35 = vpop.eup %5984  ;;  %v2146_v17 = vsel %vm2087_vm0, %v6348_v25, %v13010_v15  ;;  %v9756_v33 = vadd.f32 %v13012_v39, %v13011_v38  ;;  %v2533_v41 = vmul.f32 %v8664_v45, %v2462_v16  ;;  %v2401_v29 = vmul.f32 %v2337_v31, %v2273_v57  ;;  %v6349_v38 = vld [vmem:[%s12175_s5 + $0x1c8] sm:$0xff]  ;;  %v13017_v16 = vld [vmem:[#allocation96_spill] sm:$0xff]  ;;  %v13019_v39 = vld [vmem:[#allocation182_spill] sm:$0xff] }
 0x279   :  { %v9734_v11 = vpop.permute.xlu2 %2887  ;;  %v9736_v5 = vpop.permute.xlu1 %2867  ;;  %v9761_v24 = vadd.f32 %v9368_v14, %v13014_v2  ;;  %v2532_v46 = vmul.f32 %v8664_v45, %v2461_v0  ;;  %v9765_v37 = vadd.f32 %v2656_v27, %v8631_v62  ;;  %v9768_v44 = vadd.f32 %v2655_v7, %v8631_v62  ;;  %v13018_v57 = vld [vmem:[#allocation113_spill] sm:$0xff] }
 0x27a   :  { %v9740_v9 = vpop.permute.xlu0 %2865  ;;  %13013 = vst [vmem:[#allocation119_spill] sm:$0xff] %v9756_v33  ;;  %v5987_v47 = vpop.eup %5986  ;;  %v2145_v31 = vsel %vm2087_vm0, %v6349_v38, %v13017_v16  ;;  %v9777_v14 = vadd.f32 %v13019_v39, %v13018_v57  ;;  %v2464_v0 = vadd.f32 %v2400_v10, %v9756_v33  ;;  %v9783_v27 = vadd.f32 %v2654_v49, %v8631_v62  ;;  %v13022_v7 = vld [vmem:[#allocation161_spill] sm:$0xff]  ;;  %v13024_v57 = vld [vmem:[#allocation184_spill] sm:$0xff]  ;;  %v2341_v39 = vld [vmem:[#allocation2 + $0x1d8] sm:$0xff] }
 0x27b   :  { %13015 = vst [vmem:[#allocation124_spill] sm:$0xff] %v9761_v24  ;;  %v5989_v25 = vpop.eup %5988  ;;  %v9779_v2 = vpop.f32.mrf.mxu3  ;;  %v2211_v15 = vsel %vm2152_vm1, %v2146_v17, %v13022_v7  ;;  %v13023_v3 = vld [vmem:[#allocation193_spill] sm:$0xff]  ;;  %5990 = vtanh.f32 %v2534_v23  ;;  %v2466_v38 = vadd.f32 %v2402_v26, %v9761_v24  ;;  %v2210_v10 = vsel %vm2152_vm1, %v2145_v31, %v13024_v57 }
 0x27c   :  { %13016 = vst [vmem:[#allocation131_spill] sm:$0xff] %v9765_v37  ;;  %v2212_v8 = vsel %vm2152_vm1, %v2147_v48, %v13023_v3  ;;  %5992 = vtanh.f32 %v2533_v41  ;;  %v2465_v49 = vadd.f32 %v2401_v29, %v9777_v14  ;;  %v2340_v3 = vld [vmem:[#allocation2 + $0x1d0] sm:$0xff]  ;;  %v2276_v48 = vsel %vm2217_vm2, %v2211_v15, %v9616_v55  ;;  %v2339_v7 = vld [vmem:[#allocation2 + $0x1c8] sm:$0xff]  ;;  %v13025_v15 = vld [vmem:[#allocation87_spill] sm:$0xff] }
 0x27d   :  { %13020 = vst [vmem:[#allocation140_spill] sm:$0xff] %v9777_v14  ;;  %v2277_v17 = vsel %vm2217_vm2, %v2212_v8, %v9608_v50  ;;  %5994 = vtanh.f32 %v2532_v46  ;;  %v2659_v41 = vmul.f32 %v5987_v47, %v8664_v45  ;;  %v2658_v29 = vmul.f32 %v5989_v25, %v8664_v45  ;;  %v6350_v55 = vld [vmem:[%s12175_s5 + $0x1f0] sm:$0xff]  ;;  %v13026_v24 = vld [vmem:[#allocation97_spill] sm:$0xff] }
 0x27e   :  { %13021 = vst [vmem:[#allocation138_spill] sm:$0xff] %v9783_v27  ;;  %v2535_v31 = vmul.f32 %v8664_v45, %v2464_v0  ;;  %v2275_v50 = vsel %vm2217_vm2, %v2210_v10, %v9343_v4  ;;  %v2657_v46 = vmul.f32 %v5985_v35, %v8664_v45  ;;  %v2150_v57 = vsel %vm2087_vm0, %v6350_v55, %v13025_v15  ;;  %v6351_v0 = vld [vmem:[%s12175_s5 + $0x1e8] sm:$0xff]  ;;  %v6352_v35 = vld [vmem:[%s12175_s5 + $0x1e0] sm:$0xff]  ;;  %v13027_v10 = vld [vmem:[#allocation99_spill] sm:$0xff] }
 0x27f   :  { %2959 = vrot.lane.b32.xlu2 %v9765_v37, %s6410_s3  ;;  %2957 = vrot.lane.b32.xlu1 %v9768_v44, %s6410_s3  ;;  %v2537_v47 = vmul.f32 %v8664_v45, %v2466_v38  ;;  %v2405_v25 = vmul.f32 %v2341_v39, %v2277_v17  ;;  %v2149_v4 = vsel %vm2087_vm0, %v6351_v0, %v13026_v24  ;;  %v13028_v38 = vld [vmem:[#allocation134_spill] sm:$0xff]  ;;  %v13030_v37 = vld [vmem:[#allocation169_spill] sm:$0xff] }
 0x280   :  { %2955 = vrot.lane.b32.xlu0 %v9783_v27, %s6410_s3  ;;  %v2148_v33 = vsel %vm2087_vm0, %v6352_v35, %v13027_v10  ;;  %v2536_v14 = vmul.f32 %v8664_v45, %v2465_v49  ;;  %v2404_v55 = vmul.f32 %v2340_v3, %v2276_v48  ;;  %v9834_v39 = vadd.f32 %v9614_v13, %v13028_v38  ;;  %v13031_v35 = vld [vmem:[#allocation128_spill] sm:$0xff] }
 0x281   :  { %v9803_v23 = vpop.permute.xlu2 %2893  ;;  %v9805_v26 = vpop.permute.xlu1 %2873  ;;  %v2403_v17 = vmul.f32 %v2339_v7, %v2275_v50  ;;  %v9837_v16 = vadd.f32 %v2659_v41, %v8631_v62  ;;  %v9840_v0 = vadd.f32 %v2658_v29, %v8631_v62  ;;  %v2214_v27 = vsel %vm2152_vm1, %v2149_v4, %v13030_v37  ;;  %v13033_v48 = vld [vmem:[#allocation200_spill] sm:$0xff]  ;;  %v13034_v7 = vld [vmem:[#allocation123_spill] sm:$0xff] }
 0x282   :  { %v9812_v8 = vpop.permute.xlu0 %2871  ;;  %v5991_v15 = vpop.eup %5990  ;;  %13029 = vst [vmem:[#allocation146_spill] sm:$0xff] %v9834_v39  ;;  %v9846_v49 = vadd.f32 %v9532_v6, %v13031_v35  ;;  %5996 = vtanh.f32 %v2535_v31  ;;  %v9849_v3 = vadd.f32 %v2657_v46, %v8631_v62  ;;  %v2215_v41 = vsel %vm2152_vm1, %v2150_v57, %v13033_v48  ;;  %v13036_v6 = vld [vmem:[#allocation191_spill] sm:$0xff]  ;;  %v2344_v57 = vld [vmem:[#allocation2 + $0x1f0] sm:$0xff]  ;;  %v2342_v35 = vld [vmem:[#allocation2 + $0x1e0] sm:$0xff] }
 0x283   :  { %v5993_v24 = vpop.eup %5992  ;;  %v9855_v29 = vadd.f32 %v9453_v36, %v13034_v7  ;;  %5998 = vtanh.f32 %v2537_v47  ;;  %v2469_v50 = vadd.f32 %v2405_v25, %v9834_v39  ;;  %v2213_v37 = vsel %vm2152_vm1, %v2148_v33, %v13036_v6  ;;  %v1378_v31 = vpop.f32.mrf.mxu3  ;;  %v2343_v25 = vld [vmem:[#allocation2 + $0x1e8] sm:$0xff] }
 0x284   :  { %13032 = vst [vmem:[#allocation148_spill] sm:$0xff] %v9846_v49  ;;  %v5995_v13 = vpop.eup %5994  ;;  %6000 = vtanh.f32 %v2536_v14  ;;  %v2468_v46 = vadd.f32 %v2404_v55, %v9846_v49  ;;  %v2280_v36 = vsel %vm2217_vm2, %v2215_v41, %v9665_v18  ;;  %v2279_v4 = vsel %vm2217_vm2, %v2214_v27, %v9674_v43  ;;  %v13037_v27 = vld [vmem:[#allocation157_spill] sm:$0xff] }
 0x285   :  { %13035 = vst [vmem:[#allocation156_spill] sm:$0xff] %v9855_v29  ;;  %v2467_v47 = vadd.f32 %v2403_v17, %v9855_v29  ;;  %v2662_v14 = vmul.f32 %v5991_v15, %v8664_v45  ;;  %v2661_v55 = vmul.f32 %v5993_v24, %v8664_v45  ;;  %v2278_v18 = vsel %vm2217_vm2, %v2213_v37, %v9413_v42 }
 0x286   :  { %v2660_v17 = vmul.f32 %v5995_v13, %v8664_v45  ;;  %v2540_v41 = vmul.f32 %v8664_v45, %v2469_v50  ;;  %v2408_v7 = vmul.f32 %v2344_v57, %v2280_v36  ;;  %v9885_v6 = vadd.f32 %v1378_v31, %v13037_v27  ;;  %v13041_v50 = vld [vmem:[#allocation149_spill] sm:$0xff]  ;;  %v2345_v27 = vld [vmem:[#allocation2 + $0x1f8] sm:$0xff] }
 0x287   :  { %2965 = vrot.lane.b32.xlu2 %v9837_v16, %s6410_s3  ;;  %2963 = vrot.lane.b32.xlu1 %v9840_v0, %s6410_s3  ;;  %v2539_v39 = vmul.f32 %v8664_v45, %v2468_v46  ;;  %v2407_v15 = vmul.f32 %v2343_v25, %v2279_v4  ;;  %v2538_v24 = vmul.f32 %v8664_v45, %v2467_v47  ;;  %v6353_v46 = vld [vmem:[%s12175_s5 + $0x1f8] sm:$0xff]  ;;  %v13043_v36 = vld [vmem:[#allocation101_spill] sm:$0xff] }
 0x288   :  { %2961 = vrot.lane.b32.xlu0 %v9849_v3, %s6410_s3  ;;  %v5997_v43 = vpop.eup %5996  ;;  %13038 = vst [vmem:[#allocation110_spill] sm:$0xff] %v9885_v6  ;;  %v2406_v49 = vmul.f32 %v2342_v35, %v2278_v18  ;;  %v9890_v42 = vadd.f32 %v2662_v14, %v8631_v62  ;;  %v9893_v37 = vadd.f32 %v2661_v55, %v8631_v62  ;;  %v13044_v25 = vld [vmem:[#allocation141_spill] sm:$0xff]  ;;  %6002 = vtanh.f32 %v2540_v41 }
 0x289   :  { %v9872_v38 = vpop.permute.xlu2 %2899  ;;  %v9874_v33 = vpop.permute.xlu1 %2879  ;;  %v9897_v57 = vadd.f32 %v9779_v2, %v13041_v50  ;;  %v9900_v31 = vadd.f32 %v2660_v17, %v8631_v62  ;;  %v2151_v47 = vsel %vm2087_vm0, %v6353_v46, %v13043_v36  ;;  %v9909_v4 = vadd.f32 %v9693_v21, %v13044_v25  ;;  %v13046_v2 = vld [vmem:[#allocation198_spill] sm:$0xff]  ;;  %v13059_v36 = vld [vmem:[#allocation211_spill] sm:$0xff] }
 0x28a   :  { %v9880_v48 = vpop.permute.xlu0 %2877  ;;  %v5999_v29 = vpop.eup %5998  ;;  %13039 = vst [vmem:[#allocation152_spill] sm:$0xff] %v9890_v42  ;;  %v2472_v14 = vadd.f32 %v2408_v7, %v9885_v6  ;;  %v2216_v55 = vsel %vm2152_vm1, %v2151_v47, %v13046_v2  ;;  %6004 = vtanh.f32 %v2539_v39  ;;  %v13050_v6 = vld [vmem:[#allocation165_spill] sm:$0xff]  ;;  %v3057_v10 = vmul.f32 %v9740_v9, %v13059_v36 }
 0x28b   :  { %13040 = vst [vmem:[#allocation144_spill] sm:$0xff] %v9893_v37  ;;  %v6001_v13 = vpop.eup %6000  ;;  %v2471_v35 = vadd.f32 %v2407_v15, %v9897_v57  ;;  %6006 = vtanh.f32 %v2538_v24  ;;  %v2470_v21 = vadd.f32 %v2406_v49, %v9909_v4  ;;  %v2665_v41 = vmul.f32 %v5999_v29, %v8664_v45  ;;  %v1380_v46 = vpop.f32.mrf.mxu3  ;;  %v13063_v36 = vld [vmem:[#allocation209_spill] sm:$0xff] }
 0x28c   :  { %13042 = vst [vmem:[#allocation117_spill] sm:$0xff] %v9897_v57  ;;  %v2664_v7 = vmul.f32 %v6001_v13, %v8664_v45  ;;  %v2281_v39 = vsel %vm2217_vm2, %v2216_v55, %v9480_v30  ;;  %v2663_v15 = vmul.f32 %v5997_v43, %v8664_v45  ;;  %v2543_v24 = vmul.f32 %v8664_v45, %v2472_v14 }
 0x28d   :  { %13045 = vst [vmem:[#allocation208_spill] sm:$0xff] %v9909_v4  ;;  %v2542_v49 = vmul.f32 %v8664_v45, %v2471_v35  ;;  %v2541_v25 = vmul.f32 %v8664_v45, %v2470_v21  ;;  %v2409_v2 = vmul.f32 %v2345_v27, %v2281_v39  ;;  %v9937_v29 = vadd.f32 %v2665_v41, %v8631_v62 }
 0x28e   :  { %v6003_v47 = vpop.eup %6002  ;;  %v9940_v13 = vadd.f32 %v2664_v7, %v8631_v62  ;;  %v9943_v55 = vadd.f32 %v2663_v15, %v8631_v62  ;;  %v9946_v14 = vadd.f32 %v1380_v46, %v13050_v6  ;;  %6008 = vtanh.f32 %v2543_v24 }
 0x28f   :  { %2971 = vrot.lane.b32.xlu2 %v9890_v42, %s6410_s3  ;;  %2969 = vrot.lane.b32.xlu1 %v9893_v37, %s6410_s3  ;;  %13047 = vst [vmem:[#allocation158_spill] sm:$0xff] %v9937_v29  ;;  %6010 = vtanh.f32 %v2542_v49  ;;  %v2668_v6 = vmul.f32 %v6003_v47, %v8664_v45 }
 0x290   :  { %2967 = vrot.lane.b32.xlu0 %v9900_v31, %s6410_s3  ;;  %13048 = vst [vmem:[#allocation130_spill] sm:$0xff] %v9940_v13  ;;  %v6005_v30 = vpop.eup %6004  ;;  %6012 = vtanh.f32 %v2541_v25  ;;  %v2473_v35 = vadd.f32 %v2409_v2, %v9946_v14 }
 0x291   :  { %v9922_v18 = vpop.permute.xlu2 %2905  ;;  %v9924_v17 = vpop.permute.xlu1 %2885  ;;  %13049 = vst [vmem:[#allocation154_spill] sm:$0xff] %v9943_v55  ;;  %v2667_v7 = vmul.f32 %v6005_v30, %v8664_v45  ;;  %v9966_v46 = vadd.f32 %v2668_v6, %v8631_v62 }
 0x292   :  { %v9930_v50 = vpop.permute.xlu0 %2883  ;;  %v6007_v43 = vpop.eup %6006  ;;  %13051 = vst [vmem:[#allocation164_spill] sm:$0xff] %v9946_v14  ;;  %v2544_v24 = vmul.f32 %v8664_v45, %v2473_v35 }
 0x293   :  { %v2666_v39 = vmul.f32 %v6007_v43, %v8664_v45  ;;  %13052 = vst [vmem:[#allocation28_spill] sm:$0xff] %v9966_v46  ;;  %v9969_v49 = vadd.f32 %v2667_v7, %v8631_v62 }
 0x294   :  { %v6009_v15 = vpop.eup %6008  ;;  %6014 = vtanh.f32 %v2544_v24 }
 0x295   :  { %13053 = vst [vmem:[#allocation151_spill] sm:$0xff] %v9969_v49  ;;  %v6011_v25 = vpop.eup %6010  ;;  %v9972_v2 = vadd.f32 %v2666_v39, %v8631_v62  ;;  %v2671_v35 = vmul.f32 %v6009_v15, %v8664_v45 }
 0x296   :  { %v6013_v47 = vpop.eup %6012  ;;  %v2670_v6 = vmul.f32 %v6011_v25, %v8664_v45 }
 0x297   :  { %2977 = vrot.lane.b32.xlu2 %v9937_v29, %s6410_s3  ;;  %2975 = vrot.lane.b32.xlu1 %v9940_v13, %s6410_s3  ;;  %13054 = vst [vmem:[#allocation162_spill] sm:$0xff] %v9972_v2  ;;  %v2669_v39 = vmul.f32 %v6013_v47, %v8664_v45  ;;  %v9986_v14 = vadd.f32 %v2671_v35, %v8631_v62  ;;  %v13074_v29 = vld [vmem:[#allocation40_spill] sm:$0xff] }
 0x298   :  { %2973 = vrot.lane.b32.xlu0 %v9943_v55, %s6410_s3  ;;  %v9989_v4 = vadd.f32 %v2670_v6, %v8631_v62  ;;  %v13058_v6 = vld [vmem:[#allocation210_spill] sm:$0xff] }
 0x299   :  { %v9955_v21 = vpop.permute.xlu2 %2911  ;;  %v9957_v41 = vpop.permute.xlu1 %2891  ;;  %13055 = vst [vmem:[#allocation172_spill] sm:$0xff] %v9986_v14  ;;  %v9992_v57 = vadd.f32 %v2669_v39, %v8631_v62  ;;  %v3058_v39 = vmul.f32 %v9736_v5, %v13058_v6  ;;  %v13062_v6 = vld [vmem:[#allocation136_spill] sm:$0xff] }
 0x29a   :  { %v9961_v27 = vpop.permute.xlu0 %2889  ;;  %13056 = vst [vmem:[#allocation159_spill] sm:$0xff] %v9989_v4  ;;  %v6015_v24 = vpop.eup %6014  ;;  %v3060_v9 = vmul.f32 %v9812_v8, %v13062_v6  ;;  %v13066_v8 = vld [vmem:[#allocation102_spill] sm:$0xff] }
 0x29b   :  { %13057 = vst [vmem:[#allocation137_spill] sm:$0xff] %v9992_v57  ;;  %v2672_v35 = vmul.f32 %v6015_v24, %v8664_v45  ;;  %v13061_v24 = vld [vmem:[#allocation212_spill] sm:$0xff]  ;;  %v3062_v6 = vmul.f32 %v9610_v56, %v13066_v8 }
 0x29c   :  { %v3061_v5 = vmul.f32 %v9805_v26, %v13061_v24  ;;  %v13065_v26 = vld [vmem:[#allocation34_spill] sm:$0xff] }
 0x29d   :  { %v3063_v24 = vmul.f32 %v9880_v48, %v13065_v26  ;;  %v13069_v48 = vld [vmem:[#allocation129_spill] sm:$0xff] }
 0x29e   :  { %v3065_v26 = vmul.f32 %v9667_v19, %v13069_v48 }
 0x29f   :  { %2983 = vrot.lane.b32.xlu2 %v9966_v46, %s6410_s3  ;;  %2981 = vrot.lane.b32.xlu1 %v9969_v49, %s6410_s3 }
 0x2a0   :  { %2979 = vrot.lane.b32.xlu0 %v9972_v2, %s6410_s3 }
 0x2a1   :  { %v9980_v30 = vpop.permute.xlu2 %2917  ;;  %v2898_v43 = vpop.permute.xlu1 %2897 }
 0x2a2   :  { %v2896_v7 = vpop.permute.xlu0 %2895 }
 0x2a7   :  { %2989 = vrot.lane.b32.xlu2 %v9986_v14, %s6410_s3  ;;  %2987 = vrot.lane.b32.xlu1 %v9989_v4, %s6410_s3  ;;  %v10008_v14 = vadd.f32 %v2672_v35, %v8631_v62  ;;  %v3059_v62 = vmul.f32 %v9543_v40, %v13063_v36 }
 0x2a8   :  { %2985 = vrot.lane.b32.xlu0 %v9992_v57, %s6410_s3 }
 0x2a9   :  { %v10000_v15 = vpop.permute.xlu2 %2923  ;;  %v2904_v25 = vpop.permute.xlu1 %2903  ;;  %13060 = vst [vmem:[#allocation145_spill] sm:$0xff] %v10008_v14 }
 0x2aa   :  { %v2902_v47 = vpop.permute.xlu0 %2901 }
 0x2af   :  { %3187 = vrot.lane.b32.xlu2 %v3058_v39, %s6409_s9  ;;  %3185 = vrot.lane.b32.xlu1 %v3057_v10, %s6409_s9 }
 0x2b0   :  { %2991 = vrot.lane.b32.xlu0 %v10008_v14, %s6410_s3  ;;  %v13064_v14 = vld [vmem:[#allocation14_spill] sm:$0xff] }
 0x2b1   :  { %v10014_v46 = vpop.permute.xlu2 %2929  ;;  %v2910_v57 = vpop.permute.xlu1 %2909  ;;  %v3064_v4 = vmul.f32 %v9874_v33, %v13064_v14  ;;  %v13068_v33 = vld [vmem:[#allocation135_spill] sm:$0xff] }
 0x2b2   :  { %v2908_v45 = vpop.permute.xlu0 %2907  ;;  %v3066_v14 = vmul.f32 %v9930_v50, %v13068_v33  ;;  %v13072_v50 = vld [vmem:[#allocation22_spill] sm:$0xff] }
 0x2b3   :  { %v3068_v33 = vmul.f32 %v9734_v11, %v13072_v50 }
 0x2b7   :  { %3193 = vrot.lane.b32.xlu2 %v3061_v5, %s6409_s9  ;;  %3191 = vrot.lane.b32.xlu1 %v3060_v9, %s6409_s9 }
 0x2b8   :  { %3189 = vrot.lane.b32.xlu0 %v3059_v62, %s6409_s9  ;;  %v13067_v62 = vld [vmem:[#allocation143_spill] sm:$0xff] }
 0x2b9   :  { %v10025_v10 = vpop.permute.xlu2 %2935  ;;  %v2916_v35 = vpop.permute.xlu1 %2915  ;;  %v3067_v36 = vmul.f32 %v9924_v17, %v13067_v62  ;;  %v13071_v17 = vld [vmem:[#allocation23_spill] sm:$0xff] }
 0x2ba   :  { %v2914_v39 = vpop.permute.xlu0 %2913  ;;  %v3069_v62 = vmul.f32 %v9961_v27, %v13071_v17  ;;  %v13077_v17 = vld [vmem:[#allocation30_spill] sm:$0xff] }
 0x2bb   :  { %v3075_v2 = vmul.f32 %v2902_v47, %v13077_v17 }
 0x2bf   :  { %3199 = vrot.lane.b32.xlu2 %v3064_v4, %s6409_s9  ;;  %3197 = vrot.lane.b32.xlu1 %v3063_v24, %s6409_s9  ;;  %v13070_v24 = vld [vmem:[#allocation207_spill] sm:$0xff] }
 0x2c0   :  { %3195 = vrot.lane.b32.xlu0 %v3062_v6, %s6409_s9  ;;  %v3070_v8 = vmul.f32 %v9957_v41, %v13070_v24  ;;  %v3072_v41 = vmul.f32 %v2896_v7, %v13074_v29  ;;  %v13075_v24 = vld [vmem:[#allocation107_spill] sm:$0xff] }
 0x2c1   :  { %v10036_v40 = vpop.permute.xlu2 %2941  ;;  %v2922_v5 = vpop.permute.xlu1 %2921  ;;  %v3071_v27 = vmul.f32 %v9803_v23, %v13075_v24  ;;  %v13080_v24 = vld [vmem:[#allocation175_spill] sm:$0xff] }
 0x2c2   :  { %v2920_v9 = vpop.permute.xlu0 %2919  ;;  %v3078_v29 = vmul.f32 %v2908_v45, %v13080_v24 }
 0x2c7   :  { %3205 = vrot.lane.b32.xlu2 %v3067_v36, %s6409_s9  ;;  %3203 = vrot.lane.b32.xlu1 %v3066_v14, %s6409_s9 }
 0x2c8   :  { %3201 = vrot.lane.b32.xlu0 %v3065_v26, %s6409_s9  ;;  %v13073_v26 = vld [vmem:[#allocation18_spill] sm:$0xff] }
 0x2c9   :  { %v10047_v56 = vpop.permute.xlu2 %2947  ;;  %v2928_v4 = vpop.permute.xlu1 %2927  ;;  %v3073_v48 = vmul.f32 %v2898_v43, %v13073_v26  ;;  %v13078_v43 = vld [vmem:[#allocation142_spill] sm:$0xff] }
 0x2ca   :  { %v2926_v6 = vpop.permute.xlu0 %2925  ;;  %v3074_v7 = vmul.f32 %v9872_v38, %v13078_v43 }
 0x2cf   :  { %3211 = vrot.lane.b32.xlu2 %v3070_v8, %s6409_s9  ;;  %3209 = vrot.lane.b32.xlu1 %v3069_v62, %s6409_s9 }
 0x2d0   :  { %3207 = vrot.lane.b32.xlu0 %v3068_v33, %s6409_s9  ;;  %v13076_v33 = vld [vmem:[#allocation160_spill] sm:$0xff] }
 0x2d1   :  { %v10058_v19 = vpop.permute.xlu2 %2953  ;;  %v2934_v36 = vpop.permute.xlu1 %2933  ;;  %v3076_v50 = vmul.f32 %v2904_v25, %v13076_v33  ;;  %v13081_v25 = vld [vmem:[#allocation150_spill] sm:$0xff]  ;;  %v3081_v33 = vmul.f32 %v2914_v39, %v9322_v34 }
 0x2d2   :  { %v2932_v14 = vpop.permute.xlu0 %2931  ;;  %v3077_v47 = vmul.f32 %v9922_v18, %v13081_v25 }
 0x2d7   :  { %3217 = vrot.lane.b32.xlu2 %v3073_v48, %s6409_s9  ;;  %3215 = vrot.lane.b32.xlu1 %v3072_v41, %s6409_s9 }
 0x2d8   :  { %3213 = vrot.lane.b32.xlu0 %v3071_v27, %s6409_s9  ;;  %v13079_v27 = vld [vmem:[#allocation115_spill] sm:$0xff] }
 0x2d9   :  { %v10067_v11 = vpop.permute.xlu2 %2959  ;;  %v2940_v8 = vpop.permute.xlu1 %2939  ;;  %v3079_v26 = vmul.f32 %v2910_v57, %v13079_v27  ;;  %v13082_v57 = vld [vmem:[#allocation122_spill] sm:$0xff]  ;;  %v3084_v27 = vmul.f32 %v2920_v9, %v9395_v60 }
 0x2da   :  { %v2938_v62 = vpop.permute.xlu0 %2937  ;;  %v3080_v45 = vmul.f32 %v9955_v21, %v13082_v57 }
 0x2df   :  { %3223 = vrot.lane.b32.xlu2 %v3076_v50, %s6409_s9  ;;  %3221 = vrot.lane.b32.xlu1 %v3075_v2, %s6409_s9 }
 0x2e0   :  { %3219 = vrot.lane.b32.xlu0 %v3074_v7, %s6409_s9  ;;  %v3082_v7 = vmul.f32 %v2916_v35, %v9313_v1  ;;  %v13083_v35 = vld [vmem:[#allocation189_spill] sm:$0xff]  ;;  %v3087_v1 = vmul.f32 %v2926_v6, %v9459_v63 }
 0x2e1   :  { %v10076_v23 = vpop.permute.xlu2 %2965  ;;  %v2946_v48 = vpop.permute.xlu1 %2945  ;;  %v3083_v39 = vmul.f32 %v9980_v30, %v13083_v35 }
 0x2e2   :  { %v2944_v41 = vpop.permute.xlu0 %2943 }
 0x2e7   :  { %3229 = vrot.lane.b32.xlu2 %v3079_v26, %s6409_s9  ;;  %3227 = vrot.lane.b32.xlu1 %v3078_v29, %s6409_s9 }
 0x2e8   :  { %3225 = vrot.lane.b32.xlu0 %v3077_v47, %s6409_s9  ;;  %v3085_v47 = vmul.f32 %v2922_v5, %v9381_v59  ;;  %v3086_v5 = vmul.f32 %v10000_v15, %v9378_v58 }
 0x2e9   :  { %v10085_v38 = vpop.permute.xlu2 %2971  ;;  %v2952_v2 = vpop.permute.xlu1 %2951 }
 0x2ea   :  { %v2950_v50 = vpop.permute.xlu0 %2949 }
 0x2ef   :  { %3235 = vrot.lane.b32.xlu2 %v3082_v7, %s6409_s9  ;;  %3233 = vrot.lane.b32.xlu1 %v3081_v33, %s6409_s9 }
 0x2f0   :  { %3231 = vrot.lane.b32.xlu0 %v3080_v45, %s6409_s9  ;;  %v3088_v45 = vmul.f32 %v2928_v4, %v9448_v28  ;;  %v3089_v4 = vmul.f32 %v10014_v46, %v9445_v51 }
 0x2f1   :  { %v10094_v18 = vpop.permute.xlu2 %2977  ;;  %v2958_v29 = vpop.permute.xlu1 %2957 }
 0x2f2   :  { %v2956_v26 = vpop.permute.xlu0 %2955 }
 0x2f7   :  { %3241 = vrot.lane.b32.xlu2 %v3085_v47, %s6409_s9  ;;  %3239 = vrot.lane.b32.xlu1 %v3084_v27, %s6409_s9  ;;  %v3091_v47 = vmul.f32 %v2934_v36, %v9513_v54  ;;  %v3092_v36 = vmul.f32 %v10025_v10, %v9510_v22 }
 0x2f8   :  { %3237 = vrot.lane.b32.xlu0 %v3083_v39, %s6409_s9  ;;  %v3090_v39 = vmul.f32 %v2932_v14, %v9523_v20 }
 0x2f9   :  { %v10103_v21 = vpop.permute.xlu2 %2983  ;;  %v2964_v33 = vpop.permute.xlu1 %2963 }
 0x2fa   :  { %v2962_v7 = vpop.permute.xlu0 %2961 }
 0x2ff   :  { %3247 = vrot.lane.b32.xlu2 %v3088_v45, %s6409_s9  ;;  %3245 = vrot.lane.b32.xlu1 %v3087_v1, %s6409_s9  ;;  %v3094_v45 = vmul.f32 %v2940_v8, %v9577_v61  ;;  %v3095_v8 = vmul.f32 %v10036_v40, %v9574_v12  ;;  %v13085_v61 = vld [vmem:[#allocation114_spill] sm:$0xff] }
 0x300   :  { %3243 = vrot.lane.b32.xlu0 %v3086_v5, %s6409_s9  ;;  %v3093_v5 = vmul.f32 %v2938_v62, %v9587_v32  ;;  %v3099_v54 = vmul.f32 %v2950_v50, %v13085_v61 }
 0x301   :  { %v10112_v30 = vpop.permute.xlu2 %2989  ;;  %v2970_v9 = vpop.permute.xlu1 %2969 }
 0x302   :  { %v2968_v27 = vpop.permute.xlu0 %2967 }
 0x307   :  { %3253 = vrot.lane.b32.xlu2 %v3091_v47, %s6409_s9  ;;  %3251 = vrot.lane.b32.xlu1 %v3090_v39, %s6409_s9  ;;  %v3097_v39 = vmul.f32 %v2946_v48, %v9631_v52  ;;  %v13086_v48 = vld [vmem:[#allocation195_spill] sm:$0xff]  ;;  %v13087_v52 = vld [vmem:[#allocation138_spill] sm:$0xff] }
 0x308   :  { %3249 = vrot.lane.b32.xlu0 %v3089_v4, %s6409_s9  ;;  %v3096_v4 = vmul.f32 %v2944_v41, %v9645_v53  ;;  %v3098_v41 = vmul.f32 %v10047_v56, %v13086_v48  ;;  %v3102_v12 = vmul.f32 %v2956_v26, %v13087_v52 }
 0x309   :  { %v10121_v1 = vpop.permute.xlu2 %3187  ;;  %v2976_v15 = vpop.permute.xlu1 %2975 }
 0x30a   :  { %v2974_v6 = vpop.permute.xlu0 %2973 }
 0x30f   :  { %3259 = vrot.lane.b32.xlu2 %v3094_v45, %s6409_s9  ;;  %3257 = vrot.lane.b32.xlu1 %v3093_v5, %s6409_s9  ;;  %v13084_v5 = vld [vmem:[#allocation206_spill] sm:$0xff] }
 0x310   :  { %3255 = vrot.lane.b32.xlu0 %v3092_v36, %s6409_s9  ;;  %v3100_v36 = vmul.f32 %v2952_v2, %v13084_v5  ;;  %v13088_v2 = vld [vmem:[#allocation125_spill] sm:$0xff]  ;;  %v3105_v5 = vmul.f32 %v2962_v7, %v9849_v3  ;;  %v3107_v7 = vmul.f32 %v10076_v23, %v9837_v16 }
 0x311   :  { %v10130_v46 = vpop.permute.xlu2 %3193  ;;  %v2982_v14 = vpop.permute.xlu1 %2981  ;;  %v3101_v50 = vmul.f32 %v10058_v19, %v13088_v2 }
 0x312   :  { %v2980_v47 = vpop.permute.xlu0 %2979 }
 0x317   :  { %3265 = vrot.lane.b32.xlu2 %v3097_v39, %s6409_s9  ;;  %3263 = vrot.lane.b32.xlu1 %v3096_v4, %s6409_s9 }
 0x318   :  { %3261 = vrot.lane.b32.xlu0 %v3095_v8, %s6409_s9  ;;  %v3103_v8 = vmul.f32 %v2958_v29, %v9768_v44  ;;  %v13089_v29 = vld [vmem:[#allocation131_spill] sm:$0xff] }
 0x319   :  { %v10139_v10 = vpop.permute.xlu2 %3199  ;;  %v2988_v62 = vpop.permute.xlu1 %2987  ;;  %v3104_v26 = vmul.f32 %v10067_v11, %v13089_v29 }
 0x31a   :  { %v2986_v45 = vpop.permute.xlu0 %2985 }
 0x31f   :  { %3271 = vrot.lane.b32.xlu2 %v3100_v36, %s6409_s9  ;;  %3269 = vrot.lane.b32.xlu1 %v3099_v54, %s6409_s9 }
 0x320   :  { %3267 = vrot.lane.b32.xlu0 %v3098_v41, %s6409_s9  ;;  %v3106_v41 = vmul.f32 %v2964_v33, %v9840_v0  ;;  %v3108_v33 = vmul.f32 %v2968_v27, %v9900_v31  ;;  %v3110_v27 = vmul.f32 %v10085_v38, %v9890_v42 }
 0x321   :  { %v10148_v40 = vpop.permute.xlu2 %3205  ;;  %v3186_v39 = vpop.permute.xlu1 %3185 }
 0x322   :  { %v2992_v4 = vpop.permute.xlu0 %2991 }
 0x327   :  { %3277 = vrot.lane.b32.xlu2 %v3103_v8, %s6409_s9  ;;  %3275 = vrot.lane.b32.xlu1 %v3102_v12, %s6409_s9 }
 0x328   :  { %3273 = vrot.lane.b32.xlu0 %v3101_v50, %s6409_s9  ;;  %v3109_v50 = vmul.f32 %v2970_v9, %v9893_v37  ;;  %v3111_v9 = vmul.f32 %v2974_v6, %v9943_v55  ;;  %v13091_v6 = vld [vmem:[#allocation158_spill] sm:$0xff] }
 0x329   :  { %v10157_v54 = vpop.permute.xlu2 %3211  ;;  %v3192_v56 = vpop.permute.xlu1 %3191  ;;  %v3113_v37 = vmul.f32 %v10094_v18, %v13091_v6  ;;  %v13096_v6 = vld [vmem:[#allocation211_spill] sm:$0xff] }
 0x32a   :  { %v3190_v36 = vpop.permute.xlu0 %3189 }
 0x32f   :  { %3283 = vrot.lane.b32.xlu2 %v3106_v41, %s6409_s9  ;;  %3281 = vrot.lane.b32.xlu1 %v3105_v5, %s6409_s9 }
 0x330   :  { %3279 = vrot.lane.b32.xlu0 %v3104_v26, %s6409_s9  ;;  %v3112_v26 = vmul.f32 %v2976_v15, %v9940_v13  ;;  %v13090_v15 = vld [vmem:[#allocation162_spill] sm:$0xff] }
 0x331   :  { %v10166_v12 = vpop.permute.xlu2 %3217  ;;  %v10168_v19 = vpop.permute.xlu1 %3197  ;;  %v3114_v13 = vmul.f32 %v2980_v47, %v13090_v15  ;;  %v13094_v47 = vld [vmem:[#allocation28_spill] sm:$0xff] }
 0x332   :  { %v10170_v8 = vpop.permute.xlu0 %3195  ;;  %v3116_v15 = vmul.f32 %v10103_v21, %v13094_v47  ;;  %v13099_v21 = vld [vmem:[#allocation172_spill] sm:$0xff] }
 0x337   :  { %3289 = vrot.lane.b32.xlu2 %v3109_v50, %s6409_s9  ;;  %3287 = vrot.lane.b32.xlu1 %v3108_v33, %s6409_s9 }
 0x338   :  { %3285 = vrot.lane.b32.xlu0 %v3107_v7, %s6409_s9  ;;  %v3115_v7 = vmul.f32 %v2982_v14, %v9969_v49  ;;  %v13093_v14 = vld [vmem:[#allocation137_spill] sm:$0xff] }
 0x339   :  { %v10179_v11 = vpop.permute.xlu2 %3223  ;;  %v10181_v5 = vpop.permute.xlu1 %3203  ;;  %v3117_v49 = vmul.f32 %v2986_v45, %v13093_v14  ;;  %v13098_v45 = vld [vmem:[#allocation145_spill] sm:$0xff] }
 0x33a   :  { %v10183_v41 = vpop.permute.xlu0 %3201  ;;  %v3120_v14 = vmul.f32 %v2992_v4, %v13098_v45  ;;  %v13102_v4 = vld [vmem:[#allocation12_spill] sm:$0xff] }
 0x33f   :  { %3295 = vrot.lane.b32.xlu2 %v3112_v26, %s6409_s9  ;;  %3293 = vrot.lane.b32.xlu1 %v3111_v9, %s6409_s9 }
 0x340   :  { %3291 = vrot.lane.b32.xlu0 %v3110_v27, %s6409_s9  ;;  %v13092_v27 = vld [vmem:[#allocation159_spill] sm:$0xff] }
 0x341   :  { %v10192_v23 = vpop.permute.xlu2 %3229  ;;  %v10194_v50 = vpop.permute.xlu1 %3209  ;;  %v3118_v42 = vmul.f32 %v2988_v62, %v13092_v27 }
 0x342   :  { %v10196_v33 = vpop.permute.xlu0 %3207 }
 0x347   :  { %3301 = vrot.lane.b32.xlu2 %v3115_v7, %s6409_s9  ;;  %3299 = vrot.lane.b32.xlu1 %v3114_v13, %s6409_s9  ;;  %v13095_v7 = vld [vmem:[#allocation13_spill] sm:$0xff] }
 0x348   :  { %3297 = vrot.lane.b32.xlu0 %v3113_v37, %s6409_s9  ;;  %v2737_v62 = vmul.f32 %v13096_v6, %v13095_v7  ;;  %v13101_v6 = vld [vmem:[#allocation136_spill] sm:$0xff] }
 0x349   :  { %v10205_v38 = vpop.permute.xlu2 %3235  ;;  %v10207_v26 = vpop.permute.xlu1 %3215 }
 0x34a   :  { %v10209_v9 = vpop.permute.xlu0 %3213  ;;  %v10226_v27 = vadd.f32 %v3186_v39, %v2737_v62  ;;  %v13100_v39 = vld [vmem:[#allocation16_spill] sm:$0xff]  ;;  %v13103_v62 = vld [vmem:[#allocation209_spill] sm:$0xff] }
 0x34b   :  { %v2740_v7 = vmul.f32 %v13101_v6, %v13100_v39  ;;  %v2739_v45 = vmul.f32 %v13103_v62, %v13102_v4  ;;  %v13113_v62 = vld [vmem:[#allocation8_spill] sm:$0xff] }
 0x34c   :  { %13097 = vst [vmem:[#allocation179_spill] sm:$0xff] %v10226_v27 }
 0x34d   :  { %v10247_v55 = vadd.f32 %v3192_v56, %v2740_v7  ;;  %v13112_v7 = vld [vmem:[#allocation102_spill] sm:$0xff] }
 0x34f   :  { %3307 = vrot.lane.b32.xlu2 %v3118_v42, %s6409_s9  ;;  %3305 = vrot.lane.b32.xlu1 %v3117_v49, %s6409_s9  ;;  %v3119_v42 = vmul.f32 %v10112_v30, %v13099_v21  ;;  %v13104_v30 = vld [vmem:[#allocation17_spill] sm:$0xff]  ;;  %v13105_v21 = vld [vmem:[#allocation210_spill] sm:$0xff]  ;;  %13106 = vst [vmem:[#allocation170_spill] sm:$0xff] %v10247_v55 }
 0x350   :  { %3303 = vrot.lane.b32.xlu0 %v3116_v15, %s6409_s9 }
 0x351   :  { %v10218_v37 = vpop.permute.xlu2 %3241  ;;  %v10220_v13 = vpop.permute.xlu1 %3221 }
 0x352   :  { %v10222_v18 = vpop.permute.xlu0 %3219 }
 0x357   :  { %3311 = vrot.lane.b32.xlu1 %v3120_v14, %s6409_s9  ;;  %3569 = vrot.lane.b32.xlu2 %v10226_v27, %s6411_s30  ;;  %v2738_v14 = vmul.f32 %v13105_v21, %v13104_v30  ;;  %v10249_v27 = vadd.f32 %v3190_v36, %v2739_v45  ;;  %v13109_v36 = vld [vmem:[#allocation21_spill] sm:$0xff]  ;;  %v13110_v45 = vld [vmem:[#allocation34_spill] sm:$0xff]  ;;  %v13114_v30 = vld [vmem:[#allocation212_spill] sm:$0xff] }
 0x358   :  { %3309 = vrot.lane.b32.xlu0 %v3119_v42, %s6409_s9  ;;  %v2743_v21 = vmul.f32 %v13110_v45, %v13109_v36 }
 0x359   :  { %v10235_v49 = vpop.permute.xlu2 %3247  ;;  %v10237_v15 = vpop.permute.xlu1 %3227  ;;  %13107 = vst [vmem:[#allocation168_spill] sm:$0xff] %v10249_v27  ;;  %v10252_v42 = vadd.f32 %v10121_v1, %v2738_v14  ;;  %v13111_v1 = vld [vmem:[#allocation9_spill] sm:$0xff]  ;;  %v2741_v14 = vmul.f32 %v13114_v30, %v13113_v62  ;;  %v13122_v62 = vld [vmem:[#allocation20_spill] sm:$0xff]  ;;  %v13123_v30 = vld [vmem:[#allocation14_spill] sm:$0xff] }
 0x35a   :  { %v10239_v47 = vpop.permute.xlu0 %3225  ;;  %v2742_v4 = vmul.f32 %v13112_v7, %v13111_v1  ;;  %v13121_v7 = vld [vmem:[#allocation129_spill] sm:$0xff] }
 0x35b   :  { %13108 = vst [vmem:[#allocation105_spill] sm:$0xff] %v10252_v42 }
 0x35f   :  { %3573 = vrot.lane.b32.xlu1 %v10249_v27, %s6411_s30  ;;  %3575 = vrot.lane.b32.xlu2 %v10247_v55, %s6411_s30  ;;  %v10273_v27 = vadd.f32 %v10168_v19, %v2743_v21  ;;  %v10276_v55 = vadd.f32 %v10170_v8, %v2742_v4  ;;  %v13118_v8 = vld [vmem:[#allocation27_spill] sm:$0xff] }
 0x360   :  { %3571 = vrot.lane.b32.xlu0 %v10252_v42, %s6411_s30  ;;  %v10279_v42 = vadd.f32 %v10130_v46, %v2741_v14  ;;  %v13119_v21 = vld [vmem:[#allocation135_spill] sm:$0xff]  ;;  %v13120_v46 = vld [vmem:[#allocation10_spill] sm:$0xff]  ;;  %v2744_v14 = vmul.f32 %v13123_v30, %v13122_v62 }
 0x361   :  { %v10260_v39 = vpop.permute.xlu2 %3253  ;;  %v10262_v6 = vpop.permute.xlu1 %3233  ;;  %13115 = vst [vmem:[#allocation112_spill] sm:$0xff] %v10273_v27  ;;  %v2746_v1 = vmul.f32 %v13119_v21, %v13118_v8  ;;  %v2745_v4 = vmul.f32 %v13121_v7, %v13120_v46  ;;  %v13130_v7 = vld [vmem:[#allocation22_spill] sm:$0xff]  ;;  %v13132_v30 = vld [vmem:[#allocation143_spill] sm:$0xff] }
 0x362   :  { %v10264_v56 = vpop.permute.xlu0 %3231  ;;  %13116 = vst [vmem:[#allocation177_spill] sm:$0xff] %v10276_v55  ;;  %v13131_v62 = vld [vmem:[#allocation26_spill] sm:$0xff] }
 0x363   :  { %13117 = vst [vmem:[#allocation36_spill] sm:$0xff] %v10279_v42 }
 0x367   :  { %3579 = vrot.lane.b32.xlu1 %v10276_v55, %s6411_s30  ;;  %3581 = vrot.lane.b32.xlu2 %v10273_v27, %s6411_s30  ;;  %v10300_v55 = vadd.f32 %v10181_v5, %v2746_v1  ;;  %v10303_v27 = vadd.f32 %v10183_v41, %v2745_v4  ;;  %v13127_v41 = vld [vmem:[#allocation33_spill] sm:$0xff]  ;;  %v13128_v1 = vld [vmem:[#allocation23_spill] sm:$0xff] }
 0x368   :  { %3577 = vrot.lane.b32.xlu0 %v10279_v42, %s6411_s30  ;;  %v10306_v42 = vadd.f32 %v10139_v10, %v2744_v14  ;;  %v2749_v46 = vmul.f32 %v13128_v1, %v13127_v41  ;;  %v13129_v10 = vld [vmem:[#allocation11_spill] sm:$0xff]  ;;  %v2747_v14 = vmul.f32 %v13132_v30, %v13131_v62  ;;  %v13140_v62 = vld [vmem:[#allocation32_spill] sm:$0xff] }
 0x369   :  { %v10287_v36 = vpop.permute.xlu2 %3259  ;;  %v10289_v45 = vpop.permute.xlu1 %3239  ;;  %13124 = vst [vmem:[#allocation41_spill] sm:$0xff] %v10300_v55  ;;  %v2748_v4 = vmul.f32 %v13130_v7, %v13129_v10  ;;  %v13139_v7 = vld [vmem:[#allocation107_spill] sm:$0xff] }
 0x36a   :  { %v10291_v19 = vpop.permute.xlu0 %3237  ;;  %13125 = vst [vmem:[#allocation186_spill] sm:$0xff] %v10303_v27  ;;  %v13141_v30 = vld [vmem:[#allocation207_spill] sm:$0xff] }
 0x36b   :  { %13126 = vst [vmem:[#allocation153_spill] sm:$0xff] %v10306_v42 }
 0x36f   :  { %3585 = vrot.lane.b32.xlu1 %v10303_v27, %s6411_s30  ;;  %3587 = vrot.lane.b32.xlu2 %v10300_v55, %s6411_s30  ;;  %v10327_v27 = vadd.f32 %v10194_v50, %v2749_v46  ;;  %v10330_v55 = vadd.f32 %v10196_v33, %v2748_v4  ;;  %v13136_v33 = vld [vmem:[#allocation39_spill] sm:$0xff]  ;;  %v13137_v46 = vld [vmem:[#allocation40_spill] sm:$0xff] }
 0x370   :  { %3583 = vrot.lane.b32.xlu0 %v10306_v42, %s6411_s30  ;;  %v10333_v42 = vadd.f32 %v10148_v40, %v2747_v14  ;;  %v2752_v10 = vmul.f32 %v13137_v46, %v13136_v33  ;;  %v13138_v40 = vld [vmem:[#allocation15_spill] sm:$0xff]  ;;  %v2750_v14 = vmul.f32 %v13141_v30, %v13140_v62 }
 0x371   :  { %v10314_v8 = vpop.permute.xlu2 %3265  ;;  %v10316_v21 = vpop.permute.xlu1 %3245  ;;  %13133 = vst [vmem:[#allocation108_spill] sm:$0xff] %v10327_v27  ;;  %v2751_v4 = vmul.f32 %v13139_v7, %v13138_v40  ;;  %v13147_v7 = vld [vmem:[#allocation38_spill] sm:$0xff] }
 0x372   :  { %v10318_v5 = vpop.permute.xlu0 %3243  ;;  %13134 = vst [vmem:[#allocation167_spill] sm:$0xff] %v10330_v55 }
 0x373   :  { %13135 = vst [vmem:[#allocation118_spill] sm:$0xff] %v10333_v42 }
 0x377   :  { %3591 = vrot.lane.b32.xlu1 %v10330_v55, %s6411_s30  ;;  %3593 = vrot.lane.b32.xlu2 %v10327_v27, %s6411_s30  ;;  %v10354_v55 = vadd.f32 %v10207_v26, %v2752_v10  ;;  %v10357_v27 = vadd.f32 %v10209_v9, %v2751_v4  ;;  %v13145_v9 = vld [vmem:[#allocation45_spill] sm:$0xff]  ;;  %v13148_v4 = vld [vmem:[#allocation18_spill] sm:$0xff] }
 0x378   :  { %3589 = vrot.lane.b32.xlu0 %v10333_v42, %s6411_s30  ;;  %v10360_v42 = vadd.f32 %v10157_v54, %v2750_v14  ;;  %v2755_v10 = vmul.f32 %v13077_v17, %v13145_v9  ;;  %v13146_v54 = vld [vmem:[#allocation19_spill] sm:$0xff]  ;;  %v2753_v62 = vmul.f32 %v13148_v4, %v13147_v7 }
 0x379   :  { %v10341_v41 = vpop.permute.xlu2 %3271  ;;  %v10343_v1 = vpop.permute.xlu1 %3251  ;;  %13142 = vst [vmem:[#allocation113_spill] sm:$0xff] %v10354_v55  ;;  %v2754_v40 = vmul.f32 %v13078_v43, %v13146_v54  ;;  %v13154_v54 = vld [vmem:[#allocation44_spill] sm:$0xff] }
 0x37a   :  { %v10345_v50 = vpop.permute.xlu0 %3249  ;;  %13143 = vst [vmem:[#allocation182_spill] sm:$0xff] %v10357_v27  ;;  %v10381_v30 = vadd.f32 %v10220_v13, %v2755_v10 }
 0x37b   :  { %13144 = vst [vmem:[#allocation161_spill] sm:$0xff] %v10360_v42  ;;  %v10384_v14 = vadd.f32 %v10222_v18, %v2754_v40  ;;  %v13152_v18 = vld [vmem:[#allocation50_spill] sm:$0xff]  ;;  %v13155_v40 = vld [vmem:[#allocation160_spill] sm:$0xff] }
 0x37c   :  { %13149 = vst [vmem:[#allocation193_spill] sm:$0xff] %v10381_v30  ;;  %v2758_v9 = vmul.f32 %v13080_v24, %v13152_v18  ;;  %v2756_v7 = vmul.f32 %v13155_v40, %v13154_v54 }
 0x37d   :  { %13150 = vst [vmem:[#allocation184_spill] sm:$0xff] %v10384_v14 }
 0x37e   :  { %v10408_v4 = vadd.f32 %v10237_v15, %v2758_v9 }
 0x37f   :  { %3597 = vrot.lane.b32.xlu1 %v10357_v27, %s6411_s30  ;;  %3599 = vrot.lane.b32.xlu2 %v10354_v55, %s6411_s30  ;;  %v10387_v27 = vadd.f32 %v10166_v12, %v2753_v62  ;;  %v13153_v12 = vld [vmem:[#allocation25_spill] sm:$0xff] }
 0x380   :  { %3595 = vrot.lane.b32.xlu0 %v10360_v42, %s6411_s30  ;;  %v2757_v10 = vmul.f32 %v13081_v25, %v13153_v12  ;;  %13156 = vst [vmem:[#allocation169_spill] sm:$0xff] %v10408_v4  ;;  %v13161_v12 = vld [vmem:[#allocation48_spill] sm:$0xff] }
 0x381   :  { %v10368_v33 = vpop.permute.xlu2 %3277  ;;  %v10370_v46 = vpop.permute.xlu1 %3257  ;;  %13151 = vst [vmem:[#allocation134_spill] sm:$0xff] %v10387_v27 }
 0x382   :  { %v10372_v26 = vpop.permute.xlu0 %3255  ;;  %v10411_v62 = vadd.f32 %v10239_v47, %v2757_v10  ;;  %v13159_v47 = vld [vmem:[#allocation54_spill] sm:$0xff]  ;;  %v13162_v10 = vld [vmem:[#allocation115_spill] sm:$0xff] }
 0x383   :  { %v2761_v18 = vmul.f32 %v9322_v34, %v13159_v47  ;;  %v2759_v54 = vmul.f32 %v13162_v10, %v13161_v12 }
 0x384   :  { %13157 = vst [vmem:[#allocation128_spill] sm:$0xff] %v10411_v62 }
 0x385   :  { %v10435_v40 = vadd.f32 %v10262_v6, %v2761_v18 }
 0x387   :  { %3603 = vrot.lane.b32.xlu1 %v10384_v14, %s6411_s30  ;;  %3605 = vrot.lane.b32.xlu2 %v10381_v30, %s6411_s30  ;;  %v10414_v14 = vadd.f32 %v10179_v11, %v2756_v7  ;;  %v13160_v11 = vld [vmem:[#allocation31_spill] sm:$0xff]  ;;  %13163 = vst [vmem:[#allocation123_spill] sm:$0xff] %v10435_v40 }
 0x388   :  { %3601 = vrot.lane.b32.xlu0 %v10387_v27, %s6411_s30  ;;  %v2760_v9 = vmul.f32 %v13082_v57, %v13160_v11  ;;  %v13168_v11 = vld [vmem:[#allocation52_spill] sm:$0xff] }
 0x389   :  { %v10395_v17 = vpop.permute.xlu2 %3283  ;;  %v10397_v43 = vpop.permute.xlu1 %3263  ;;  %13158 = vst [vmem:[#allocation200_spill] sm:$0xff] %v10414_v14 }
 0x38a   :  { %v10399_v13 = vpop.permute.xlu0 %3261  ;;  %v10438_v7 = vadd.f32 %v10264_v56, %v2760_v9  ;;  %v13166_v56 = vld [vmem:[#allocation58_spill] sm:$0xff]  ;;  %v13169_v9 = vld [vmem:[#allocation196_spill] sm:$0xff] }
 0x38b   :  { %v2764_v47 = vmul.f32 %v9395_v60, %v13166_v56  ;;  %v2762_v12 = vmul.f32 %v13169_v9, %v13168_v11 }
 0x38c   :  { %13164 = vst [vmem:[#allocation191_spill] sm:$0xff] %v10438_v7 }
 0x38d   :  { %v10462_v10 = vadd.f32 %v10289_v45, %v2764_v47 }
 0x38f   :  { %3609 = vrot.lane.b32.xlu1 %v10411_v62, %s6411_s30  ;;  %3611 = vrot.lane.b32.xlu2 %v10408_v4, %s6411_s30  ;;  %v10441_v62 = vadd.f32 %v10192_v23, %v2759_v54  ;;  %v13167_v23 = vld [vmem:[#allocation37_spill] sm:$0xff]  ;;  %13170 = vst [vmem:[#allocation149_spill] sm:$0xff] %v10462_v10 }
 0x390   :  { %3607 = vrot.lane.b32.xlu0 %v10414_v14, %s6411_s30  ;;  %v2763_v18 = vmul.f32 %v13083_v35, %v13167_v23  ;;  %v13175_v23 = vld [vmem:[#allocation56_spill] sm:$0xff] }
 0x391   :  { %v10422_v24 = vpop.permute.xlu2 %3289  ;;  %v10424_v25 = vpop.permute.xlu1 %3269  ;;  %13165 = vst [vmem:[#allocation157_spill] sm:$0xff] %v10441_v62 }
 0x392   :  { %v10426_v15 = vpop.permute.xlu0 %3267  ;;  %v10465_v54 = vadd.f32 %v10291_v19, %v2763_v18  ;;  %v13173_v19 = vld [vmem:[#allocation62_spill] sm:$0xff]  ;;  %v2765_v18 = vmul.f32 %v9381_v59, %v13175_v23 }
 0x393   :  { %v2767_v56 = vmul.f32 %v9459_v63, %v13173_v19 }
 0x394   :  { %13171 = vst [vmem:[#allocation141_spill] sm:$0xff] %v10465_v54 }
 0x395   :  { %v10489_v11 = vadd.f32 %v10316_v21, %v2767_v56  ;;  %v13179_v21 = vld [vmem:[#allocation66_spill] sm:$0xff]  ;;  %v13181_v56 = vld [vmem:[#allocation60_spill] sm:$0xff] }
 0x397   :  { %3615 = vrot.lane.b32.xlu1 %v10438_v7, %s6411_s30  ;;  %3617 = vrot.lane.b32.xlu2 %v10435_v40, %s6411_s30  ;;  %v10468_v7 = vadd.f32 %v10205_v38, %v2762_v12  ;;  %v13174_v38 = vld [vmem:[#allocation43_spill] sm:$0xff]  ;;  %13176 = vst [vmem:[#allocation165_spill] sm:$0xff] %v10489_v11  ;;  %v10495_v12 = vadd.f32 %v10218_v37, %v2765_v18 }
 0x398   :  { %3613 = vrot.lane.b32.xlu0 %v10441_v62, %s6411_s30  ;;  %v2766_v47 = vmul.f32 %v9378_v58, %v13174_v38  ;;  %v13180_v37 = vld [vmem:[#allocation47_spill] sm:$0xff]  ;;  %v2768_v38 = vmul.f32 %v9448_v28, %v13181_v56 }
 0x399   :  { %v10449_v34 = vpop.permute.xlu2 %3295  ;;  %v10451_v57 = vpop.permute.xlu1 %3275  ;;  %13172 = vst [vmem:[#allocation198_spill] sm:$0xff] %v10468_v7  ;;  %v2769_v19 = vmul.f32 %v9445_v51, %v13180_v37  ;;  %v13188_v37 = vld [vmem:[#allocation205_spill] sm:$0xff] }
 0x39a   :  { %v10453_v6 = vpop.permute.xlu0 %3273  ;;  %v10492_v9 = vadd.f32 %v10318_v5, %v2766_v47  ;;  %13178 = vst [vmem:[#allocation142_spill] sm:$0xff] %v10495_v12  ;;  %v2770_v5 = vmul.f32 %v9523_v20, %v13179_v21  ;;  %v10522_v18 = vadd.f32 %v10235_v49, %v2768_v38  ;;  %v13186_v49 = vld [vmem:[#allocation51_spill] sm:$0xff] }
 0x39b   :  { %v10519_v23 = vadd.f32 %v10345_v50, %v2769_v19  ;;  %v2772_v21 = vmul.f32 %v9510_v22, %v13186_v49 }
 0x39c   :  { %13177 = vst [vmem:[#allocation30_spill] sm:$0xff] %v10492_v9  ;;  %v10516_v47 = vadd.f32 %v10343_v1, %v2770_v5  ;;  %v13185_v1 = vld [vmem:[#allocation70_spill] sm:$0xff]  ;;  %v13187_v5 = vld [vmem:[#allocation64_spill] sm:$0xff] }
 0x39d   :  { %13183 = vst [vmem:[#allocation150_spill] sm:$0xff] %v10519_v23  ;;  %v2773_v50 = vmul.f32 %v9587_v32, %v13185_v1  ;;  %v2771_v19 = vmul.f32 %v13188_v37, %v13187_v5  ;;  %v10546_v38 = vadd.f32 %v10372_v26, %v2772_v21  ;;  %v13192_v26 = vld [vmem:[#allocation74_spill] sm:$0xff]  ;;  %v13195_v21 = vld [vmem:[#allocation68_spill] sm:$0xff]  ;;  %v13196_v5 = vld [vmem:[#allocation203_spill] sm:$0xff] }
 0x39e   :  { %13182 = vst [vmem:[#allocation175_spill] sm:$0xff] %v10516_v47  ;;  %v2776_v1 = vmul.f32 %v9645_v53, %v13192_v26  ;;  %v2774_v37 = vmul.f32 %v13196_v5, %v13195_v21 }
 0x39f   :  { %3621 = vrot.lane.b32.xlu1 %v10465_v54, %s6411_s30  ;;  %3623 = vrot.lane.b32.xlu2 %v10462_v10, %s6411_s30  ;;  %13184 = vst [vmem:[#allocation122_spill] sm:$0xff] %v10522_v18  ;;  %v10543_v56 = vadd.f32 %v10370_v46, %v2773_v50  ;;  %v13194_v50 = vld [vmem:[#allocation188_spill] sm:$0xff] }
 0x3a0   :  { %3619 = vrot.lane.b32.xlu0 %v10468_v7, %s6411_s30  ;;  %13190 = vst [vmem:[#allocation114_spill] sm:$0xff] %v10546_v38 }
 0x3a1   :  { %v10476_v60 = vpop.permute.xlu2 %3301  ;;  %v10478_v35 = vpop.permute.xlu1 %3281  ;;  %13189 = vst [vmem:[#allocation189_spill] sm:$0xff] %v10543_v56 }
 0x3a2   :  { %v10480_v45 = vpop.permute.xlu0 %3279 }
 0x3a7   :  { %3627 = vrot.lane.b32.xlu1 %v10492_v9, %s6411_s30  ;;  %3629 = vrot.lane.b32.xlu2 %v10489_v11, %s6411_s30 }
 0x3a8   :  { %3625 = vrot.lane.b32.xlu0 %v10495_v12, %s6411_s30 }
 0x3a9   :  { %v10503_v58 = vpop.permute.xlu2 %3307  ;;  %v10505_v59 = vpop.permute.xlu1 %3287 }
 0x3aa   :  { %v10507_v63 = vpop.permute.xlu0 %3285 }
 0x3af   :  { %3633 = vrot.lane.b32.xlu1 %v10519_v23, %s6411_s30  ;;  %3635 = vrot.lane.b32.xlu2 %v10516_v47, %s6411_s30  ;;  %v10549_v23 = vadd.f32 %v10260_v39, %v2771_v19  ;;  %v13193_v39 = vld [vmem:[#allocation55_spill] sm:$0xff]  ;;  %v10570_v19 = vadd.f32 %v10397_v43, %v2776_v1 }
 0x3b0   :  { %3631 = vrot.lane.b32.xlu0 %v10522_v18, %s6411_s30  ;;  %v2775_v49 = vmul.f32 %v13194_v50, %v13193_v39  ;;  %v13202_v50 = vld [vmem:[#allocation72_spill] sm:$0xff] }
 0x3b1   :  { %v10530_v51 = vpop.permute.xlu1 %3293  ;;  %v10532_v28 = vpop.permute.xlu2 %3569  ;;  %13191 = vst [vmem:[#allocation195_spill] sm:$0xff] %v10549_v23 }
 0x3b2   :  { %v10534_v20 = vpop.permute.xlu0 %3291  ;;  %13197 = vst [vmem:[#allocation138_spill] sm:$0xff] %v10570_v19 }
 0x3b7   :  { %3639 = vrot.lane.b32.xlu1 %v10546_v38, %s6411_s30  ;;  %3641 = vrot.lane.b32.xlu2 %v10543_v56, %s6411_s30  ;;  %v10573_v38 = vadd.f32 %v10399_v13, %v2775_v49  ;;  %v10576_v56 = vadd.f32 %v10287_v36, %v2774_v37  ;;  %v13200_v13 = vld [vmem:[#allocation78_spill] sm:$0xff]  ;;  %v13201_v36 = vld [vmem:[#allocation59_spill] sm:$0xff]  ;;  %v13203_v49 = vld [vmem:[#allocation109_spill] sm:$0xff] }
 0x3b8   :  { %3637 = vrot.lane.b32.xlu0 %v10549_v23, %s6411_s30  ;;  %v2779_v1 = vmul.f32 %v13085_v61, %v13200_v13  ;;  %v2778_v39 = vmul.f32 %v13086_v48, %v13201_v36  ;;  %v2777_v21 = vmul.f32 %v13203_v49, %v13202_v50  ;;  %v13209_v36 = vld [vmem:[#allocation76_spill] sm:$0xff] }
 0x3b9   :  { %v10557_v22 = vpop.permute.xlu1 %3299  ;;  %v10559_v32 = vpop.permute.xlu2 %3575  ;;  %13198 = vst [vmem:[#allocation125_spill] sm:$0xff] %v10573_v38 }
 0x3ba   :  { %v10561_v46 = vpop.permute.xlu0 %3297  ;;  %13199 = vst [vmem:[#allocation131_spill] sm:$0xff] %v10576_v56  ;;  %v10597_v5 = vadd.f32 %v10424_v25, %v2779_v1  ;;  %v10600_v37 = vadd.f32 %v10426_v15, %v2778_v39  ;;  %v13207_v15 = vld [vmem:[#allocation82_spill] sm:$0xff] }
 0x3bb   :  { %v2782_v13 = vmul.f32 %v13087_v52, %v13207_v15  ;;  %v13210_v39 = vld [vmem:[#allocation206_spill] sm:$0xff] }
 0x3bc   :  { %13204 = vst [vmem:[#allocation13_spill] sm:$0xff] %v10597_v5  ;;  %v2780_v50 = vmul.f32 %v13210_v39, %v13209_v36 }
 0x3bd   :  { %13205 = vst [vmem:[#allocation211_spill] sm:$0xff] %v10600_v37  ;;  %v10624_v49 = vadd.f32 %v10451_v57, %v2782_v13 }
 0x3bf   :  { %3645 = vrot.lane.b32.xlu1 %v10573_v38, %s6411_s30  ;;  %3647 = vrot.lane.b32.xlu2 %v10570_v19, %s6411_s30  ;;  %v10603_v38 = vadd.f32 %v10314_v8, %v2777_v21  ;;  %v13208_v8 = vld [vmem:[#allocation63_spill] sm:$0xff]  ;;  %13211 = vst [vmem:[#allocation136_spill] sm:$0xff] %v10624_v49 }
 0x3c0   :  { %3643 = vrot.lane.b32.xlu0 %v10576_v56, %s6411_s30  ;;  %v2781_v1 = vmul.f32 %v13088_v2, %v13208_v8  ;;  %v13216_v8 = vld [vmem:[#allocation80_spill] sm:$0xff] }
 0x3c1   :  { %v10584_v53 = vpop.permute.xlu1 %3305  ;;  %v10586_v26 = vpop.permute.xlu2 %3581  ;;  %13206 = vst [vmem:[#allocation16_spill] sm:$0xff] %v10603_v38 }
 0x3c2   :  { %v10588_v43 = vpop.permute.xlu0 %3303  ;;  %v10627_v21 = vadd.f32 %v10453_v6, %v2781_v1  ;;  %v13214_v6 = vld [vmem:[#allocation86_spill] sm:$0xff]  ;;  %v2783_v1 = vmul.f32 %v9768_v44, %v13216_v8 }
 0x3c3   :  { %v2785_v15 = vmul.f32 %v9849_v3, %v13214_v6 }
 0x3c4   :  { %13212 = vst [vmem:[#allocation12_spill] sm:$0xff] %v10627_v21 }
 0x3c5   :  { %v10651_v36 = vadd.f32 %v10478_v35, %v2785_v15  ;;  %v13220_v35 = vld [vmem:[#allocation90_spill] sm:$0xff]  ;;  %v13222_v15 = vld [vmem:[#allocation84_spill] sm:$0xff] }
 0x3c7   :  { %3651 = vrot.lane.b32.xlu1 %v10600_v37, %s6411_s30  ;;  %3653 = vrot.lane.b32.xlu2 %v10597_v5, %s6411_s30  ;;  %v10630_v37 = vadd.f32 %v10341_v41, %v2780_v50  ;;  %v13215_v41 = vld [vmem:[#allocation67_spill] sm:$0xff]  ;;  %13217 = vst [vmem:[#allocation17_spill] sm:$0xff] %v10651_v36  ;;  %v10657_v50 = vadd.f32 %v10368_v33, %v2783_v1 }
 0x3c8   :  { %3649 = vrot.lane.b32.xlu0 %v10603_v38, %s6411_s30  ;;  %v2784_v13 = vmul.f32 %v13089_v29, %v13215_v41  ;;  %v13221_v33 = vld [vmem:[#allocation71_spill] sm:$0xff]  ;;  %v2786_v41 = vmul.f32 %v9840_v0, %v13222_v15  ;;  %v13231_v15 = vld [vmem:[#allocation144_spill] sm:$0xff] }
 0x3c9   :  { %v10611_v61 = vpop.permute.xlu1 %3311  ;;  %v10613_v48 = vpop.permute.xlu2 %3587  ;;  %13213 = vst [vmem:[#allocation209_spill] sm:$0xff] %v10630_v37  ;;  %v2787_v6 = vmul.f32 %v9837_v16, %v13221_v33 }
 0x3ca   :  { %v10615_v25 = vpop.permute.xlu0 %3309  ;;  %v10654_v39 = vadd.f32 %v10480_v45, %v2784_v13  ;;  %13219 = vst [vmem:[#allocation21_spill] sm:$0xff] %v10657_v50  ;;  %v2788_v45 = vmul.f32 %v9900_v31, %v13220_v35  ;;  %v10684_v1 = vadd.f32 %v10395_v17, %v2786_v41  ;;  %v13228_v17 = vld [vmem:[#allocation75_spill] sm:$0xff] }
 0x3cb   :  { %v10681_v8 = vadd.f32 %v10507_v63, %v2787_v6  ;;  %v13227_v63 = vld [vmem:[#allocation154_spill] sm:$0xff]  ;;  %v13230_v6 = vld [vmem:[#allocation88_spill] sm:$0xff] }
 0x3cc   :  { %13218 = vst [vmem:[#allocation210_spill] sm:$0xff] %v10654_v39  ;;  %v10678_v13 = vadd.f32 %v10505_v59, %v2788_v45  ;;  %v13226_v59 = vld [vmem:[#allocation93_spill] sm:$0xff]  ;;  %v13229_v45 = vld [vmem:[#allocation152_spill] sm:$0xff]  ;;  %v2789_v41 = vmul.f32 %v13231_v15, %v13230_v6  ;;  %v13239_v6 = vld [vmem:[#allocation91_spill] sm:$0xff] }
 0x3cd   :  { %13224 = vst [vmem:[#allocation9_spill] sm:$0xff] %v10681_v8  ;;  %v2791_v35 = vmul.f32 %v13227_v63, %v13226_v59  ;;  %v2790_v33 = vmul.f32 %v13229_v45, %v13228_v17  ;;  %v13238_v45 = vld [vmem:[#allocation158_spill] sm:$0xff] }
 0x3ce   :  { %13223 = vst [vmem:[#allocation34_spill] sm:$0xff] %v10678_v13  ;;  %v13240_v15 = vld [vmem:[#allocation130_spill] sm:$0xff] }
 0x3cf   :  { %3657 = vrot.lane.b32.xlu1 %v10627_v21, %s6411_s30  ;;  %3659 = vrot.lane.b32.xlu2 %v10624_v49, %s6411_s30  ;;  %13225 = vst [vmem:[#allocation102_spill] sm:$0xff] %v10684_v1 }
 0x3d0   :  { %3655 = vrot.lane.b32.xlu0 %v10630_v37, %s6411_s30 }
 0x3d1   :  { %v10638_v52 = vpop.permute.xlu1 %3573  ;;  %v10640_v2 = vpop.permute.xlu2 %3593 }
 0x3d2   :  { %v10642_v57 = vpop.permute.xlu0 %3571 }
 0x3d7   :  { %3663 = vrot.lane.b32.xlu1 %v10654_v39, %s6411_s30  ;;  %3665 = vrot.lane.b32.xlu2 %v10651_v36, %s6411_s30  ;;  %v10711_v39 = vadd.f32 %v10422_v24, %v2789_v41  ;;  %v13237_v24 = vld [vmem:[#allocation79_spill] sm:$0xff]  ;;  %v2792_v41 = vmul.f32 %v13240_v15, %v13239_v6  ;;  %v13248_v6 = vld [vmem:[#allocation94_spill] sm:$0xff] }
 0x3d8   :  { %3661 = vrot.lane.b32.xlu0 %v10657_v50, %s6411_s30  ;;  %v13249_v15 = vld [vmem:[#allocation151_spill] sm:$0xff] }
 0x3d9   :  { %v10665_v3 = vpop.permute.xlu1 %3579  ;;  %v10667_v44 = vpop.permute.xlu2 %3599  ;;  %13234 = vst [vmem:[#allocation27_spill] sm:$0xff] %v10711_v39 }
 0x3da   :  { %v10669_v29 = vpop.permute.xlu0 %3577 }
 0x3df   :  { %3669 = vrot.lane.b32.xlu1 %v10681_v8, %s6411_s30  ;;  %3671 = vrot.lane.b32.xlu2 %v10678_v13, %s6411_s30  ;;  %v10705_v8 = vadd.f32 %v10530_v51, %v2791_v35  ;;  %v10708_v13 = vadd.f32 %v10534_v20, %v2790_v33  ;;  %v13235_v20 = vld [vmem:[#allocation96_spill] sm:$0xff]  ;;  %v13236_v35 = vld [vmem:[#allocation162_spill] sm:$0xff]  ;;  %v2793_v33 = vmul.f32 %v13238_v45, %v13237_v24 }
 0x3e0   :  { %3667 = vrot.lane.b32.xlu0 %v10684_v1, %s6411_s30  ;;  %v2794_v17 = vmul.f32 %v13236_v35, %v13235_v20  ;;  %v13247_v45 = vld [vmem:[#allocation28_spill] sm:$0xff] }
 0x3e1   :  { %v10692_v16 = vpop.permute.xlu1 %3585  ;;  %v10694_v0 = vpop.permute.xlu2 %3605  ;;  %13232 = vst [vmem:[#allocation8_spill] sm:$0xff] %v10705_v8 }
 0x3e2   :  { %v10696_v31 = vpop.permute.xlu0 %3583  ;;  %13233 = vst [vmem:[#allocation212_spill] sm:$0xff] %v10708_v13 }
 0x3e7   :  { %3675 = vrot.lane.b32.xlu1 %v10708_v13, %s6411_s30  ;;  %3677 = vrot.lane.b32.xlu2 %v10705_v8, %s6411_s30  ;;  %v10732_v13 = vadd.f32 %v10557_v22, %v2794_v17  ;;  %v10735_v8 = vadd.f32 %v10561_v46, %v2793_v33  ;;  %v13244_v46 = vld [vmem:[#allocation99_spill] sm:$0xff]  ;;  %v13245_v17 = vld [vmem:[#allocation137_spill] sm:$0xff] }
 0x3e8   :  { %3673 = vrot.lane.b32.xlu0 %v10711_v39, %s6411_s30  ;;  %v10738_v39 = vadd.f32 %v10449_v34, %v2792_v41  ;;  %v2797_v24 = vmul.f32 %v13245_v17, %v13244_v46  ;;  %v13246_v34 = vld [vmem:[#allocation83_spill] sm:$0xff]  ;;  %v2795_v41 = vmul.f32 %v13249_v15, %v13248_v6  ;;  %v13257_v6 = vld [vmem:[#allocation97_spill] sm:$0xff] }
 0x3e9   :  { %v10719_v59 = vpop.permute.xlu1 %3591  ;;  %v10721_v63 = vpop.permute.xlu2 %3611  ;;  %13241 = vst [vmem:[#allocation135_spill] sm:$0xff] %v10732_v13  ;;  %v2796_v33 = vmul.f32 %v13247_v45, %v13246_v34  ;;  %v13256_v45 = vld [vmem:[#allocation172_spill] sm:$0xff]  ;;  %v13258_v15 = vld [vmem:[#allocation159_spill] sm:$0xff] }
 0x3ea   :  { %v10723_v51 = vpop.permute.xlu0 %3589  ;;  %13242 = vst [vmem:[#allocation10_spill] sm:$0xff] %v10735_v8 }
 0x3eb   :  { %13243 = vst [vmem:[#allocation129_spill] sm:$0xff] %v10738_v39 }
 0x3ef   :  { %3681 = vrot.lane.b32.xlu1 %v10735_v8, %s6411_s30  ;;  %3683 = vrot.lane.b32.xlu2 %v10732_v13, %s6411_s30  ;;  %v10759_v8 = vadd.f32 %v10584_v53, %v2797_v24  ;;  %v10762_v13 = vadd.f32 %v10588_v43, %v2796_v33  ;;  %v13253_v43 = vld [vmem:[#allocation101_spill] sm:$0xff] }
 0x3f0   :  { %3679 = vrot.lane.b32.xlu0 %v10738_v39, %s6411_s30  ;;  %v10765_v39 = vadd.f32 %v10476_v60, %v2795_v41  ;;  %v13254_v24 = vld [vmem:[#allocation145_spill] sm:$0xff]  ;;  %v13255_v60 = vld [vmem:[#allocation87_spill] sm:$0xff]  ;;  %v2798_v41 = vmul.f32 %v13258_v15, %v13257_v6 }
 0x3f1   :  { %v10746_v20 = vpop.permute.xlu1 %3597  ;;  %v10748_v35 = vpop.permute.xlu2 %3617  ;;  %13250 = vst [vmem:[#allocation20_spill] sm:$0xff] %v10759_v8  ;;  %v2800_v34 = vmul.f32 %v13254_v24, %v13253_v43  ;;  %v2799_v33 = vmul.f32 %v13256_v45, %v13255_v60 }
 0x3f2   :  { %v10750_v22 = vpop.permute.xlu0 %3595  ;;  %13251 = vst [vmem:[#allocation14_spill] sm:$0xff] %v10762_v13 }
 0x3f3   :  { %13252 = vst [vmem:[#allocation33_spill] sm:$0xff] %v10765_v39 }
 0x3f7   :  { %3687 = vrot.lane.b32.xlu1 %v10762_v13, %s6411_s30  ;;  %3689 = vrot.lane.b32.xlu2 %v10759_v8, %s6411_s30  ;;  %v10786_v13 = vadd.f32 %v10611_v61, %v2800_v34  ;;  %v10789_v8 = vadd.f32 %v10615_v25, %v2799_v33  ;;  %v3443_v61 = vld [vmem:[%s12174_s4 + $0x10] sm:$0xff]  ;;  %v3441_v34 = vld [vmem:[%s12174_s4] sm:$0xff] }
 0x3f8   :  { %3685 = vrot.lane.b32.xlu0 %v10765_v39, %s6411_s30  ;;  %v10792_v39 = vadd.f32 %v10503_v58, %v2798_v41  ;;  %v3442_v58 = vld [vmem:[%s12174_s4 + $0x8] sm:$0xff]  ;;  %v3763_v60 = vmul.f32 %v10638_v52, %v3443_v61  ;;  %v3761_v33 = vmul.f32 %v10532_v28, %v3441_v34  ;;  %v3445_v52 = vld [vmem:[%s12174_s4 + $0x20] sm:$0xff]  ;;  %v3444_v28 = vld [vmem:[%s12174_s4 + $0x18] sm:$0xff] }
 0x3f9   :  { %v10773_v46 = vpop.permute.xlu1 %3603  ;;  %v10775_v17 = vpop.permute.xlu2 %3623  ;;  %13259 = vst [vmem:[#allocation23_spill] sm:$0xff] %v10786_v13  ;;  %v3762_v45 = vmul.f32 %v10642_v57, %v3442_v58  ;;  %v3446_v41 = vld [vmem:[%s12174_s4 + $0x28] sm:$0xff]  ;;  %v3765_v58 = vmul.f32 %v10669_v29, %v3445_v52  ;;  %v3764_v34 = vmul.f32 %v10559_v32, %v3444_v28  ;;  %v3447_v32 = vld [vmem:[%s12174_s4 + $0x30] sm:$0xff] }
 0x3fa   :  { %v10777_v53 = vpop.permute.xlu0 %3601  ;;  %13260 = vst [vmem:[#allocation11_spill] sm:$0xff] %v10789_v8  ;;  %v3766_v61 = vmul.f32 %v10665_v3, %v3446_v41  ;;  %v3448_v3 = vld [vmem:[%s12174_s4 + $0x38] sm:$0xff]  ;;  %v3767_v28 = vmul.f32 %v10586_v26, %v3447_v32  ;;  %v3450_v26 = vld [vmem:[%s12174_s4 + $0x48] sm:$0xff] }
 0x3fb   :  { %13261 = vst [vmem:[#allocation22_spill] sm:$0xff] %v10792_v39  ;;  %v3768_v52 = vmul.f32 %v10696_v31, %v3448_v3  ;;  %v3770_v32 = vmul.f32 %v10613_v48, %v3450_v26  ;;  %v3453_v48 = vld [vmem:[%s12174_s4 + $0x60] sm:$0xff] }
 0x3fc   :  { %v3773_v26 = vmul.f32 %v10640_v2, %v3453_v48  ;;  %v3456_v2 = vld [vmem:[%s12174_s4 + $0x78] sm:$0xff] }
 0x3fd   :  { %v3776_v48 = vmul.f32 %v10667_v44, %v3456_v2  ;;  %v3459_v44 = vld [vmem:[%s12174_s4 + $0x90] sm:$0xff] }
 0x3fe   :  { %v3779_v2 = vmul.f32 %v10694_v0, %v3459_v44  ;;  %v3462_v0 = vld [vmem:[%s12174_s4 + $0xa8] sm:$0xff] }
 0x3ff   :  { %3693 = vrot.lane.b32.xlu1 %v10789_v8, %s6411_s30  ;;  %3695 = vrot.lane.b32.xlu2 %v10786_v13, %s6411_s30  ;;  %v3782_v44 = vmul.f32 %v10721_v63, %v3462_v0  ;;  %v3465_v63 = vld [vmem:[%s12174_s4 + $0xc0] sm:$0xff] }
 0x400   :  { %3691 = vrot.lane.b32.xlu0 %v10792_v39, %s6411_s30  ;;  %v3785_v0 = vmul.f32 %v10748_v35, %v3465_v63  ;;  %v3468_v35 = vld [vmem:[%s12174_s4 + $0xd8] sm:$0xff] }
 0x401   :  { %v10800_v43 = vpop.permute.xlu1 %3609  ;;  %v10802_v24 = vpop.permute.xlu2 %3629  ;;  %v3788_v63 = vmul.f32 %v10775_v17, %v3468_v35  ;;  %v3471_v17 = vld [vmem:[%s12174_s4 + $0xf0] sm:$0xff] }
 0x402   :  { %v10810_v25 = vpop.permute.xlu0 %3607  ;;  %v3791_v35 = vmul.f32 %v10802_v24, %v3471_v17  ;;  %v3474_v24 = vld [vmem:[%s12174_s4 + $0x108] sm:$0xff] }
 0x407   :  { %3891 = vrot.lane.b32.xlu1 %v3762_v45, %s6411_s30  ;;  %3893 = vrot.lane.b32.xlu2 %v3763_v60, %s6411_s30 }
 0x408   :  { %3889 = vrot.lane.b32.xlu0 %v3761_v33, %s6411_s30  ;;  %v3449_v33 = vld [vmem:[%s12174_s4 + $0x40] sm:$0xff] }
 0x409   :  { %v10821_v6 = vpop.permute.xlu1 %3615  ;;  %v10823_v15 = vpop.permute.xlu2 %3635  ;;  %v3769_v41 = vmul.f32 %v10692_v16, %v3449_v33  ;;  %v3451_v16 = vld [vmem:[%s12174_s4 + $0x50] sm:$0xff] }
 0x40a   :  { %v10831_v57 = vpop.permute.xlu0 %3613  ;;  %v3771_v3 = vmul.f32 %v10723_v51, %v3451_v16  ;;  %v3794_v17 = vmul.f32 %v10823_v15, %v3474_v24  ;;  %v3477_v15 = vld [vmem:[%s12174_s4 + $0x120] sm:$0xff] }
 0x40f   :  { %3897 = vrot.lane.b32.xlu1 %v3765_v58, %s6411_s30  ;;  %3899 = vrot.lane.b32.xlu2 %v3766_v61, %s6411_s30 }
 0x410   :  { %3895 = vrot.lane.b32.xlu0 %v3764_v34, %s6411_s30  ;;  %v3452_v34 = vld [vmem:[%s12174_s4 + $0x58] sm:$0xff] }
 0x411   :  { %v10842_v60 = vpop.permute.xlu1 %3621  ;;  %v10844_v45 = vpop.permute.xlu2 %3641  ;;  %v3772_v33 = vmul.f32 %v10719_v59, %v3452_v34  ;;  %v3454_v59 = vld [vmem:[%s12174_s4 + $0x68] sm:$0xff] }
 0x412   :  { %v10852_v29 = vpop.permute.xlu0 %3619  ;;  %v3774_v16 = vmul.f32 %v10750_v22, %v3454_v59  ;;  %v3797_v24 = vmul.f32 %v10844_v45, %v3477_v15  ;;  %v3480_v45 = vld [vmem:[%s12174_s4 + $0x138] sm:$0xff] }
 0x417   :  { %3903 = vrot.lane.b32.xlu1 %v3768_v52, %s6411_s30  ;;  %3905 = vrot.lane.b32.xlu2 %v3769_v41, %s6411_s30 }
 0x418   :  { %3901 = vrot.lane.b32.xlu0 %v3767_v28, %s6411_s30  ;;  %v3455_v28 = vld [vmem:[%s12174_s4 + $0x70] sm:$0xff] }
 0x419   :  { %v10863_v61 = vpop.permute.xlu1 %3627  ;;  %v10865_v58 = vpop.permute.xlu2 %3647  ;;  %v3775_v34 = vmul.f32 %v10746_v20, %v3455_v28  ;;  %v3457_v20 = vld [vmem:[%s12174_s4 + $0x80] sm:$0xff] }
 0x41a   :  { %v10873_v31 = vpop.permute.xlu0 %3625  ;;  %v3777_v59 = vmul.f32 %v10777_v53, %v3457_v20  ;;  %v3800_v15 = vmul.f32 %v10865_v58, %v3480_v45  ;;  %v3483_v58 = vld [vmem:[%s12174_s4 + $0x150] sm:$0xff] }
 0x41f   :  { %3909 = vrot.lane.b32.xlu1 %v3771_v3, %s6411_s30  ;;  %3911 = vrot.lane.b32.xlu2 %v3772_v33, %s6411_s30 }
 0x420   :  { %3907 = vrot.lane.b32.xlu0 %v3770_v32, %s6411_s30  ;;  %v3458_v32 = vld [vmem:[%s12174_s4 + $0x88] sm:$0xff] }
 0x421   :  { %v10884_v41 = vpop.permute.xlu1 %3633  ;;  %v10886_v52 = vpop.permute.xlu2 %3653  ;;  %v3778_v28 = vmul.f32 %v10773_v46, %v3458_v32  ;;  %v3460_v46 = vld [vmem:[%s12174_s4 + $0x98] sm:$0xff] }
 0x422   :  { %v10894_v51 = vpop.permute.xlu0 %3631  ;;  %v3780_v20 = vmul.f32 %v10810_v25, %v3460_v46  ;;  %v3803_v45 = vmul.f32 %v10886_v52, %v3483_v58  ;;  %v3486_v52 = vld [vmem:[%s12174_s4 + $0x168] sm:$0xff] }
 0x427   :  { %3915 = vrot.lane.b32.xlu1 %v3774_v16, %s6411_s30  ;;  %3917 = vrot.lane.b32.xlu2 %v3775_v34, %s6411_s30 }
 0x428   :  { %3913 = vrot.lane.b32.xlu0 %v3773_v26, %s6411_s30  ;;  %v3461_v26 = vld [vmem:[%s12174_s4 + $0xa0] sm:$0xff] }
 0x429   :  { %v10905_v33 = vpop.permute.xlu1 %3639  ;;  %v10907_v3 = vpop.permute.xlu2 %3659  ;;  %v3781_v32 = vmul.f32 %v10800_v43, %v3461_v26  ;;  %v3463_v43 = vld [vmem:[%s12174_s4 + $0xb0] sm:$0xff] }
 0x42a   :  { %v10915_v22 = vpop.permute.xlu0 %3637  ;;  %v3783_v46 = vmul.f32 %v10831_v57, %v3463_v43  ;;  %v3806_v58 = vmul.f32 %v10907_v3, %v3486_v52  ;;  %v3489_v3 = vld [vmem:[%s12174_s4 + $0x180] sm:$0xff] }
 0x42f   :  { %3921 = vrot.lane.b32.xlu1 %v3777_v59, %s6411_s30  ;;  %3923 = vrot.lane.b32.xlu2 %v3778_v28, %s6411_s30 }
 0x430   :  { %3919 = vrot.lane.b32.xlu0 %v3776_v48, %s6411_s30  ;;  %v3464_v48 = vld [vmem:[%s12174_s4 + $0xb8] sm:$0xff] }
 0x431   :  { %v10926_v34 = vpop.permute.xlu1 %3645  ;;  %v10928_v16 = vpop.permute.xlu2 %3665  ;;  %v3784_v26 = vmul.f32 %v10821_v6, %v3464_v48  ;;  %v3466_v6 = vld [vmem:[%s12174_s4 + $0xc8] sm:$0xff] }
 0x432   :  { %v10936_v53 = vpop.permute.xlu0 %3643  ;;  %v3786_v43 = vmul.f32 %v10852_v29, %v3466_v6  ;;  %v3809_v52 = vmul.f32 %v10928_v16, %v3489_v3  ;;  %v3492_v16 = vld [vmem:[%s12174_s4 + $0x198] sm:$0xff] }
 0x437   :  { %3927 = vrot.lane.b32.xlu1 %v3780_v20, %s6411_s30  ;;  %3929 = vrot.lane.b32.xlu2 %v3781_v32, %s6411_s30 }
 0x438   :  { %3925 = vrot.lane.b32.xlu0 %v3779_v2, %s6411_s30  ;;  %v3467_v2 = vld [vmem:[%s12174_s4 + $0xd0] sm:$0xff] }
 0x439   :  { %v10947_v28 = vpop.permute.xlu1 %3651  ;;  %v10949_v59 = vpop.permute.xlu2 %3671  ;;  %v3787_v48 = vmul.f32 %v10842_v60, %v3467_v2  ;;  %v3469_v60 = vld [vmem:[%s12174_s4 + $0xe0] sm:$0xff] }
 0x43a   :  { %v10957_v25 = vpop.permute.xlu0 %3649  ;;  %v3789_v6 = vmul.f32 %v10873_v31, %v3469_v60  ;;  %v3812_v3 = vmul.f32 %v10949_v59, %v3492_v16  ;;  %v3495_v59 = vld [vmem:[%s12174_s4 + $0x1b0] sm:$0xff] }
 0x43f   :  { %3933 = vrot.lane.b32.xlu1 %v3783_v46, %s6411_s30  ;;  %3935 = vrot.lane.b32.xlu2 %v3784_v26, %s6411_s30 }
 0x440   :  { %3931 = vrot.lane.b32.xlu0 %v3782_v44, %s6411_s30  ;;  %v3470_v44 = vld [vmem:[%s12174_s4 + $0xe8] sm:$0xff] }
 0x441   :  { %v10968_v32 = vpop.permute.xlu1 %3657  ;;  %v10970_v20 = vpop.permute.xlu2 %3677  ;;  %v3790_v2 = vmul.f32 %v10863_v61, %v3470_v44  ;;  %v3472_v61 = vld [vmem:[%s12174_s4 + $0xf8] sm:$0xff] }
 0x442   :  { %v10978_v57 = vpop.permute.xlu0 %3655  ;;  %v3792_v60 = vmul.f32 %v10894_v51, %v3472_v61  ;;  %v3815_v16 = vmul.f32 %v10970_v20, %v3495_v59  ;;  %v3498_v20 = vld [vmem:[%s12174_s4 + $0x1c8] sm:$0xff] }
 0x447   :  { %3939 = vrot.lane.b32.xlu1 %v3786_v43, %s6411_s30  ;;  %3941 = vrot.lane.b32.xlu2 %v3787_v48, %s6411_s30 }
 0x448   :  { %3937 = vrot.lane.b32.xlu0 %v3785_v0, %s6411_s30  ;;  %v3473_v0 = vld [vmem:[%s12174_s4 + $0x100] sm:$0xff] }
 0x449   :  { %v10989_v26 = vpop.permute.xlu1 %3663  ;;  %v10991_v46 = vpop.permute.xlu2 %3683  ;;  %v3793_v44 = vmul.f32 %v10884_v41, %v3473_v0  ;;  %v3475_v41 = vld [vmem:[%s12174_s4 + $0x110] sm:$0xff] }
 0x44a   :  { %v10999_v29 = vpop.permute.xlu0 %3661  ;;  %v3795_v61 = vmul.f32 %v10915_v22, %v3475_v41  ;;  %v3818_v59 = vmul.f32 %v10991_v46, %v3498_v20  ;;  %v3501_v46 = vld [vmem:[%s12174_s4 + $0x1e0] sm:$0xff] }
 0x44f   :  { %3945 = vrot.lane.b32.xlu1 %v3789_v6, %s6411_s30  ;;  %3947 = vrot.lane.b32.xlu2 %v3790_v2, %s6411_s30 }
 0x450   :  { %3943 = vrot.lane.b32.xlu0 %v3788_v63, %s6411_s30  ;;  %v3476_v63 = vld [vmem:[%s12174_s4 + $0x118] sm:$0xff] }
 0x451   :  { %v11010_v48 = vpop.permute.xlu1 %3669  ;;  %v11012_v43 = vpop.permute.xlu2 %3689  ;;  %v3796_v0 = vmul.f32 %v10905_v33, %v3476_v63  ;;  %v3478_v33 = vld [vmem:[%s12174_s4 + $0x128] sm:$0xff] }
 0x452   :  { %v11020_v31 = vpop.permute.xlu0 %3667  ;;  %v3798_v41 = vmul.f32 %v10936_v53, %v3478_v33  ;;  %v3821_v20 = vmul.f32 %v11012_v43, %v3501_v46  ;;  %v3504_v43 = vld [vmem:[%s12174_s4 + $0x1f8] sm:$0xff]  ;;  %v13268_v46 = vld [vmem:[#allocation170_spill] sm:$0xff] }
 0x457   :  { %3951 = vrot.lane.b32.xlu1 %v3792_v60, %s6411_s30  ;;  %3953 = vrot.lane.b32.xlu2 %v3793_v44, %s6411_s30 }
 0x458   :  { %3949 = vrot.lane.b32.xlu0 %v3791_v35, %s6411_s30  ;;  %v3479_v35 = vld [vmem:[%s12174_s4 + $0x130] sm:$0xff] }
 0x459   :  { %v11031_v2 = vpop.permute.xlu1 %3675  ;;  %v11033_v6 = vpop.permute.xlu2 %3695  ;;  %v3799_v63 = vmul.f32 %v10926_v34, %v3479_v35  ;;  %v3481_v34 = vld [vmem:[%s12174_s4 + $0x140] sm:$0xff] }
 0x45a   :  { %v11041_v51 = vpop.permute.xlu0 %3673  ;;  %v3801_v33 = vmul.f32 %v10957_v25, %v3481_v34 }
 0x45f   :  { %3957 = vrot.lane.b32.xlu1 %v3795_v61, %s6411_s30  ;;  %3959 = vrot.lane.b32.xlu2 %v3796_v0, %s6411_s30 }
 0x460   :  { %3955 = vrot.lane.b32.xlu0 %v3794_v17, %s6411_s30  ;;  %v3482_v17 = vld [vmem:[%s12174_s4 + $0x148] sm:$0xff] }
 0x461   :  { %v11052_v44 = vpop.permute.xlu1 %3681  ;;  %v11054_v60 = vpop.permute.xlu2 %3893  ;;  %v3802_v35 = vmul.f32 %v10947_v28, %v3482_v17  ;;  %v3484_v28 = vld [vmem:[%s12174_s4 + $0x158] sm:$0xff] }
 0x462   :  { %v11062_v22 = vpop.permute.xlu0 %3679  ;;  %v3804_v34 = vmul.f32 %v10978_v57, %v3484_v28 }
 0x467   :  { %3963 = vrot.lane.b32.xlu1 %v3798_v41, %s6411_s30  ;;  %3965 = vrot.lane.b32.xlu2 %v3799_v63, %s6411_s30 }
 0x468   :  { %3961 = vrot.lane.b32.xlu0 %v3797_v24, %s6411_s30  ;;  %v3485_v24 = vld [vmem:[%s12174_s4 + $0x160] sm:$0xff] }
 0x469   :  { %v11073_v0 = vpop.permute.xlu1 %3687  ;;  %v11075_v61 = vpop.permute.xlu2 %3899  ;;  %v3805_v17 = vmul.f32 %v10968_v32, %v3485_v24  ;;  %v3487_v32 = vld [vmem:[%s12174_s4 + $0x170] sm:$0xff] }
 0x46a   :  { %v11083_v53 = vpop.permute.xlu0 %3685  ;;  %v3807_v28 = vmul.f32 %v10999_v29, %v3487_v32 }
 0x46f   :  { %3969 = vrot.lane.b32.xlu1 %v3801_v33, %s6411_s30  ;;  %3971 = vrot.lane.b32.xlu2 %v3802_v35, %s6411_s30 }
 0x470   :  { %3967 = vrot.lane.b32.xlu0 %v3800_v15, %s6411_s30  ;;  %v3488_v15 = vld [vmem:[%s12174_s4 + $0x178] sm:$0xff] }
 0x471   :  { %v11094_v63 = vpop.permute.xlu1 %3693  ;;  %v11096_v41 = vpop.permute.xlu2 %3905  ;;  %v3808_v24 = vmul.f32 %v10989_v26, %v3488_v15  ;;  %v3490_v26 = vld [vmem:[%s12174_s4 + $0x188] sm:$0xff] }
 0x472   :  { %v11104_v25 = vpop.permute.xlu0 %3691  ;;  %v3810_v32 = vmul.f32 %v11020_v31, %v3490_v26 }
 0x477   :  { %3975 = vrot.lane.b32.xlu1 %v3804_v34, %s6411_s30  ;;  %3977 = vrot.lane.b32.xlu2 %v3805_v17, %s6411_s30 }
 0x478   :  { %3973 = vrot.lane.b32.xlu0 %v3803_v45, %s6411_s30  ;;  %v3491_v45 = vld [vmem:[%s12174_s4 + $0x190] sm:$0xff] }
 0x479   :  { %v11115_v35 = vpop.permute.xlu1 %3891  ;;  %v11117_v33 = vpop.permute.xlu2 %3911  ;;  %v3811_v15 = vmul.f32 %v11010_v48, %v3491_v45  ;;  %v3493_v48 = vld [vmem:[%s12174_s4 + $0x1a0] sm:$0xff] }
 0x47a   :  { %v11125_v57 = vpop.permute.xlu0 %3889  ;;  %v3813_v26 = vmul.f32 %v11041_v51, %v3493_v48 }
 0x47f   :  { %3981 = vrot.lane.b32.xlu1 %v3807_v28, %s6411_s30  ;;  %3983 = vrot.lane.b32.xlu2 %v3808_v24, %s6411_s30 }
 0x480   :  { %3979 = vrot.lane.b32.xlu0 %v3806_v58, %s6411_s30  ;;  %v3494_v58 = vld [vmem:[%s12174_s4 + $0x1a8] sm:$0xff] }
 0x481   :  { %v11136_v17 = vpop.permute.xlu1 %3897  ;;  %v11138_v34 = vpop.permute.xlu2 %3917  ;;  %v3814_v45 = vmul.f32 %v11031_v2, %v3494_v58  ;;  %v3496_v2 = vld [vmem:[%s12174_s4 + $0x1b8] sm:$0xff] }
 0x482   :  { %v11146_v29 = vpop.permute.xlu0 %3895  ;;  %v3816_v48 = vmul.f32 %v11062_v22, %v3496_v2 }
 0x487   :  { %3987 = vrot.lane.b32.xlu1 %v3810_v32, %s6411_s30  ;;  %3989 = vrot.lane.b32.xlu2 %v3811_v15, %s6411_s30 }
 0x488   :  { %3985 = vrot.lane.b32.xlu0 %v3809_v52, %s6411_s30  ;;  %v3497_v52 = vld [vmem:[%s12174_s4 + $0x1c0] sm:$0xff] }
 0x489   :  { %v11157_v24 = vpop.permute.xlu1 %3903  ;;  %v11159_v28 = vpop.permute.xlu2 %3923  ;;  %v3817_v58 = vmul.f32 %v11052_v44, %v3497_v52  ;;  %v3499_v44 = vld [vmem:[%s12174_s4 + $0x1d0] sm:$0xff] }
 0x48a   :  { %v11167_v31 = vpop.permute.xlu0 %3901  ;;  %v3819_v2 = vmul.f32 %v11083_v53, %v3499_v44 }
 0x48f   :  { %3993 = vrot.lane.b32.xlu1 %v3813_v26, %s6411_s30  ;;  %3995 = vrot.lane.b32.xlu2 %v3814_v45, %s6411_s30 }
 0x490   :  { %3991 = vrot.lane.b32.xlu0 %v3812_v3, %s6411_s30  ;;  %v3500_v3 = vld [vmem:[%s12174_s4 + $0x1d8] sm:$0xff] }
 0x491   :  { %v11178_v15 = vpop.permute.xlu1 %3909  ;;  %v11180_v32 = vpop.permute.xlu2 %3929  ;;  %v3820_v52 = vmul.f32 %v11073_v0, %v3500_v3  ;;  %v3502_v0 = vld [vmem:[%s12174_s4 + $0x1e8] sm:$0xff] }
 0x492   :  { %v11188_v51 = vpop.permute.xlu0 %3907  ;;  %v3822_v44 = vmul.f32 %v11104_v25, %v3502_v0  ;;  %v13267_v0 = vld [vmem:[#allocation36_spill] sm:$0xff] }
 0x497   :  { %3999 = vrot.lane.b32.xlu1 %v3816_v48, %s6411_s30  ;;  %4001 = vrot.lane.b32.xlu2 %v3817_v58, %s6411_s30 }
 0x498   :  { %3997 = vrot.lane.b32.xlu0 %v3815_v16, %s6411_s30  ;;  %v3503_v16 = vld [vmem:[%s12174_s4 + $0x1f0] sm:$0xff]  ;;  %s6413_s4 = smov [#allocation5]  }
 0x499   :  { %v11199_v45 = vpop.permute.xlu1 %3915  ;;  %v11201_v26 = vpop.permute.xlu2 %3935  ;;  %v3823_v3 = vmul.f32 %v11094_v63, %v3503_v16  ;;  %v3824_v16 = vmul.f32 %v11033_v6, %v3504_v43 }
 0x49a   :  { %13262 = vst [vmem:[#allocation26_spill] sm:$0xff] %v11201_v26  ;;  %v11209_v22 = vpop.permute.xlu0 %3913 }
 0x49f   :  { %4005 = vrot.lane.b32.xlu1 %v3819_v2, %s6411_s30  ;;  %4007 = vrot.lane.b32.xlu2 %v3820_v52, %s6411_s30  ;;  %v13264_v52 = vld [vmem:[#allocation105_spill] sm:$0xff]  ;;  %v13265_v2 = vld [vmem:[#allocation179_spill] sm:$0xff] }
 0x4a0   :  { %4003 = vrot.lane.b32.xlu0 %v3818_v59, %s6411_s30  ;;  %6016 = vtanh.f32 %v13264_v52 }
 0x4a1   :  { %v11220_v58 = vpop.permute.xlu1 %3921  ;;  %v11222_v48 = vpop.permute.xlu2 %3941  ;;  %6018 = vtanh.f32 %v13265_v2 }
 0x4a2   :  { %13263 = vst [vmem:[#allocation143_spill] sm:$0xff] %v11222_v48  ;;  %v11230_v53 = vpop.permute.xlu0 %3919  ;;  %6020 = vtanh.f32 %v13267_v0  ;;  %v13272_v0 = vld [vmem:[#allocation153_spill] sm:$0xff] }
 0x4a3   :  { %6022 = vtanh.f32 %v13268_v46 }
 0x4a6   :  { %v6017_v63 = vpop.eup %6016 }
 0x4a7   :  { %4011 = vrot.lane.b32.xlu1 %v3822_v44, %s6411_s30  ;;  %4013 = vrot.lane.b32.xlu2 %v3823_v3, %s6411_s30  ;;  %v6019_v25 = vpop.eup %6018  ;;  %v13269_v3 = vld [vmem:[#allocation168_spill] sm:$0xff] }
 0x4a8   :  { %4009 = vrot.lane.b32.xlu0 %v3821_v20, %s6411_s30  ;;  %6024 = vtanh.f32 %v13269_v3  ;;  %v6021_v2 = vpop.eup %6020 }
 0x4a9   :  { %v11243_v59 = vpop.permute.xlu1 %3927  ;;  %v11245_v48 = vpop.permute.xlu2 %3947  ;;  %6026 = vtanh.f32 %v13272_v0  ;;  %v13278_v0 = vld [vmem:[#allocation118_spill] sm:$0xff] }
 0x4aa   :  { %13266 = vst [vmem:[#allocation39_spill] sm:$0xff] %v11245_v48  ;;  %v11247_v26 = vpop.permute.xlu0 %3925  ;;  %v6023_v6 = vpop.eup %6022 }
 0x4ae   :  { %v6025_v43 = vpop.eup %6024 }
 0x4af   :  { %4531 = vrot.lane.b32.xlu2 %v6017_v63, %s6410_s3  ;;  %4529 = vrot.lane.b32.xlu1 %v6019_v25, %s6410_s3  ;;  %v13273_v63 = vld [vmem:[#allocation112_spill] sm:$0xff]  ;;  %v13274_v25 = vld [vmem:[#allocation177_spill] sm:$0xff] }
 0x4b0   :  { %4015 = vrot.lane.b32.xlu0 %v3824_v16, %s6411_s30  ;;  %6028 = vtanh.f32 %v13273_v63 }
 0x4b1   :  { %v11259_v44 = vpop.permute.xlu1 %3933  ;;  %v11261_v20 = vpop.permute.xlu2 %3953  ;;  %6030 = vtanh.f32 %v13274_v25 }
 0x4b2   :  { %13270 = vst [vmem:[#allocation40_spill] sm:$0xff] %v11259_v44  ;;  %v11263_v52 = vpop.permute.xlu0 %3931  ;;  %6032 = vtanh.f32 %v13278_v0 }
 0x4b3   :  { %13271 = vst [vmem:[#allocation15_spill] sm:$0xff] %v11261_v20  ;;  %v6027_v20 = vpop.eup %6026 }
 0x4b6   :  { %v6029_v48 = vpop.eup %6028 }
 0x4b7   :  { %4537 = vrot.lane.b32.xlu2 %v6021_v2, %s6410_s3  ;;  %4535 = vrot.lane.b32.xlu1 %v6023_v6, %s6410_s3  ;;  %v6031_v44 = vpop.eup %6030  ;;  %v13279_v2 = vld [vmem:[#allocation41_spill] sm:$0xff]  ;;  %v13280_v6 = vld [vmem:[#allocation186_spill] sm:$0xff] }
 0x4b8   :  { %4533 = vrot.lane.b32.xlu0 %v6025_v43, %s6410_s3  ;;  %6034 = vtanh.f32 %v13279_v2 }
 0x4b9   :  { %v11271_v16 = vpop.permute.xlu1 %3939  ;;  %v11273_v3 = vpop.permute.xlu2 %3959  ;;  %6036 = vtanh.f32 %v13280_v6 }
 0x4ba   :  { %13275 = vst [vmem:[#allocation107_spill] sm:$0xff] %v11271_v16  ;;  %v11275_v46 = vpop.permute.xlu0 %3937  ;;  %6038 = vtanh.f32 %v10360_v42 }
 0x4bb   :  { %13276 = vst [vmem:[#allocation32_spill] sm:$0xff] %v11273_v3  ;;  %v6033_v3 = vpop.eup %6032 }
 0x4bc   :  { %13277 = vst [vmem:[#allocation207_spill] sm:$0xff] %v11275_v46 }
 0x4be   :  { %v6035_v16 = vpop.eup %6034 }
 0x4bf   :  { %4543 = vrot.lane.b32.xlu2 %v6027_v20, %s6410_s3  ;;  %4541 = vrot.lane.b32.xlu1 %v6029_v48, %s6410_s3  ;;  %v6037_v46 = vpop.eup %6036  ;;  %v13283_v48 = vld [vmem:[#allocation108_spill] sm:$0xff] }
 0x4c0   :  { %4539 = vrot.lane.b32.xlu0 %v6031_v44, %s6410_s3  ;;  %6040 = vtanh.f32 %v13283_v48  ;;  %v13284_v44 = vld [vmem:[#allocation167_spill] sm:$0xff]  ;;  %v6039_v2 = vpop.eup %6038 }
 0x4c1   :  { %v11283_v43 = vpop.permute.xlu1 %3945  ;;  %v11285_v25 = vpop.permute.xlu2 %3965  ;;  %6042 = vtanh.f32 %v13284_v44 }
 0x4c2   :  { %13281 = vst [vmem:[#allocation45_spill] sm:$0xff] %v11283_v43  ;;  %v11287_v63 = vpop.permute.xlu0 %3943  ;;  %6044 = vtanh.f32 %v10387_v27 }
 0x4c3   :  { %13282 = vst [vmem:[#allocation19_spill] sm:$0xff] %v11285_v25  ;;  %6046 = vtanh.f32 %v10354_v55 }
 0x4c6   :  { %v6041_v25 = vpop.eup %6040 }
 0x4c7   :  { %4549 = vrot.lane.b32.xlu2 %v6033_v3, %s6410_s3  ;;  %4547 = vrot.lane.b32.xlu1 %v6035_v16, %s6410_s3  ;;  %v6043_v43 = vpop.eup %6042 }
 0x4c8   :  { %4545 = vrot.lane.b32.xlu0 %v6037_v46, %s6410_s3  ;;  %v13286_v46 = vld [vmem:[#allocation182_spill] sm:$0xff]  ;;  %v6045_v44 = vpop.eup %6044 }
 0x4c9   :  { %v11295_v20 = vpop.permute.xlu1 %3951  ;;  %v11297_v0 = vpop.permute.xlu2 %3971  ;;  %6048 = vtanh.f32 %v13286_v46 }
 0x4ca   :  { %13285 = vst [vmem:[#allocation38_spill] sm:$0xff] %v11297_v0  ;;  %v11299_v6 = vpop.permute.xlu0 %3949  ;;  %v6047_v48 = vpop.eup %6046  ;;  %6050 = vtanh.f32 %v10414_v14 }
 0x4cb   :  { %6052 = vtanh.f32 %v10381_v30 }
 0x4cf   :  { %4555 = vrot.lane.b32.xlu2 %v6039_v2, %s6410_s3  ;;  %4553 = vrot.lane.b32.xlu1 %v6041_v25, %s6410_s3  ;;  %v6049_v0 = vpop.eup %6048  ;;  %v13289_v25 = vld [vmem:[#allocation184_spill] sm:$0xff] }
 0x4d0   :  { %4551 = vrot.lane.b32.xlu0 %v6043_v43, %s6410_s3  ;;  %6054 = vtanh.f32 %v13289_v25  ;;  %v6051_v46 = vpop.eup %6050 }
 0x4d1   :  { %v11307_v3 = vpop.permute.xlu1 %3957  ;;  %v11309_v16 = vpop.permute.xlu2 %3977  ;;  %6056 = vtanh.f32 %v10441_v62 }
 0x4d2   :  { %13287 = vst [vmem:[#allocation18_spill] sm:$0xff] %v11307_v3  ;;  %v11311_v42 = vpop.permute.xlu0 %3955  ;;  %v6053_v55 = vpop.eup %6052  ;;  %6058 = vtanh.f32 %v10408_v4 }
 0x4d3   :  { %13288 = vst [vmem:[#allocation50_spill] sm:$0xff] %v11309_v16 }
 0x4d6   :  { %v6055_v16 = vpop.eup %6054 }
 0x4d7   :  { %4561 = vrot.lane.b32.xlu2 %v6045_v44, %s6410_s3  ;;  %4559 = vrot.lane.b32.xlu1 %v6047_v48, %s6410_s3  ;;  %v6057_v25 = vpop.eup %6056 }
 0x4d8   :  { %4557 = vrot.lane.b32.xlu0 %v6049_v0, %s6410_s3  ;;  %v13293_v0 = vld [vmem:[#allocation128_spill] sm:$0xff]  ;;  %v6059_v30 = vpop.eup %6058 }
 0x4d9   :  { %v11319_v2 = vpop.permute.xlu1 %3963  ;;  %v11321_v43 = vpop.permute.xlu2 %3983  ;;  %6060 = vtanh.f32 %v13293_v0 }
 0x4da   :  { %13290 = vst [vmem:[#allocation25_spill] sm:$0xff] %v11319_v2  ;;  %v11323_v27 = vpop.permute.xlu0 %3961  ;;  %6062 = vtanh.f32 %v10468_v7 }
 0x4db   :  { %13291 = vst [vmem:[#allocation44_spill] sm:$0xff] %v11321_v43  ;;  %6064 = vtanh.f32 %v10435_v40 }
 0x4dc   :  { %13292 = vst [vmem:[#allocation160_spill] sm:$0xff] %v11323_v27 }
 0x4df   :  { %4567 = vrot.lane.b32.xlu2 %v6051_v46, %s6410_s3  ;;  %4565 = vrot.lane.b32.xlu1 %v6053_v55, %s6410_s3  ;;  %v6061_v43 = vpop.eup %6060  ;;  %v13297_v55 = vld [vmem:[#allocation191_spill] sm:$0xff] }
 0x4e0   :  { %4563 = vrot.lane.b32.xlu0 %v6055_v16, %s6410_s3  ;;  %6066 = vtanh.f32 %v13297_v55  ;;  %v6063_v0 = vpop.eup %6062 }
 0x4e1   :  { %v11331_v48 = vpop.permute.xlu1 %3969  ;;  %v11333_v44 = vpop.permute.xlu2 %3989  ;;  %6068 = vtanh.f32 %v10495_v12 }
 0x4e2   :  { %13294 = vst [vmem:[#allocation54_spill] sm:$0xff] %v11331_v48  ;;  %v11335_v14 = vpop.permute.xlu0 %3967  ;;  %v6065_v4 = vpop.eup %6064  ;;  %6070 = vtanh.f32 %v10462_v10  ;;  %v13324_v48 = vld [vmem:[#allocation33_spill] sm:$0xff] }
 0x4e3   :  { %13295 = vst [vmem:[#allocation31_spill] sm:$0xff] %v11333_v44  ;;  %6072 = vtanh.f32 %v10465_v54 }
 0x4e4   :  { %13296 = vst [vmem:[#allocation48_spill] sm:$0xff] %v11335_v14  ;;  %6074 = vtanh.f32 %v10522_v18 }
 0x4e5   :  { %6076 = vtanh.f32 %v10489_v11 }
 0x4e6   :  { %v6067_v44 = vpop.eup %6066  ;;  %6078 = vtanh.f32 %v10492_v9 }
 0x4e7   :  { %4573 = vrot.lane.b32.xlu2 %v6057_v25, %s6410_s3  ;;  %4571 = vrot.lane.b32.xlu1 %v6059_v30, %s6410_s3  ;;  %v6069_v7 = vpop.eup %6068  ;;  %6080 = vtanh.f32 %v10549_v23 }
 0x4e8   :  { %4569 = vrot.lane.b32.xlu0 %v6061_v43, %s6410_s3  ;;  %v6071_v55 = vpop.eup %6070  ;;  %6082 = vtanh.f32 %v10516_v47 }
 0x4e9   :  { %v11343_v46 = vpop.permute.xlu1 %3975  ;;  %v11345_v16 = vpop.permute.xlu2 %3995 }
 0x4ea   :  { %13298 = vst [vmem:[#allocation115_spill] sm:$0xff] %v11343_v46  ;;  %v11347_v62 = vpop.permute.xlu0 %3973  ;;  %v6073_v40 = vpop.eup %6072 }
 0x4eb   :  { %13299 = vst [vmem:[#allocation58_spill] sm:$0xff] %v11345_v16  ;;  %v6075_v12 = vpop.eup %6074 }
 0x4ec   :  { %13300 = vst [vmem:[#allocation37_spill] sm:$0xff] %v11347_v62  ;;  %v6077_v54 = vpop.eup %6076 }
 0x4ed   :  { %v6079_v10 = vpop.eup %6078 }
 0x4ee   :  { %v6081_v9 = vpop.eup %6080 }
 0x4ef   :  { %4579 = vrot.lane.b32.xlu2 %v6063_v0, %s6410_s3  ;;  %4577 = vrot.lane.b32.xlu1 %v6065_v4, %s6410_s3  ;;  %v6083_v11 = vpop.eup %6082 }
 0x4f0   :  { %4575 = vrot.lane.b32.xlu0 %v6067_v44, %s6410_s3 }
 0x4f1   :  { %v11355_v30 = vpop.permute.xlu1 %3981  ;;  %v11357_v25 = vpop.permute.xlu2 %4001 }
 0x4f2   :  { %13301 = vst [vmem:[#allocation52_spill] sm:$0xff] %v11357_v25  ;;  %v11359_v43 = vpop.permute.xlu0 %3979 }
 0x4f3   :  { %13302 = vst [vmem:[#allocation196_spill] sm:$0xff] %v11359_v43  ;;  %v13323_v43 = vld [vmem:[#allocation49_spill] sm:$0xff] }
 0x4f7   :  { %4585 = vrot.lane.b32.xlu2 %v6069_v7, %s6410_s3  ;;  %4583 = vrot.lane.b32.xlu1 %v6071_v55, %s6410_s3 }
 0x4f8   :  { %4581 = vrot.lane.b32.xlu0 %v6073_v40, %s6410_s3  ;;  %v13305_v40 = vld [vmem:[#allocation150_spill] sm:$0xff] }
 0x4f9   :  { %v11367_v4 = vpop.permute.xlu1 %3987  ;;  %v11369_v0 = vpop.permute.xlu2 %4007  ;;  %6084 = vtanh.f32 %v13305_v40 }
 0x4fa   :  { %13303 = vst [vmem:[#allocation62_spill] sm:$0xff] %v11369_v0  ;;  %v11371_v44 = vpop.permute.xlu0 %3985  ;;  %6086 = vtanh.f32 %v10576_v56 }
 0x4fb   :  { %13304 = vst [vmem:[#allocation43_spill] sm:$0xff] %v11371_v44 }
 0x4ff   :  { %4591 = vrot.lane.b32.xlu2 %v6075_v12, %s6410_s3  ;;  %4589 = vrot.lane.b32.xlu1 %v6077_v54, %s6410_s3  ;;  %v6085_v0 = vpop.eup %6084  ;;  %v13308_v54 = vld [vmem:[#allocation189_spill] sm:$0xff] }
 0x500   :  { %4587 = vrot.lane.b32.xlu0 %v6079_v10, %s6410_s3  ;;  %6088 = vtanh.f32 %v13308_v54  ;;  %v13309_v10 = vld [vmem:[#allocation114_spill] sm:$0xff]  ;;  %v6087_v47 = vpop.eup %6086 }
 0x501   :  { %v11379_v7 = vpop.permute.xlu1 %3993  ;;  %v11381_v55 = vpop.permute.xlu2 %4013  ;;  %6090 = vtanh.f32 %v13309_v10 }
 0x502   :  { %13306 = vst [vmem:[#allocation56_spill] sm:$0xff] %v11381_v55  ;;  %v11383_v18 = vpop.permute.xlu0 %3991  ;;  %6092 = vtanh.f32 %v10603_v38 }
 0x503   :  { %13307 = vst [vmem:[#allocation66_spill] sm:$0xff] %v11383_v18  ;;  %6094 = vtanh.f32 %v10570_v19 }
 0x506   :  { %v6089_v55 = vpop.eup %6088 }
 0x507   :  { %4597 = vrot.lane.b32.xlu2 %v6081_v9, %s6410_s3  ;;  %4595 = vrot.lane.b32.xlu1 %v6083_v11, %s6410_s3  ;;  %v6091_v25 = vpop.eup %6090  ;;  %v13311_v11 = vld [vmem:[#allocation125_spill] sm:$0xff] }
 0x508   :  { %4593 = vrot.lane.b32.xlu0 %v6085_v0, %s6410_s3  ;;  %6096 = vtanh.f32 %v13311_v11  ;;  %v6093_v10 = vpop.eup %6092 }
 0x509   :  { %v11391_v12 = vpop.permute.xlu1 %3999  ;;  %v11393_v23 = vpop.permute.xlu2 %4531  ;;  %6098 = vtanh.f32 %v10630_v37 }
 0x50a   :  { %v11395_v40 = vpop.permute.xlu0 %3997  ;;  %v6095_v54 = vpop.eup %6094  ;;  %6100 = vtanh.f32 %v10597_v5 }
 0x50b   :  { %13310 = vst [vmem:[#allocation47_spill] sm:$0xff] %v11395_v40 }
 0x50e   :  { %v6097_v40 = vpop.eup %6096 }
 0x50f   :  { %4603 = vrot.lane.b32.xlu2 %v6087_v47, %s6410_s3  ;;  %4601 = vrot.lane.b32.xlu1 %v6089_v55, %s6410_s3  ;;  %v13313_v47 = vld [vmem:[#allocation211_spill] sm:$0xff]  ;;  %v6099_v11 = vpop.eup %6098 }
 0x510   :  { %4599 = vrot.lane.b32.xlu0 %v6091_v25, %s6410_s3  ;;  %6102 = vtanh.f32 %v13313_v47  ;;  %v6101_v19 = vpop.eup %6100 }
 0x511   :  { %v11403_v9 = vpop.permute.xlu1 %4005  ;;  %v11405_v0 = vpop.permute.xlu2 %4537  ;;  %6104 = vtanh.f32 %v10657_v50 }
 0x512   :  { %v11407_v56 = vpop.permute.xlu0 %4003  ;;  %6106 = vtanh.f32 %v10624_v49 }
 0x513   :  { %13312 = vst [vmem:[#allocation60_spill] sm:$0xff] %v11407_v56  ;;  %6108 = vtanh.f32 %v10627_v21 }
 0x514   :  { %6110 = vtanh.f32 %v10684_v1  ;;  %v13317_v1 = vld [vmem:[#allocation27_spill] sm:$0xff] }
 0x515   :  { %6112 = vtanh.f32 %v10651_v36 }
 0x516   :  { %v6103_v56 = vpop.eup %6102 }
 0x517   :  { %4609 = vrot.lane.b32.xlu2 %v6093_v10, %s6410_s3  ;;  %4607 = vrot.lane.b32.xlu1 %v6095_v54, %s6410_s3  ;;  %v6105_v37 = vpop.eup %6104 }
 0x518   :  { %4605 = vrot.lane.b32.xlu0 %v6097_v40, %s6410_s3  ;;  %v6107_v47 = vpop.eup %6106 }
 0x519   :  { %v11415_v25 = vpop.permute.xlu1 %4011  ;;  %v11417_v55 = vpop.permute.xlu2 %4543 }
 0x51a   :  { %v11419_v38 = vpop.permute.xlu0 %4009  ;;  %v6109_v5 = vpop.eup %6108 }
 0x51b   :  { %13314 = vst [vmem:[#allocation70_spill] sm:$0xff] %v11419_v38  ;;  %v6111_v21 = vpop.eup %6110 }
 0x51c   :  { %v6113_v49 = vpop.eup %6112 }
 0x51f   :  { %4615 = vrot.lane.b32.xlu2 %v6099_v11, %s6410_s3  ;;  %4613 = vrot.lane.b32.xlu1 %v6101_v19, %s6410_s3 }
 0x520   :  { %4611 = vrot.lane.b32.xlu0 %v6103_v56, %s6410_s3  ;;  %v13316_v56 = vld [vmem:[#allocation210_spill] sm:$0xff] }
 0x521   :  { %v11427_v40 = vpop.permute.xlu2 %4549  ;;  %v11429_v54 = vpop.permute.xlu1 %4529  ;;  %6114 = vtanh.f32 %v13316_v56 }
 0x522   :  { %v11431_v10 = vpop.permute.xlu0 %4015  ;;  %6116 = vtanh.f32 %v13317_v1  ;;  %v13320_v1 = vld [vmem:[#allocation129_spill] sm:$0xff] }
 0x523   :  { %13315 = vst [vmem:[#allocation51_spill] sm:$0xff] %v11431_v10 }
 0x527   :  { %4621 = vrot.lane.b32.xlu2 %v6105_v37, %s6410_s3  ;;  %4619 = vrot.lane.b32.xlu1 %v6107_v47, %s6410_s3  ;;  %v6115_v10 = vpop.eup %6114  ;;  %v13318_v37 = vld [vmem:[#allocation34_spill] sm:$0xff] }
 0x528   :  { %4617 = vrot.lane.b32.xlu0 %v6109_v5, %s6410_s3  ;;  %6118 = vtanh.f32 %v13318_v37  ;;  %v13319_v5 = vld [vmem:[#allocation9_spill] sm:$0xff]  ;;  %v6117_v38 = vpop.eup %6116 }
 0x529   :  { %v11439_v19 = vpop.permute.xlu2 %4555  ;;  %v11441_v11 = vpop.permute.xlu1 %4535  ;;  %6120 = vtanh.f32 %v13319_v5 }
 0x52a   :  { %v11443_v50 = vpop.permute.xlu0 %4533  ;;  %6122 = vtanh.f32 %v13320_v1  ;;  %v4081_v1 = vadd.f32 %v11125_v57, %v13323_v43  ;;  %v13327_v43 = vld [vmem:[#allocation57_spill] sm:$0xff] }
 0x52c   :  { %v4145_v62 = vmul.f32 0.5, %v4081_v1  ;;  %v13330_v1 = vld [vmem:[#allocation20_spill] sm:$0xff] }
 0x52e   :  { %v6119_v16 = vpop.eup %6118 }
 0x52f   :  { %4627 = vrot.lane.b32.xlu2 %v6111_v21, %s6410_s3  ;;  %4625 = vrot.lane.b32.xlu1 %v6113_v49, %s6410_s3  ;;  %v6121_v18 = vpop.eup %6120  ;;  %v13321_v49 = vld [vmem:[#allocation8_spill] sm:$0xff] }
 0x530   :  { %4623 = vrot.lane.b32.xlu0 %v6115_v10, %s6410_s3  ;;  %6124 = vtanh.f32 %v13321_v49  ;;  %v13322_v21 = vld [vmem:[#allocation212_spill] sm:$0xff]  ;;  %v6123_v44 = vpop.eup %6122 }
 0x531   :  { %v11451_v47 = vpop.permute.xlu2 %4561  ;;  %v11453_v56 = vpop.permute.xlu1 %4541  ;;  %6126 = vtanh.f32 %v13322_v21 }
 0x532   :  { %v11455_v36 = vpop.permute.xlu0 %4539  ;;  %6128 = vtanh.f32 %v13324_v48  ;;  %v4083_v48 = vadd.f32 %v11054_v60, %v13327_v43  ;;  %v13331_v60 = vld [vmem:[#allocation14_spill] sm:$0xff] }
 0x536   :  { %v6125_v46 = vpop.eup %6124 }
 0x537   :  { %4633 = vrot.lane.b32.xlu2 %v6117_v38, %s6410_s3  ;;  %4631 = vrot.lane.b32.xlu1 %v6119_v16, %s6410_s3  ;;  %v6127_v38 = vpop.eup %6126  ;;  %v13326_v16 = vld [vmem:[#allocation10_spill] sm:$0xff] }
 0x538   :  { %4629 = vrot.lane.b32.xlu0 %v6121_v18, %s6410_s3  ;;  %v13325_v18 = vld [vmem:[#allocation135_spill] sm:$0xff]  ;;  %v6129_v57 = vpop.eup %6128 }
 0x539   :  { %v11463_v10 = vpop.permute.xlu2 %4567  ;;  %v11465_v5 = vpop.permute.xlu1 %4547  ;;  %6130 = vtanh.f32 %v13325_v18 }
 0x53a   :  { %v11467_v37 = vpop.permute.xlu0 %4545  ;;  %6132 = vtanh.f32 %v13326_v16 }
 0x53b   :  { %6134 = vtanh.f32 %v4145_v62  ;;  %v4147_v62 = vmul.f32 0.5, %v4083_v48 }
 0x53c   :  { %6136 = vtanh.f32 %v10792_v39 }
 0x53d   :  { %6138 = vtanh.f32 %v13330_v1 }
 0x53e   :  { %6140 = vtanh.f32 %v13331_v60 }
 0x53f   :  { %4639 = vrot.lane.b32.xlu2 %v6123_v44, %s6410_s3  ;;  %4637 = vrot.lane.b32.xlu1 %v6125_v46, %s6410_s3  ;;  %v6131_v44 = vpop.eup %6130  ;;  %v13328_v46 = vld [vmem:[#allocation61_spill] sm:$0xff]  ;;  %6142 = vtanh.f32 %v4147_v62 }
 0x540   :  { %4635 = vrot.lane.b32.xlu0 %v6127_v38, %s6410_s3  ;;  %v4084_v18 = vadd.f32 %v11146_v29, %v13328_v46  ;;  %v6133_v14 = vpop.eup %6132  ;;  %v13329_v38 = vld [vmem:[#allocation53_spill] sm:$0xff] }
 0x541   :  { %v11477_v21 = vpop.permute.xlu2 %4573  ;;  %v11479_v49 = vpop.permute.xlu1 %4553  ;;  %v4082_v16 = vadd.f32 %v11115_v35, %v13329_v38 }
 0x542   :  { %v11481_v2 = vpop.permute.xlu0 %4551  ;;  %v4148_v46 = vmul.f32 0.5, %v4084_v18  ;;  %v6135_v35 = vpop.eup %6134 }
 0x543   :  { %v4146_v3 = vmul.f32 0.5, %v4082_v16  ;;  %v6137_v38 = vpop.eup %6136  ;;  %v4273_v18 = vmul.f32 0.5, %v6135_v35 }
 0x544   :  { %v6139_v1 = vpop.eup %6138  ;;  %6144 = vtanh.f32 %v4148_v46 }
 0x545   :  { %v6141_v48 = vpop.eup %6140  ;;  %6146 = vtanh.f32 %v4146_v3  ;;  %v4337_v46 = vadd.f32 0.5, %v4273_v18 }
 0x546   :  { %6148 = vtanh.f32 %v10786_v13 }
 0x547   :  { %4645 = vrot.lane.b32.xlu2 %v6129_v57, %s6410_s3  ;;  %4643 = vrot.lane.b32.xlu1 %v6131_v44, %s6410_s3  ;;  %v13333_v57 = vld [vmem:[#allocation69_spill] sm:$0xff]  ;;  %6150 = vtanh.f32 %v10789_v8 }
 0x548   :  { %4641 = vrot.lane.b32.xlu0 %v6133_v14, %s6410_s3  ;;  %v4086_v44 = vadd.f32 %v11075_v61, %v13333_v57  ;;  %v13334_v14 = vld [vmem:[#allocation73_spill] sm:$0xff] }
 0x549   :  { %v11495_v43 = vpop.permute.xlu2 %4579  ;;  %v11497_v29 = vpop.permute.xlu1 %4559  ;;  %v4087_v60 = vadd.f32 %v11167_v31, %v13334_v14  ;;  %v4721_v14 = vmul.f32 %v11429_v54, %v4337_v46 }
 0x54a   :  { %13332 = vst [vmem:[#allocation64_spill] sm:$0xff] %v11495_v43  ;;  %v11499_v39 = vpop.permute.xlu0 %4557  ;;  %v13335_v43 = vld [vmem:[#allocation65_spill] sm:$0xff]  ;;  %v4150_v61 = vmul.f32 0.5, %v4086_v44 }
 0x54b   :  { %v4085_v27 = vadd.f32 %v11136_v17, %v13335_v43  ;;  %v4151_v3 = vmul.f32 0.5, %v4087_v60  ;;  %v6143_v17 = vpop.eup %6142  ;;  %v13338_v44 = vld [vmem:[#allocation85_spill] sm:$0xff] }
 0x54c   :  { %v6145_v35 = vpop.eup %6144  ;;  %6152 = vtanh.f32 %v4150_v61  ;;  %v4090_v8 = vadd.f32 %v11188_v51, %v13338_v44  ;;  %v13339_v60 = vld [vmem:[#allocation77_spill] sm:$0xff] }
 0x54d   :  { %v4149_v43 = vmul.f32 0.5, %v4085_v27  ;;  %6154 = vtanh.f32 %v4151_v3  ;;  %v4275_v27 = vmul.f32 0.5, %v6143_v17  ;;  %v4276_v18 = vmul.f32 0.5, %v6145_v35 }
 0x54e   :  { %v4154_v51 = vmul.f32 0.5, %v4090_v8 }
 0x54f   :  { %4651 = vrot.lane.b32.xlu2 %v6137_v38, %s6410_s3  ;;  %4649 = vrot.lane.b32.xlu1 %v6139_v1, %s6410_s3  ;;  %v6147_v38 = vpop.eup %6146  ;;  %v13337_v1 = vld [vmem:[#allocation81_spill] sm:$0xff]  ;;  %6156 = vtanh.f32 %v4149_v43  ;;  %v4340_v17 = vadd.f32 0.5, %v4276_v18 }
 0x550   :  { %4647 = vrot.lane.b32.xlu0 %v6141_v48, %s6410_s3  ;;  %v4089_v57 = vadd.f32 %v11096_v41, %v13337_v1  ;;  %v6149_v48 = vpop.eup %6148  ;;  %v4274_v61 = vmul.f32 0.5, %v6147_v38 }
 0x551   :  { %v11512_v16 = vpop.permute.xlu2 %4585  ;;  %v11514_v31 = vpop.permute.xlu1 %4565 }
 0x552   :  { %13336 = vst [vmem:[#allocation205_spill] sm:$0xff] %v11512_v16  ;;  %v11516_v62 = vpop.permute.xlu0 %4563  ;;  %v6151_v13 = vpop.eup %6150  ;;  %v4088_v16 = vadd.f32 %v11157_v24, %v13339_v60  ;;  %v4153_v41 = vmul.f32 0.5, %v4089_v57  ;;  %v4339_v24 = vadd.f32 0.5, %v4275_v27  ;;  %v4338_v44 = vadd.f32 0.5, %v4274_v61  ;;  %v13342_v60 = vld [vmem:[#allocation95_spill] sm:$0xff] }
 0x553   :  { %v6153_v43 = vpop.eup %6152  ;;  %v4724_v57 = vmul.f32 %v11441_v11, %v4340_v17  ;;  %v4093_v8 = vadd.f32 %v11209_v22, %v13342_v60  ;;  %v13346_v60 = vld [vmem:[#allocation98_spill] sm:$0xff] }
 0x554   :  { %v4152_v1 = vmul.f32 0.5, %v4088_v16  ;;  %v6155_v35 = vpop.eup %6154  ;;  %6158 = vtanh.f32 %v4153_v41  ;;  %v13343_v16 = vld [vmem:[#allocation89_spill] sm:$0xff]  ;;  %v4278_v18 = vmul.f32 0.5, %v6153_v43 }
 0x555   :  { %6160 = vtanh.f32 %v4154_v51  ;;  %v4091_v27 = vadd.f32 %v11178_v15, %v13343_v16  ;;  %v4279_v61 = vmul.f32 0.5, %v6155_v35  ;;  %v4157_v22 = vmul.f32 0.5, %v4093_v8 }
 0x556   :  { %6162 = vtanh.f32 %v4152_v1  ;;  %v4342_v15 = vadd.f32 0.5, %v4278_v18  ;;  %v4094_v8 = vadd.f32 %v11199_v45, %v13346_v60  ;;  %v13347_v45 = vld [vmem:[#allocation190_spill] sm:$0xff] }
 0x557   :  { %4655 = vrot.lane.b32.xlu1 %v6149_v48, %s6410_s3  ;;  %4849 = vrot.lane.b32.xlu2 %v4721_v14, %s6409_s9  ;;  %v6157_v48 = vpop.eup %6156  ;;  %v13341_v14 = vld [vmem:[#allocation92_spill] sm:$0xff]  ;;  %v4155_v1 = vmul.f32 0.5, %v4091_v27  ;;  %v4343_v43 = vadd.f32 0.5, %v4279_v61 }
 0x558   :  { %4653 = vrot.lane.b32.xlu0 %v6151_v13, %s6410_s3  ;;  %v4092_v38 = vadd.f32 %v11117_v33, %v13341_v14  ;;  %v4723_v13 = vmul.f32 %v11443_v50, %v4339_v24  ;;  %v4277_v33 = vmul.f32 0.5, %v6157_v48 }
 0x559   :  { %v11528_v54 = vpop.permute.xlu2 %4591  ;;  %v11530_v3 = vpop.permute.xlu1 %4571  ;;  %v4727_v14 = vmul.f32 %v11453_v56, %v4343_v43 }
 0x55a   :  { %13340 = vst [vmem:[#allocation74_spill] sm:$0xff] %v11528_v54  ;;  %v11532_v46 = vpop.permute.xlu0 %4569  ;;  %v4722_v54 = vmul.f32 %v11393_v23, %v4338_v44  ;;  %v4156_v50 = vmul.f32 0.5, %v4092_v38  ;;  %v6159_v51 = vpop.eup %6158  ;;  %v4341_v17 = vadd.f32 0.5, %v4277_v33  ;;  %v13344_v44 = vld [vmem:[#allocation100_spill] sm:$0xff]  ;;  %v13345_v38 = vld [vmem:[#allocation103_spill] sm:$0xff]  ;;  %v4158_v33 = vmul.f32 0.5, %v4094_v8 }
 0x55b   :  { %v6161_v24 = vpop.eup %6160  ;;  %v4095_v48 = vadd.f32 %v11138_v34, %v13344_v44  ;;  %v4281_v16 = vmul.f32 0.5, %v6159_v51 }
 0x55c   :  { %v6163_v35 = vpop.eup %6162  ;;  %6164 = vtanh.f32 %v4156_v50  ;;  %v4282_v27 = vmul.f32 0.5, %v6161_v24  ;;  %v4127_v50 = vadd.f32 %v11355_v30, %v13347_v45  ;;  %v13348_v24 = vld [vmem:[#allocation24_spill] sm:$0xff] }
 0x55d   :  { %6166 = vtanh.f32 %v4157_v22  ;;  %v4280_v34 = vmul.f32 0.5, %v6163_v35  ;;  %v4345_v22 = vadd.f32 0.5, %v4281_v16 }
 0x55e   :  { %6168 = vtanh.f32 %v4155_v1  ;;  %v4346_v51 = vadd.f32 0.5, %v4282_v27 }
 0x55f   :  { %4853 = vrot.lane.b32.xlu1 %v4723_v13, %s6409_s9  ;;  %4855 = vrot.lane.b32.xlu2 %v4724_v57, %s6409_s9  ;;  %v4096_v13 = vadd.f32 %v11230_v53, %v13345_v38  ;;  %v4725_v57 = vmul.f32 %v11405_v0, %v4341_v17  ;;  %v4098_v17 = vadd.f32 %v11159_v28, %v13348_v24  ;;  %v13350_v38 = vld [vmem:[#allocation104_spill] sm:$0xff] }
 0x560   :  { %4851 = vrot.lane.b32.xlu0 %v4722_v54, %s6409_s9  ;;  %v4726_v54 = vmul.f32 %v11455_v36, %v4342_v15  ;;  %v4159_v36 = vmul.f32 0.5, %v4095_v48  ;;  %v4344_v15 = vadd.f32 0.5, %v4280_v34  ;;  %v4729_v35 = vmul.f32 %v11467_v37, %v4345_v22  ;;  %v13349_v48 = vld [vmem:[#allocation29_spill] sm:$0xff]  ;;  %v13351_v34 = vld [vmem:[#allocation180_spill] sm:$0xff] }
 0x561   :  { %v11546_v11 = vpop.permute.xlu2 %4597  ;;  %v11548_v41 = vpop.permute.xlu1 %4577  ;;  %v4160_v53 = vmul.f32 0.5, %v4096_v13  ;;  %v4730_v44 = vmul.f32 %v11465_v5, %v4346_v51  ;;  %v4097_v13 = vadd.f32 %v11220_v58, %v13350_v38  ;;  %v4162_v37 = vmul.f32 0.5, %v4098_v17 }
 0x562   :  { %v11550_v23 = vpop.permute.xlu0 %4575  ;;  %v6165_v61 = vpop.eup %6164  ;;  %6170 = vtanh.f32 %v4159_v36  ;;  %v4130_v36 = vadd.f32 %v11367_v4, %v13351_v34  ;;  %v13354_v4 = vld [vmem:[#allocation35_spill] sm:$0xff] }
 0x563   :  { %v6167_v1 = vpop.eup %6166  ;;  %6172 = vtanh.f32 %v4160_v53  ;;  %v4284_v30 = vmul.f32 0.5, %v6165_v61  ;;  %v4161_v58 = vmul.f32 0.5, %v4097_v13  ;;  %v13355_v13 = vld [vmem:[#allocation201_spill] sm:$0xff] }
 0x564   :  { %v6169_v43 = vpop.eup %6168  ;;  %6174 = vtanh.f32 %v4158_v33  ;;  %v4285_v60 = vmul.f32 0.5, %v6167_v1 }
 0x565   :  { %v4283_v28 = vmul.f32 0.5, %v6169_v43  ;;  %v4348_v8 = vadd.f32 0.5, %v4284_v30 }
 0x566   :  { %v4349_v53 = vadd.f32 0.5, %v4285_v60 }
 0x567   :  { %4859 = vrot.lane.b32.xlu1 %v4726_v54, %s6409_s9  ;;  %4861 = vrot.lane.b32.xlu2 %v4727_v14, %s6409_s9  ;;  %v4099_v54 = vadd.f32 %v11247_v26, %v13349_v48  ;;  %v4728_v14 = vmul.f32 %v11417_v55, %v4344_v15  ;;  %v4347_v33 = vadd.f32 0.5, %v4283_v28  ;;  %v4732_v51 = vmul.f32 %v11481_v2, %v4348_v8  ;;  %v13353_v15 = vld [vmem:[#allocation106_spill] sm:$0xff] }
 0x568   :  { %4857 = vrot.lane.b32.xlu0 %v4725_v57, %s6409_s9  ;;  %v4191_v57 = vmul.f32 0.5, %v4127_v50  ;;  %v6171_v27 = vpop.eup %6170  ;;  %v13352_v50 = vld [vmem:[#allocation42_spill] sm:$0xff]  ;;  %v4733_v1 = vmul.f32 %v11479_v49, %v4349_v53  ;;  %v4102_v43 = vadd.f32 %v11263_v52, %v13353_v15 }
 0x569   :  { %v11564_v56 = vpop.permute.xlu2 %4603  ;;  %v11566_v18 = vpop.permute.xlu1 %4583  ;;  %v4163_v55 = vmul.f32 0.5, %v4099_v54  ;;  %v4101_v22 = vadd.f32 %v11180_v32, %v13352_v50  ;;  %v4731_v24 = vmul.f32 %v11427_v40, %v4347_v33  ;;  %v4287_v17 = vmul.f32 0.5, %v6171_v27  ;;  %v13356_v27 = vld [vmem:[#allocation116_spill] sm:$0xff]  ;;  %v13359_v33 = vld [vmem:[#allocation207_spill] sm:$0xff] }
 0x56a   :  { %v11568_v0 = vpop.permute.xlu0 %4581  ;;  %6176 = vtanh.f32 %v4191_v57  ;;  %v6173_v61 = vpop.eup %6172  ;;  %v4166_v40 = vmul.f32 0.5, %v4102_v43  ;;  %v4133_v57 = vadd.f32 %v11379_v7, %v13355_v13 }
 0x56b   :  { %v6175_v45 = vpop.eup %6174  ;;  %6178 = vtanh.f32 %v4162_v37  ;;  %v4288_v48 = vmul.f32 0.5, %v6173_v61  ;;  %v4165_v49 = vmul.f32 0.5, %v4101_v22  ;;  %v13358_v61 = vld [vmem:[#allocation121_spill] sm:$0xff]  ;;  %v13360_v22 = vld [vmem:[#allocation111_spill] sm:$0xff] }
 0x56c   :  { %6180 = vtanh.f32 %v4163_v55  ;;  %v4286_v32 = vmul.f32 0.5, %v6175_v45  ;;  %v4105_v45 = vadd.f32 %v13359_v33, %v13358_v61  ;;  %v4197_v15 = vmul.f32 0.5, %v4133_v57  ;;  %v13367_v61 = vld [vmem:[#allocation107_spill] sm:$0xff] }
 0x56d   :  { %6182 = vtanh.f32 %v4161_v58  ;;  %v4352_v60 = vadd.f32 0.5, %v4288_v48  ;;  %v13357_v58 = vld [vmem:[#allocation26_spill] sm:$0xff] }
 0x56e   :  { %v4350_v37 = vadd.f32 0.5, %v4286_v32  ;;  %v4104_v34 = vadd.f32 %v13357_v58, %v13356_v27  ;;  %v13365_v58 = vld [vmem:[#allocation139_spill] sm:$0xff] }
 0x56f   :  { %4865 = vrot.lane.b32.xlu1 %v4729_v35, %s6409_s9  ;;  %4867 = vrot.lane.b32.xlu2 %v4730_v44, %s6409_s9  ;;  %v4100_v35 = vadd.f32 %v11243_v59, %v13354_v4  ;;  %v4194_v44 = vmul.f32 0.5, %v4130_v36  ;;  %v4736_v53 = vmul.f32 %v11497_v29, %v4352_v60 }
 0x570   :  { %4863 = vrot.lane.b32.xlu0 %v4728_v14, %s6409_s9  ;;  %v6177_v2 = vpop.eup %6176  ;;  %v4351_v14 = vadd.f32 0.5, %v4287_v17  ;;  %v4734_v50 = vmul.f32 %v11439_v19, %v4350_v37  ;;  %v4168_v17 = vmul.f32 0.5, %v4104_v34  ;;  %v4169_v19 = vmul.f32 0.5, %v4105_v45  ;;  %v13364_v37 = vld [vmem:[#allocation143_spill] sm:$0xff] }
 0x571   :  { %v11584_v5 = vpop.permute.xlu2 %4609  ;;  %v11586_v26 = vpop.permute.xlu1 %4589  ;;  %v4164_v38 = vmul.f32 0.5, %v4100_v35  ;;  %6184 = vtanh.f32 %v4194_v44  ;;  %v4319_v55 = vmul.f32 0.5, %v6177_v2  ;;  %v4108_v34 = vadd.f32 %v11287_v63, %v13365_v58 }
 0x572   :  { %v11588_v16 = vpop.permute.xlu0 %4587  ;;  %v6179_v59 = vpop.eup %6178  ;;  %6186 = vtanh.f32 %v4165_v49  ;;  %v4735_v36 = vmul.f32 %v11499_v39, %v4351_v14 }
 0x573   :  { %v6181_v28 = vpop.eup %6180  ;;  %6188 = vtanh.f32 %v4166_v40  ;;  %v4290_v7 = vmul.f32 0.5, %v6179_v59  ;;  %v4383_v29 = vadd.f32 0.5, %v4319_v55  ;;  %v13362_v40 = vld [vmem:[#allocation140_spill] sm:$0xff] }
 0x574   :  { %v6183_v8 = vpop.eup %6182  ;;  %6190 = vtanh.f32 %v4164_v38  ;;  %v4291_v43 = vmul.f32 0.5, %v6181_v28  ;;  %v4136_v14 = vadd.f32 %v11391_v12, %v13362_v40  ;;  %v13363_v28 = vld [vmem:[#allocation132_spill] sm:$0xff]  ;;  %v13369_v40 = vld [vmem:[#allocation155_spill] sm:$0xff] }
 0x575   :  { %v4289_v39 = vmul.f32 0.5, %v6183_v8  ;;  %v4354_v44 = vadd.f32 0.5, %v4290_v7  ;;  %6192 = vtanh.f32 %v4197_v15  ;;  %v4107_v55 = vadd.f32 %v13364_v37, %v13363_v28  ;;  %v13372_v37 = vld [vmem:[#allocation147_spill] sm:$0xff] }
 0x576   :  { %v4355_v59 = vadd.f32 0.5, %v4291_v43  ;;  %6194 = vtanh.f32 %v4168_v17  ;;  %v4200_v45 = vmul.f32 0.5, %v4136_v14  ;;  %v13370_v14 = vld [vmem:[#allocation39_spill] sm:$0xff] }
 0x577   :  { %4871 = vrot.lane.b32.xlu1 %v4732_v51, %s6409_s9  ;;  %4873 = vrot.lane.b32.xlu2 %v4733_v1, %s6409_s9  ;;  %v13361_v51 = vld [vmem:[#allocation40_spill] sm:$0xff]  ;;  %v4353_v13 = vadd.f32 0.5, %v4289_v39  ;;  %v4738_v8 = vmul.f32 %v11516_v62, %v4354_v44  ;;  %6196 = vtanh.f32 %v4169_v19 }
 0x578   :  { %4869 = vrot.lane.b32.xlu0 %v4731_v24, %s6409_s9  ;;  %v4103_v1 = vadd.f32 %v13361_v51, %v13360_v22  ;;  %v6185_v24 = vpop.eup %6184  ;;  %v4739_v27 = vmul.f32 %v11514_v31, %v4355_v59  ;;  %v4171_v22 = vmul.f32 0.5, %v4107_v55  ;;  %v4110_v59 = vadd.f32 %v13370_v14, %v13369_v40  ;;  %v13373_v55 = vld [vmem:[#allocation45_spill] sm:$0xff] }
 0x579   :  { %v11604_v54 = vpop.permute.xlu2 %4615  ;;  %v11606_v52 = vpop.permute.xlu1 %4595  ;;  %v4322_v57 = vmul.f32 0.5, %v6185_v24  ;;  %v13368_v24 = vld [vmem:[#allocation148_spill] sm:$0xff] }
 0x57a   :  { %v11608_v30 = vpop.permute.xlu0 %4593  ;;  %v6187_v2 = vpop.eup %6186  ;;  %v4167_v49 = vmul.f32 0.5, %v4103_v1  ;;  %v4139_v17 = vadd.f32 %v11403_v9, %v13368_v24 }
 0x57b   :  { %v6189_v38 = vpop.eup %6188  ;;  %v4293_v12 = vmul.f32 0.5, %v6187_v2  ;;  %v4386_v31 = vadd.f32 0.5, %v4322_v57  ;;  %v13371_v57 = vld [vmem:[#allocation163_spill] sm:$0xff] }
 0x57c   :  { %v6191_v60 = vpop.eup %6190  ;;  %6198 = vtanh.f32 %v4167_v49 }
 0x57d   :  { %v4292_v62 = vmul.f32 0.5, %v6191_v60  ;;  %v6193_v7 = vpop.eup %6192  ;;  %v4357_v1 = vadd.f32 0.5, %v4293_v12  ;;  %6200 = vtanh.f32 %v4200_v45  ;;  %v4111_v60 = vadd.f32 %v11299_v6, %v13371_v57 }
 0x57e   :  { %v6195_v39 = vpop.eup %6194  ;;  %v4325_v2 = vmul.f32 0.5, %v6193_v7  ;;  %6202 = vtanh.f32 %v4171_v22 }
 0x57f   :  { %4877 = vrot.lane.b32.xlu1 %v4735_v36, %s6409_s9  ;;  %4879 = vrot.lane.b32.xlu2 %v4736_v53, %s6409_s9  ;;  %v4737_v36 = vmul.f32 %v11451_v47, %v4353_v13  ;;  %v13366_v53 = vld [vmem:[#allocation126_spill] sm:$0xff]  ;;  %v4172_v47 = vmul.f32 0.5, %v4108_v34  ;;  %v6197_v19 = vpop.eup %6196  ;;  %v4356_v44 = vadd.f32 0.5, %v4292_v62  ;;  %v4296_v9 = vmul.f32 0.5, %v6195_v39  ;;  %v13374_v62 = vld [vmem:[#allocation117_spill] sm:$0xff] }
 0x580   :  { %4875 = vrot.lane.b32.xlu0 %v4734_v50, %s6409_s9  ;;  %v4106_v33 = vadd.f32 %v13367_v61, %v13366_v53  ;;  %v4294_v50 = vmul.f32 0.5, %v6189_v38  ;;  %v4741_v38 = vmul.f32 %v11532_v46, %v4357_v1  ;;  %v4297_v58 = vmul.f32 0.5, %v6197_v19  ;;  %v13375_v39 = vld [vmem:[#allocation178_spill] sm:$0xff]  ;;  %v13377_v19 = vld [vmem:[#allocation185_spill] sm:$0xff] }
 0x581   :  { %v4622_v4 = vpop.permute.xlu2 %4621  ;;  %v11624_v35 = vpop.permute.xlu1 %4601  ;;  %6204 = vtanh.f32 %v4172_v47  ;;  %v4740_v28 = vmul.f32 %v11463_v10, %v4356_v44  ;;  %v4175_v10 = vmul.f32 0.5, %v4111_v60  ;;  %v4360_v53 = vadd.f32 0.5, %v4296_v9 }
 0x582   :  { %v11626_v48 = vpop.permute.xlu0 %4599  ;;  %v11628_v32 = vmul.f32 %v4622_v4, %v4383_v29  ;;  %v4170_v29 = vmul.f32 0.5, %v4106_v33  ;;  %v4358_v4 = vadd.f32 0.5, %v4294_v50  ;;  %v6199_v49 = vpop.eup %6198  ;;  %v4361_v7 = vadd.f32 0.5, %v4297_v58 }
 0x583   :  { %v4295_v46 = vmul.f32 0.5, %v6199_v49  ;;  %v6201_v34 = vpop.eup %6200  ;;  %v4114_v44 = vadd.f32 %v11311_v42, %v13377_v19  ;;  %v13378_v49 = vld [vmem:[#allocation171_spill] sm:$0xff] }
 0x584   :  { %v4742_v13 = vmul.f32 %v11530_v3, %v4358_v4  ;;  %6206 = vtanh.f32 %v4170_v29  ;;  %v4389_v3 = vadd.f32 0.5, %v4325_v2  ;;  %v6203_v45 = vpop.eup %6202  ;;  %v4328_v47 = vmul.f32 0.5, %v6201_v34  ;;  %v13376_v29 = vld [vmem:[#allocation15_spill] sm:$0xff]  ;;  %v13380_v34 = vld [vmem:[#allocation32_spill] sm:$0xff] }
 0x585   :  { %v4113_v24 = vadd.f32 %v13376_v29, %v13375_v39  ;;  %v4745_v4 = vmul.f32 %v11548_v41, %v4361_v7  ;;  %v4112_v40 = vadd.f32 %v11295_v20, %v13378_v49  ;;  %v13384_v7 = vld [vmem:[#allocation192_spill] sm:$0xff] }
 0x586   :  { %v4392_v41 = vadd.f32 0.5, %v4328_v47 }
 0x587   :  { %4883 = vrot.lane.b32.xlu1 %v4738_v8, %s6409_s9  ;;  %4885 = vrot.lane.b32.xlu2 %v4739_v27, %s6409_s9  ;;  %v4109_v8 = vadd.f32 %v13373_v55, %v13372_v37  ;;  %v4203_v27 = vmul.f32 0.5, %v4139_v17  ;;  %v6205_v22 = vpop.eup %6204  ;;  %v4744_v17 = vmul.f32 %v11550_v23, %v4360_v53  ;;  %v4176_v9 = vmul.f32 0.5, %v4112_v40  ;;  %v13381_v53 = vld [vmem:[#allocation204_spill] sm:$0xff] }
 0x588   :  { %4881 = vrot.lane.b32.xlu0 %v4737_v36, %s6409_s9  ;;  %v4174_v36 = vmul.f32 0.5, %v4110_v59  ;;  %v4300_v59 = vmul.f32 0.5, %v6205_v22  ;;  %v13385_v22 = vld [vmem:[#allocation18_spill] sm:$0xff] }
 0x589   :  { %v4628_v63 = vpop.permute.xlu2 %4627  ;;  %v11644_v51 = vpop.permute.xlu1 %4607  ;;  %v4173_v50 = vmul.f32 0.5, %v4109_v8  ;;  %6208 = vtanh.f32 %v4203_v27 }
 0x58a   :  { %v11646_v15 = vpop.permute.xlu0 %4605  ;;  %v11648_v43 = vmul.f32 %v4628_v63, %v4386_v31  ;;  %v4142_v31 = vadd.f32 %v11415_v25, %v13374_v62  ;;  %v4359_v63 = vadd.f32 0.5, %v4295_v46  ;;  %v6207_v1 = vpop.eup %6206  ;;  %6210 = vtanh.f32 %v4174_v36  ;;  %v13383_v62 = vld [vmem:[#allocation64_spill] sm:$0xff] }
 0x58b   :  { %6212 = vtanh.f32 %v4175_v10  ;;  %v4299_v25 = vmul.f32 0.5, %v6203_v45  ;;  %v4298_v23 = vmul.f32 0.5, %v6207_v1  ;;  %v4364_v55 = vadd.f32 0.5, %v4300_v59  ;;  %v13382_v45 = vld [vmem:[#allocation160_spill] sm:$0xff] }
 0x58c   :  { %v4743_v2 = vmul.f32 %v11477_v21, %v4359_v63  ;;  %6214 = vtanh.f32 %v4173_v50  ;;  %v4206_v14 = vmul.f32 0.5, %v4142_v31  ;;  %v4178_v21 = vmul.f32 0.5, %v4114_v44 }
 0x58d   :  { %v4363_v37 = vadd.f32 0.5, %v4299_v25  ;;  %v4362_v27 = vadd.f32 0.5, %v4298_v23  ;;  %v4748_v10 = vmul.f32 %v11566_v18, %v4364_v55  ;;  %v4117_v50 = vadd.f32 %v13382_v45, %v13381_v53 }
 0x58e   :  { %6216 = vtanh.f32 %v4206_v14  ;;  %v4115_v63 = vadd.f32 %v13385_v22, %v13384_v7 }
 0x58f   :  { %4889 = vrot.lane.b32.xlu1 %v4741_v38, %s6409_s9  ;;  %4891 = vrot.lane.b32.xlu2 %v4742_v13, %s6409_s9  ;;  %v6209_v38 = vpop.eup %6208  ;;  %v4177_v13 = vmul.f32 0.5, %v4113_v24  ;;  %v4746_v31 = vmul.f32 %v13383_v62, %v4362_v27 }
 0x590   :  { %4887 = vrot.lane.b32.xlu0 %v4740_v28, %s6409_s9  ;;  %v6211_v20 = vpop.eup %6210  ;;  %v4331_v58 = vmul.f32 0.5, %v6209_v38  ;;  %v4179_v25 = vmul.f32 0.5, %v4115_v63  ;;  %v13386_v38 = vld [vmem:[#allocation176_spill] sm:$0xff] }
 0x591   :  { %v4634_v6 = vpop.permute.xlu2 %4633  ;;  %v11664_v12 = vpop.permute.xlu1 %4613  ;;  %6218 = vtanh.f32 %v4177_v13  ;;  %v4302_v47 = vmul.f32 0.5, %v6211_v20  ;;  %v13387_v13 = vld [vmem:[#allocation19_spill] sm:$0xff] }
 0x592   :  { %v11666_v61 = vpop.permute.xlu0 %4611  ;;  %v11668_v33 = vmul.f32 %v4634_v6, %v4389_v3  ;;  %v6213_v8 = vpop.eup %6212  ;;  %v13379_v3 = vld [vmem:[#allocation199_spill] sm:$0xff]  ;;  %v4747_v6 = vmul.f32 %v11568_v0, %v4363_v37  ;;  %6220 = vtanh.f32 %v4178_v21  ;;  %v4395_v18 = vadd.f32 0.5, %v4331_v58  ;;  %v13389_v37 = vld [vmem:[#allocation48_spill] sm:$0xff]  ;;  %v13391_v58 = vld [vmem:[#allocation166_spill] sm:$0xff] }
 0x593   :  { %v6215_v46 = vpop.eup %6214  ;;  %v4116_v36 = vadd.f32 %v13380_v34, %v13379_v3  ;;  %6222 = vtanh.f32 %v4176_v9  ;;  %v4303_v1 = vmul.f32 0.5, %v6213_v8  ;;  %v4366_v49 = vadd.f32 0.5, %v4302_v47  ;;  %v13388_v9 = vld [vmem:[#allocation127_spill] sm:$0xff]  ;;  %v13390_v8 = vld [vmem:[#allocation205_spill] sm:$0xff] }
 0x594   :  { %v4301_v39 = vmul.f32 0.5, %v6215_v46  ;;  %v6217_v0 = vpop.eup %6216  ;;  %v4120_v55 = vadd.f32 %v13389_v37, %v13388_v9  ;;  %v13392_v46 = vld [vmem:[#allocation25_spill] sm:$0xff] }
 0x595   :  { %v4180_v29 = vmul.f32 0.5, %v4116_v36  ;;  %v4367_v40 = vadd.f32 0.5, %v4303_v1  ;;  %v4334_v23 = vmul.f32 0.5, %v6217_v0  ;;  %v4750_v21 = vmul.f32 %v11588_v16, %v4366_v49  ;;  %v13394_v0 = vld [vmem:[#allocation38_spill] sm:$0xff] }
 0x596   :  { %v4365_v59 = vadd.f32 0.5, %v4301_v39  ;;  %v4118_v3 = vadd.f32 %v13392_v46, %v13391_v58  ;;  %v4184_v45 = vmul.f32 0.5, %v4120_v55  ;;  %v13400_v58 = vld [vmem:[#allocation179_spill] sm:$0xff] }
 0x597   :  { %4895 = vrot.lane.b32.xlu1 %v4744_v17, %s6409_s9  ;;  %4897 = vrot.lane.b32.xlu2 %v4745_v4, %s6409_s9  ;;  %v4181_v4 = vmul.f32 0.5, %v4117_v50  ;;  %6224 = vtanh.f32 %v4180_v29  ;;  %v4751_v20 = vmul.f32 %v11586_v26, %v4367_v40  ;;  %v4398_v26 = vadd.f32 0.5, %v4334_v23  ;;  %v13397_v40 = vld [vmem:[#allocation74_spill] sm:$0xff] }
 0x598   :  { %4893 = vrot.lane.b32.xlu0 %v4743_v2, %s6409_s9  ;;  %v6219_v2 = vpop.eup %6218  ;;  %v4749_v27 = vmul.f32 %v13390_v8, %v4365_v59  ;;  %v4182_v7 = vmul.f32 0.5, %v4118_v3  ;;  %v13398_v59 = vld [vmem:[#allocation120_spill] sm:$0xff]  ;;  %v13399_v23 = vld [vmem:[#allocation54_spill] sm:$0xff] }
 0x599   :  { %v4640_v42 = vpop.permute.xlu2 %4639  ;;  %v11684_v57 = vpop.permute.xlu1 %4619  ;;  %6226 = vtanh.f32 %v4181_v4  ;;  %v4305_v34 = vmul.f32 0.5, %v6219_v2  ;;  %v13395_v2 = vld [vmem:[#allocation46_spill] sm:$0xff] }
 0x59a   :  { %v11686_v60 = vpop.permute.xlu0 %4617  ;;  %v11688_v28 = vmul.f32 %v4640_v42, %v4392_v41  ;;  %v6221_v14 = vpop.eup %6220  ;;  %v4119_v42 = vadd.f32 %v13387_v13, %v13386_v38  ;;  %6228 = vtanh.f32 %v4179_v25  ;;  %v13396_v25 = vld [vmem:[#allocation37_spill] sm:$0xff] }
 0x59b   :  { %v6223_v41 = vpop.eup %6222  ;;  %v4306_v36 = vmul.f32 0.5, %v6221_v14  ;;  %v4369_v22 = vadd.f32 0.5, %v4305_v34  ;;  %v4123_v49 = vadd.f32 %v13396_v25, %v13395_v2  ;;  %v13401_v34 = vmov 0.0  }
 0x59c   :  { %v4183_v16 = vmul.f32 0.5, %v4119_v42 }
 0x59d   :  { %v4370_v63 = vadd.f32 0.5, %v4306_v36 }
 0x59e   :  { %6230 = vtanh.f32 %v4183_v16 }
 0x59f   :  { %4901 = vrot.lane.b32.xlu1 %v4747_v6, %s6409_s9  ;;  %4903 = vrot.lane.b32.xlu2 %v4748_v10, %s6409_s9  ;;  %v4304_v6 = vmul.f32 0.5, %v6223_v41  ;;  %v4754_v4 = vmul.f32 %v11606_v52, %v4370_v63  ;;  %6232 = vtanh.f32 %v4184_v45  ;;  %v4121_v41 = vadd.f32 %v13399_v23, %v13398_v59 }
 0x5a0   :  { %4899 = vrot.lane.b32.xlu0 %v4746_v31, %s6409_s9  ;;  %v6225_v31 = vpop.eup %6224  ;;  %6234 = vtanh.f32 %v4182_v7  ;;  %v13405_v7 = vld [vmem:[#allocation196_spill] sm:$0xff] }
 0x5a1   :  { %v4646_v24 = vpop.permute.xlu2 %4645  ;;  %v11702_v17 = vpop.permute.xlu1 %4625  ;;  %v4368_v1 = vadd.f32 0.5, %v4304_v6  ;;  %v4308_v38 = vmul.f32 0.5, %v6225_v31  ;;  %v4185_v55 = vmul.f32 0.5, %v4121_v41  ;;  %v13402_v6 = vld [vmem:[#allocation183_spill] sm:$0xff]  ;;  %v13404_v31 = vld [vmem:[#allocation197_spill] sm:$0xff] }
 0x5a2   :  { %v11704_v19 = vpop.permute.xlu0 %4623  ;;  %v11706_v44 = vmul.f32 %v4646_v24, %v4395_v18  ;;  %v6227_v47 = vpop.eup %6226  ;;  %v13393_v18 = vld [vmem:[#allocation202_spill] sm:$0xff]  ;;  %v4753_v24 = vmul.f32 %v11608_v30, %v4369_v22  ;;  %v4126_v22 = vadd.f32 %v13405_v7, %v13404_v31 }
 0x5a3   :  { %v6229_v39 = vpop.eup %6228  ;;  %v4122_v29 = vadd.f32 %v13394_v0, %v13393_v18  ;;  %v4752_v14 = vmul.f32 %v13397_v40, %v4368_v1  ;;  %v4309_v13 = vmul.f32 0.5, %v6227_v47  ;;  %v4372_v8 = vadd.f32 0.5, %v4308_v38  ;;  %v13406_v47 = vld [vmem:[#allocation174_spill] sm:$0xff]  ;;  %v13407_v1 = vld [vmem:[#allocation115_spill] sm:$0xff]  ;;  %v13409_v38 = vld [vmem:[#allocation181_spill] sm:$0xff] }
 0x5a4   :  { %v4307_v42 = vmul.f32 0.5, %v6229_v39  ;;  %v6231_v37 = vpop.eup %6230  ;;  %v4124_v39 = vadd.f32 %v13407_v1, %v13406_v47 }
 0x5a5   :  { %v4186_v52 = vmul.f32 0.5, %v4122_v29  ;;  %v6233_v46 = vpop.eup %6232  ;;  %v4311_v18 = vmul.f32 0.5, %v6231_v37  ;;  %v13412_v37 = vld [vmem:[#allocation43_spill] sm:$0xff] }
 0x5a6   :  { %v4371_v3 = vadd.f32 0.5, %v4307_v42  ;;  %v6235_v36 = vpop.eup %6234  ;;  %v4312_v0 = vmul.f32 0.5, %v6233_v46  ;;  %v4188_v25 = vmul.f32 0.5, %v4124_v39 }
 0x5a7   :  { %4907 = vrot.lane.b32.xlu1 %v4750_v21, %s6409_s9  ;;  %4909 = vrot.lane.b32.xlu2 %v4751_v20, %s6409_s9  ;;  %v4187_v20 = vmul.f32 0.5, %v4123_v49  ;;  %6236 = vtanh.f32 %v4186_v52  ;;  %v4310_v29 = vmul.f32 0.5, %v6235_v36  ;;  %v4375_v49 = vadd.f32 0.5, %v4311_v18  ;;  %v13416_v18 = vld [vmem:[#allocation194_spill] sm:$0xff] }
 0x5a8   :  { %4905 = vrot.lane.b32.xlu0 %v4749_v27, %s6409_s9  ;;  %v4373_v27 = vadd.f32 0.5, %v4309_v13  ;;  %v4755_v63 = vmul.f32 %v11546_v11, %v4371_v3  ;;  %v4376_v40 = vadd.f32 0.5, %v4312_v0  ;;  %v13410_v13 = vld [vmem:[#allocation44_spill] sm:$0xff]  ;;  %v13417_v0 = vld [vmem:[#allocation66_spill] sm:$0xff] }
 0x5a9   :  { %v4652_v10 = vpop.permute.xlu2 %4651  ;;  %v11720_v53 = vpop.permute.xlu1 %4631  ;;  %6238 = vtanh.f32 %v4187_v20  ;;  %v4374_v23 = vadd.f32 0.5, %v4310_v29  ;;  %v4128_v42 = vadd.f32 %v13410_v13, %v13409_v38  ;;  %v4759_v52 = vmul.f32 %v11646_v15, %v4375_v49  ;;  %v13411_v20 = vld [vmem:[#allocation173_spill] sm:$0xff] }
 0x5aa   :  { %v11722_v50 = vpop.permute.xlu0 %4629  ;;  %v11724_v62 = vmul.f32 %v4652_v10, %v4398_v26  ;;  %v13403_v26 = vld [vmem:[#allocation50_spill] sm:$0xff]  ;;  %v4756_v10 = vmul.f32 %v11626_v48, %v4372_v8  ;;  %v4757_v45 = vmul.f32 %v11624_v35, %v4373_v27  ;;  %6240 = vtanh.f32 %v4185_v55  ;;  %v13419_v13 = vld [vmem:[#allocation133_spill] sm:$0xff] }
 0x5ab   :  { %v4125_v16 = vadd.f32 %v13403_v26, %v13402_v6  ;;  %v4129_v55 = vadd.f32 %v13412_v37, %v13411_v20  ;;  %v4758_v8 = vmul.f32 %v11564_v56, %v4374_v23  ;;  %v4192_v3 = vmul.f32 0.5, %v4128_v42  ;;  %v13418_v23 = vld [vmem:[#allocation41_spill] sm:$0xff]  ;;  %v13420_v42 = vld [vmem:[#allocation58_spill] sm:$0xff]  ;;  %v13421_v37 = vld [vmem:[#allocation119_spill] sm:$0xff] }
 0x5ac   :  { %v4132_v29 = vadd.f32 %v13417_v0, %v13416_v18  ;;  %v13428_v18 = vld [vmem:[#allocation108_spill] sm:$0xff] }
 0x5ad   :  { %v4189_v35 = vmul.f32 0.5, %v4125_v16  ;;  %v6237_v11 = vpop.eup %6236 }
 0x5ae   :  { %v4314_v27 = vmul.f32 0.5, %v6237_v11 }
 0x5af   :  { %4913 = vrot.lane.b32.xlu1 %v4753_v24, %s6409_s9  ;;  %4915 = vrot.lane.b32.xlu2 %v4754_v4, %s6409_s9  ;;  %v4190_v4 = vmul.f32 0.5, %v4126_v22  ;;  %v6239_v59 = vpop.eup %6238  ;;  %6242 = vtanh.f32 %v4189_v35  ;;  %v13414_v22 = vld [vmem:[#allocation187_spill] sm:$0xff] }
 0x5b0   :  { %4911 = vrot.lane.b32.xlu0 %v4752_v14, %s6409_s9  ;;  %v13408_v14 = vld [vmem:[#allocation170_spill] sm:$0xff]  ;;  %v6241_v41 = vpop.eup %6240  ;;  %v4378_v26 = vadd.f32 0.5, %v4314_v27 }
 0x5b1   :  { %v4850_v30 = vpop.permute.xlu2 %4849  ;;  %v11738_v21 = vpop.permute.xlu1 %4637  ;;  %6244 = vtanh.f32 %v4190_v4  ;;  %v4313_v46 = vmul.f32 0.5, %v6241_v41 }
 0x5b2   :  { %v11740_v9 = vpop.permute.xlu0 %4635  ;;  %5041 = vst.msk [vmem:[#allocation5] sm:$0xff] %vm2087_vm0, %v4850_v30  ;;  %v4760_v30 = vmul.f32 %v11644_v51, %v4376_v40  ;;  %6246 = vtanh.f32 %v4188_v25  ;;  %v4193_v51 = vmul.f32 0.5, %v4129_v55  ;;  %v4762_v1 = vmul.f32 %v11666_v61, %v4378_v26  ;;  %v13422_v55 = vld [vmem:[#allocation47_spill] sm:$0xff] }
 0x5b3   :  { %5106 = vst.msk [vmem:[#allocation5] sm:$0xff] %vm5105_vm4, %v13400_v58  ;;  %v4315_v58 = vmul.f32 0.5, %v6239_v59  ;;  %v4377_v31 = vadd.f32 0.5, %v4313_v46  ;;  %6248 = vtanh.f32 %v4192_v3 }
 0x5b4   :  { %5171 = vst.msk [vmem:[#allocation5] sm:$0xff] %vm5170_vm5, %v13401_v34  ;;  %6250 = vtanh.f32 %v4193_v51 }
 0x5b5   :  { %v6243_v56 = vpop.eup %6242  ;;  %v4379_v16 = vadd.f32 0.5, %v4315_v58  ;;  %v4761_v35 = vmul.f32 %v11584_v5, %v4377_v31  ;;  %v13425_v31 = vld [vmem:[#allocation52_spill] sm:$0xff] }
 0x5b7   :  { %4919 = vrot.lane.b32.xlu1 %v4756_v10, %s6409_s9  ;;  %4921 = vrot.lane.b32.xlu2 %v4757_v45, %s6409_s9  ;;  %v13413_v10 = vld [vmem:[#allocation112_spill] sm:$0xff]  ;;  %v6245_v45 = vpop.eup %6244  ;;  %v4763_v39 = vmul.f32 %v11664_v12, %v4379_v16  ;;  %v4196_v12 = vmul.f32 0.5, %v4132_v29 }
 0x5b8   :  { %4917 = vrot.lane.b32.xlu0 %v4755_v63, %s6409_s9  ;;  %v6247_v7 = vpop.eup %6246  ;;  %v13415_v63 = vld [vmem:[#allocation31_spill] sm:$0xff]  ;;  %v4318_v4 = vmul.f32 0.5, %v6245_v45  ;;  %v13424_v45 = vld [vmem:[#allocation124_spill] sm:$0xff] }
 0x5b9   :  { %v4856_v48 = vpop.permute.xlu2 %4855  ;;  %v11759_v24 = vpop.permute.xlu1 %4643  ;;  %v4131_v47 = vadd.f32 %v13415_v63, %v13414_v22  ;;  %v4316_v11 = vmul.f32 0.5, %v6247_v7  ;;  %v4137_v7 = vadd.f32 %v13425_v31, %v13424_v45 }
 0x5ba   :  { %v11761_v2 = vpop.permute.xlu0 %4641  ;;  %5044 = vst.msk [vmem:[#allocation5 + $0x18] sm:$0xff] %vm2087_vm0, %v4856_v48  ;;  %v4317_v48 = vmul.f32 0.5, %v6243_v56  ;;  %v4382_v59 = vadd.f32 0.5, %v4318_v4 }
 0x5bb   :  { %5109 = vst.msk [vmem:[#allocation5 + $0x18] sm:$0xff] %vm5105_vm4, %v13408_v14  ;;  %v4195_v25 = vmul.f32 0.5, %v4131_v47  ;;  %v6249_v14 = vpop.eup %6248  ;;  %v4380_v38 = vadd.f32 0.5, %v4316_v11  ;;  %v13426_v47 = vld [vmem:[#allocation156_spill] sm:$0xff] }
 0x5bc   :  { %5174 = vst.msk [vmem:[#allocation5 + $0x18] sm:$0xff] %vm5170_vm5, %v13401_v34  ;;  %v4381_v5 = vadd.f32 0.5, %v4317_v48  ;;  %v6251_v41 = vpop.eup %6250  ;;  %v4766_v20 = vmul.f32 %v11684_v57, %v4382_v59  ;;  %v4320_v58 = vmul.f32 0.5, %v6249_v14  ;;  %v13432_v59 = vld [vmem:[#allocation62_spill] sm:$0xff] }
 0x5bd   :  { %6252 = vtanh.f32 %v4195_v25  ;;  %v4764_v27 = vmul.f32 %v11604_v54, %v4380_v38  ;;  %v4321_v46 = vmul.f32 0.5, %v6251_v41 }
 0x5be   :  { %6254 = vtanh.f32 %v4196_v12  ;;  %v4384_v26 = vadd.f32 0.5, %v4320_v58 }
 0x5bf   :  { %4925 = vrot.lane.b32.xlu1 %v4759_v52, %s6409_s9  ;;  %4927 = vrot.lane.b32.xlu2 %v4760_v30, %s6409_s9  ;;  %v4134_v52 = vadd.f32 %v13420_v42, %v13419_v13  ;;  %v4765_v30 = vmul.f32 %v11686_v60, %v4381_v5  ;;  %v4385_v16 = vadd.f32 0.5, %v4321_v46  ;;  %v13430_v5 = vld [vmem:[#allocation36_spill] sm:$0xff]  ;;  %v13434_v42 = vld [vmem:[#allocation70_spill] sm:$0xff] }
 0x5c0   :  { %4923 = vrot.lane.b32.xlu0 %v4758_v8, %s6409_s9  ;;  %v4135_v8 = vadd.f32 %v13422_v55, %v13421_v37  ;;  %v4768_v22 = vmul.f32 %v11704_v19, %v4384_v26  ;;  %v13429_v19 = vld [vmem:[#allocation168_spill] sm:$0xff]  ;;  %v13435_v37 = vld [vmem:[#allocation113_spill] sm:$0xff] }
 0x5c1   :  { %v4862_v15 = vpop.permute.xlu2 %4861  ;;  %v11778_v36 = vpop.permute.xlu1 %4649  ;;  %v4198_v3 = vmul.f32 0.5, %v4134_v52  ;;  %v4769_v63 = vmul.f32 %v11702_v17, %v4385_v16  ;;  %v4201_v17 = vmul.f32 0.5, %v4137_v7  ;;  %v13433_v13 = vld [vmem:[#allocation208_spill] sm:$0xff]  ;;  %v13439_v16 = vld [vmem:[#allocation153_spill] sm:$0xff] }
 0x5c2   :  { %v11780_v6 = vpop.permute.xlu0 %4647  ;;  %5047 = vst.msk [vmem:[#allocation5 + $0x30] sm:$0xff] %vm2087_vm0, %v4862_v15  ;;  %v4199_v60 = vmul.f32 0.5, %v4135_v8  ;;  %v4141_v52 = vadd.f32 %v13434_v42, %v13433_v13  ;;  %v13448_v13 = vld [vmem:[#allocation123_spill] sm:$0xff] }
 0x5c3   :  { %5112 = vst.msk [vmem:[#allocation5 + $0x30] sm:$0xff] %vm5105_vm4, %v13413_v10  ;;  %v6253_v57 = vpop.eup %6252  ;;  %v13423_v10 = vld [vmem:[#allocation105_spill] sm:$0xff]  ;;  %6256 = vtanh.f32 %v4198_v3 }
 0x5c4   :  { %5177 = vst.msk [vmem:[#allocation5 + $0x30] sm:$0xff] %vm5170_vm5, %v13401_v34  ;;  %v6255_v54 = vpop.eup %6254  ;;  %6258 = vtanh.f32 %v4199_v60  ;;  %v4323_v0 = vmul.f32 0.5, %v6253_v57  ;;  %v4205_v8 = vmul.f32 0.5, %v4141_v52  ;;  %v13438_v60 = vld [vmem:[#allocation56_spill] sm:$0xff] }
 0x5c5   :  { %v4324_v29 = vmul.f32 0.5, %v6255_v54  ;;  %6260 = vtanh.f32 %v4201_v17  ;;  %v13440_v54 = vld [vmem:[#allocation164_spill] sm:$0xff] }
 0x5c7   :  { %4931 = vrot.lane.b32.xlu1 %v4762_v1, %s6409_s9  ;;  %4933 = vrot.lane.b32.xlu2 %v4763_v39, %s6409_s9  ;;  %v13427_v1 = vld [vmem:[#allocation60_spill] sm:$0xff]  ;;  %v4388_v12 = vadd.f32 0.5, %v4324_v29  ;;  %v13443_v29 = vld [vmem:[#allocation186_spill] sm:$0xff] }
 0x5c8   :  { %4929 = vrot.lane.b32.xlu0 %v4761_v35, %s6409_s9  ;;  %v4138_v39 = vadd.f32 %v13427_v1, %v13426_v47 }
 0x5c9   :  { %v4868_v49 = vpop.permute.xlu2 %4867  ;;  %v11797_v61 = vpop.permute.xlu1 %4655  ;;  %v4772_v38 = vmul.f32 %v11720_v53, %v4388_v12 }
 0x5ca   :  { %v11799_v40 = vpop.permute.xlu0 %4653  ;;  %5050 = vst.msk [vmem:[#allocation5 + $0x48] sm:$0xff] %vm2087_vm0, %v4868_v49  ;;  %v4202_v4 = vmul.f32 0.5, %v4138_v39  ;;  %v6257_v25 = vpop.eup %6256  ;;  %v4387_v49 = vadd.f32 0.5, %v4323_v0 }
 0x5cb   :  { %5115 = vst.msk [vmem:[#allocation5 + $0x48] sm:$0xff] %vm5105_vm4, %v13418_v23  ;;  %v6259_v14 = vpop.eup %6258 }
 0x5cc   :  { %5180 = vst.msk [vmem:[#allocation5 + $0x48] sm:$0xff] %vm5170_vm5, %v13401_v34  ;;  %v4771_v41 = vmul.f32 %v11722_v50, %v4387_v49  ;;  %6262 = vtanh.f32 %v4202_v4  ;;  %v6261_v46 = vpop.eup %6260 }
 0x5cd   :  { %v4329_v31 = vmul.f32 0.5, %v6261_v46 }
 0x5cf   :  { %4937 = vrot.lane.b32.xlu1 %v4765_v30, %s6409_s9  ;;  %4939 = vrot.lane.b32.xlu2 %v4766_v20, %s6409_s9  ;;  %v4326_v30 = vmul.f32 0.5, %v6257_v25  ;;  %v4327_v20 = vmul.f32 0.5, %v6259_v14 }
 0x5d0   :  { %4935 = vrot.lane.b32.xlu0 %v4764_v27, %s6409_s9  ;;  %v13436_v27 = vld [vmem:[#allocation177_spill] sm:$0xff] }
 0x5d1   :  { %v4874_v15 = vpop.permute.xlu2 %4873  ;;  %v4854_v51 = vpop.permute.xlu1 %4853  ;;  %v4390_v3 = vadd.f32 0.5, %v4326_v30 }
 0x5d2   :  { %v4852_v56 = vpop.permute.xlu0 %4851  ;;  %5053 = vst.msk [vmem:[#allocation5 + $0x60] sm:$0xff] %vm2087_vm0, %v4874_v15  ;;  %v4391_v15 = vadd.f32 0.5, %v4327_v20 }
 0x5d3   :  { %5042 = vst.msk [vmem:[#allocation5 + $0x8] sm:$0xff] %vm2087_vm0, %v4852_v56  ;;  %v4774_v57 = vmul.f32 %v11740_v9, %v4390_v3  ;;  %v13442_v9 = vld [vmem:[#allocation193_spill] sm:$0xff] }
 0x5d4   :  { %5107 = vst.msk [vmem:[#allocation5 + $0x8] sm:$0xff] %vm5105_vm4, %v13423_v10  ;;  %v4775_v26 = vmul.f32 %v11738_v21, %v4391_v15  ;;  %v13441_v10 = vld [vmem:[#allocation51_spill] sm:$0xff]  ;;  %v13454_v3 = vld [vmem:[#allocation165_spill] sm:$0xff]  ;;  %v13455_v15 = vld [vmem:[#allocation128_spill] sm:$0xff] }
 0x5d5   :  { %5172 = vst.msk [vmem:[#allocation5 + $0x8] sm:$0xff] %vm5170_vm5, %v13401_v34  ;;  %v4144_v45 = vadd.f32 %v13441_v10, %v13440_v54  ;;  %v13459_v10 = vld [vmem:[#allocation198_spill] sm:$0xff] }
 0x5d6   :  { %5118 = vst.msk [vmem:[#allocation5 + $0x60] sm:$0xff] %vm5105_vm4, %v13428_v18  ;;  %v4393_v18 = vadd.f32 0.5, %v4329_v31  ;;  %v13460_v31 = vld [vmem:[#allocation189_spill] sm:$0xff] }
 0x5d7   :  { %5183 = vst.msk [vmem:[#allocation5 + $0x60] sm:$0xff] %vm5170_vm5, %v13401_v34  ;;  %4943 = vrot.lane.b32.xlu1 %v4768_v22, %s6409_s9  ;;  %4945 = vrot.lane.b32.xlu2 %v4769_v63, %s6409_s9  ;;  %v4208_v47 = vmul.f32 0.5, %v4144_v45 }
 0x5d8   :  { %5043 = vst.msk [vmem:[#allocation5 + $0x10] sm:$0xff] %vm2087_vm0, %v4854_v51  ;;  %4941 = vrot.lane.b32.xlu0 %v11628_v32, %s6409_s9  ;;  %v13431_v32 = vld [vmem:[#allocation146_spill] sm:$0xff]  ;;  %v6263_v51 = vpop.eup %6262 }
 0x5d9   :  { %5108 = vst.msk [vmem:[#allocation5 + $0x10] sm:$0xff] %vm5105_vm4, %v13429_v19  ;;  %v4880_v35 = vpop.permute.xlu2 %4879  ;;  %v4860_v48 = vpop.permute.xlu1 %4859  ;;  %v4140_v23 = vadd.f32 %v13432_v59, %v13431_v32  ;;  %v4330_v7 = vmul.f32 0.5, %v6263_v51  ;;  %v13446_v32 = vld [vmem:[#allocation167_spill] sm:$0xff] }
 0x5da   :  { %5173 = vst.msk [vmem:[#allocation5 + $0x10] sm:$0xff] %vm5170_vm5, %v13401_v34  ;;  %v4858_v11 = vpop.permute.xlu0 %4857 }
 0x5db   :  { %5045 = vst.msk [vmem:[#allocation5 + $0x20] sm:$0xff] %vm2087_vm0, %v4858_v11  ;;  %v4204_v53 = vmul.f32 0.5, %v4140_v23  ;;  %v4394_v0 = vadd.f32 0.5, %v4330_v7  ;;  %v13461_v7 = vld [vmem:[#allocation141_spill] sm:$0xff] }
 0x5dc   :  { %5110 = vst.msk [vmem:[#allocation5 + $0x20] sm:$0xff] %vm5105_vm4, %v13430_v5 }
 0x5dd   :  { %5175 = vst.msk [vmem:[#allocation5 + $0x20] sm:$0xff] %vm5170_vm5, %v13401_v34  ;;  %6264 = vtanh.f32 %v4204_v53  ;;  %v4778_v19 = vmul.f32 %v11759_v24, %v4394_v0  ;;  %v13445_v24 = vld [vmem:[#allocation169_spill] sm:$0xff]  ;;  %v13450_v53 = vld [vmem:[#allocation134_spill] sm:$0xff] }
 0x5de   :  { %5056 = vst.msk [vmem:[#allocation5 + $0x78] sm:$0xff] %vm2087_vm0, %v4880_v35  ;;  %6266 = vtanh.f32 %v4205_v8  ;;  %v13444_v35 = vld [vmem:[#allocation118_spill] sm:$0xff]  ;;  %v13452_v8 = vld [vmem:[#allocation184_spill] sm:$0xff] }
 0x5df   :  { %5121 = vst.msk [vmem:[#allocation5 + $0x78] sm:$0xff] %vm5105_vm4, %v13435_v37  ;;  %4949 = vrot.lane.b32.xlu1 %v4771_v41, %s6409_s9  ;;  %4951 = vrot.lane.b32.xlu2 %v4772_v38, %s6409_s9  ;;  %v13447_v38 = vld [vmem:[#allocation161_spill] sm:$0xff]  ;;  %v13465_v0 = vld [vmem:[#allocation122_spill] sm:$0xff] }
 0x5e0   :  { %5186 = vst.msk [vmem:[#allocation5 + $0x78] sm:$0xff] %vm5170_vm5, %v13401_v34  ;;  %4947 = vrot.lane.b32.xlu0 %v11648_v43, %s6409_s9  ;;  %v13437_v43 = vld [vmem:[#allocation110_spill] sm:$0xff] }
 0x5e1   :  { %5046 = vst.msk [vmem:[#allocation5 + $0x28] sm:$0xff] %vm2087_vm0, %v4860_v48  ;;  %v4886_v50 = vpop.permute.xlu2 %4885  ;;  %v4866_v55 = vpop.permute.xlu1 %4865  ;;  %v4143_v56 = vadd.f32 %v13438_v60, %v13437_v43  ;;  %v13456_v60 = vld [vmem:[#allocation157_spill] sm:$0xff] }
 0x5e2   :  { %5111 = vst.msk [vmem:[#allocation5 + $0x28] sm:$0xff] %vm5105_vm4, %v13436_v27  ;;  %v4864_v58 = vpop.permute.xlu0 %4863 }
 0x5e3   :  { %5176 = vst.msk [vmem:[#allocation5 + $0x28] sm:$0xff] %vm5170_vm5, %v13401_v34  ;;  %v4207_v21 = vmul.f32 0.5, %v4143_v56  ;;  %v6265_v39 = vpop.eup %6264 }
 0x5e4   :  { %5048 = vst.msk [vmem:[#allocation5 + $0x38] sm:$0xff] %vm2087_vm0, %v4864_v58  ;;  %v6267_v17 = vpop.eup %6266  ;;  %v4332_v48 = vmul.f32 0.5, %v6265_v39  ;;  %v13464_v39 = vld [vmem:[#allocation30_spill] sm:$0xff] }
 0x5e5   :  { %5113 = vst.msk [vmem:[#allocation5 + $0x38] sm:$0xff] %vm5105_vm4, %v13439_v16  ;;  %6268 = vtanh.f32 %v4207_v21  ;;  %v4333_v4 = vmul.f32 0.5, %v6267_v17  ;;  %v13466_v17 = vld [vmem:[#allocation13_spill] sm:$0xff] }
 0x5e6   :  { %5178 = vst.msk [vmem:[#allocation5 + $0x38] sm:$0xff] %vm5170_vm5, %v13401_v34  ;;  %6270 = vtanh.f32 %v4208_v47  ;;  %v4396_v12 = vadd.f32 0.5, %v4332_v48  ;;  %v13463_v47 = vld [vmem:[#allocation138_spill] sm:$0xff]  ;;  %v13468_v48 = vld [vmem:[#allocation195_spill] sm:$0xff] }
 0x5e7   :  { %5059 = vst.msk [vmem:[#allocation5 + $0x90] sm:$0xff] %vm2087_vm0, %v4886_v50  ;;  %4955 = vrot.lane.b32.xlu1 %v4774_v57, %s6409_s9  ;;  %4957 = vrot.lane.b32.xlu2 %v4775_v26, %s6409_s9  ;;  %v4397_v14 = vadd.f32 0.5, %v4333_v4  ;;  %v13457_v57 = vld [vmem:[#allocation175_spill] sm:$0xff]  ;;  %v13469_v4 = vld [vmem:[#allocation136_spill] sm:$0xff] }
 0x5e8   :  { %5124 = vst.msk [vmem:[#allocation5 + $0x90] sm:$0xff] %vm5105_vm4, %v13442_v9  ;;  %4953 = vrot.lane.b32.xlu0 %v11668_v33, %s6409_s9  ;;  %v4777_v33 = vmul.f32 %v11761_v2, %v4393_v18  ;;  %v13458_v26 = vld [vmem:[#allocation191_spill] sm:$0xff] }
 0x5e9   :  { %5189 = vst.msk [vmem:[#allocation5 + $0x90] sm:$0xff] %vm5170_vm5, %v13401_v34  ;;  %v4892_v22 = vpop.permute.xlu2 %4891  ;;  %v4872_v63 = vpop.permute.xlu1 %4871  ;;  %v4781_v59 = vmul.f32 %v11778_v36, %v4397_v14 }
 0x5ea   :  { %5049 = vst.msk [vmem:[#allocation5 + $0x40] sm:$0xff] %vm2087_vm0, %v4866_v55  ;;  %v4870_v1 = vpop.permute.xlu0 %4869  ;;  %v13451_v55 = vld [vmem:[#allocation149_spill] sm:$0xff] }
 0x5eb   :  { %5114 = vst.msk [vmem:[#allocation5 + $0x40] sm:$0xff] %vm5105_vm4, %v13443_v29  ;;  %v6269_v49 = vpop.eup %6268 }
 0x5ec   :  { %5179 = vst.msk [vmem:[#allocation5 + $0x40] sm:$0xff] %vm5170_vm5, %v13401_v34  ;;  %v6271_v5 = vpop.eup %6270  ;;  %v4335_v23 = vmul.f32 0.5, %v6269_v49  ;;  %v13471_v49 = vld [vmem:[#allocation131_spill] sm:$0xff] }
 0x5ed   :  { %5051 = vst.msk [vmem:[#allocation5 + $0x50] sm:$0xff] %vm2087_vm0, %v4870_v1  ;;  %v4336_v41 = vmul.f32 0.5, %v6271_v5 }
 0x5ee   :  { %5116 = vst.msk [vmem:[#allocation5 + $0x50] sm:$0xff] %vm5105_vm4, %v13444_v35  ;;  %v4399_v52 = vadd.f32 0.5, %v4335_v23  ;;  %v13467_v35 = vld [vmem:[#allocation150_spill] sm:$0xff] }
 0x5ef   :  { %5181 = vst.msk [vmem:[#allocation5 + $0x50] sm:$0xff] %vm5170_vm5, %v13401_v34  ;;  %4961 = vrot.lane.b32.xlu1 %v4777_v33, %s6409_s9  ;;  %4963 = vrot.lane.b32.xlu2 %v4778_v19, %s6409_s9  ;;  %v4400_v30 = vadd.f32 0.5, %v4336_v41  ;;  %v13475_v23 = vld [vmem:[#allocation34_spill] sm:$0xff] }
 0x5f0   :  { %5062 = vst.msk [vmem:[#allocation5 + $0xa8] sm:$0xff] %vm2087_vm0, %v4892_v22  ;;  %4959 = vrot.lane.b32.xlu0 %v11688_v28, %s6409_s9  ;;  %v4780_v28 = vmul.f32 %v11780_v6, %v4396_v12  ;;  %v4783_v20 = vmul.f32 %v11799_v40, %v4399_v52  ;;  %v13462_v22 = vld [vmem:[#allocation142_spill] sm:$0xff]  ;;  %v13472_v12 = vld [vmem:[#allocation17_spill] sm:$0xff] }
 0x5f1   :  { %5127 = vst.msk [vmem:[#allocation5 + $0xa8] sm:$0xff] %vm5105_vm4, %v13445_v24  ;;  %v4898_v2 = vpop.permute.xlu2 %4897  ;;  %v4878_v11 = vpop.permute.xlu1 %4877  ;;  %v4784_v37 = vmul.f32 %v11797_v61, %v4400_v30  ;;  %v13479_v30 = vld [vmem:[#allocation12_spill] sm:$0xff] }
 0x5f2   :  { %5192 = vst.msk [vmem:[#allocation5 + $0xa8] sm:$0xff] %vm5170_vm5, %v13401_v34  ;;  %v4876_v25 = vpop.permute.xlu0 %4875 }
 0x5f3   :  { %5052 = vst.msk [vmem:[#allocation5 + $0x58] sm:$0xff] %vm2087_vm0, %v4872_v63 }
 0x5f4   :  { %5117 = vst.msk [vmem:[#allocation5 + $0x58] sm:$0xff] %vm5105_vm4, %v13446_v32 }
 0x5f5   :  { %5182 = vst.msk [vmem:[#allocation5 + $0x58] sm:$0xff] %vm5170_vm5, %v13401_v34 }
 0x5f6   :  { %5054 = vst.msk [vmem:[#allocation5 + $0x68] sm:$0xff] %vm2087_vm0, %v4876_v25  ;;  %v13470_v25 = vld [vmem:[#allocation114_spill] sm:$0xff] }
 0x5f7   :  { %5119 = vst.msk [vmem:[#allocation5 + $0x68] sm:$0xff] %vm5105_vm4, %v13447_v38  ;;  %4967 = vrot.lane.b32.xlu1 %v4780_v28, %s6409_s9  ;;  %4969 = vrot.lane.b32.xlu2 %v4781_v59, %s6409_s9  ;;  %v13473_v28 = vld [vmem:[#allocation125_spill] sm:$0xff]  ;;  %v13474_v59 = vld [vmem:[#allocation16_spill] sm:$0xff] }
 0x5f8   :  { %5184 = vst.msk [vmem:[#allocation5 + $0x68] sm:$0xff] %vm5170_vm5, %v13401_v34  ;;  %4965 = vrot.lane.b32.xlu0 %v11706_v44, %s6409_s9  ;;  %v13449_v44 = vld [vmem:[#allocation182_spill] sm:$0xff] }
 0x5f9   :  { %5065 = vst.msk [vmem:[#allocation5 + $0xc0] sm:$0xff] %vm2087_vm0, %v4898_v2  ;;  %v4904_v36 = vpop.permute.xlu2 %4903  ;;  %v4884_v6 = vpop.permute.xlu1 %4883 }
 0x5fa   :  { %5130 = vst.msk [vmem:[#allocation5 + $0xc0] sm:$0xff] %vm5105_vm4, %v13448_v13  ;;  %v4882_v42 = vpop.permute.xlu0 %4881  ;;  %v13477_v13 = vld [vmem:[#allocation209_spill] sm:$0xff] }
 0x5fb   :  { %5195 = vst.msk [vmem:[#allocation5 + $0xc0] sm:$0xff] %vm5170_vm5, %v13401_v34 }
 0x5fc   :  { %5055 = vst.msk [vmem:[#allocation5 + $0x70] sm:$0xff] %vm2087_vm0, %v4878_v11 }
 0x5fd   :  { %5120 = vst.msk [vmem:[#allocation5 + $0x70] sm:$0xff] %vm5105_vm4, %v13449_v44  ;;  %v13480_v44 = vld [vmem:[#allocation21_spill] sm:$0xff] }
 0x5fe   :  { %5185 = vst.msk [vmem:[#allocation5 + $0x70] sm:$0xff] %vm5170_vm5, %v13401_v34 }
 0x5ff   :  { %5057 = vst.msk [vmem:[#allocation5 + $0x80] sm:$0xff] %vm2087_vm0, %v4882_v42  ;;  %4973 = vrot.lane.b32.xlu1 %v4783_v20, %s6409_s9  ;;  %4975 = vrot.lane.b32.xlu2 %v4784_v37, %s6409_s9  ;;  %v13478_v42 = vld [vmem:[#allocation8_spill] sm:$0xff] }
 0x600   :  { %5122 = vst.msk [vmem:[#allocation5 + $0x80] sm:$0xff] %vm5105_vm4, %v13450_v53  ;;  %4971 = vrot.lane.b32.xlu0 %v11724_v62, %s6409_s9  ;;  %v13453_v62 = vld [vmem:[#allocation200_spill] sm:$0xff]  ;;  %v13481_v53 = vld [vmem:[#allocation135_spill] sm:$0xff]  ;;  %s5239_s9 = sshll.u32 %s6413_s4, 4  ;;  %s5240_s9 = int_to_ptr.vmem [resolvable:$true] %s5239_s9 }
 0x601   :  { %5187 = vst.msk [vmem:[#allocation5 + $0x80] sm:$0xff] %vm5170_vm5, %v13401_v34  ;;  %v4910_v61 = vpop.permute.xlu2 %4909  ;;  %v4890_v40 = vpop.permute.xlu1 %4889 }
 0x602   :  { %5068 = vst.msk [vmem:[#allocation5 + $0xd8] sm:$0xff] %vm2087_vm0, %v4904_v36  ;;  %v4888_v50 = vpop.permute.xlu0 %4887  ;;  %v13476_v36 = vld [vmem:[#allocation211_spill] sm:$0xff] }
 0x603   :  { %5133 = vst.msk [vmem:[#allocation5 + $0xd8] sm:$0xff] %vm5105_vm4, %v13451_v55 }
 0x604   :  { %5198 = vst.msk [vmem:[#allocation5 + $0xd8] sm:$0xff] %vm5170_vm5, %v13401_v34 }
 0x605   :  { %5058 = vst.msk [vmem:[#allocation5 + $0x88] sm:$0xff] %vm2087_vm0, %v4884_v6 }
 0x606   :  { %5123 = vst.msk [vmem:[#allocation5 + $0x88] sm:$0xff] %vm5105_vm4, %v13452_v8  ;;  %v13483_v8 = vld [vmem:[#allocation102_spill] sm:$0xff] }
 0x607   :  { %5188 = vst.msk [vmem:[#allocation5 + $0x88] sm:$0xff] %vm5170_vm5, %v13401_v34 }
 0x608   :  { %5060 = vst.msk [vmem:[#allocation5 + $0x98] sm:$0xff] %vm2087_vm0, %v4888_v50 }
 0x609   :  { %5125 = vst.msk [vmem:[#allocation5 + $0x98] sm:$0xff] %vm5105_vm4, %v13453_v62  ;;  %v4916_v27 = vpop.permute.xlu2 %4915  ;;  %v4896_v58 = vpop.permute.xlu1 %4895  ;;  %v13484_v62 = vld [vmem:[#allocation20_spill] sm:$0xff] }
 0x60a   :  { %5190 = vst.msk [vmem:[#allocation5 + $0x98] sm:$0xff] %vm5170_vm5, %v13401_v34  ;;  %v4894_v46 = vpop.permute.xlu0 %4893 }
 0x60b   :  { %5071 = vst.msk [vmem:[#allocation5 + $0xf0] sm:$0xff] %vm2087_vm0, %v4910_v61 }
 0x60c   :  { %5136 = vst.msk [vmem:[#allocation5 + $0xf0] sm:$0xff] %vm5105_vm4, %v13454_v3  ;;  %v13486_v3 = vld [vmem:[#allocation27_spill] sm:$0xff] }
 0x60d   :  { %5201 = vst.msk [vmem:[#allocation5 + $0xf0] sm:$0xff] %vm5170_vm5, %v13401_v34 }
 0x60e   :  { %5061 = vst.msk [vmem:[#allocation5 + $0xa0] sm:$0xff] %vm2087_vm0, %v4890_v40  ;;  %v13482_v40 = vld [vmem:[#allocation210_spill] sm:$0xff] }
 0x60f   :  { %5126 = vst.msk [vmem:[#allocation5 + $0xa0] sm:$0xff] %vm5105_vm4, %v13455_v15 }
 0x610   :  { %5191 = vst.msk [vmem:[#allocation5 + $0xa0] sm:$0xff] %vm5170_vm5, %v13401_v34 }
 0x611   :  { %5063 = vst.msk [vmem:[#allocation5 + $0xb0] sm:$0xff] %vm2087_vm0, %v4894_v46  ;;  %v4922_v51 = vpop.permute.xlu2 %4921  ;;  %v4902_v43 = vpop.permute.xlu1 %4901 }
 0x612   :  { %5128 = vst.msk [vmem:[#allocation5 + $0xb0] sm:$0xff] %vm5105_vm4, %v13456_v60  ;;  %v4900_v56 = vpop.permute.xlu0 %4899 }
 0x613   :  { %5193 = vst.msk [vmem:[#allocation5 + $0xb0] sm:$0xff] %vm5170_vm5, %v13401_v34 }
 0x614   :  { %5074 = vst.msk [vmem:[#allocation5 + $0x108] sm:$0xff] %vm2087_vm0, %v4916_v27  ;;  %v13485_v27 = vld [vmem:[#allocation9_spill] sm:$0xff] }
 0x615   :  { %5139 = vst.msk [vmem:[#allocation5 + $0x108] sm:$0xff] %vm5105_vm4, %v13457_v57 }
 0x616   :  { %5204 = vst.msk [vmem:[#allocation5 + $0x108] sm:$0xff] %vm5170_vm5, %v13401_v34 }
 0x617   :  { %5064 = vst.msk [vmem:[#allocation5 + $0xb8] sm:$0xff] %vm2087_vm0, %v4896_v58 }
 0x618   :  { %5129 = vst.msk [vmem:[#allocation5 + $0xb8] sm:$0xff] %vm5105_vm4, %v13458_v26  ;;  %v13490_v26 = vld [vmem:[#allocation10_spill] sm:$0xff] }
 0x619   :  { %5194 = vst.msk [vmem:[#allocation5 + $0xb8] sm:$0xff] %vm5170_vm5, %v13401_v34  ;;  %v4908_v16 = vpop.permute.xlu1 %4907  ;;  %v4928_v45 = vpop.permute.xlu2 %4927 }
 0x61a   :  { %5066 = vst.msk [vmem:[#allocation5 + $0xc8] sm:$0xff] %vm2087_vm0, %v4900_v56  ;;  %v4906_v54 = vpop.permute.xlu0 %4905  ;;  %v13489_v56 = vld [vmem:[#allocation129_spill] sm:$0xff] }
 0x61b   :  { %5131 = vst.msk [vmem:[#allocation5 + $0xc8] sm:$0xff] %vm5105_vm4, %v13459_v10  ;;  %v13492_v10 = vld [vmem:[#allocation14_spill] sm:$0xff] }
 0x61c   :  { %5196 = vst.msk [vmem:[#allocation5 + $0xc8] sm:$0xff] %vm5170_vm5, %v13401_v34 }
 0x61d   :  { %5077 = vst.msk [vmem:[#allocation5 + $0x120] sm:$0xff] %vm2087_vm0, %v4922_v51  ;;  %v13487_v51 = vld [vmem:[#allocation23_spill] sm:$0xff] }
 0x61e   :  { %5142 = vst.msk [vmem:[#allocation5 + $0x120] sm:$0xff] %vm5105_vm4, %v13460_v31  ;;  %v13493_v31 = vld [vmem:[#allocation22_spill] sm:$0xff] }
 0x61f   :  { %5207 = vst.msk [vmem:[#allocation5 + $0x120] sm:$0xff] %vm5170_vm5, %v13401_v34 }
 0x620   :  { %5067 = vst.msk [vmem:[#allocation5 + $0xd0] sm:$0xff] %vm2087_vm0, %v4902_v43  ;;  %v13488_v43 = vld [vmem:[#allocation212_spill] sm:$0xff] }
 0x621   :  { %5132 = vst.msk [vmem:[#allocation5 + $0xd0] sm:$0xff] %vm5105_vm4, %v13461_v7  ;;  %v4914_v9 = vpop.permute.xlu1 %4913  ;;  %v4934_v63 = vpop.permute.xlu2 %4933  ;;  %v13494_v7 = vld [vmem:[#allocation11_spill] sm:$0xff] }
 0x622   :  { %5197 = vst.msk [vmem:[#allocation5 + $0xd0] sm:$0xff] %vm5170_vm5, %v13401_v34  ;;  %v4912_v21 = vpop.permute.xlu0 %4911 }
 0x623   :  { %5069 = vst.msk [vmem:[#allocation5 + $0xe0] sm:$0xff] %vm2087_vm0, %v4906_v54 }
 0x624   :  { %5134 = vst.msk [vmem:[#allocation5 + $0xe0] sm:$0xff] %vm5105_vm4, %v13462_v22 }
 0x625   :  { %5199 = vst.msk [vmem:[#allocation5 + $0xe0] sm:$0xff] %vm5170_vm5, %v13401_v34 }
 0x626   :  { %5080 = vst.msk [vmem:[#allocation5 + $0x138] sm:$0xff] %vm2087_vm0, %v4928_v45 }
 0x627   :  { %5145 = vst.msk [vmem:[#allocation5 + $0x138] sm:$0xff] %vm5105_vm4, %v13463_v47 }
 0x628   :  { %5210 = vst.msk [vmem:[#allocation5 + $0x138] sm:$0xff] %vm5170_vm5, %v13401_v34 }
 0x629   :  { %5070 = vst.msk [vmem:[#allocation5 + $0xe8] sm:$0xff] %vm2087_vm0, %v4908_v16  ;;  %v4920_v1 = vpop.permute.xlu1 %4919  ;;  %v4940_v29 = vpop.permute.xlu2 %4939  ;;  %v13491_v16 = vld [vmem:[#allocation33_spill] sm:$0xff] }
 0x62a   :  { %5135 = vst.msk [vmem:[#allocation5 + $0xe8] sm:$0xff] %vm5105_vm4, %v13464_v39  ;;  %v4918_v18 = vpop.permute.xlu0 %4917 }
 0x62b   :  { %5200 = vst.msk [vmem:[#allocation5 + $0xe8] sm:$0xff] %vm5170_vm5, %v13401_v34 }
 0x62c   :  { %5072 = vst.msk [vmem:[#allocation5 + $0xf8] sm:$0xff] %vm2087_vm0, %v4912_v21 }
 0x62d   :  { %5137 = vst.msk [vmem:[#allocation5 + $0xf8] sm:$0xff] %vm5105_vm4, %v13465_v0 }
 0x62e   :  { %5202 = vst.msk [vmem:[#allocation5 + $0xf8] sm:$0xff] %vm5170_vm5, %v13401_v34 }
 0x62f   :  { %5083 = vst.msk [vmem:[#allocation5 + $0x150] sm:$0xff] %vm2087_vm0, %v4934_v63 }
 0x630   :  { %5148 = vst.msk [vmem:[#allocation5 + $0x150] sm:$0xff] %vm5105_vm4, %v13466_v17 }
 0x631   :  { %5213 = vst.msk [vmem:[#allocation5 + $0x150] sm:$0xff] %vm5170_vm5, %v13401_v34  ;;  %v4926_v33 = vpop.permute.xlu1 %4925  ;;  %v4946_v24 = vpop.permute.xlu2 %4945 }
 0x632   :  { %5073 = vst.msk [vmem:[#allocation5 + $0x100] sm:$0xff] %vm2087_vm0, %v4914_v9  ;;  %v4924_v19 = vpop.permute.xlu0 %4923 }
 0x633   :  { %5138 = vst.msk [vmem:[#allocation5 + $0x100] sm:$0xff] %vm5105_vm4, %v13467_v35 }
 0x634   :  { %5203 = vst.msk [vmem:[#allocation5 + $0x100] sm:$0xff] %vm5170_vm5, %v13401_v34 }
 0x635   :  { %5075 = vst.msk [vmem:[#allocation5 + $0x110] sm:$0xff] %vm2087_vm0, %v4918_v18 }
 0x636   :  { %5140 = vst.msk [vmem:[#allocation5 + $0x110] sm:$0xff] %vm5105_vm4, %v13468_v48 }
 0x637   :  { %5205 = vst.msk [vmem:[#allocation5 + $0x110] sm:$0xff] %vm5170_vm5, %v13401_v34 }
 0x638   :  { %5086 = vst.msk [vmem:[#allocation5 + $0x168] sm:$0xff] %vm2087_vm0, %v4940_v29 }
 0x639   :  { %5151 = vst.msk [vmem:[#allocation5 + $0x168] sm:$0xff] %vm5105_vm4, %v13469_v4  ;;  %v4932_v11 = vpop.permute.xlu1 %4931  ;;  %v4952_v5 = vpop.permute.xlu2 %4951 }
 0x63a   :  { %5216 = vst.msk [vmem:[#allocation5 + $0x168] sm:$0xff] %vm5170_vm5, %v13401_v34  ;;  %v4930_v2 = vpop.permute.xlu0 %4929 }
 0x63b   :  { %5076 = vst.msk [vmem:[#allocation5 + $0x118] sm:$0xff] %vm2087_vm0, %v4920_v1 }
 0x63c   :  { %5141 = vst.msk [vmem:[#allocation5 + $0x118] sm:$0xff] %vm5105_vm4, %v13470_v25 }
 0x63d   :  { %5206 = vst.msk [vmem:[#allocation5 + $0x118] sm:$0xff] %vm5170_vm5, %v13401_v34 }
 0x63e   :  { %5078 = vst.msk [vmem:[#allocation5 + $0x128] sm:$0xff] %vm2087_vm0, %v4924_v19 }
 0x63f   :  { %5143 = vst.msk [vmem:[#allocation5 + $0x128] sm:$0xff] %vm5105_vm4, %v13471_v49 }
 0x640   :  { %5208 = vst.msk [vmem:[#allocation5 + $0x128] sm:$0xff] %vm5170_vm5, %v13401_v34 }
 0x641   :  { %5089 = vst.msk [vmem:[#allocation5 + $0x180] sm:$0xff] %vm2087_vm0, %v4946_v24  ;;  %v4938_v32 = vpop.permute.xlu1 %4937  ;;  %v4958_v38 = vpop.permute.xlu2 %4957 }
 0x642   :  { %5154 = vst.msk [vmem:[#allocation5 + $0x180] sm:$0xff] %vm5105_vm4, %v13472_v12  ;;  %v4936_v14 = vpop.permute.xlu0 %4935 }
 0x643   :  { %5219 = vst.msk [vmem:[#allocation5 + $0x180] sm:$0xff] %vm5170_vm5, %v13401_v34 }
 0x644   :  { %5079 = vst.msk [vmem:[#allocation5 + $0x130] sm:$0xff] %vm2087_vm0, %v4926_v33 }
 0x645   :  { %5144 = vst.msk [vmem:[#allocation5 + $0x130] sm:$0xff] %vm5105_vm4, %v13473_v28 }
 0x646   :  { %5209 = vst.msk [vmem:[#allocation5 + $0x130] sm:$0xff] %vm5170_vm5, %v13401_v34 }
 0x647   :  { %5081 = vst.msk [vmem:[#allocation5 + $0x140] sm:$0xff] %vm2087_vm0, %v4930_v2 }
 0x648   :  { %5146 = vst.msk [vmem:[#allocation5 + $0x140] sm:$0xff] %vm5105_vm4, %v13474_v59 }
 0x649   :  { %5211 = vst.msk [vmem:[#allocation5 + $0x140] sm:$0xff] %vm5170_vm5, %v13401_v34  ;;  %v4944_v6 = vpop.permute.xlu1 %4943  ;;  %v4964_v20 = vpop.permute.xlu2 %4963 }
 0x64a   :  { %5092 = vst.msk [vmem:[#allocation5 + $0x198] sm:$0xff] %vm2087_vm0, %v4952_v5  ;;  %v4942_v41 = vpop.permute.xlu0 %4941 }
 0x64b   :  { %5157 = vst.msk [vmem:[#allocation5 + $0x198] sm:$0xff] %vm5105_vm4, %v13475_v23 }
 0x64c   :  { %5222 = vst.msk [vmem:[#allocation5 + $0x198] sm:$0xff] %vm5170_vm5, %v13401_v34 }
 0x64d   :  { %5082 = vst.msk [vmem:[#allocation5 + $0x148] sm:$0xff] %vm2087_vm0, %v4932_v11 }
 0x64e   :  { %5147 = vst.msk [vmem:[#allocation5 + $0x148] sm:$0xff] %vm5105_vm4, %v13476_v36 }
 0x64f   :  { %5212 = vst.msk [vmem:[#allocation5 + $0x148] sm:$0xff] %vm5170_vm5, %v13401_v34 }
 0x650   :  { %5084 = vst.msk [vmem:[#allocation5 + $0x158] sm:$0xff] %vm2087_vm0, %v4936_v14 }
 0x651   :  { %5149 = vst.msk [vmem:[#allocation5 + $0x158] sm:$0xff] %vm5105_vm4, %v13477_v13  ;;  %v4950_v37 = vpop.permute.xlu1 %4949  ;;  %v4970_v50 = vpop.permute.xlu2 %4969 }
 0x652   :  { %5214 = vst.msk [vmem:[#allocation5 + $0x158] sm:$0xff] %vm5170_vm5, %v13401_v34  ;;  %v4948_v52 = vpop.permute.xlu0 %4947 }
 0x653   :  { %5095 = vst.msk [vmem:[#allocation5 + $0x1b0] sm:$0xff] %vm2087_vm0, %v4958_v38 }
 0x654   :  { %5160 = vst.msk [vmem:[#allocation5 + $0x1b0] sm:$0xff] %vm5105_vm4, %v13478_v42 }
 0x655   :  { %5225 = vst.msk [vmem:[#allocation5 + $0x1b0] sm:$0xff] %vm5170_vm5, %v13401_v34 }
 0x656   :  { %5085 = vst.msk [vmem:[#allocation5 + $0x160] sm:$0xff] %vm2087_vm0, %v4938_v32 }
 0x657   :  { %5150 = vst.msk [vmem:[#allocation5 + $0x160] sm:$0xff] %vm5105_vm4, %v13479_v30 }
 0x658   :  { %5215 = vst.msk [vmem:[#allocation5 + $0x160] sm:$0xff] %vm5170_vm5, %v13401_v34 }
 0x659   :  { %5087 = vst.msk [vmem:[#allocation5 + $0x170] sm:$0xff] %vm2087_vm0, %v4942_v41  ;;  %v4956_v55 = vpop.permute.xlu1 %4955  ;;  %v4976_v46 = vpop.permute.xlu2 %4975 }
 0x65a   :  { %5152 = vst.msk [vmem:[#allocation5 + $0x170] sm:$0xff] %vm5105_vm4, %v13480_v44  ;;  %v4954_v61 = vpop.permute.xlu0 %4953 }
 0x65b   :  { %5217 = vst.msk [vmem:[#allocation5 + $0x170] sm:$0xff] %vm5170_vm5, %v13401_v34 }
 0x65c   :  { %5098 = vst.msk [vmem:[#allocation5 + $0x1c8] sm:$0xff] %vm2087_vm0, %v4964_v20 }
 0x65d   :  { %5163 = vst.msk [vmem:[#allocation5 + $0x1c8] sm:$0xff] %vm5105_vm4, %v13481_v53 }
 0x65e   :  { %5228 = vst.msk [vmem:[#allocation5 + $0x1c8] sm:$0xff] %vm5170_vm5, %v13401_v34 }
 0x65f   :  { %5088 = vst.msk [vmem:[#allocation5 + $0x178] sm:$0xff] %vm2087_vm0, %v4944_v6 }
 0x660   :  { %5153 = vst.msk [vmem:[#allocation5 + $0x178] sm:$0xff] %vm5105_vm4, %v13482_v40 }
 0x661   :  { %5218 = vst.msk [vmem:[#allocation5 + $0x178] sm:$0xff] %vm5170_vm5, %v13401_v34  ;;  %v4962_v15 = vpop.permute.xlu1 %4961 }
 0x662   :  { %5090 = vst.msk [vmem:[#allocation5 + $0x188] sm:$0xff] %vm2087_vm0, %v4948_v52  ;;  %v4960_v58 = vpop.permute.xlu0 %4959 }
 0x663   :  { %5155 = vst.msk [vmem:[#allocation5 + $0x188] sm:$0xff] %vm5105_vm4, %v13483_v8 }
 0x664   :  { %5220 = vst.msk [vmem:[#allocation5 + $0x188] sm:$0xff] %vm5170_vm5, %v13401_v34 }
 0x665   :  { %5101 = vst.msk [vmem:[#allocation5 + $0x1e0] sm:$0xff] %vm2087_vm0, %v4970_v50 }
 0x666   :  { %5166 = vst.msk [vmem:[#allocation5 + $0x1e0] sm:$0xff] %vm5105_vm4, %v13484_v62 }
 0x667   :  { %5231 = vst.msk [vmem:[#allocation5 + $0x1e0] sm:$0xff] %vm5170_vm5, %v13401_v34 }
 0x668   :  { %5091 = vst.msk [vmem:[#allocation5 + $0x190] sm:$0xff] %vm2087_vm0, %v4950_v37 }
 0x669   :  { %5156 = vst.msk [vmem:[#allocation5 + $0x190] sm:$0xff] %vm5105_vm4, %v13485_v27  ;;  %v4968_v57 = vpop.permute.xlu1 %4967 }
 0x66a   :  { %5221 = vst.msk [vmem:[#allocation5 + $0x190] sm:$0xff] %vm5170_vm5, %v13401_v34  ;;  %v4966_v60 = vpop.permute.xlu0 %4965 }
 0x66b   :  { %5093 = vst.msk [vmem:[#allocation5 + $0x1a0] sm:$0xff] %vm2087_vm0, %v4954_v61 }
 0x66c   :  { %5158 = vst.msk [vmem:[#allocation5 + $0x1a0] sm:$0xff] %vm5105_vm4, %v13486_v3 }
 0x66d   :  { %5223 = vst.msk [vmem:[#allocation5 + $0x1a0] sm:$0xff] %vm5170_vm5, %v13401_v34 }
 0x66e   :  { %5104 = vst.msk [vmem:[#allocation5 + $0x1f8] sm:$0xff] %vm2087_vm0, %v4976_v46 }
 0x66f   :  { %5169 = vst.msk [vmem:[#allocation5 + $0x1f8] sm:$0xff] %vm5105_vm4, %v13487_v51 }
 0x670   :  { %5234 = vst.msk [vmem:[#allocation5 + $0x1f8] sm:$0xff] %vm5170_vm5, %v13401_v34 }
 0x671   :  { %5094 = vst.msk [vmem:[#allocation5 + $0x1a8] sm:$0xff] %vm2087_vm0, %v4956_v55  ;;  %v4974_v45 = vpop.permute.xlu1 %4973 }
 0x672   :  { %5159 = vst.msk [vmem:[#allocation5 + $0x1a8] sm:$0xff] %vm5105_vm4, %v13488_v43  ;;  %v4972_v54 = vpop.permute.xlu0 %4971 }
 0x673   :  { %5224 = vst.msk [vmem:[#allocation5 + $0x1a8] sm:$0xff] %vm5170_vm5, %v13401_v34 }
 0x674   :  { %5096 = vst.msk [vmem:[#allocation5 + $0x1b8] sm:$0xff] %vm2087_vm0, %v4960_v58 }
 0x675   :  { %5161 = vst.msk [vmem:[#allocation5 + $0x1b8] sm:$0xff] %vm5105_vm4, %v13489_v56 }
 0x676   :  { %5226 = vst.msk [vmem:[#allocation5 + $0x1b8] sm:$0xff] %vm5170_vm5, %v13401_v34 }
 0x677   :  { %5097 = vst.msk [vmem:[#allocation5 + $0x1c0] sm:$0xff] %vm2087_vm0, %v4962_v15 }
 0x678   :  { %5162 = vst.msk [vmem:[#allocation5 + $0x1c0] sm:$0xff] %vm5105_vm4, %v13490_v26 }
 0x679   :  { %5227 = vst.msk [vmem:[#allocation5 + $0x1c0] sm:$0xff] %vm5170_vm5, %v13401_v34 }
 0x67a   :  { %5099 = vst.msk [vmem:[#allocation5 + $0x1d0] sm:$0xff] %vm2087_vm0, %v4966_v60 }
 0x67b   :  { %5164 = vst.msk [vmem:[#allocation5 + $0x1d0] sm:$0xff] %vm5105_vm4, %v13491_v16 }
 0x67c   :  { %5229 = vst.msk [vmem:[#allocation5 + $0x1d0] sm:$0xff] %vm5170_vm5, %v13401_v34 }
 0x67d   :  { %5100 = vst.msk [vmem:[#allocation5 + $0x1d8] sm:$0xff] %vm2087_vm0, %v4968_v57 }
 0x67e   :  { %5165 = vst.msk [vmem:[#allocation5 + $0x1d8] sm:$0xff] %vm5105_vm4, %v13492_v10 }
 0x67f   :  { %5230 = vst.msk [vmem:[#allocation5 + $0x1d8] sm:$0xff] %vm5170_vm5, %v13401_v34 }
 0x680   :  { %5102 = vst.msk [vmem:[#allocation5 + $0x1e8] sm:$0xff] %vm2087_vm0, %v4972_v54 }
 0x681   :  { %5167 = vst.msk [vmem:[#allocation5 + $0x1e8] sm:$0xff] %vm5105_vm4, %v13493_v31 }
 0x682   :  { %5232 = vst.msk [vmem:[#allocation5 + $0x1e8] sm:$0xff] %vm5170_vm5, %v13401_v34 }
 0x683   :  { %5103 = vst.msk [vmem:[#allocation5 + $0x1f0] sm:$0xff] %vm2087_vm0, %v4974_v45 }
 0x684   :  { %5168 = vst.msk [vmem:[#allocation5 + $0x1f0] sm:$0xff] %vm5105_vm4, %v13494_v7 }
 0x685   :  { %5233 = vst.msk [vmem:[#allocation5 + $0x1f0] sm:$0xff] %vm5170_vm5, %v13401_v34 }
 0x686   :  { %5247 = dma.vmem_to_hbm [thread:$0]  %s5240_s9, 8192, %s5242_s29, [#allocation4], %s6407_s26, %s6407_s26, %s6408_s27  }
 0x687   :  { %6404 = dma.done.wait [#allocation4], 8192  }
 0x688   :  { %6405 = vsyncadd [#allocation4], 4294959104 }
 0x689   :  { %5252 = vsyncpa [#allocation3], 1 }
 0x68a   :  { %5253 = vsyncpa [#allocation4], 1 }

</bundles_post_ra>
